<compile_context>
chip_gen: v7x
topology: tpu7x:2x2x1
jax: 0.10.0
libtpu: 0.0.40
codegen_flags: <defaults>
</compile_context>

<pallas_src>
import jax
import jax.numpy as jnp
from jax.experimental import pallas as pl
from jax.experimental.pallas import tpu as pltpu

# MXU operand dtype (accumulation is always f32 via preferred_element_type).
MM_DTYPE = jnp.bfloat16

# Halo offsets inside the padded VMEM scratch: rows use the minimal halo of 2
# (leading, untiled dim); columns use 8 so the interior *store* is
# sublane-aligned (the shifted-window *reads* may be unaligned; that is cheap).
_PY, _PX = 2, 8


def _zero_halo(pad_ref, H, W):
    """Zero only the halo strips.  The interior is fully overwritten every grid
    step, so this stays correct per-core under 'parallel' grid semantics."""
    Hp, Wp, Ch = pad_ref.shape
    dt = pad_ref.dtype
    pad_ref[0:_PY, :, :] = jnp.zeros((_PY, Wp, Ch), dt)
    pad_ref[_PY + H:Hp, :, :] = jnp.zeros((Hp - _PY - H, Wp, Ch), dt)
    pad_ref[_PY:_PY + H, 0:_PX, :] = jnp.zeros((H, _PX, Ch), dt)
    pad_ref[_PY:_PY + H, _PX + W:Wp, :] = jnp.zeros((H, Wp - _PX - W, Ch), dt)


def _dilated_pair_matmul(pad_ref, wtap_ref, H, W, cin, cout):
    """3x3(d=1) + 3x3(d=2) conv pair as 18 per-tap matmuls accumulated in f32.

    pad_ref:  (H+2*_PY, W+2*_PX, cin) f32 scratch (interior = conv input).
    wtap_ref: (18, cin, cout) bf16 tap weights (output-side 1x1 already folded).
    Tap order: d=1 taps (ky,kx row-major) then d=2 taps (matches host packing).
    """
    HW = H * W
    acc = jnp.zeros((HW, cout), jnp.float32)
    k = 0
    for dil in (1, 2):
        for ky in range(3):
            for kx in range(3):
                y0 = _PY + dil * (ky - 1)
                x0 = _PX + dil * (kx - 1)
                win = pad_ref[y0:y0 + H, x0:x0 + W, :].reshape(HW, cin)
                acc = acc + jnp.dot(win.astype(MM_DTYPE), wtap_ref[k],
                                    preferred_element_type=jnp.float32)
                k += 1
    return acc


# ---------------------------------------------------------------------------
# fused kernel: COS_Denoise + cosine scaling + GCR + LSR + final combine
# ---------------------------------------------------------------------------
def _make_fused_kernel(H, W, C):
    HW = H * W
    C2 = 2 * C
    inv_n = 1.0 / float(HW * C)          # flattened length per stream

    def kernel(x_ref,
               a_c1w_ref, a_c1b_ref, a_wtap_ref, a_btap_ref,
               gw1_ref, gb1_ref, gw2_ref, gb2_ref,
               l_c1w_ref, l_c1b_ref, l_wtap_ref, l_btap_ref,
               out_ref, pad_a, pad_b):
        lane = jax.lax.broadcasted_iota(jnp.int32, (1, C2), 1)
        is_rgb = lane < C

        _zero_halo(pad_a, H, W)
        _zero_halo(pad_b, H, W)

        # ---------------- COS_Denoise ----------------
        # shared 1x1 conv on both streams at once (block-diag(c1w, c1w))
        x = x_ref[0]                                             # (HW, 2C) [rgb|ther]
        c1 = jnp.dot(x.astype(MM_DTYPE), a_c1w_ref[...],
                     preferred_element_type=jnp.float32) + a_c1b_ref[...]
        pad_a[_PY:_PY + H, _PX:_PX + W, :] = c1.reshape(H, W, C2)

        # conv2(d=1)+conv3(d=2) with conv4 folded -> F = [F_rgb | F_ther]
        f_cat = (_dilated_pair_matmul(pad_a, a_wtap_ref, H, W, C2, C2)
                 + a_btap_ref[...])                              # (HW, 2C) f32

        # cosine similarity between the flattened streams (two-pass centering,
        # same eps placement as F.normalize / torch reference)
        colsq = jnp.sum(f_cat * f_cat, axis=0, keepdims=True)    # (1, 2C)
        nrm_r = jnp.maximum(jnp.sqrt(jnp.sum(colsq[:, :C], axis=1, keepdims=True)), 1e-12)
        nrm_t = jnp.maximum(jnp.sqrt(jnp.sum(colsq[:, C:], axis=1, keepdims=True)), 1e-12)
        a_cat = f_cat * jnp.where(is_rgb, 1.0 / nrm_r, 1.0 / nrm_t)
        colsum = jnp.sum(a_cat, axis=0, keepdims=True)
        mean_r = jnp.sum(colsum[:, :C], axis=1, keepdims=True) * inv_n
        mean_t = jnp.sum(colsum[:, C:], axis=1, keepdims=True) * inv_n
        c_cat = a_cat - jnp.where(is_rgb, mean_r, mean_t)
        csq = jnp.sum(c_cat * c_cat, axis=0, keepdims=True)
        cn_r = jnp.sqrt(jnp.sum(csq[:, :C], axis=1, keepdims=True))
        cn_t = jnp.sqrt(jnp.sum(csq[:, C:], axis=1, keepdims=True))
        # lane-dense cross term: lanes hold [Ar*At | At*Ar] -> full sum = 2*dot
        cross = c_cat * pltpu.roll(c_cat, shift=C, axis=1)
        dot_rt = 0.5 * jnp.sum(jnp.sum(cross, axis=0, keepdims=True),
                               axis=1, keepdims=True)
        sim = 1.0 - dot_rt / (cn_r * cn_t + 1e-6)                # (1, 1)

        # F_ther += F_ther * similarity   (thermal lanes only, lane-masked)
        f_cat = f_cat * jnp.where(is_rgb, 1.0, 1.0 + sim)

        # ---------------- GlobalChannelRegulation ----------------
        avg_cat = jnp.sum(f_cat, axis=0, keepdims=True) * (1.0 / HW)   # [avg_r | avg_t]
        max_cat = jnp.max(f_cat, axis=0, keepdims=True)                # [max_r | max_t]
        feat = jnp.concatenate([avg_cat, max_cat], axis=1)             # (1, 4C)
        feat8 = jnp.broadcast_to(feat, (8, 4 * C))                     # pad M for the MXU
        h = jnp.maximum(jnp.dot(feat8, gw1_ref[...],
                                preferred_element_type=jnp.float32) + gb1_ref[...], 0.0)
        cw = (jnp.dot(h, gw2_ref[...],
                      preferred_element_type=jnp.float32) + gb2_ref[...])[0:1]  # (1, 2C)

        # X_C = F * (F * W)  for both streams in one lane-dense shot
        xc_cat = f_cat * f_cat * cw              # [X_C_rgb | X_C_ther]

        # ---------------- LocalSpatialRectification ----------------
        x1 = jnp.dot(xc_cat.astype(MM_DTYPE), l_c1w_ref[...],
                     preferred_element_type=jnp.float32) + l_c1b_ref[...]   # (HW, C)
        pad_b[_PY:_PY + H, _PX:_PX + W, :] = x1.reshape(H, W, C)
        wgt = (_dilated_pair_matmul(pad_b, l_wtap_ref, H, W, C, C2)
               + l_btap_ref[...])                # (HW, 2C) = [W_rgb | W_ther]

        # ---------------- final combination (cross pairing via lane roll) ---
        #   X_out_rgb  = F_rgb  + X_C_ther * (1 + W_ther)
        #   X_out_ther = F_ther + X_C_rgb  * (1 + W_rgb )
        out = f_cat + pltpu.roll(xc_cat, shift=C, axis=1) * \
            (1.0 + pltpu.roll(wgt, shift=C, axis=1))
        out_ref[0] = out.astype(out_ref.dtype)

    return kernel


# ---------------------------------------------------------------------------
# host-side weight preprocessing (glue): block-diag lane stacking + exact
# folding of the output-side 1x1 convs into the dilated-conv tap weights.
# ---------------------------------------------------------------------------
def _prepare_weights(params, C):
    cp, gp, lp = params["cos"], params["gcr"], params["lsr"]
    C2 = 2 * C
    z = jnp.zeros((C, C), jnp.float32)

    # COS_Denoise: shared 1x1 conv1 -> block-diag (2C, 2C)
    c1w = cp["c1_w"]
    a_c1w = jnp.concatenate(
        [jnp.concatenate([c1w, z], axis=1),
         jnp.concatenate([z, c1w], axis=1)], axis=0)
    a_c1b = jnp.concatenate([cp["c1_b"], cp["c1_b"]]).reshape(1, C2)

    # d=1 taps first, then d=2 (matches the kernel's tap loop); fold conv4
    # (exact: no nonlinearity between the dilated sum and the 1x1), then
    # block-diagonalize per tap so [rgb|ther] lanes share the weights.
    w_taps = jnp.concatenate([cp["c2_w"].reshape(9, C, C),
                              cp["c3_w"].reshape(9, C, C)], axis=0)     # (18, C, C)
    w_eff = jnp.einsum("kio,od->kid", w_taps, cp["c4_w"])
    z18 = jnp.zeros((18, C, C), jnp.float32)
    a_wtap = jnp.concatenate(
        [jnp.concatenate([w_eff, z18], axis=2),
         jnp.concatenate([z18, w_eff], axis=2)], axis=1)                # (18, 2C, 2C)
    b_eff = (cp["c2_b"] + cp["c3_b"]) @ cp["c4_w"] + cp["c4_b"]
    a_btap = jnp.concatenate([b_eff, b_eff]).reshape(1, C2)

    # GlobalChannelRegulation MLP (kept f32; tiny)
    gw1, gb1 = gp["w1"], gp["b1"].reshape(1, C)
    gw2, gb2 = gp["w2"], gp["b2"].reshape(1, C2)

    # LocalSpatialRectification: conv3 (C -> 2C) folded into the tap weights
    l_c1w, l_c1b = lp["c1_w"], lp["c1_b"].reshape(1, C)
    lw_taps = jnp.concatenate([lp["c21_w"].reshape(9, C, C),
                               lp["c22_w"].reshape(9, C, C)], axis=0)
    l_wtap = jnp.einsum("kio,od->kid", lw_taps, lp["c3_w"])             # (18, C, 2C)
    l_btap = ((lp["c21_b"] + lp["c22_b"]) @ lp["c3_w"]
              + lp["c3_b"]).reshape(1, C2)

    return (a_c1w.astype(MM_DTYPE), a_c1b, a_wtap.astype(MM_DTYPE), a_btap,
            gw1, gb1, gw2, gb2,
            l_c1w.astype(MM_DTYPE), l_c1b, l_wtap.astype(MM_DTYPE), l_btap)


# ---------------------------------------------------------------------------
# full forward pass
# ---------------------------------------------------------------------------
def cross_feature_regulation(F_rgb_nchw, F_ther_nchw, params):
    B, C, H, W = F_rgb_nchw.shape
    assert (2 * C) % 128 == 0, "needs 2C to be a multiple of 128 lanes (C=64)"
    HW = H * W
    C2 = 2 * C

    # NCHW -> NHWC, lane-concat the two streams, flatten spatial (host glue)
    fr = jnp.transpose(F_rgb_nchw, (0, 2, 3, 1))
    ft = jnp.transpose(F_ther_nchw, (0, 2, 3, 1))
    x_in = jnp.concatenate([fr, ft], axis=-1).reshape(B, HW, C2)

    weights = _prepare_weights(params, C)

    img_spec = pl.BlockSpec((1, HW, C2), lambda b: (b, 0, 0))

    def wspec(a):
        nd = a.ndim
        return pl.BlockSpec(a.shape, lambda b, _n=nd: (0,) * _n)

    pad_a_shape = (H + 2 * _PY, W + 2 * _PX, C2)
    pad_b_shape = (H + 2 * _PY, W + 2 * _PX, C)

    out_cat = pl.pallas_call(
        _make_fused_kernel(H, W, C),
        grid=(B,),
        in_specs=[img_spec] + [wspec(w) for w in weights],
        out_specs=img_spec,
        out_shape=jax.ShapeDtypeStruct((B, HW, C2), jnp.float32),
        scratch_shapes=[pltpu.VMEM(pad_a_shape, jnp.float32),
                        pltpu.VMEM(pad_b_shape, jnp.float32)],
        compiler_params=pltpu.CompilerParams(
            dimension_semantics=("parallel",),
            vmem_limit_bytes=32 * 1024 * 1024),
    )(x_in, *weights)

    out_cat = out_cat.reshape(B, H, W, C2)
    out_r = jnp.transpose(out_cat[..., :C], (0, 3, 1, 2))       # back to NCHW
    out_t = jnp.transpose(out_cat[..., C:], (0, 3, 1, 2))
    return out_r, out_t


# ---------------------------------------------------------------------------
# pure-JAX f32 reference (mirrors the PyTorch module) for validation
# ---------------------------------------------------------------------------
def _conv3x3(x, w_hwio, b, dil):
    out = jax.lax.conv_general_dilated(
        x, w_hwio, window_strides=(1, 1),
        padding=[(dil, dil), (dil, dil)],
        rhs_dilation=(dil, dil),
        dimension_numbers=("NHWC", "HWIO", "NHWC"),
        precision=jax.lax.Precision.HIGHEST)
    return out + b


def reference_forward(F_rgb_nchw, F_ther_nchw, params):
    cp, gp, lp = params["cos"], params["gcr"], params["lsr"]
    B, C, H, W = F_rgb_nchw.shape
    hp = jax.lax.Precision.HIGHEST
    fr = jnp.transpose(F_rgb_nchw, (0, 2, 3, 1))
    ft = jnp.transpose(F_ther_nchw, (0, 2, 3, 1))

    def cos_branch(x):
        x1 = jnp.einsum("bhwc,cd->bhwd", x, cp["c1_w"], precision=hp) + cp["c1_b"]
        y = (_conv3x3(x1, cp["c2_w"], cp["c2_b"], 1)
             + _conv3x3(x1, cp["c3_w"], cp["c3_b"], 2))
        return jnp.einsum("bhwc,cd->bhwd", y, cp["c4_w"], precision=hp) + cp["c4_b"]

    Fr, Ft = cos_branch(fr), cos_branch(ft)
    Ar, At = Fr.reshape(B, -1), Ft.reshape(B, -1)
    Ar = Ar / jnp.maximum(jnp.linalg.norm(Ar, axis=1, keepdims=True), 1e-12)
    At = At / jnp.maximum(jnp.linalg.norm(At, axis=1, keepdims=True), 1e-12)
    Arc = Ar - Ar.mean(axis=1, keepdims=True)
    Atc = At - At.mean(axis=1, keepdims=True)
    sim = 1.0 - jnp.sum(Arc * Atc, axis=1) / (
        jnp.linalg.norm(Arc, axis=1) * jnp.linalg.norm(Atc, axis=1) + 1e-6)
    Ft = Ft * (1.0 + sim[:, None, None, None])

    comb = jnp.concatenate([Fr, Ft], axis=-1)
    feat = jnp.concatenate([comb.mean(axis=(1, 2)), comb.max(axis=(1, 2))], axis=-1)
    h = jax.nn.relu(feat @ gp["w1"] + gp["b1"])
    cw = h @ gp["w2"] + gp["b2"]
    XCr = Fr * Fr * cw[:, None, None, :C]
    XCt = Ft * Ft * cw[:, None, None, C:]

    combx = jnp.concatenate([XCr, XCt], axis=-1)
    x1 = jnp.einsum("bhwc,cd->bhwd", combx, lp["c1_w"], precision=hp) + lp["c1_b"]
    y = (_conv3x3(x1, lp["c21_w"], lp["c21_b"], 1)
         + _conv3x3(x1, lp["c22_w"], lp["c22_b"], 2))
    wgt = jnp.einsum("bhwc,cd->bhwd", y, lp["c3_w"], precision=hp) + lp["c3_b"]
    Wr, Wt = wgt[..., :C], wgt[..., C:]
    out_r = Fr + Wt * XCt + XCt
    out_t = Ft + Wr * XCr + XCr
    return (jnp.transpose(out_r, (0, 3, 1, 2)),
            jnp.transpose(out_t, (0, 3, 1, 2)))


# ---------------------------------------------------------------------------
# deterministic synthetic parameter initialization
# ---------------------------------------------------------------------------
def init_params(key, c):
    keys = iter(jax.random.split(key, 20))

    def w(shape, scale=0.1):
        return scale * jax.random.normal(next(keys), shape, jnp.float32)

    return {
        "cos": {
            "c1_w": w((c, c)), "c1_b": w((c,)),
            "c2_w": w((3, 3, c, c)), "c2_b": w((c,)),
            "c3_w": w((3, 3, c, c)), "c3_b": w((c,)),
            "c4_w": w((c, c)), "c4_b": w((c,)),
        },
        "gcr": {
            "w1": w((4 * c, c)), "b1": w((c,)),
            "w2": w((c, 2 * c)), "b2": w((2 * c,)),
        },
        "lsr": {
            "c1_w": w((2 * c, c)), "c1_b": w((c,)),
            "c21_w": w((3, 3, c, c)), "c21_b": w((c,)),
            "c22_w": w((3, 3, c, c)), "c22_b": w((c,)),
            "c3_w": w((c, 2 * c)), "c3_b": w((2 * c,)),
        },
    }


if __name__ == "__main__":
    # C=64 matches the COS_Denoise default (hard-coded in the reference module)
    # and gives a lane-dense 2C = 128 working width.
    B, C, H, W = 2, 64, 16, 16
    key = jax.random.PRNGKey(0)
    k1, k2, kp = jax.random.split(key, 3)
    F_rgb = jax.random.normal(k1, (B, C, H, W), jnp.float32)
    F_ther = jax.random.normal(k2, (B, C, H, W), jnp.float32)
    params = init_params(kp, C)

    fwd = jax.jit(cross_feature_regulation)
    out_rgb, out_ther = fwd(F_rgb, F_ther, params)
    jax.block_until_ready((out_rgb, out_ther))
    assert out_rgb.shape == (B, C, H, W) and out_ther.shape == (B, C, H, W)
    assert bool(jnp.isfinite(out_rgb).all()) and bool(jnp.isfinite(out_ther).all())

    # validate against the pure-JAX f32 reference (bf16 MXU path -> loose tol)
    ref_rgb, ref_ther = jax.jit(reference_forward)(F_rgb, F_ther, params)
    scale = float(jnp.maximum(jnp.max(jnp.abs(ref_rgb)), jnp.max(jnp.abs(ref_ther))))
    err = float(jnp.maximum(jnp.max(jnp.abs(out_rgb - ref_rgb)),
                            jnp.max(jnp.abs(out_ther - ref_ther)))) / max(scale, 1e-6)
    assert err < 0.1, f"kernel/reference mismatch: normalized max err {err:.4f}"
    print("KERNEL_OK")
</pallas_src>

<mosaic_0001>
module attributes {stable_mosaic.version = 11 : i64} {
  func.func @kernel(%arg0: i32, %arg1: memref<1x256x128xf32, #tpu.memory_space<vmem>>, %arg2: memref<128x128xbf16, #tpu.memory_space<vmem>>, %arg3: memref<1x128xf32, #tpu.memory_space<vmem>>, %arg4: memref<18x128x128xbf16, #tpu.memory_space<vmem>>, %arg5: memref<1x128xf32, #tpu.memory_space<vmem>>, %arg6: memref<256x64xf32, #tpu.memory_space<vmem>>, %arg7: memref<1x64xf32, #tpu.memory_space<vmem>>, %arg8: memref<64x128xf32, #tpu.memory_space<vmem>>, %arg9: memref<1x128xf32, #tpu.memory_space<vmem>>, %arg10: memref<128x64xbf16, #tpu.memory_space<vmem>>, %arg11: memref<1x64xf32, #tpu.memory_space<vmem>>, %arg12: memref<18x64x128xbf16, #tpu.memory_space<vmem>>, %arg13: memref<1x128xf32, #tpu.memory_space<vmem>>, %arg14: memref<1x256x128xf32, #tpu.memory_space<vmem>>, %arg15: memref<20x32x128xf32, #tpu.memory_space<vmem>>, %arg16: memref<20x32x64xf32, #tpu.memory_space<vmem>>) attributes {dimension_semantics = [#tpu.dimension_semantics<parallel>], iteration_bounds = array<i64: 2>, scalar_prefetch = 0 : i64, scratch_operands = 2 : i64, tpu.core_type = #tpu.core_type<tc>, window_params = [{transform_indices = @transform_0, window_bounds = array<i64: 1, 256, 128>}, {pipeline_mode = #tpu.pipeline_mode<synchronous>, transform_indices = @transform_1, window_bounds = array<i64: 128, 128>}, {pipeline_mode = #tpu.pipeline_mode<synchronous>, transform_indices = @transform_2, window_bounds = array<i64: 1, 128>}, {pipeline_mode = #tpu.pipeline_mode<synchronous>, transform_indices = @transform_3, window_bounds = array<i64: 18, 128, 128>}, {pipeline_mode = #tpu.pipeline_mode<synchronous>, transform_indices = @transform_4, window_bounds = array<i64: 1, 128>}, {pipeline_mode = #tpu.pipeline_mode<synchronous>, transform_indices = @transform_5, window_bounds = array<i64: 256, 64>}, {pipeline_mode = #tpu.pipeline_mode<synchronous>, transform_indices = @transform_6, window_bounds = array<i64: 1, 64>}, {pipeline_mode = #tpu.pipeline_mode<synchronous>, transform_indices = @transform_7, window_bounds = array<i64: 64, 128>}, {pipeline_mode = #tpu.pipeline_mode<synchronous>, transform_indices = @transform_8, window_bounds = array<i64: 1, 128>}, {pipeline_mode = #tpu.pipeline_mode<synchronous>, transform_indices = @transform_9, window_bounds = array<i64: 128, 64>}, {pipeline_mode = #tpu.pipeline_mode<synchronous>, transform_indices = @transform_10, window_bounds = array<i64: 1, 64>}, {pipeline_mode = #tpu.pipeline_mode<synchronous>, transform_indices = @transform_11, window_bounds = array<i64: 18, 64, 128>}, {pipeline_mode = #tpu.pipeline_mode<synchronous>, transform_indices = @transform_12, window_bounds = array<i64: 1, 128>}, {transform_indices = @transform_13, window_bounds = array<i64: 1, 256, 128>}]} {
    %0 = tpu.iota {dimensions = array<i32: 1>} : vector<1x128xi32>
    %c64_i32 = arith.constant 64 : i32
    %1 = vector.broadcast %c64_i32 : i32 to vector<1x128xi32>
    %2 = arith.cmpi slt, %0, %1 : vector<1x128xi32>
    %cst = arith.constant 0.000000e+00 : f32
    %3 = vector.broadcast %cst : f32 to vector<2x32x128xf32>
    %c0 = arith.constant 0 : index
    %c0_0 = arith.constant 0 : index
    %c0_1 = arith.constant 0 : index
    %4 = vector.load %arg15[%c0, %c0_0, %c0_1] : memref<20x32x128xf32, #tpu.memory_space<vmem>>, vector<2x32x128xf32>
    tpu.vector_store %arg15[%c0, %c0_0, %c0_1], %3 {strides = array<i32>} : memref<20x32x128xf32, #tpu.memory_space<vmem>>, vector<2x32x128xf32>,
    %cst_2 = arith.constant 0.000000e+00 : f32
    %5 = vector.broadcast %cst_2 : f32 to vector<2x32x128xf32>
    %c18 = arith.constant 18 : index
    %c0_3 = arith.constant 0 : index
    %c0_4 = arith.constant 0 : index
    %6 = vector.load %arg15[%c18, %c0_3, %c0_4] : memref<20x32x128xf32, #tpu.memory_space<vmem>>, vector<2x32x128xf32>
    tpu.vector_store %arg15[%c18, %c0_3, %c0_4], %5 {strides = array<i32>} : memref<20x32x128xf32, #tpu.memory_space<vmem>>, vector<2x32x128xf32>,
    %cst_5 = arith.constant 0.000000e+00 : f32
    %7 = vector.broadcast %cst_5 : f32 to vector<16x8x128xf32>
    %c2 = arith.constant 2 : index
    %c0_6 = arith.constant 0 : index
    %c0_7 = arith.constant 0 : index
    %8 = vector.load %arg15[%c2, %c0_6, %c0_7] : memref<20x32x128xf32, #tpu.memory_space<vmem>>, vector<16x8x128xf32>
    tpu.vector_store %arg15[%c2, %c0_6, %c0_7], %7 {strides = array<i32>} : memref<20x32x128xf32, #tpu.memory_space<vmem>>, vector<16x8x128xf32>,
    %cst_8 = arith.constant 0.000000e+00 : f32
    %9 = vector.broadcast %cst_8 : f32 to vector<16x8x128xf32>
    %c2_9 = arith.constant 2 : index
    %c24 = arith.constant 24 : index
    %c0_10 = arith.constant 0 : index
    %10 = vector.load %arg15[%c2_9, %c24, %c0_10] : memref<20x32x128xf32, #tpu.memory_space<vmem>>, vector<16x8x128xf32>
    tpu.vector_store %arg15[%c2_9, %c24, %c0_10], %9 {strides = array<i32>} : memref<20x32x128xf32, #tpu.memory_space<vmem>>, vector<16x8x128xf32>,
    %cst_11 = arith.constant 0.000000e+00 : f32
    %11 = vector.broadcast %cst_11 : f32 to vector<2x32x64xf32>
    %c0_12 = arith.constant 0 : index
    %c0_13 = arith.constant 0 : index
    %c0_14 = arith.constant 0 : index
    %12 = vector.load %arg16[%c0_12, %c0_13, %c0_14] : memref<20x32x64xf32, #tpu.memory_space<vmem>>, vector<2x32x64xf32>
    tpu.vector_store %arg16[%c0_12, %c0_13, %c0_14], %11 {strides = array<i32>} : memref<20x32x64xf32, #tpu.memory_space<vmem>>, vector<2x32x64xf32>,
    %cst_15 = arith.constant 0.000000e+00 : f32
    %13 = vector.broadcast %cst_15 : f32 to vector<2x32x64xf32>
    %c18_16 = arith.constant 18 : index
    %c0_17 = arith.constant 0 : index
    %c0_18 = arith.constant 0 : index
    %14 = vector.load %arg16[%c18_16, %c0_17, %c0_18] : memref<20x32x64xf32, #tpu.memory_space<vmem>>, vector<2x32x64xf32>
    tpu.vector_store %arg16[%c18_16, %c0_17, %c0_18], %13 {strides = array<i32>} : memref<20x32x64xf32, #tpu.memory_space<vmem>>, vector<2x32x64xf32>,
    %cst_19 = arith.constant 0.000000e+00 : f32
    %15 = vector.broadcast %cst_19 : f32 to vector<16x8x64xf32>
    %c2_20 = arith.constant 2 : index
    %c0_21 = arith.constant 0 : index
    %c0_22 = arith.constant 0 : index
    %16 = vector.load %arg16[%c2_20, %c0_21, %c0_22] : memref<20x32x64xf32, #tpu.memory_space<vmem>>, vector<16x8x64xf32>
    tpu.vector_store %arg16[%c2_20, %c0_21, %c0_22], %15 {strides = array<i32>} : memref<20x32x64xf32, #tpu.memory_space<vmem>>, vector<16x8x64xf32>,
    %cst_23 = arith.constant 0.000000e+00 : f32
    %17 = vector.broadcast %cst_23 : f32 to vector<16x8x64xf32>
    %c2_24 = arith.constant 2 : index
    %c24_25 = arith.constant 24 : index
    %c0_26 = arith.constant 0 : index
    %18 = vector.load %arg16[%c2_24, %c24_25, %c0_26] : memref<20x32x64xf32, #tpu.memory_space<vmem>>, vector<16x8x64xf32>
    tpu.vector_store %arg16[%c2_24, %c24_25, %c0_26], %17 {strides = array<i32>} : memref<20x32x64xf32, #tpu.memory_space<vmem>>, vector<16x8x64xf32>,
    %c0_27 = arith.constant 0 : index
    %c0_28 = arith.constant 0 : index
    %c0_29 = arith.constant 0 : index
    %19 = vector.load %arg1[%c0_27, %c0_28, %c0_29] : memref<1x256x128xf32, #tpu.memory_space<vmem>>, vector<1x256x128xf32>
    %20 = vector.shape_cast %19 : vector<1x256x128xf32> to vector<256x128xf32>
    %21 = arith.truncf %20 : vector<256x128xf32> to vector<256x128xbf16>
    %c0_30 = arith.constant 0 : index
    %c0_31 = arith.constant 0 : index
    %22 = vector.load %arg2[%c0_30, %c0_31] : memref<128x128xbf16, #tpu.memory_space<vmem>>, vector<128x128xbf16>
    %cst_32 = arith.constant dense<0.000000e+00> : vector<256x128xf32>
    %23 = tpu.matmul %21, %22, %cst_32 {dimension_numbers = #tpu.dot_dimension_numbers<[1], [0], [0], [1], [0, 0, 1, 1], [], []>} : vector<256x128xbf16>, vector<128x128xbf16>, vector<256x128xf32> -> vector<256x128xf32>
    %c0_33 = arith.constant 0 : index
    %c0_34 = arith.constant 0 : index
    %24 = vector.load %arg3[%c0_33, %c0_34] : memref<1x128xf32, #tpu.memory_space<vmem>>, vector<1x128xf32>
    %25 = vector.broadcast %24 : vector<1x128xf32> to vector<256x128xf32>
    %26 = arith.addf %23, %25 : vector<256x128xf32>
    %27 = vector.shape_cast %26 : vector<256x128xf32> to vector<16x16x128xf32>
    %c2_35 = arith.constant 2 : index
    %c8 = arith.constant 8 : index
    %c0_36 = arith.constant 0 : index
    %28 = vector.load %arg15[%c2_35, %c8, %c0_36] : memref<20x32x128xf32, #tpu.memory_space<vmem>>, vector<16x16x128xf32>
    tpu.vector_store %arg15[%c2_35, %c8, %c0_36], %27 {strides = array<i32>} : memref<20x32x128xf32, #tpu.memory_space<vmem>>, vector<16x16x128xf32>,
    %cst_37 = arith.constant 0.000000e+00 : f32
    %29 = vector.broadcast %cst_37 : f32 to vector<256x128xf32>
    %c1 = arith.constant 1 : index
    %c7 = arith.constant 7 : index
    %c0_38 = arith.constant 0 : index
    %30 = vector.load %arg15[%c1, %c7, %c0_38] : memref<20x32x128xf32, #tpu.memory_space<vmem>>, vector<16x16x128xf32>
    %31 = vector.shape_cast %30 : vector<16x16x128xf32> to vector<256x128xf32>
    %32 = arith.truncf %31 : vector<256x128xf32> to vector<256x128xbf16>
    %c0_39 = arith.constant 0 : index
    %c0_40 = arith.constant 0 : index
    %c0_41 = arith.constant 0 : index
    %33 = vector.load %arg4[%c0_39, %c0_40, %c0_41] : memref<18x128x128xbf16, #tpu.memory_space<vmem>>, vector<1x128x128xbf16>
    %34 = vector.shape_cast %33 : vector<1x128x128xbf16> to vector<128x128xbf16>
    %cst_42 = arith.constant dense<0.000000e+00> : vector<256x128xf32>
    %35 = tpu.matmul %32, %34, %cst_42 {dimension_numbers = #tpu.dot_dimension_numbers<[1], [0], [0], [1], [0, 0, 1, 1], [], []>} : vector<256x128xbf16>, vector<128x128xbf16>, vector<256x128xf32> -> vector<256x128xf32>
    %36 = arith.addf %29, %35 : vector<256x128xf32>
    %c1_43 = arith.constant 1 : index
    %c8_44 = arith.constant 8 : index
    %c0_45 = arith.constant 0 : index
    %37 = vector.load %arg15[%c1_43, %c8_44, %c0_45] : memref<20x32x128xf32, #tpu.memory_space<vmem>>, vector<16x16x128xf32>
    %38 = vector.shape_cast %37 : vector<16x16x128xf32> to vector<256x128xf32>
    %39 = arith.truncf %38 : vector<256x128xf32> to vector<256x128xbf16>
    %c1_46 = arith.constant 1 : index
    %c0_47 = arith.constant 0 : index
    %c0_48 = arith.constant 0 : index
    %40 = vector.load %arg4[%c1_46, %c0_47, %c0_48] : memref<18x128x128xbf16, #tpu.memory_space<vmem>>, vector<1x128x128xbf16>
    %41 = vector.shape_cast %40 : vector<1x128x128xbf16> to vector<128x128xbf16>
    %cst_49 = arith.constant dense<0.000000e+00> : vector<256x128xf32>
    %42 = tpu.matmul %39, %41, %cst_49 {dimension_numbers = #tpu.dot_dimension_numbers<[1], [0], [0], [1], [0, 0, 1, 1], [], []>} : vector<256x128xbf16>, vector<128x128xbf16>, vector<256x128xf32> -> vector<256x128xf32>
    %43 = arith.addf %36, %42 : vector<256x128xf32>
    %c1_50 = arith.constant 1 : index
    %c9 = arith.constant 9 : index
    %c0_51 = arith.constant 0 : index
    %44 = vector.load %arg15[%c1_50, %c9, %c0_51] : memref<20x32x128xf32, #tpu.memory_space<vmem>>, vector<16x16x128xf32>
    %45 = vector.shape_cast %44 : vector<16x16x128xf32> to vector<256x128xf32>
    %46 = arith.truncf %45 : vector<256x128xf32> to vector<256x128xbf16>
    %c2_52 = arith.constant 2 : index
    %c0_53 = arith.constant 0 : index
    %c0_54 = arith.constant 0 : index
    %47 = vector.load %arg4[%c2_52, %c0_53, %c0_54] : memref<18x128x128xbf16, #tpu.memory_space<vmem>>, vector<1x128x128xbf16>
    %48 = vector.shape_cast %47 : vector<1x128x128xbf16> to vector<128x128xbf16>
    %cst_55 = arith.constant dense<0.000000e+00> : vector<256x128xf32>
    %49 = tpu.matmul %46, %48, %cst_55 {dimension_numbers = #tpu.dot_dimension_numbers<[1], [0], [0], [1], [0, 0, 1, 1], [], []>} : vector<256x128xbf16>, vector<128x128xbf16>, vector<256x128xf32> -> vector<256x128xf32>
    %50 = arith.addf %43, %49 : vector<256x128xf32>
    %c2_56 = arith.constant 2 : index
    %c7_57 = arith.constant 7 : index
    %c0_58 = arith.constant 0 : index
    %51 = vector.load %arg15[%c2_56, %c7_57, %c0_58] : memref<20x32x128xf32, #tpu.memory_space<vmem>>, vector<16x16x128xf32>
    %52 = vector.shape_cast %51 : vector<16x16x128xf32> to vector<256x128xf32>
    %53 = arith.truncf %52 : vector<256x128xf32> to vector<256x128xbf16>
    %c3 = arith.constant 3 : index
    %c0_59 = arith.constant 0 : index
    %c0_60 = arith.constant 0 : index
    %54 = vector.load %arg4[%c3, %c0_59, %c0_60] : memref<18x128x128xbf16, #tpu.memory_space<vmem>>, vector<1x128x128xbf16>
    %55 = vector.shape_cast %54 : vector<1x128x128xbf16> to vector<128x128xbf16>
    %cst_61 = arith.constant dense<0.000000e+00> : vector<256x128xf32>
    %56 = tpu.matmul %53, %55, %cst_61 {dimension_numbers = #tpu.dot_dimension_numbers<[1], [0], [0], [1], [0, 0, 1, 1], [], []>} : vector<256x128xbf16>, vector<128x128xbf16>, vector<256x128xf32> -> vector<256x128xf32>
    %57 = arith.addf %50, %56 : vector<256x128xf32>
    %c2_62 = arith.constant 2 : index
    %c8_63 = arith.constant 8 : index
    %c0_64 = arith.constant 0 : index
    %58 = vector.load %arg15[%c2_62, %c8_63, %c0_64] : memref<20x32x128xf32, #tpu.memory_space<vmem>>, vector<16x16x128xf32>
    %59 = vector.shape_cast %58 : vector<16x16x128xf32> to vector<256x128xf32>
    %60 = arith.truncf %59 : vector<256x128xf32> to vector<256x128xbf16>
    %c4 = arith.constant 4 : index
    %c0_65 = arith.constant 0 : index
    %c0_66 = arith.constant 0 : index
    %61 = vector.load %arg4[%c4, %c0_65, %c0_66] : memref<18x128x128xbf16, #tpu.memory_space<vmem>>, vector<1x128x128xbf16>
    %62 = vector.shape_cast %61 : vector<1x128x128xbf16> to vector<128x128xbf16>
    %cst_67 = arith.constant dense<0.000000e+00> : vector<256x128xf32>
    %63 = tpu.matmul %60, %62, %cst_67 {dimension_numbers = #tpu.dot_dimension_numbers<[1], [0], [0], [1], [0, 0, 1, 1], [], []>} : vector<256x128xbf16>, vector<128x128xbf16>, vector<256x128xf32> -> vector<256x128xf32>
    %64 = arith.addf %57, %63 : vector<256x128xf32>
    %c2_68 = arith.constant 2 : index
    %c9_69 = arith.constant 9 : index
    %c0_70 = arith.constant 0 : index
    %65 = vector.load %arg15[%c2_68, %c9_69, %c0_70] : memref<20x32x128xf32, #tpu.memory_space<vmem>>, vector<16x16x128xf32>
    %66 = vector.shape_cast %65 : vector<16x16x128xf32> to vector<256x128xf32>
    %67 = arith.truncf %66 : vector<256x128xf32> to vector<256x128xbf16>
    %c5 = arith.constant 5 : index
    %c0_71 = arith.constant 0 : index
    %c0_72 = arith.constant 0 : index
    %68 = vector.load %arg4[%c5, %c0_71, %c0_72] : memref<18x128x128xbf16, #tpu.memory_space<vmem>>, vector<1x128x128xbf16>
    %69 = vector.shape_cast %68 : vector<1x128x128xbf16> to vector<128x128xbf16>
    %cst_73 = arith.constant dense<0.000000e+00> : vector<256x128xf32>
    %70 = tpu.matmul %67, %69, %cst_73 {dimension_numbers = #tpu.dot_dimension_numbers<[1], [0], [0], [1], [0, 0, 1, 1], [], []>} : vector<256x128xbf16>, vector<128x128xbf16>, vector<256x128xf32> -> vector<256x128xf32>
    %71 = arith.addf %64, %70 : vector<256x128xf32>
    %c3_74 = arith.constant 3 : index
    %c7_75 = arith.constant 7 : index
    %c0_76 = arith.constant 0 : index
    %72 = vector.load %arg15[%c3_74, %c7_75, %c0_76] : memref<20x32x128xf32, #tpu.memory_space<vmem>>, vector<16x16x128xf32>
    %73 = vector.shape_cast %72 : vector<16x16x128xf32> to vector<256x128xf32>
    %74 = arith.truncf %73 : vector<256x128xf32> to vector<256x128xbf16>
    %c6 = arith.constant 6 : index
    %c0_77 = arith.constant 0 : index
    %c0_78 = arith.constant 0 : index
    %75 = vector.load %arg4[%c6, %c0_77, %c0_78] : memref<18x128x128xbf16, #tpu.memory_space<vmem>>, vector<1x128x128xbf16>
    %76 = vector.shape_cast %75 : vector<1x128x128xbf16> to vector<128x128xbf16>
    %cst_79 = arith.constant dense<0.000000e+00> : vector<256x128xf32>
    %77 = tpu.matmul %74, %76, %cst_79 {dimension_numbers = #tpu.dot_dimension_numbers<[1], [0], [0], [1], [0, 0, 1, 1], [], []>} : vector<256x128xbf16>, vector<128x128xbf16>, vector<256x128xf32> -> vector<256x128xf32>
    %78 = arith.addf %71, %77 : vector<256x128xf32>
    %c3_80 = arith.constant 3 : index
    %c8_81 = arith.constant 8 : index
    %c0_82 = arith.constant 0 : index
    %79 = vector.load %arg15[%c3_80, %c8_81, %c0_82] : memref<20x32x128xf32, #tpu.memory_space<vmem>>, vector<16x16x128xf32>
    %80 = vector.shape_cast %79 : vector<16x16x128xf32> to vector<256x128xf32>
    %81 = arith.truncf %80 : vector<256x128xf32> to vector<256x128xbf16>
    %c7_83 = arith.constant 7 : index
    %c0_84 = arith.constant 0 : index
    %c0_85 = arith.constant 0 : index
    %82 = vector.load %arg4[%c7_83, %c0_84, %c0_85] : memref<18x128x128xbf16, #tpu.memory_space<vmem>>, vector<1x128x128xbf16>
    %83 = vector.shape_cast %82 : vector<1x128x128xbf16> to vector<128x128xbf16>
    %cst_86 = arith.constant dense<0.000000e+00> : vector<256x128xf32>
    %84 = tpu.matmul %81, %83, %cst_86 {dimension_numbers = #tpu.dot_dimension_numbers<[1], [0], [0], [1], [0, 0, 1, 1], [], []>} : vector<256x128xbf16>, vector<128x128xbf16>, vector<256x128xf32> -> vector<256x128xf32>
    %85 = arith.addf %78, %84 : vector<256x128xf32>
    %c3_87 = arith.constant 3 : index
    %c9_88 = arith.constant 9 : index
    %c0_89 = arith.constant 0 : index
    %86 = vector.load %arg15[%c3_87, %c9_88, %c0_89] : memref<20x32x128xf32, #tpu.memory_space<vmem>>, vector<16x16x128xf32>
    %87 = vector.shape_cast %86 : vector<16x16x128xf32> to vector<256x128xf32>
    %88 = arith.truncf %87 : vector<256x128xf32> to vector<256x128xbf16>
    %c8_90 = arith.constant 8 : index
    %c0_91 = arith.constant 0 : index
    %c0_92 = arith.constant 0 : index
    %89 = vector.load %arg4[%c8_90, %c0_91, %c0_92] : memref<18x128x128xbf16, #tpu.memory_space<vmem>>, vector<1x128x128xbf16>
    %90 = vector.shape_cast %89 : vector<1x128x128xbf16> to vector<128x128xbf16>
    %cst_93 = arith.constant dense<0.000000e+00> : vector<256x128xf32>
    %91 = tpu.matmul %88, %90, %cst_93 {dimension_numbers = #tpu.dot_dimension_numbers<[1], [0], [0], [1], [0, 0, 1, 1], [], []>} : vector<256x128xbf16>, vector<128x128xbf16>, vector<256x128xf32> -> vector<256x128xf32>
    %92 = arith.addf %85, %91 : vector<256x128xf32>
    %c0_94 = arith.constant 0 : index
    %c6_95 = arith.constant 6 : index
    %c0_96 = arith.constant 0 : index
    %93 = vector.load %arg15[%c0_94, %c6_95, %c0_96] : memref<20x32x128xf32, #tpu.memory_space<vmem>>, vector<16x16x128xf32>
    %94 = vector.shape_cast %93 : vector<16x16x128xf32> to vector<256x128xf32>
    %95 = arith.truncf %94 : vector<256x128xf32> to vector<256x128xbf16>
    %c9_97 = arith.constant 9 : index
    %c0_98 = arith.constant 0 : index
    %c0_99 = arith.constant 0 : index
    %96 = vector.load %arg4[%c9_97, %c0_98, %c0_99] : memref<18x128x128xbf16, #tpu.memory_space<vmem>>, vector<1x128x128xbf16>
    %97 = vector.shape_cast %96 : vector<1x128x128xbf16> to vector<128x128xbf16>
    %cst_100 = arith.constant dense<0.000000e+00> : vector<256x128xf32>
    %98 = tpu.matmul %95, %97, %cst_100 {dimension_numbers = #tpu.dot_dimension_numbers<[1], [0], [0], [1], [0, 0, 1, 1], [], []>} : vector<256x128xbf16>, vector<128x128xbf16>, vector<256x128xf32> -> vector<256x128xf32>
    %99 = arith.addf %92, %98 : vector<256x128xf32>
    %c0_101 = arith.constant 0 : index
    %c8_102 = arith.constant 8 : index
    %c0_103 = arith.constant 0 : index
    %100 = vector.load %arg15[%c0_101, %c8_102, %c0_103] : memref<20x32x128xf32, #tpu.memory_space<vmem>>, vector<16x16x128xf32>
    %101 = vector.shape_cast %100 : vector<16x16x128xf32> to vector<256x128xf32>
    %102 = arith.truncf %101 : vector<256x128xf32> to vector<256x128xbf16>
    %c10 = arith.constant 10 : index
    %c0_104 = arith.constant 0 : index
    %c0_105 = arith.constant 0 : index
    %103 = vector.load %arg4[%c10, %c0_104, %c0_105] : memref<18x128x128xbf16, #tpu.memory_space<vmem>>, vector<1x128x128xbf16>
    %104 = vector.shape_cast %103 : vector<1x128x128xbf16> to vector<128x128xbf16>
    %cst_106 = arith.constant dense<0.000000e+00> : vector<256x128xf32>
    %105 = tpu.matmul %102, %104, %cst_106 {dimension_numbers = #tpu.dot_dimension_numbers<[1], [0], [0], [1], [0, 0, 1, 1], [], []>} : vector<256x128xbf16>, vector<128x128xbf16>, vector<256x128xf32> -> vector<256x128xf32>
    %106 = arith.addf %99, %105 : vector<256x128xf32>
    %c0_107 = arith.constant 0 : index
    %c10_108 = arith.constant 10 : index
    %c0_109 = arith.constant 0 : index
    %107 = vector.load %arg15[%c0_107, %c10_108, %c0_109] : memref<20x32x128xf32, #tpu.memory_space<vmem>>, vector<16x16x128xf32>
    %108 = vector.shape_cast %107 : vector<16x16x128xf32> to vector<256x128xf32>
    %109 = arith.truncf %108 : vector<256x128xf32> to vector<256x128xbf16>
    %c11 = arith.constant 11 : index
    %c0_110 = arith.constant 0 : index
    %c0_111 = arith.constant 0 : index
    %110 = vector.load %arg4[%c11, %c0_110, %c0_111] : memref<18x128x128xbf16, #tpu.memory_space<vmem>>, vector<1x128x128xbf16>
    %111 = vector.shape_cast %110 : vector<1x128x128xbf16> to vector<128x128xbf16>
    %cst_112 = arith.constant dense<0.000000e+00> : vector<256x128xf32>
    %112 = tpu.matmul %109, %111, %cst_112 {dimension_numbers = #tpu.dot_dimension_numbers<[1], [0], [0], [1], [0, 0, 1, 1], [], []>} : vector<256x128xbf16>, vector<128x128xbf16>, vector<256x128xf32> -> vector<256x128xf32>
    %113 = arith.addf %106, %112 : vector<256x128xf32>
    %c2_113 = arith.constant 2 : index
    %c6_114 = arith.constant 6 : index
    %c0_115 = arith.constant 0 : index
    %114 = vector.load %arg15[%c2_113, %c6_114, %c0_115] : memref<20x32x128xf32, #tpu.memory_space<vmem>>, vector<16x16x128xf32>
    %115 = vector.shape_cast %114 : vector<16x16x128xf32> to vector<256x128xf32>
    %116 = arith.truncf %115 : vector<256x128xf32> to vector<256x128xbf16>
    %c12 = arith.constant 12 : index
    %c0_116 = arith.constant 0 : index
    %c0_117 = arith.constant 0 : index
    %117 = vector.load %arg4[%c12, %c0_116, %c0_117] : memref<18x128x128xbf16, #tpu.memory_space<vmem>>, vector<1x128x128xbf16>
    %118 = vector.shape_cast %117 : vector<1x128x128xbf16> to vector<128x128xbf16>
    %cst_118 = arith.constant dense<0.000000e+00> : vector<256x128xf32>
    %119 = tpu.matmul %116, %118, %cst_118 {dimension_numbers = #tpu.dot_dimension_numbers<[1], [0], [0], [1], [0, 0, 1, 1], [], []>} : vector<256x128xbf16>, vector<128x128xbf16>, vector<256x128xf32> -> vector<256x128xf32>
    %120 = arith.addf %113, %119 : vector<256x128xf32>
    %c2_119 = arith.constant 2 : index
    %c8_120 = arith.constant 8 : index
    %c0_121 = arith.constant 0 : index
    %121 = vector.load %arg15[%c2_119, %c8_120, %c0_121] : memref<20x32x128xf32, #tpu.memory_space<vmem>>, vector<16x16x128xf32>
    %122 = vector.shape_cast %121 : vector<16x16x128xf32> to vector<256x128xf32>
    %123 = arith.truncf %122 : vector<256x128xf32> to vector<256x128xbf16>
    %c13 = arith.constant 13 : index
    %c0_122 = arith.constant 0 : index
    %c0_123 = arith.constant 0 : index
    %124 = vector.load %arg4[%c13, %c0_122, %c0_123] : memref<18x128x128xbf16, #tpu.memory_space<vmem>>, vector<1x128x128xbf16>
    %125 = vector.shape_cast %124 : vector<1x128x128xbf16> to vector<128x128xbf16>
    %cst_124 = arith.constant dense<0.000000e+00> : vector<256x128xf32>
    %126 = tpu.matmul %123, %125, %cst_124 {dimension_numbers = #tpu.dot_dimension_numbers<[1], [0], [0], [1], [0, 0, 1, 1], [], []>} : vector<256x128xbf16>, vector<128x128xbf16>, vector<256x128xf32> -> vector<256x128xf32>
    %127 = arith.addf %120, %126 : vector<256x128xf32>
    %c2_125 = arith.constant 2 : index
    %c10_126 = arith.constant 10 : index
    %c0_127 = arith.constant 0 : index
    %128 = vector.load %arg15[%c2_125, %c10_126, %c0_127] : memref<20x32x128xf32, #tpu.memory_space<vmem>>, vector<16x16x128xf32>
    %129 = vector.shape_cast %128 : vector<16x16x128xf32> to vector<256x128xf32>
    %130 = arith.truncf %129 : vector<256x128xf32> to vector<256x128xbf16>
    %c14 = arith.constant 14 : index
    %c0_128 = arith.constant 0 : index
    %c0_129 = arith.constant 0 : index
    %131 = vector.load %arg4[%c14, %c0_128, %c0_129] : memref<18x128x128xbf16, #tpu.memory_space<vmem>>, vector<1x128x128xbf16>
    %132 = vector.shape_cast %131 : vector<1x128x128xbf16> to vector<128x128xbf16>
    %cst_130 = arith.constant dense<0.000000e+00> : vector<256x128xf32>
    %133 = tpu.matmul %130, %132, %cst_130 {dimension_numbers = #tpu.dot_dimension_numbers<[1], [0], [0], [1], [0, 0, 1, 1], [], []>} : vector<256x128xbf16>, vector<128x128xbf16>, vector<256x128xf32> -> vector<256x128xf32>
    %134 = arith.addf %127, %133 : vector<256x128xf32>
    %c4_131 = arith.constant 4 : index
    %c6_132 = arith.constant 6 : index
    %c0_133 = arith.constant 0 : index
    %135 = vector.load %arg15[%c4_131, %c6_132, %c0_133] : memref<20x32x128xf32, #tpu.memory_space<vmem>>, vector<16x16x128xf32>
    %136 = vector.shape_cast %135 : vector<16x16x128xf32> to vector<256x128xf32>
    %137 = arith.truncf %136 : vector<256x128xf32> to vector<256x128xbf16>
    %c15 = arith.constant 15 : index
    %c0_134 = arith.constant 0 : index
    %c0_135 = arith.constant 0 : index
    %138 = vector.load %arg4[%c15, %c0_134, %c0_135] : memref<18x128x128xbf16, #tpu.memory_space<vmem>>, vector<1x128x128xbf16>
    %139 = vector.shape_cast %138 : vector<1x128x128xbf16> to vector<128x128xbf16>
    %cst_136 = arith.constant dense<0.000000e+00> : vector<256x128xf32>
    %140 = tpu.matmul %137, %139, %cst_136 {dimension_numbers = #tpu.dot_dimension_numbers<[1], [0], [0], [1], [0, 0, 1, 1], [], []>} : vector<256x128xbf16>, vector<128x128xbf16>, vector<256x128xf32> -> vector<256x128xf32>
    %141 = arith.addf %134, %140 : vector<256x128xf32>
    %c4_137 = arith.constant 4 : index
    %c8_138 = arith.constant 8 : index
    %c0_139 = arith.constant 0 : index
    %142 = vector.load %arg15[%c4_137, %c8_138, %c0_139] : memref<20x32x128xf32, #tpu.memory_space<vmem>>, vector<16x16x128xf32>
    %143 = vector.shape_cast %142 : vector<16x16x128xf32> to vector<256x128xf32>
    %144 = arith.truncf %143 : vector<256x128xf32> to vector<256x128xbf16>
    %c16 = arith.constant 16 : index
    %c0_140 = arith.constant 0 : index
    %c0_141 = arith.constant 0 : index
    %145 = vector.load %arg4[%c16, %c0_140, %c0_141] : memref<18x128x128xbf16, #tpu.memory_space<vmem>>, vector<1x128x128xbf16>
    %146 = vector.shape_cast %145 : vector<1x128x128xbf16> to vector<128x128xbf16>
    %cst_142 = arith.constant dense<0.000000e+00> : vector<256x128xf32>
    %147 = tpu.matmul %144, %146, %cst_142 {dimension_numbers = #tpu.dot_dimension_numbers<[1], [0], [0], [1], [0, 0, 1, 1], [], []>} : vector<256x128xbf16>, vector<128x128xbf16>, vector<256x128xf32> -> vector<256x128xf32>
    %148 = arith.addf %141, %147 : vector<256x128xf32>
    %c4_143 = arith.constant 4 : index
    %c10_144 = arith.constant 10 : index
    %c0_145 = arith.constant 0 : index
    %149 = vector.load %arg15[%c4_143, %c10_144, %c0_145] : memref<20x32x128xf32, #tpu.memory_space<vmem>>, vector<16x16x128xf32>
    %150 = vector.shape_cast %149 : vector<16x16x128xf32> to vector<256x128xf32>
    %151 = arith.truncf %150 : vector<256x128xf32> to vector<256x128xbf16>
    %c17 = arith.constant 17 : index
    %c0_146 = arith.constant 0 : index
    %c0_147 = arith.constant 0 : index
    %152 = vector.load %arg4[%c17, %c0_146, %c0_147] : memref<18x128x128xbf16, #tpu.memory_space<vmem>>, vector<1x128x128xbf16>
    %153 = vector.shape_cast %152 : vector<1x128x128xbf16> to vector<128x128xbf16>
    %cst_148 = arith.constant dense<0.000000e+00> : vector<256x128xf32>
    %154 = tpu.matmul %151, %153, %cst_148 {dimension_numbers = #tpu.dot_dimension_numbers<[1], [0], [0], [1], [0, 0, 1, 1], [], []>} : vector<256x128xbf16>, vector<128x128xbf16>, vector<256x128xf32> -> vector<256x128xf32>
    %155 = arith.addf %148, %154 : vector<256x128xf32>
    %c0_149 = arith.constant 0 : index
    %c0_150 = arith.constant 0 : index
    %156 = vector.load %arg5[%c0_149, %c0_150] : memref<1x128xf32, #tpu.memory_space<vmem>>, vector<1x128xf32>
    %157 = vector.broadcast %156 : vector<1x128xf32> to vector<256x128xf32>
    %158 = arith.addf %155, %157 : vector<256x128xf32>
    %159 = arith.mulf %158, %158 : vector<256x128xf32>
    %cst_151 = arith.constant dense<0.000000e+00> : vector<128xf32>
    %160 = vector.multi_reduction <add>, %159, %cst_151 [0] : vector<256x128xf32> to vector<128xf32>
    %161 = vector.shape_cast %160 : vector<128xf32> to vector<1x128xf32>
    %162 = vector.extract_strided_slice %161 {offsets = [0, 0], sizes = [1, 64], strides = [1, 1]} : vector<1x128xf32> to vector<1x64xf32>
    %cst_152 = arith.constant dense<0.000000e+00> : vector<1xf32>
    %163 = vector.multi_reduction <add>, %162, %cst_152 [1] : vector<1x64xf32> to vector<1xf32>
    %164 = vector.shape_cast %163 : vector<1xf32> to vector<1x1xf32>
    %165 = math.sqrt %164 : vector<1x1xf32>
    %cst_153 = arith.constant 9.99999996E-13 : f32
    %166 = vector.broadcast %cst_153 : f32 to vector<1x1xf32>
    %167 = arith.maximumf %165, %166 : vector<1x1xf32>
    %168 = vector.extract_strided_slice %161 {offsets = [0, 64], sizes = [1, 64], strides = [1, 1]} : vector<1x128xf32> to vector<1x64xf32>
    %cst_154 = arith.constant dense<0.000000e+00> : vector<1xf32>
    %169 = vector.multi_reduction <add>, %168, %cst_154 [1] : vector<1x64xf32> to vector<1xf32>
    %170 = vector.shape_cast %169 : vector<1xf32> to vector<1x1xf32>
    %171 = math.sqrt %170 : vector<1x1xf32>
    %cst_155 = arith.constant 9.99999996E-13 : f32
    %172 = vector.broadcast %cst_155 : f32 to vector<1x1xf32>
    %173 = arith.maximumf %171, %172 : vector<1x1xf32>
    %cst_156 = arith.constant 1.000000e+00 : f32
    %174 = vector.broadcast %cst_156 : f32 to vector<1x1xf32>
    %175 = arith.divf %174, %167 : vector<1x1xf32>
    %cst_157 = arith.constant 1.000000e+00 : f32
    %176 = vector.broadcast %cst_157 : f32 to vector<1x1xf32>
    %177 = arith.divf %176, %173 : vector<1x1xf32>
    %178 = vector.shape_cast %175 : vector<1x1xf32> to vector<1x1xf32>
    %179 = vector.broadcast %178 : vector<1x1xf32> to vector<1x128xf32>
    %180 = vector.shape_cast %177 : vector<1x1xf32> to vector<1x1xf32>
    %181 = vector.broadcast %180 : vector<1x1xf32> to vector<1x128xf32>
    %182 = arith.select %2, %179, %181 : vector<1x128xi1>, vector<1x128xf32>
    %183 = vector.broadcast %182 : vector<1x128xf32> to vector<256x128xf32>
    %184 = arith.mulf %158, %183 : vector<256x128xf32>
    %cst_158 = arith.constant dense<0.000000e+00> : vector<128xf32>
    %185 = vector.multi_reduction <add>, %184, %cst_158 [0] : vector<256x128xf32> to vector<128xf32>
    %186 = vector.shape_cast %185 : vector<128xf32> to vector<1x128xf32>
    %187 = vector.extract_strided_slice %186 {offsets = [0, 0], sizes = [1, 64], strides = [1, 1]} : vector<1x128xf32> to vector<1x64xf32>
    %cst_159 = arith.constant dense<0.000000e+00> : vector<1xf32>
    %188 = vector.multi_reduction <add>, %187, %cst_159 [1] : vector<1x64xf32> to vector<1xf32>
    %189 = vector.shape_cast %188 : vector<1xf32> to vector<1x1xf32>
    %cst_160 = arith.constant 6.10351563E-5 : f32
    %190 = vector.broadcast %cst_160 : f32 to vector<1x1xf32>
    %191 = arith.mulf %189, %190 : vector<1x1xf32>
    %192 = vector.extract_strided_slice %186 {offsets = [0, 64], sizes = [1, 64], strides = [1, 1]} : vector<1x128xf32> to vector<1x64xf32>
    %cst_161 = arith.constant dense<0.000000e+00> : vector<1xf32>
    %193 = vector.multi_reduction <add>, %192, %cst_161 [1] : vector<1x64xf32> to vector<1xf32>
    %194 = vector.shape_cast %193 : vector<1xf32> to vector<1x1xf32>
    %cst_162 = arith.constant 6.10351563E-5 : f32
    %195 = vector.broadcast %cst_162 : f32 to vector<1x1xf32>
    %196 = arith.mulf %194, %195 : vector<1x1xf32>
    %197 = vector.shape_cast %191 : vector<1x1xf32> to vector<1x1xf32>
    %198 = vector.broadcast %197 : vector<1x1xf32> to vector<1x128xf32>
    %199 = vector.shape_cast %196 : vector<1x1xf32> to vector<1x1xf32>
    %200 = vector.broadcast %199 : vector<1x1xf32> to vector<1x128xf32>
    %201 = arith.select %2, %198, %200 : vector<1x128xi1>, vector<1x128xf32>
    %202 = vector.broadcast %201 : vector<1x128xf32> to vector<256x128xf32>
    %203 = arith.subf %184, %202 : vector<256x128xf32>
    %204 = arith.mulf %203, %203 : vector<256x128xf32>
    %cst_163 = arith.constant dense<0.000000e+00> : vector<128xf32>
    %205 = vector.multi_reduction <add>, %204, %cst_163 [0] : vector<256x128xf32> to vector<128xf32>
    %206 = vector.shape_cast %205 : vector<128xf32> to vector<1x128xf32>
    %207 = vector.extract_strided_slice %206 {offsets = [0, 0], sizes = [1, 64], strides = [1, 1]} : vector<1x128xf32> to vector<1x64xf32>
    %cst_164 = arith.constant dense<0.000000e+00> : vector<1xf32>
    %208 = vector.multi_reduction <add>, %207, %cst_164 [1] : vector<1x64xf32> to vector<1xf32>
    %209 = vector.shape_cast %208 : vector<1xf32> to vector<1x1xf32>
    %210 = math.sqrt %209 : vector<1x1xf32>
    %211 = vector.extract_strided_slice %206 {offsets = [0, 64], sizes = [1, 64], strides = [1, 1]} : vector<1x128xf32> to vector<1x64xf32>
    %cst_165 = arith.constant dense<0.000000e+00> : vector<1xf32>
    %212 = vector.multi_reduction <add>, %211, %cst_165 [1] : vector<1x64xf32> to vector<1xf32>
    %213 = vector.shape_cast %212 : vector<1xf32> to vector<1x1xf32>
    %214 = math.sqrt %213 : vector<1x1xf32>
    %c64_i32_166 = arith.constant 64 : i32
    %215 = tpu.dynamic_rotate %203 by %c64_i32_166 dim 1 : vector<256x128xf32>, i32 -> vector<256x128xf32>
    %216 = arith.mulf %203, %215 : vector<256x128xf32>
    %cst_167 = arith.constant dense<0.000000e+00> : vector<128xf32>
    %217 = vector.multi_reduction <add>, %216, %cst_167 [0] : vector<256x128xf32> to vector<128xf32>
    %218 = vector.shape_cast %217 : vector<128xf32> to vector<1x128xf32>
    %cst_168 = arith.constant dense<0.000000e+00> : vector<1xf32>
    %219 = vector.multi_reduction <add>, %218, %cst_168 [1] : vector<1x128xf32> to vector<1xf32>
    %220 = vector.shape_cast %219 : vector<1xf32> to vector<1x1xf32>
    %cst_169 = arith.constant 5.000000e-01 : f32
    %221 = vector.broadcast %cst_169 : f32 to vector<1x1xf32>
    %222 = arith.mulf %221, %220 : vector<1x1xf32>
    %223 = arith.mulf %210, %214 : vector<1x1xf32>
    %cst_170 = arith.constant 9.99999997E-7 : f32
    %224 = vector.broadcast %cst_170 : f32 to vector<1x1xf32>
    %225 = arith.addf %223, %224 : vector<1x1xf32>
    %226 = arith.divf %222, %225 : vector<1x1xf32>
    %cst_171 = arith.constant 1.000000e+00 : f32
    %227 = vector.broadcast %cst_171 : f32 to vector<1x1xf32>
    %228 = arith.subf %227, %226 : vector<1x1xf32>
    %cst_172 = arith.constant 1.000000e+00 : f32
    %229 = vector.broadcast %cst_172 : f32 to vector<1x1xf32>
    %230 = arith.addf %229, %228 : vector<1x1xf32>
    %cst_173 = arith.constant 1.000000e+00 : f32
    %231 = vector.broadcast %cst_173 : f32 to vector<1x128xf32>
    %232 = vector.shape_cast %230 : vector<1x1xf32> to vector<1x1xf32>
    %233 = vector.broadcast %232 : vector<1x1xf32> to vector<1x128xf32>
    %234 = arith.select %2, %231, %233 : vector<1x128xi1>, vector<1x128xf32>
    %235 = vector.broadcast %234 : vector<1x128xf32> to vector<256x128xf32>
    %236 = arith.mulf %158, %235 : vector<256x128xf32>
    %cst_174 = arith.constant dense<0.000000e+00> : vector<128xf32>
    %237 = vector.multi_reduction <add>, %236, %cst_174 [0] : vector<256x128xf32> to vector<128xf32>
    %238 = vector.shape_cast %237 : vector<128xf32> to vector<1x128xf32>
    %cst_175 = arith.constant 3.906250e-03 : f32
    %239 = vector.broadcast %cst_175 : f32 to vector<1x128xf32>
    %240 = arith.mulf %238, %239 : vector<1x128xf32>
    %cst_176 = arith.constant dense<0xFF800000> : vector<128xf32>
    %241 = vector.multi_reduction <maximumf>, %236, %cst_176 [0] : vector<256x128xf32> to vector<128xf32>
    %242 = vector.shape_cast %241 : vector<128xf32> to vector<1x128xf32>
    %243 = tpu.concatenate %240, %242 in 1 : vector<1x128xf32>, vector<1x128xf32> -> vector<1x256xf32>
    %244 = vector.shape_cast %243 : vector<1x256xf32> to vector<1x256xf32>
    %245 = vector.broadcast %244 : vector<1x256xf32> to vector<8x256xf32>
    %c0_177 = arith.constant 0 : index
    %c0_178 = arith.constant 0 : index
    %246 = vector.load %arg6[%c0_177, %c0_178] : memref<256x64xf32, #tpu.memory_space<vmem>>, vector<256x64xf32>
    %cst_179 = arith.constant dense<0.000000e+00> : vector<8x64xf32>
    %247 = tpu.matmul %245, %246, %cst_179 {dimension_numbers = #tpu.dot_dimension_numbers<[1], [0], [0], [1], [0, 0, 1, 1], [], []>} : vector<8x256xf32>, vector<256x64xf32>, vector<8x64xf32> -> vector<8x64xf32>
    %c0_180 = arith.constant 0 : index
    %c0_181 = arith.constant 0 : index
    %248 = vector.load %arg7[%c0_180, %c0_181] : memref<1x64xf32, #tpu.memory_space<vmem>>, vector<1x64xf32>
    %249 = vector.broadcast %248 : vector<1x64xf32> to vector<8x64xf32>
    %250 = arith.addf %247, %249 : vector<8x64xf32>
    %cst_182 = arith.constant 0.000000e+00 : f32
    %251 = vector.broadcast %cst_182 : f32 to vector<8x64xf32>
    %252 = arith.maximumf %250, %251 : vector<8x64xf32>
    %c0_183 = arith.constant 0 : index
    %c0_184 = arith.constant 0 : index
    %253 = vector.load %arg8[%c0_183, %c0_184] : memref<64x128xf32, #tpu.memory_space<vmem>>, vector<64x128xf32>
    %cst_185 = arith.constant dense<0.000000e+00> : vector<8x128xf32>
    %254 = tpu.matmul %252, %253, %cst_185 {dimension_numbers = #tpu.dot_dimension_numbers<[1], [0], [0], [1], [0, 0, 1, 1], [], []>} : vector<8x64xf32>, vector<64x128xf32>, vector<8x128xf32> -> vector<8x128xf32>
    %c0_186 = arith.constant 0 : index
    %c0_187 = arith.constant 0 : index
    %255 = vector.load %arg9[%c0_186, %c0_187] : memref<1x128xf32, #tpu.memory_space<vmem>>, vector<1x128xf32>
    %256 = vector.broadcast %255 : vector<1x128xf32> to vector<8x128xf32>
    %257 = arith.addf %254, %256 : vector<8x128xf32>
    %258 = vector.extract_strided_slice %257 {offsets = [0, 0], sizes = [1, 128], strides = [1, 1]} : vector<8x128xf32> to vector<1x128xf32>
    %259 = arith.mulf %236, %236 : vector<256x128xf32>
    %260 = vector.broadcast %258 : vector<1x128xf32> to vector<256x128xf32>
    %261 = arith.mulf %259, %260 : vector<256x128xf32>
    %262 = arith.truncf %261 : vector<256x128xf32> to vector<256x128xbf16>
    %c0_188 = arith.constant 0 : index
    %c0_189 = arith.constant 0 : index
    %263 = vector.load %arg10[%c0_188, %c0_189] : memref<128x64xbf16, #tpu.memory_space<vmem>>, vector<128x64xbf16>
    %cst_190 = arith.constant dense<0.000000e+00> : vector<256x64xf32>
    %264 = tpu.matmul %262, %263, %cst_190 {dimension_numbers = #tpu.dot_dimension_numbers<[1], [0], [0], [1], [0, 0, 1, 1], [], []>} : vector<256x128xbf16>, vector<128x64xbf16>, vector<256x64xf32> -> vector<256x64xf32>
    %c0_191 = arith.constant 0 : index
    %c0_192 = arith.constant 0 : index
    %265 = vector.load %arg11[%c0_191, %c0_192] : memref<1x64xf32, #tpu.memory_space<vmem>>, vector<1x64xf32>
    %266 = vector.broadcast %265 : vector<1x64xf32> to vector<256x64xf32>
    %267 = arith.addf %264, %266 : vector<256x64xf32>
    %268 = vector.shape_cast %267 : vector<256x64xf32> to vector<16x16x64xf32>
    %c2_193 = arith.constant 2 : index
    %c8_194 = arith.constant 8 : index
    %c0_195 = arith.constant 0 : index
    %269 = vector.load %arg16[%c2_193, %c8_194, %c0_195] : memref<20x32x64xf32, #tpu.memory_space<vmem>>, vector<16x16x64xf32>
    tpu.vector_store %arg16[%c2_193, %c8_194, %c0_195], %268 {strides = array<i32>} : memref<20x32x64xf32, #tpu.memory_space<vmem>>, vector<16x16x64xf32>,
    %cst_196 = arith.constant 0.000000e+00 : f32
    %270 = vector.broadcast %cst_196 : f32 to vector<256x128xf32>
    %c1_197 = arith.constant 1 : index
    %c7_198 = arith.constant 7 : index
    %c0_199 = arith.constant 0 : index
    %271 = vector.load %arg16[%c1_197, %c7_198, %c0_199] : memref<20x32x64xf32, #tpu.memory_space<vmem>>, vector<16x16x64xf32>
    %272 = vector.shape_cast %271 : vector<16x16x64xf32> to vector<256x64xf32>
    %273 = arith.truncf %272 : vector<256x64xf32> to vector<256x64xbf16>
    %c0_200 = arith.constant 0 : index
    %c0_201 = arith.constant 0 : index
    %c0_202 = arith.constant 0 : index
    %274 = vector.load %arg12[%c0_200, %c0_201, %c0_202] : memref<18x64x128xbf16, #tpu.memory_space<vmem>>, vector<1x64x128xbf16>
    %275 = vector.shape_cast %274 : vector<1x64x128xbf16> to vector<64x128xbf16>
    %cst_203 = arith.constant dense<0.000000e+00> : vector<256x128xf32>
    %276 = tpu.matmul %273, %275, %cst_203 {dimension_numbers = #tpu.dot_dimension_numbers<[1], [0], [0], [1], [0, 0, 1, 1], [], []>} : vector<256x64xbf16>, vector<64x128xbf16>, vector<256x128xf32> -> vector<256x128xf32>
    %277 = arith.addf %270, %276 : vector<256x128xf32>
    %c1_204 = arith.constant 1 : index
    %c8_205 = arith.constant 8 : index
    %c0_206 = arith.constant 0 : index
    %278 = vector.load %arg16[%c1_204, %c8_205, %c0_206] : memref<20x32x64xf32, #tpu.memory_space<vmem>>, vector<16x16x64xf32>
    %279 = vector.shape_cast %278 : vector<16x16x64xf32> to vector<256x64xf32>
    %280 = arith.truncf %279 : vector<256x64xf32> to vector<256x64xbf16>
    %c1_207 = arith.constant 1 : index
    %c0_208 = arith.constant 0 : index
    %c0_209 = arith.constant 0 : index
    %281 = vector.load %arg12[%c1_207, %c0_208, %c0_209] : memref<18x64x128xbf16, #tpu.memory_space<vmem>>, vector<1x64x128xbf16>
    %282 = vector.shape_cast %281 : vector<1x64x128xbf16> to vector<64x128xbf16>
    %cst_210 = arith.constant dense<0.000000e+00> : vector<256x128xf32>
    %283 = tpu.matmul %280, %282, %cst_210 {dimension_numbers = #tpu.dot_dimension_numbers<[1], [0], [0], [1], [0, 0, 1, 1], [], []>} : vector<256x64xbf16>, vector<64x128xbf16>, vector<256x128xf32> -> vector<256x128xf32>
    %284 = arith.addf %277, %283 : vector<256x128xf32>
    %c1_211 = arith.constant 1 : index
    %c9_212 = arith.constant 9 : index
    %c0_213 = arith.constant 0 : index
    %285 = vector.load %arg16[%c1_211, %c9_212, %c0_213] : memref<20x32x64xf32, #tpu.memory_space<vmem>>, vector<16x16x64xf32>
    %286 = vector.shape_cast %285 : vector<16x16x64xf32> to vector<256x64xf32>
    %287 = arith.truncf %286 : vector<256x64xf32> to vector<256x64xbf16>
    %c2_214 = arith.constant 2 : index
    %c0_215 = arith.constant 0 : index
    %c0_216 = arith.constant 0 : index
    %288 = vector.load %arg12[%c2_214, %c0_215, %c0_216] : memref<18x64x128xbf16, #tpu.memory_space<vmem>>, vector<1x64x128xbf16>
    %289 = vector.shape_cast %288 : vector<1x64x128xbf16> to vector<64x128xbf16>
    %cst_217 = arith.constant dense<0.000000e+00> : vector<256x128xf32>
    %290 = tpu.matmul %287, %289, %cst_217 {dimension_numbers = #tpu.dot_dimension_numbers<[1], [0], [0], [1], [0, 0, 1, 1], [], []>} : vector<256x64xbf16>, vector<64x128xbf16>, vector<256x128xf32> -> vector<256x128xf32>
    %291 = arith.addf %284, %290 : vector<256x128xf32>
    %c2_218 = arith.constant 2 : index
    %c7_219 = arith.constant 7 : index
    %c0_220 = arith.constant 0 : index
    %292 = vector.load %arg16[%c2_218, %c7_219, %c0_220] : memref<20x32x64xf32, #tpu.memory_space<vmem>>, vector<16x16x64xf32>
    %293 = vector.shape_cast %292 : vector<16x16x64xf32> to vector<256x64xf32>
    %294 = arith.truncf %293 : vector<256x64xf32> to vector<256x64xbf16>
    %c3_221 = arith.constant 3 : index
    %c0_222 = arith.constant 0 : index
    %c0_223 = arith.constant 0 : index
    %295 = vector.load %arg12[%c3_221, %c0_222, %c0_223] : memref<18x64x128xbf16, #tpu.memory_space<vmem>>, vector<1x64x128xbf16>
    %296 = vector.shape_cast %295 : vector<1x64x128xbf16> to vector<64x128xbf16>
    %cst_224 = arith.constant dense<0.000000e+00> : vector<256x128xf32>
    %297 = tpu.matmul %294, %296, %cst_224 {dimension_numbers = #tpu.dot_dimension_numbers<[1], [0], [0], [1], [0, 0, 1, 1], [], []>} : vector<256x64xbf16>, vector<64x128xbf16>, vector<256x128xf32> -> vector<256x128xf32>
    %298 = arith.addf %291, %297 : vector<256x128xf32>
    %c2_225 = arith.constant 2 : index
    %c8_226 = arith.constant 8 : index
    %c0_227 = arith.constant 0 : index
    %299 = vector.load %arg16[%c2_225, %c8_226, %c0_227] : memref<20x32x64xf32, #tpu.memory_space<vmem>>, vector<16x16x64xf32>
    %300 = vector.shape_cast %299 : vector<16x16x64xf32> to vector<256x64xf32>
    %301 = arith.truncf %300 : vector<256x64xf32> to vector<256x64xbf16>
    %c4_228 = arith.constant 4 : index
    %c0_229 = arith.constant 0 : index
    %c0_230 = arith.constant 0 : index
    %302 = vector.load %arg12[%c4_228, %c0_229, %c0_230] : memref<18x64x128xbf16, #tpu.memory_space<vmem>>, vector<1x64x128xbf16>
    %303 = vector.shape_cast %302 : vector<1x64x128xbf16> to vector<64x128xbf16>
    %cst_231 = arith.constant dense<0.000000e+00> : vector<256x128xf32>
    %304 = tpu.matmul %301, %303, %cst_231 {dimension_numbers = #tpu.dot_dimension_numbers<[1], [0], [0], [1], [0, 0, 1, 1], [], []>} : vector<256x64xbf16>, vector<64x128xbf16>, vector<256x128xf32> -> vector<256x128xf32>
    %305 = arith.addf %298, %304 : vector<256x128xf32>
    %c2_232 = arith.constant 2 : index
    %c9_233 = arith.constant 9 : index
    %c0_234 = arith.constant 0 : index
    %306 = vector.load %arg16[%c2_232, %c9_233, %c0_234] : memref<20x32x64xf32, #tpu.memory_space<vmem>>, vector<16x16x64xf32>
    %307 = vector.shape_cast %306 : vector<16x16x64xf32> to vector<256x64xf32>
    %308 = arith.truncf %307 : vector<256x64xf32> to vector<256x64xbf16>
    %c5_235 = arith.constant 5 : index
    %c0_236 = arith.constant 0 : index
    %c0_237 = arith.constant 0 : index
    %309 = vector.load %arg12[%c5_235, %c0_236, %c0_237] : memref<18x64x128xbf16, #tpu.memory_space<vmem>>, vector<1x64x128xbf16>
    %310 = vector.shape_cast %309 : vector<1x64x128xbf16> to vector<64x128xbf16>
    %cst_238 = arith.constant dense<0.000000e+00> : vector<256x128xf32>
    %311 = tpu.matmul %308, %310, %cst_238 {dimension_numbers = #tpu.dot_dimension_numbers<[1], [0], [0], [1], [0, 0, 1, 1], [], []>} : vector<256x64xbf16>, vector<64x128xbf16>, vector<256x128xf32> -> vector<256x128xf32>
    %312 = arith.addf %305, %311 : vector<256x128xf32>
    %c3_239 = arith.constant 3 : index
    %c7_240 = arith.constant 7 : index
    %c0_241 = arith.constant 0 : index
    %313 = vector.load %arg16[%c3_239, %c7_240, %c0_241] : memref<20x32x64xf32, #tpu.memory_space<vmem>>, vector<16x16x64xf32>
    %314 = vector.shape_cast %313 : vector<16x16x64xf32> to vector<256x64xf32>
    %315 = arith.truncf %314 : vector<256x64xf32> to vector<256x64xbf16>
    %c6_242 = arith.constant 6 : index
    %c0_243 = arith.constant 0 : index
    %c0_244 = arith.constant 0 : index
    %316 = vector.load %arg12[%c6_242, %c0_243, %c0_244] : memref<18x64x128xbf16, #tpu.memory_space<vmem>>, vector<1x64x128xbf16>
    %317 = vector.shape_cast %316 : vector<1x64x128xbf16> to vector<64x128xbf16>
    %cst_245 = arith.constant dense<0.000000e+00> : vector<256x128xf32>
    %318 = tpu.matmul %315, %317, %cst_245 {dimension_numbers = #tpu.dot_dimension_numbers<[1], [0], [0], [1], [0, 0, 1, 1], [], []>} : vector<256x64xbf16>, vector<64x128xbf16>, vector<256x128xf32> -> vector<256x128xf32>
    %319 = arith.addf %312, %318 : vector<256x128xf32>
    %c3_246 = arith.constant 3 : index
    %c8_247 = arith.constant 8 : index
    %c0_248 = arith.constant 0 : index
    %320 = vector.load %arg16[%c3_246, %c8_247, %c0_248] : memref<20x32x64xf32, #tpu.memory_space<vmem>>, vector<16x16x64xf32>
    %321 = vector.shape_cast %320 : vector<16x16x64xf32> to vector<256x64xf32>
    %322 = arith.truncf %321 : vector<256x64xf32> to vector<256x64xbf16>
    %c7_249 = arith.constant 7 : index
    %c0_250 = arith.constant 0 : index
    %c0_251 = arith.constant 0 : index
    %323 = vector.load %arg12[%c7_249, %c0_250, %c0_251] : memref<18x64x128xbf16, #tpu.memory_space<vmem>>, vector<1x64x128xbf16>
    %324 = vector.shape_cast %323 : vector<1x64x128xbf16> to vector<64x128xbf16>
    %cst_252 = arith.constant dense<0.000000e+00> : vector<256x128xf32>
    %325 = tpu.matmul %322, %324, %cst_252 {dimension_numbers = #tpu.dot_dimension_numbers<[1], [0], [0], [1], [0, 0, 1, 1], [], []>} : vector<256x64xbf16>, vector<64x128xbf16>, vector<256x128xf32> -> vector<256x128xf32>
    %326 = arith.addf %319, %325 : vector<256x128xf32>
    %c3_253 = arith.constant 3 : index
    %c9_254 = arith.constant 9 : index
    %c0_255 = arith.constant 0 : index
    %327 = vector.load %arg16[%c3_253, %c9_254, %c0_255] : memref<20x32x64xf32, #tpu.memory_space<vmem>>, vector<16x16x64xf32>
    %328 = vector.shape_cast %327 : vector<16x16x64xf32> to vector<256x64xf32>
    %329 = arith.truncf %328 : vector<256x64xf32> to vector<256x64xbf16>
    %c8_256 = arith.constant 8 : index
    %c0_257 = arith.constant 0 : index
    %c0_258 = arith.constant 0 : index
    %330 = vector.load %arg12[%c8_256, %c0_257, %c0_258] : memref<18x64x128xbf16, #tpu.memory_space<vmem>>, vector<1x64x128xbf16>
    %331 = vector.shape_cast %330 : vector<1x64x128xbf16> to vector<64x128xbf16>
    %cst_259 = arith.constant dense<0.000000e+00> : vector<256x128xf32>
    %332 = tpu.matmul %329, %331, %cst_259 {dimension_numbers = #tpu.dot_dimension_numbers<[1], [0], [0], [1], [0, 0, 1, 1], [], []>} : vector<256x64xbf16>, vector<64x128xbf16>, vector<256x128xf32> -> vector<256x128xf32>
    %333 = arith.addf %326, %332 : vector<256x128xf32>
    %c0_260 = arith.constant 0 : index
    %c6_261 = arith.constant 6 : index
    %c0_262 = arith.constant 0 : index
    %334 = vector.load %arg16[%c0_260, %c6_261, %c0_262] : memref<20x32x64xf32, #tpu.memory_space<vmem>>, vector<16x16x64xf32>
    %335 = vector.shape_cast %334 : vector<16x16x64xf32> to vector<256x64xf32>
    %336 = arith.truncf %335 : vector<256x64xf32> to vector<256x64xbf16>
    %c9_263 = arith.constant 9 : index
    %c0_264 = arith.constant 0 : index
    %c0_265 = arith.constant 0 : index
    %337 = vector.load %arg12[%c9_263, %c0_264, %c0_265] : memref<18x64x128xbf16, #tpu.memory_space<vmem>>, vector<1x64x128xbf16>
    %338 = vector.shape_cast %337 : vector<1x64x128xbf16> to vector<64x128xbf16>
    %cst_266 = arith.constant dense<0.000000e+00> : vector<256x128xf32>
    %339 = tpu.matmul %336, %338, %cst_266 {dimension_numbers = #tpu.dot_dimension_numbers<[1], [0], [0], [1], [0, 0, 1, 1], [], []>} : vector<256x64xbf16>, vector<64x128xbf16>, vector<256x128xf32> -> vector<256x128xf32>
    %340 = arith.addf %333, %339 : vector<256x128xf32>
    %c0_267 = arith.constant 0 : index
    %c8_268 = arith.constant 8 : index
    %c0_269 = arith.constant 0 : index
    %341 = vector.load %arg16[%c0_267, %c8_268, %c0_269] : memref<20x32x64xf32, #tpu.memory_space<vmem>>, vector<16x16x64xf32>
    %342 = vector.shape_cast %341 : vector<16x16x64xf32> to vector<256x64xf32>
    %343 = arith.truncf %342 : vector<256x64xf32> to vector<256x64xbf16>
    %c10_270 = arith.constant 10 : index
    %c0_271 = arith.constant 0 : index
    %c0_272 = arith.constant 0 : index
    %344 = vector.load %arg12[%c10_270, %c0_271, %c0_272] : memref<18x64x128xbf16, #tpu.memory_space<vmem>>, vector<1x64x128xbf16>
    %345 = vector.shape_cast %344 : vector<1x64x128xbf16> to vector<64x128xbf16>
    %cst_273 = arith.constant dense<0.000000e+00> : vector<256x128xf32>
    %346 = tpu.matmul %343, %345, %cst_273 {dimension_numbers = #tpu.dot_dimension_numbers<[1], [0], [0], [1], [0, 0, 1, 1], [], []>} : vector<256x64xbf16>, vector<64x128xbf16>, vector<256x128xf32> -> vector<256x128xf32>
    %347 = arith.addf %340, %346 : vector<256x128xf32>
    %c0_274 = arith.constant 0 : index
    %c10_275 = arith.constant 10 : index
    %c0_276 = arith.constant 0 : index
    %348 = vector.load %arg16[%c0_274, %c10_275, %c0_276] : memref<20x32x64xf32, #tpu.memory_space<vmem>>, vector<16x16x64xf32>
    %349 = vector.shape_cast %348 : vector<16x16x64xf32> to vector<256x64xf32>
    %350 = arith.truncf %349 : vector<256x64xf32> to vector<256x64xbf16>
    %c11_277 = arith.constant 11 : index
    %c0_278 = arith.constant 0 : index
    %c0_279 = arith.constant 0 : index
    %351 = vector.load %arg12[%c11_277, %c0_278, %c0_279] : memref<18x64x128xbf16, #tpu.memory_space<vmem>>, vector<1x64x128xbf16>
    %352 = vector.shape_cast %351 : vector<1x64x128xbf16> to vector<64x128xbf16>
    %cst_280 = arith.constant dense<0.000000e+00> : vector<256x128xf32>
    %353 = tpu.matmul %350, %352, %cst_280 {dimension_numbers = #tpu.dot_dimension_numbers<[1], [0], [0], [1], [0, 0, 1, 1], [], []>} : vector<256x64xbf16>, vector<64x128xbf16>, vector<256x128xf32> -> vector<256x128xf32>
    %354 = arith.addf %347, %353 : vector<256x128xf32>
    %c2_281 = arith.constant 2 : index
    %c6_282 = arith.constant 6 : index
    %c0_283 = arith.constant 0 : index
    %355 = vector.load %arg16[%c2_281, %c6_282, %c0_283] : memref<20x32x64xf32, #tpu.memory_space<vmem>>, vector<16x16x64xf32>
    %356 = vector.shape_cast %355 : vector<16x16x64xf32> to vector<256x64xf32>
    %357 = arith.truncf %356 : vector<256x64xf32> to vector<256x64xbf16>
    %c12_284 = arith.constant 12 : index
    %c0_285 = arith.constant 0 : index
    %c0_286 = arith.constant 0 : index
    %358 = vector.load %arg12[%c12_284, %c0_285, %c0_286] : memref<18x64x128xbf16, #tpu.memory_space<vmem>>, vector<1x64x128xbf16>
    %359 = vector.shape_cast %358 : vector<1x64x128xbf16> to vector<64x128xbf16>
    %cst_287 = arith.constant dense<0.000000e+00> : vector<256x128xf32>
    %360 = tpu.matmul %357, %359, %cst_287 {dimension_numbers = #tpu.dot_dimension_numbers<[1], [0], [0], [1], [0, 0, 1, 1], [], []>} : vector<256x64xbf16>, vector<64x128xbf16>, vector<256x128xf32> -> vector<256x128xf32>
    %361 = arith.addf %354, %360 : vector<256x128xf32>
    %c2_288 = arith.constant 2 : index
    %c8_289 = arith.constant 8 : index
    %c0_290 = arith.constant 0 : index
    %362 = vector.load %arg16[%c2_288, %c8_289, %c0_290] : memref<20x32x64xf32, #tpu.memory_space<vmem>>, vector<16x16x64xf32>
    %363 = vector.shape_cast %362 : vector<16x16x64xf32> to vector<256x64xf32>
    %364 = arith.truncf %363 : vector<256x64xf32> to vector<256x64xbf16>
    %c13_291 = arith.constant 13 : index
    %c0_292 = arith.constant 0 : index
    %c0_293 = arith.constant 0 : index
    %365 = vector.load %arg12[%c13_291, %c0_292, %c0_293] : memref<18x64x128xbf16, #tpu.memory_space<vmem>>, vector<1x64x128xbf16>
    %366 = vector.shape_cast %365 : vector<1x64x128xbf16> to vector<64x128xbf16>
    %cst_294 = arith.constant dense<0.000000e+00> : vector<256x128xf32>
    %367 = tpu.matmul %364, %366, %cst_294 {dimension_numbers = #tpu.dot_dimension_numbers<[1], [0], [0], [1], [0, 0, 1, 1], [], []>} : vector<256x64xbf16>, vector<64x128xbf16>, vector<256x128xf32> -> vector<256x128xf32>
    %368 = arith.addf %361, %367 : vector<256x128xf32>
    %c2_295 = arith.constant 2 : index
    %c10_296 = arith.constant 10 : index
    %c0_297 = arith.constant 0 : index
    %369 = vector.load %arg16[%c2_295, %c10_296, %c0_297] : memref<20x32x64xf32, #tpu.memory_space<vmem>>, vector<16x16x64xf32>
    %370 = vector.shape_cast %369 : vector<16x16x64xf32> to vector<256x64xf32>
    %371 = arith.truncf %370 : vector<256x64xf32> to vector<256x64xbf16>
    %c14_298 = arith.constant 14 : index
    %c0_299 = arith.constant 0 : index
    %c0_300 = arith.constant 0 : index
    %372 = vector.load %arg12[%c14_298, %c0_299, %c0_300] : memref<18x64x128xbf16, #tpu.memory_space<vmem>>, vector<1x64x128xbf16>
    %373 = vector.shape_cast %372 : vector<1x64x128xbf16> to vector<64x128xbf16>
    %cst_301 = arith.constant dense<0.000000e+00> : vector<256x128xf32>
    %374 = tpu.matmul %371, %373, %cst_301 {dimension_numbers = #tpu.dot_dimension_numbers<[1], [0], [0], [1], [0, 0, 1, 1], [], []>} : vector<256x64xbf16>, vector<64x128xbf16>, vector<256x128xf32> -> vector<256x128xf32>
    %375 = arith.addf %368, %374 : vector<256x128xf32>
    %c4_302 = arith.constant 4 : index
    %c6_303 = arith.constant 6 : index
    %c0_304 = arith.constant 0 : index
    %376 = vector.load %arg16[%c4_302, %c6_303, %c0_304] : memref<20x32x64xf32, #tpu.memory_space<vmem>>, vector<16x16x64xf32>
    %377 = vector.shape_cast %376 : vector<16x16x64xf32> to vector<256x64xf32>
    %378 = arith.truncf %377 : vector<256x64xf32> to vector<256x64xbf16>
    %c15_305 = arith.constant 15 : index
    %c0_306 = arith.constant 0 : index
    %c0_307 = arith.constant 0 : index
    %379 = vector.load %arg12[%c15_305, %c0_306, %c0_307] : memref<18x64x128xbf16, #tpu.memory_space<vmem>>, vector<1x64x128xbf16>
    %380 = vector.shape_cast %379 : vector<1x64x128xbf16> to vector<64x128xbf16>
    %cst_308 = arith.constant dense<0.000000e+00> : vector<256x128xf32>
    %381 = tpu.matmul %378, %380, %cst_308 {dimension_numbers = #tpu.dot_dimension_numbers<[1], [0], [0], [1], [0, 0, 1, 1], [], []>} : vector<256x64xbf16>, vector<64x128xbf16>, vector<256x128xf32> -> vector<256x128xf32>
    %382 = arith.addf %375, %381 : vector<256x128xf32>
    %c4_309 = arith.constant 4 : index
    %c8_310 = arith.constant 8 : index
    %c0_311 = arith.constant 0 : index
    %383 = vector.load %arg16[%c4_309, %c8_310, %c0_311] : memref<20x32x64xf32, #tpu.memory_space<vmem>>, vector<16x16x64xf32>
    %384 = vector.shape_cast %383 : vector<16x16x64xf32> to vector<256x64xf32>
    %385 = arith.truncf %384 : vector<256x64xf32> to vector<256x64xbf16>
    %c16_312 = arith.constant 16 : index
    %c0_313 = arith.constant 0 : index
    %c0_314 = arith.constant 0 : index
    %386 = vector.load %arg12[%c16_312, %c0_313, %c0_314] : memref<18x64x128xbf16, #tpu.memory_space<vmem>>, vector<1x64x128xbf16>
    %387 = vector.shape_cast %386 : vector<1x64x128xbf16> to vector<64x128xbf16>
    %cst_315 = arith.constant dense<0.000000e+00> : vector<256x128xf32>
    %388 = tpu.matmul %385, %387, %cst_315 {dimension_numbers = #tpu.dot_dimension_numbers<[1], [0], [0], [1], [0, 0, 1, 1], [], []>} : vector<256x64xbf16>, vector<64x128xbf16>, vector<256x128xf32> -> vector<256x128xf32>
    %389 = arith.addf %382, %388 : vector<256x128xf32>
    %c4_316 = arith.constant 4 : index
    %c10_317 = arith.constant 10 : index
    %c0_318 = arith.constant 0 : index
    %390 = vector.load %arg16[%c4_316, %c10_317, %c0_318] : memref<20x32x64xf32, #tpu.memory_space<vmem>>, vector<16x16x64xf32>
    %391 = vector.shape_cast %390 : vector<16x16x64xf32> to vector<256x64xf32>
    %392 = arith.truncf %391 : vector<256x64xf32> to vector<256x64xbf16>
    %c17_319 = arith.constant 17 : index
    %c0_320 = arith.constant 0 : index
    %c0_321 = arith.constant 0 : index
    %393 = vector.load %arg12[%c17_319, %c0_320, %c0_321] : memref<18x64x128xbf16, #tpu.memory_space<vmem>>, vector<1x64x128xbf16>
    %394 = vector.shape_cast %393 : vector<1x64x128xbf16> to vector<64x128xbf16>
    %cst_322 = arith.constant dense<0.000000e+00> : vector<256x128xf32>
    %395 = tpu.matmul %392, %394, %cst_322 {dimension_numbers = #tpu.dot_dimension_numbers<[1], [0], [0], [1], [0, 0, 1, 1], [], []>} : vector<256x64xbf16>, vector<64x128xbf16>, vector<256x128xf32> -> vector<256x128xf32>
    %396 = arith.addf %389, %395 : vector<256x128xf32>
    %c0_323 = arith.constant 0 : index
    %c0_324 = arith.constant 0 : index
    %397 = vector.load %arg13[%c0_323, %c0_324] : memref<1x128xf32, #tpu.memory_space<vmem>>, vector<1x128xf32>
    %398 = vector.broadcast %397 : vector<1x128xf32> to vector<256x128xf32>
    %399 = arith.addf %396, %398 : vector<256x128xf32>
    %c64_i32_325 = arith.constant 64 : i32
    %400 = tpu.dynamic_rotate %261 by %c64_i32_325 dim 1 : vector<256x128xf32>, i32 -> vector<256x128xf32>
    %c64_i32_326 = arith.constant 64 : i32
    %401 = tpu.dynamic_rotate %399 by %c64_i32_326 dim 1 : vector<256x128xf32>, i32 -> vector<256x128xf32>
    %cst_327 = arith.constant 1.000000e+00 : f32
    %402 = vector.broadcast %cst_327 : f32 to vector<256x128xf32>
    %403 = arith.addf %402, %401 : vector<256x128xf32>
    %404 = arith.mulf %400, %403 : vector<256x128xf32>
    %405 = arith.addf %236, %404 : vector<256x128xf32>
    %c0_328 = arith.constant 0 : index
    %c0_329 = arith.constant 0 : index
    %c0_330 = arith.constant 0 : index
    %406 = vector.load %arg14[%c0_328, %c0_329, %c0_330] : memref<1x256x128xf32, #tpu.memory_space<vmem>>, vector<1x256x128xf32>
    %407 = vector.shape_cast %406 : vector<1x256x128xf32> to vector<256x128xf32>
    %408 = vector.shape_cast %405 : vector<256x128xf32> to vector<1x256x128xf32>
    tpu.vector_store %arg14[%c0_328, %c0_329, %c0_330], %408 {strides = array<i32>} : memref<1x256x128xf32, #tpu.memory_space<vmem>>, vector<1x256x128xf32>,
    return
  }
  func.func @transform_0(%arg0: i32) -> (i32, i32, i32) {
    %c0_i32 = arith.constant 0 : i32
    %c0_i32_0 = arith.constant 0 : i32
    %c0_i32_1 = arith.constant 0 : i32
    return %arg0, %c0_i32, %c0_i32_0 : i32, i32, i32
  }
  func.func @transform_1(%arg0: i32) -> (i32, i32) {
    %c0_i32 = arith.constant 0 : i32
    %c0_i32_0 = arith.constant 0 : i32
    %c0_i32_1 = arith.constant 0 : i32
    return %c0_i32, %c0_i32_0 : i32, i32
  }
  func.func @transform_2(%arg0: i32) -> (i32, i32) {
    %c0_i32 = arith.constant 0 : i32
    %c0_i32_0 = arith.constant 0 : i32
    %c0_i32_1 = arith.constant 0 : i32
    return %c0_i32, %c0_i32_0 : i32, i32
  }
  func.func @transform_3(%arg0: i32) -> (i32, i32, i32) {
    %c0_i32 = arith.constant 0 : i32
    %c0_i32_0 = arith.constant 0 : i32
    %c0_i32_1 = arith.constant 0 : i32
    %c0_i32_2 = arith.constant 0 : i32
    return %c0_i32, %c0_i32_0, %c0_i32_1 : i32, i32, i32
  }
  func.func @transform_4(%arg0: i32) -> (i32, i32) {
    %c0_i32 = arith.constant 0 : i32
    %c0_i32_0 = arith.constant 0 : i32
    %c0_i32_1 = arith.constant 0 : i32
    return %c0_i32, %c0_i32_0 : i32, i32
  }
  func.func @transform_5(%arg0: i32) -> (i32, i32) {
    %c0_i32 = arith.constant 0 : i32
    %c0_i32_0 = arith.constant 0 : i32
    %c0_i32_1 = arith.constant 0 : i32
    return %c0_i32, %c0_i32_0 : i32, i32
  }
  func.func @transform_6(%arg0: i32) -> (i32, i32) {
    %c0_i32 = arith.constant 0 : i32
    %c0_i32_0 = arith.constant 0 : i32
    %c0_i32_1 = arith.constant 0 : i32
    return %c0_i32, %c0_i32_0 : i32, i32
  }
  func.func @transform_7(%arg0: i32) -> (i32, i32) {
    %c0_i32 = arith.constant 0 : i32
    %c0_i32_0 = arith.constant 0 : i32
    %c0_i32_1 = arith.constant 0 : i32
    return %c0_i32, %c0_i32_0 : i32, i32
  }
  func.func @transform_8(%arg0: i32) -> (i32, i32) {
    %c0_i32 = arith.constant 0 : i32
    %c0_i32_0 = arith.constant 0 : i32
    %c0_i32_1 = arith.constant 0 : i32
    return %c0_i32, %c0_i32_0 : i32, i32
  }
  func.func @transform_9(%arg0: i32) -> (i32, i32) {
    %c0_i32 = arith.constant 0 : i32
    %c0_i32_0 = arith.constant 0 : i32
    %c0_i32_1 = arith.constant 0 : i32
    return %c0_i32, %c0_i32_0 : i32, i32
  }
  func.func @transform_10(%arg0: i32) -> (i32, i32) {
    %c0_i32 = arith.constant 0 : i32
    %c0_i32_0 = arith.constant 0 : i32
    %c0_i32_1 = arith.constant 0 : i32
    return %c0_i32, %c0_i32_0 : i32, i32
  }
  func.func @transform_11(%arg0: i32) -> (i32, i32, i32) {
    %c0_i32 = arith.constant 0 : i32
    %c0_i32_0 = arith.constant 0 : i32
    %c0_i32_1 = arith.constant 0 : i32
    %c0_i32_2 = arith.constant 0 : i32
    return %c0_i32, %c0_i32_0, %c0_i32_1 : i32, i32, i32
  }
  func.func @transform_12(%arg0: i32) -> (i32, i32) {
    %c0_i32 = arith.constant 0 : i32
    %c0_i32_0 = arith.constant 0 : i32
    %c0_i32_1 = arith.constant 0 : i32
    return %c0_i32, %c0_i32_0 : i32, i32
  }
  func.func @transform_13(%arg0: i32) -> (i32, i32, i32) {
    %c0_i32 = arith.constant 0 : i32
    %c0_i32_0 = arith.constant 0 : i32
    %c0_i32_1 = arith.constant 0 : i32
    return %arg0, %c0_i32, %c0_i32_0 : i32, i32, i32
  }
}

</mosaic_0001>

<bundles_post_ra>
// kernel: cross_feature_regulation.1
= control target key start
LH: loop header
LB: loop body
LE: loop exit
PB: predicated region body
PF: predicated region fallthrough
CT: control target
= control target key end

     0   :  { %s18408_s25 = smov 0   ;;  %s21782_s0 = inlined_call_operand.vmem [shape: f32[2,256,128], index: 0, kind: input, shape index: {}]   ;;  %s21783_s1 = inlined_call_operand.vmem [shape: bf16[128,128], index: 1, kind: input, shape index: {}]   ;;  %s21784_s2 = inlined_call_operand.vmem [shape: f32[1,128], index: 2, kind: input, shape index: {}]   ;;  %s21785_s3 = inlined_call_operand.vmem [shape: bf16[18,128,128], index: 3, kind: input, shape index: {}]   ;;  %s21786_s4 = inlined_call_operand.vmem [shape: f32[1,128], index: 4, kind: input, shape index: {}]   ;;  %s21787_s5 = inlined_call_operand.vmem [shape: f32[256,64], index: 5, kind: input, shape index: {}]   ;;  %s21788_s6 = inlined_call_operand.vmem [shape: f32[1,64], index: 6, kind: input, shape index: {}]   ;;  %s21789_s7 = inlined_call_operand.vmem [shape: f32[64,128], index: 7, kind: input, shape index: {}]   ;;  %s21790_s8 = inlined_call_operand.vmem [shape: f32[1,128], index: 8, kind: input, shape index: {}]   ;;  %s21791_s9 = inlined_call_operand.vmem [shape: bf16[128,64], index: 9, kind: input, shape index: {}]   ;;  %s21792_s10 = inlined_call_operand.vmem [shape: f32[1,64], index: 10, kind: input, shape index: {}]   ;;  %s21793_s11 = inlined_call_operand.vmem [shape: bf16[18,64,128], index: 11, kind: input, shape index: {}]   ;;  %s21794_s12 = inlined_call_operand.vmem [shape: f32[1,128], index: 12, kind: input, shape index: {}]   ;;  %s21795_s13 = inlined_call_operand.vmem [shape: f32[2,256,128], index: 13, kind: output, shape index: {}]  }
   0x1 LB: > { %s13394_s26 = sadd.s32 4294967295, %s18332_s25   ;;  %p13398_p0 = scmp.ge.s32.totalorder %s18332_s25, 1  ;;  %s18332_s25 = sphi %s18408_s25, %s23_s25  }
   0x2   : > { %p387_p1 = scmp.lt.s32.totalorder %s18332_s25, 3 }
   0x4   : > { %p388_p2 = pnand %p13398_p0, %p387_p1 }
   0x6   : > { %391 = sbr.rel (%p388_p2) target bundleno = 4870 (0x1306), region = 72 }
   0xd   : > { %v18077_v0 = vld [vmem:[%s21783_s1] sm:$0xff]   ;;  %p431_p3 = scmp.lt.s32.totalorder %s13394_s26, 1  ;;  %v18078_v1 = vld [vmem:[%s21783_s1 + $0x8] sm:$0xff]   ;;  %v18079_v2 = vld [vmem:[%s21783_s1 + $0x10] sm:$0xff]   ;;  %vm495_vm0 = vcmask 523264   ;;  %s18336_s14 = smov 64  }
   0xe   : > { %15226 = vmatprep.subr.bf16.mxu0 %v18077_v0  ;;  %v18080_v3 = vld [vmem:[%s21783_s1 + $0x18] sm:$0xff]   ;;  %v18081_v7 = vld [vmem:[%s21783_s1 + $0x20] sm:$0xff]   ;;  %v18082_v8 = vld [vmem:[%s21783_s1 + $0x28] sm:$0xff]   ;;  %vm18337_vm10 = vmmov 0  }
   0xf   : > { %s21958_s26 = smov (!%p431_p3, %s13394_s26), 1  ;;  %15227 = vmatpush3.bf16.msra.mxu0 %v18077_v0  ;;  %v18083_v9 = vld [vmem:[%s21783_s1 + $0x30] sm:$0xff]   ;;  %v18085_v10 = vld [vmem:[%s21785_s3 + $0x40] sm:$0xff]   ;;  %v18086_v11 = vld [vmem:[%s21785_s3 + $0x48] sm:$0xff]   ;;  %v18334_v0 = vmov 0.0  }
  0x10   : > { %15228 = vmatprep.subr.bf16.mxu0 %v18078_v1  ;;  %s14340_s16 = sshll.u32 %s21958_s26, 8  ;;  %15274 = vmatprep.subr.bf16.mxu1 %v18085_v10  ;;  %v18084_v12 = vld [vmem:[%s21783_s1 + $0x38] sm:$0xff]   ;;  %v18087_v13 = vld [vmem:[%s21785_s3 + $0x50] sm:$0xff]   ;;  %v18089_v19 = vld [vmem:[%s21785_s3 + $0x60] sm:$0xff]   ;;  %450 = vst [vmem:[#allocation2 + $0x28] sm:$0xff] %v18334_v0 }
  0x11   : > { %s18433_s19 = scalar_lea.vmem %s21782_s0, %s14340_s16  ;;  %15275 = vmatpush3.bf16.msra.mxu1 %v18085_v10  ;;  %v18088_v16 = vld [vmem:[%s21785_s3 + $0x58] sm:$0xff]   ;;  %v18090_v61 = vld [vmem:[%s21785_s3 + $0x68] sm:$0xff]   ;;  %v18091_v62 = vld [vmem:[%s21785_s3 + $0x70] sm:$0xff]   ;;  %451 = vst [vmem:[#allocation2 + $0x30] sm:$0xff] %v18334_v0  ;;  %s21682_s18 = scalar_lea.vmem %s21795_s13, %s14340_s16 }
  0x12   : > { %v546_v4 = vld [vmem:[%s18433_s19] sm:$0xff]  ;;  %v547_v5 = vld [vmem:[%s18433_s19 + $0x8] sm:$0xff]  ;;  %15276 = vmatprep.subr.bf16.mxu1 %v18086_v11  ;;  %v548_v14 = vld [vmem:[%s18433_s19 + $0x10] sm:$0xff]  ;;  %445 = vst [vmem:[#allocation2] sm:$0xff] %v18334_v0 }
  0x13   : > { %15229 = vmatpush3.bf16.msra.mxu0 %v18078_v1  ;;  %v578_v6 = vpack.c.bf16 %v547_v5, %v546_v4  ;;  %v549_v15 = vld [vmem:[%s18433_s19 + $0x18] sm:$0xff]  ;;  %v550_v17 = vld [vmem:[%s18433_s19 + $0x20] sm:$0xff]  ;;  %v551_v18 = vld [vmem:[%s18433_s19 + $0x28] sm:$0xff]  ;;  %446 = vst [vmem:[#allocation2 + $0x8] sm:$0xff] %v18334_v0  ;;  %v21797_v1 = vmov 0.0|0.0  }
  0x14   : > { %15230 = vmatprep.subr.bf16.mxu0 %v18079_v2  ;;  %v579_v20 = vpack.c.bf16 %v549_v15, %v548_v14  ;;  %v580_v21 = vpack.c.bf16 %v551_v18, %v550_v17  ;;  %v552_v22 = vld [vmem:[%s18433_s19 + $0x30] sm:$0xff]  ;;  %v553_v23 = vld [vmem:[%s18433_s19 + $0x38] sm:$0xff]  ;;  %v554_v24 = vld [vmem:[%s18433_s19 + $0x40] sm:$0xff]  ;;  %447 = vst [vmem:[#allocation2 + $0x10] sm:$0xff] %v18334_v0  ;;  %15290 = vmatprep.mubr.bf16.mxu1 %v21797_v1 }
  0x15   : > { %15242 = vmatprep.mubr.bf16.mxu0 %v578_v6  ;;  %15277 = vmatpush3.bf16.msra.mxu1 %v18086_v11  ;;  %v555_v25 = vld [vmem:[%s18433_s19 + $0x48] sm:$0xff]  ;;  %v581_v26 = vpack.c.bf16 %v553_v23, %v552_v22  ;;  %v556_v28 = vld [vmem:[%s18433_s19 + $0x50] sm:$0xff]  ;;  %v557_v29 = vld [vmem:[%s18433_s19 + $0x58] sm:$0xff]  ;;  %448 = vst [vmem:[#allocation2 + $0x18] sm:$0xff] %v18334_v0 }
  0x16   : > { %15278 = vmatprep.subr.bf16.mxu1 %v18087_v13  ;;  %v582_v27 = vpack.c.bf16 %v555_v25, %v554_v24  ;;  %v558_v30 = vld [vmem:[%s18433_s19 + $0x60] sm:$0xff]  ;;  %v559_v31 = vld [vmem:[%s18433_s19 + $0x68] sm:$0xff]  ;;  %v583_v32 = vpack.c.bf16 %v557_v29, %v556_v28  ;;  %v560_v34 = vld [vmem:[%s18433_s19 + $0x70] sm:$0xff]  ;;  %449 = vst [vmem:[#allocation2 + $0x20] sm:$0xff] %v18334_v0 }
  0x17   : > { %15231 = vmatpush3.bf16.msra.mxu0 %v18079_v2  ;;  %v584_v33 = vpack.c.bf16 %v559_v31, %v558_v30  ;;  %v561_v35 = vld [vmem:[%s18433_s19 + $0x78] sm:$0xff]  ;;  %v562_v36 = vld [vmem:[%s18433_s19 + $0x80] sm:$0xff]  ;;  %v563_v37 = vld [vmem:[%s18433_s19 + $0x88] sm:$0xff]  ;;  %452 = vst [vmem:[#allocation2 + $0x38] sm:$0xff] %v18334_v0 }
  0x18   : > { %15232 = vmatprep.subr.bf16.mxu0 %v18080_v3  ;;  %v585_v38 = vpack.c.bf16 %v561_v35, %v560_v34  ;;  %v586_v39 = vpack.c.bf16 %v563_v37, %v562_v36  ;;  %v564_v40 = vld [vmem:[%s18433_s19 + $0x90] sm:$0xff]  ;;  %v565_v41 = vld [vmem:[%s18433_s19 + $0x98] sm:$0xff]  ;;  %v566_v42 = vld [vmem:[%s18433_s19 + $0xa0] sm:$0xff]  ;;  %454 = vst [vmem:[#allocation2 + $0x240] sm:$0xff] %v18334_v0 }
  0x19   : > { %15279 = vmatpush3.bf16.msra.mxu1 %v18087_v13  ;;  %v567_v43 = vld [vmem:[%s18433_s19 + $0xa8] sm:$0xff]  ;;  %v587_v44 = vpack.c.bf16 %v565_v41, %v564_v40  ;;  %v568_v46 = vld [vmem:[%s18433_s19 + $0xb0] sm:$0xff]  ;;  %v569_v47 = vld [vmem:[%s18433_s19 + $0xb8] sm:$0xff]  ;;  %455 = vst [vmem:[#allocation2 + $0x248] sm:$0xff] %v18334_v0 }
  0x1a   : > { %15280 = vmatprep.subr.bf16.mxu1 %v18088_v16  ;;  %v588_v45 = vpack.c.bf16 %v567_v43, %v566_v42  ;;  %v570_v48 = vld [vmem:[%s18433_s19 + $0xc0] sm:$0xff]  ;;  %v571_v49 = vld [vmem:[%s18433_s19 + $0xc8] sm:$0xff]  ;;  %v589_v50 = vpack.c.bf16 %v569_v47, %v568_v46  ;;  %v572_v52 = vld [vmem:[%s18433_s19 + $0xd0] sm:$0xff]  ;;  %456 = vst [vmem:[#allocation2 + $0x250] sm:$0xff] %v18334_v0 }
  0x1b   : > { %15233 = vmatpush3.bf16.msra.mxu0 %v18080_v3  ;;  %v590_v51 = vpack.c.bf16 %v571_v49, %v570_v48  ;;  %v573_v53 = vld [vmem:[%s18433_s19 + $0xd8] sm:$0xff]  ;;  %v574_v54 = vld [vmem:[%s18433_s19 + $0xe0] sm:$0xff]  ;;  %v575_v55 = vld [vmem:[%s18433_s19 + $0xe8] sm:$0xff]  ;;  %457 = vst [vmem:[#allocation2 + $0x258] sm:$0xff] %v18334_v0 }
  0x1c   : > { %15234 = vmatprep.subr.bf16.mxu0 %v18081_v7  ;;  %v591_v56 = vpack.c.bf16 %v573_v53, %v572_v52  ;;  %v592_v57 = vpack.c.bf16 %v575_v55, %v574_v54  ;;  %v576_v58 = vld [vmem:[%s18433_s19 + $0xf0] sm:$0xff]  ;;  %v577_v59 = vld [vmem:[%s18433_s19 + $0xf8] sm:$0xff]  ;;  %458 = vst [vmem:[#allocation2 + $0x260] sm:$0xff] %v18334_v0  ;;  %459 = vst [vmem:[#allocation2 + $0x268] sm:$0xff] %v18334_v0 }
  0x1d   : > { %15281 = vmatpush3.bf16.msra.mxu1 %v18088_v16  ;;  %v593_v60 = vpack.c.bf16 %v577_v59, %v576_v58  ;;  %v18092_v63 = vld [vmem:[%s21785_s3 + $0x78] sm:$0xff]   ;;  %460 = vst [vmem:[#allocation2 + $0x270] sm:$0xff] %v18334_v0  ;;  %461 = vst [vmem:[#allocation2 + $0x278] sm:$0xff] %v18334_v0  ;;  %v18093_v2 = vld [vmem:[%s21785_s3] sm:$0xff]  }
  0x1e   : > { %15282 = vmatprep.subr.bf16.mxu1 %v18089_v19  ;;  %463 = vst [vmem:[#allocation2 + $0x40] sm:$0xff] %v18334_v0  ;;  %464 = vst [vmem:[#allocation2 + $0x60] sm:$0xff] %v18334_v0  ;;  %v18513_v3 = vld [vmem:[%s21784_s2] ss:$0 sm:$0xff]  ;;  %v18094_v14 = vld [vmem:[%s21785_s3 + $0x8] sm:$0xff]  }
  0x1f   : > { %15235 = vmatpush3.bf16.msra.mxu0 %v18081_v7  ;;  %465 = vst [vmem:[#allocation2 + $0x80] sm:$0xff] %v18334_v0  ;;  %466 = vst [vmem:[#allocation2 + $0xa0] sm:$0xff] %v18334_v0 }
  0x20   : > { %15236 = vmatprep.subr.bf16.mxu0 %v18082_v8  ;;  %467 = vst [vmem:[#allocation2 + $0xc0] sm:$0xff] %v18334_v0  ;;  %468 = vst [vmem:[#allocation2 + $0xe0] sm:$0xff] %v18334_v0 }
  0x21   : > { %15283 = vmatpush3.bf16.msra.mxu1 %v18089_v19  ;;  %469 = vst [vmem:[#allocation2 + $0x100] sm:$0xff] %v18334_v0  ;;  %470 = vst [vmem:[#allocation2 + $0x120] sm:$0xff] %v18334_v0 }
  0x22   : > { %15284 = vmatprep.subr.bf16.mxu1 %v18090_v61  ;;  %471 = vst [vmem:[#allocation2 + $0x140] sm:$0xff] %v18334_v0  ;;  %472 = vst [vmem:[#allocation2 + $0x160] sm:$0xff] %v18334_v0 }
  0x23   : > { %15237 = vmatpush3.bf16.msra.mxu0 %v18082_v8  ;;  %473 = vst [vmem:[#allocation2 + $0x180] sm:$0xff] %v18334_v0  ;;  %474 = vst [vmem:[#allocation2 + $0x1a0] sm:$0xff] %v18334_v0 }
  0x24   : > { %15238 = vmatprep.subr.bf16.mxu0 %v18083_v9  ;;  %475 = vst [vmem:[#allocation2 + $0x1c0] sm:$0xff] %v18334_v0  ;;  %476 = vst [vmem:[#allocation2 + $0x1e0] sm:$0xff] %v18334_v0 }
  0x25   : > { %15285 = vmatpush3.bf16.msra.mxu1 %v18090_v61  ;;  %477 = vst [vmem:[#allocation2 + $0x200] sm:$0xff] %v18334_v0  ;;  %478 = vst [vmem:[#allocation2 + $0x220] sm:$0xff] %v18334_v0 }
  0x26   : > { %15286 = vmatprep.subr.bf16.mxu1 %v18091_v62  ;;  %479 = vst [vmem:[#allocation2 + $0x58] sm:$0xff] %v18334_v0  ;;  %480 = vst [vmem:[#allocation2 + $0x78] sm:$0xff] %v18334_v0 }
  0x27   : > { %15239 = vmatpush3.bf16.msra.mxu0 %v18083_v9  ;;  %481 = vst [vmem:[#allocation2 + $0x98] sm:$0xff] %v18334_v0  ;;  %482 = vst [vmem:[#allocation2 + $0xb8] sm:$0xff] %v18334_v0 }
  0x28   : > { %15240 = vmatprep.subr.bf16.mxu0 %v18084_v12  ;;  %483 = vst [vmem:[#allocation2 + $0xd8] sm:$0xff] %v18334_v0  ;;  %484 = vst [vmem:[#allocation2 + $0xf8] sm:$0xff] %v18334_v0 }
  0x29   : > { %15287 = vmatpush3.bf16.msra.mxu1 %v18091_v62  ;;  %485 = vst [vmem:[#allocation2 + $0x118] sm:$0xff] %v18334_v0  ;;  %486 = vst [vmem:[#allocation2 + $0x138] sm:$0xff] %v18334_v0 }
  0x2a   : > { %487 = vst [vmem:[#allocation2 + $0x158] sm:$0xff] %v18334_v0  ;;  %488 = vst [vmem:[#allocation2 + $0x178] sm:$0xff] %v18334_v0  ;;  %15288 = vmatprep.subr.bf16.mxu1 %v18092_v63 }
  0x2b   : > { %15241 = vmatpush3.bf16.msra.mxu0 %v18084_v12  ;;  %489 = vst [vmem:[#allocation2 + $0x198] sm:$0xff] %v18334_v0  ;;  %490 = vst [vmem:[#allocation2 + $0x1b8] sm:$0xff] %v18334_v0 }
  0x2c   : > { %491 = vst [vmem:[#allocation2 + $0x1d8] sm:$0xff] %v18334_v0  ;;  %492 = vst [vmem:[#allocation2 + $0x1f8] sm:$0xff] %v18334_v0 }
  0x2d   : > { %493 = vst [vmem:[#allocation2 + $0x218] sm:$0xff] %v18334_v0  ;;  %494 = vst [vmem:[#allocation2 + $0x238] sm:$0xff] %v18334_v0  ;;  %15289 = vmatpush3.bf16.msra.mxu1 %v18092_v63 }
  0x2e   : > { %15243 = vmatmul.mubr.bf16.vlgmr.msra.gmra.mrb[0].mxu0 %v579_v20  ;;  %15322 = vmatprep.subr.bf16.mxu1 %v18093_v2  ;;  %v18095_v20 = vld [vmem:[%s21785_s3 + $0x10] sm:$0xff]  }
  0x2f   : > { %15246 = vmatprep.mubr.bf16.mxu0 %v580_v21 }
  0x36   : > { %15247 = vmatmul.mubr.bf16.gmra.mrb[4].mxu0 %v581_v26  ;;  %v18096_v26 = vld [vmem:[%s21785_s3 + $0x18] sm:$0xff]  }
  0x37   : > { %15250 = vmatprep.mubr.bf16.mxu0 %v582_v27 }
  0x3e   : > { %15251 = vmatmul.mubr.bf16.gmra.mrb[8].mxu0 %v583_v32  ;;  %v18097_v32 = vld [vmem:[%s21785_s3 + $0x20] sm:$0xff]  }
  0x3f   : > { %15254 = vmatprep.mubr.bf16.mxu0 %v584_v33 }
  0x46   : > { %15255 = vmatmul.mubr.bf16.gmra.mrb[12].mxu0 %v585_v38  ;;  %v18098_v38 = vld [vmem:[%s21785_s3 + $0x28] sm:$0xff]  }
  0x47   : > { %15258 = vmatprep.mubr.bf16.mxu0 %v586_v39 }
  0x4e   : > { %15259 = vmatmul.mubr.bf16.gmra.mrb[16].mxu0 %v587_v44  ;;  %v18099_v44 = vld [vmem:[%s21785_s3 + $0x30] sm:$0xff]  }
  0x4f   : > { %15262 = vmatprep.mubr.bf16.mxu0 %v588_v45 }
  0x56   : > { %15263 = vmatmul.mubr.bf16.gmra.mrb[20].mxu0 %v589_v50  ;;  %v18100_v50 = vld [vmem:[%s21785_s3 + $0x38] sm:$0xff]  }
  0x57   : > { %15266 = vmatprep.mubr.bf16.mxu0 %v590_v51 }
  0x5e   : > { %15267 = vmatmul.mubr.bf16.gmra.mrb[24].mxu0 %v591_v56  ;;  %v18569_v56 = vld [vmem:[%s21785_s3 + $0x80] sm:$0xff]  }
  0x5f   : > { %15270 = vmatprep.mubr.bf16.mxu0 %v592_v57 }
  0x66   : > { %15271 = vmatmul.mubr.bf16.gmra.mrb[28].mxu0 %v593_v60 }
 0x101   : > { %v15244_v4 = vpop.f32.mrb[0].mxu0 }
 0x102   : > { %v708_v5 = vadd.f32 %v15244_v4, %v18513_v3  ;;  %v699_v6 = vpop.f32.mrb[1].mxu0 }
 0x103   : > { %v700_v7 = vadd.f32 %v18513_v3, %v699_v6  ;;  %v15245_v8 = vpop.f32.mrb[2].mxu0 }
 0x104   : > { %828 = vst [vmem:[#allocation2 + $0x68] sm:$0xff] %v708_v5  ;;  %v711_v9 = vadd.f32 %v15245_v8, %v18513_v3  ;;  %v702_v10 = vpop.f32.mrb[3].mxu0 }
 0x105   : > { %826 = vst [vmem:[#allocation2 + $0x48] sm:$0xff] %v700_v7  ;;  %v703_v11 = vadd.f32 %v18513_v3, %v702_v10 }
 0x106   : > { %829 = vst [vmem:[#allocation2 + $0x70] sm:$0xff] %v711_v9  ;;  %v957_v12 = vpack.c.bf16 %v711_v9, %v708_v5 }
 0x107   : > { %827 = vst [vmem:[#allocation2 + $0x50] sm:$0xff] %v703_v11  ;;  %v956_v13 = vpack.c.bf16 %v703_v11, %v700_v7 }
 0x109   : > { %v15248_v15 = vpop.f32.mrb[4].mxu0  ;;  %15291 = vmatmul.mubr.bf16.vlgmr.msra.gmra.mrb[0].mxu1 %v956_v13 }
 0x10a   : > { %v724_v16 = vadd.f32 %v15248_v15, %v18513_v3  ;;  %v715_v17 = vpop.f32.mrb[5].mxu0  ;;  %15323 = vmatpush3.bf16.msra.mxu1 %v18093_v2  ;;  %15294 = vmatprep.mubr.bf16.mxu1 %v957_v12 }
 0x10b   : > { %v716_v18 = vadd.f32 %v18513_v3, %v715_v17  ;;  %v15249_v19 = vpop.f32.mrb[6].mxu0  ;;  %15324 = vmatprep.subr.bf16.mxu1 %v18094_v14 }
 0x10c   : > { %832 = vst [vmem:[#allocation2 + $0xa8] sm:$0xff] %v724_v16  ;;  %v727_v21 = vadd.f32 %v15249_v19, %v18513_v3  ;;  %v718_v22 = vpop.f32.mrb[7].mxu0 }
 0x10d   : > { %830 = vst [vmem:[#allocation2 + $0x88] sm:$0xff] %v716_v18  ;;  %v719_v23 = vadd.f32 %v18513_v3, %v718_v22 }
 0x10e   : > { %833 = vst [vmem:[#allocation2 + $0xb0] sm:$0xff] %v727_v21  ;;  %15325 = vmatpush3.bf16.msra.mxu1 %v18094_v14  ;;  %v959_v24 = vpack.c.bf16 %v727_v21, %v724_v16 }
 0x10f   : > { %831 = vst [vmem:[#allocation2 + $0x90] sm:$0xff] %v719_v23  ;;  %v958_v25 = vpack.c.bf16 %v719_v23, %v716_v18  ;;  %15326 = vmatprep.subr.bf16.mxu1 %v18095_v20 }
 0x111   : > { %v15252_v27 = vpop.f32.mrb[8].mxu0  ;;  %15295 = vmatmul.mubr.bf16.gmra.mrb[4].mxu1 %v958_v25  ;;  %v859_v25 = vld [vmem:[#allocation2 + $0x27] sm:$0xff] }
 0x112   : > { %v740_v28 = vadd.f32 %v15252_v27, %v18513_v3  ;;  %v731_v29 = vpop.f32.mrb[9].mxu0  ;;  %15298 = vmatprep.mubr.bf16.mxu1 %v959_v24  ;;  %15327 = vmatpush3.bf16.msra.mxu1 %v18095_v20 }
 0x113   : > { %v732_v30 = vadd.f32 %v18513_v3, %v731_v29  ;;  %v15253_v31 = vpop.f32.mrb[10].mxu0  ;;  %15328 = vmatprep.subr.bf16.mxu1 %v18096_v26 }
 0x114   : > { %836 = vst [vmem:[#allocation2 + $0xe8] sm:$0xff] %v740_v28  ;;  %v743_v33 = vadd.f32 %v15253_v31, %v18513_v3  ;;  %v734_v34 = vpop.f32.mrb[11].mxu0 }
 0x115   : > { %834 = vst [vmem:[#allocation2 + $0xc8] sm:$0xff] %v732_v30  ;;  %v735_v35 = vadd.f32 %v18513_v3, %v734_v34  ;;  %v864_v34 = vld [vmem:[#allocation2 + $0x6f] sm:$0xff] }
 0x116   : > { %837 = vst [vmem:[#allocation2 + $0xf0] sm:$0xff] %v743_v33  ;;  %v18539_v36 = vpack.c.bf16 %v743_v33, %v740_v28  ;;  %15329 = vmatpush3.bf16.msra.mxu1 %v18096_v26  ;;  %v860_v26 = vld [vmem:[#allocation2 + $0x2f] sm:$0xff] }
 0x117   : > { %835 = vst [vmem:[#allocation2 + $0xd0] sm:$0xff] %v735_v35  ;;  %v18541_v37 = vpack.c.bf16 %v735_v35, %v732_v30  ;;  %15330 = vmatprep.subr.bf16.mxu1 %v18097_v32  ;;  %v891_v30 = vpack.c.bf16 %v860_v26, %v859_v25  ;;  %v862_v33 = vld [vmem:[#allocation2 + $0x4f] sm:$0xff]  ;;  %v861_v35 = vld [vmem:[#allocation2 + $0x47] sm:$0xff] }
 0x119   : > { %v15256_v39 = vpop.f32.mrb[12].mxu0  ;;  %15299 = vmatmul.mubr.bf16.gmra.mrb[8].mxu1 %v18541_v37 }
 0x11a   : > { %v756_v40 = vadd.f32 %v15256_v39, %v18513_v3  ;;  %v747_v41 = vpop.f32.mrb[13].mxu0  ;;  %15302 = vmatprep.mubr.bf16.mxu1 %v18539_v36  ;;  %15331 = vmatpush3.bf16.msra.mxu1 %v18097_v32  ;;  %v863_v39 = vld [vmem:[#allocation2 + $0x67] sm:$0xff] }
 0x11b   : > { %v748_v42 = vadd.f32 %v18513_v3, %v747_v41  ;;  %v15257_v43 = vpop.f32.mrb[14].mxu0  ;;  %15332 = vmatprep.subr.bf16.mxu1 %v18098_v38  ;;  %v18103_v41 = vld [vmem:[%s21785_s3 + $0x90] sm:$0xff]  }
 0x11c   : > { %840 = vst [vmem:[#allocation2 + $0x128] sm:$0xff] %v756_v40  ;;  %v759_v45 = vadd.f32 %v15257_v43, %v18513_v3  ;;  %v750_v46 = vpop.f32.mrb[15].mxu0  ;;  %v868_v43 = vld [vmem:[#allocation2 + $0xaf] sm:$0xff] }
 0x11d   : > { %838 = vst [vmem:[#allocation2 + $0x108] sm:$0xff] %v748_v42  ;;  %v751_v47 = vadd.f32 %v18513_v3, %v750_v46  ;;  %v867_v46 = vld [vmem:[#allocation2 + $0xa7] sm:$0xff] }
 0x11e   : > { %841 = vst [vmem:[#allocation2 + $0x130] sm:$0xff] %v759_v45  ;;  %v18555_v48 = vpack.c.bf16 %v759_v45, %v756_v40  ;;  %15333 = vmatpush3.bf16.msra.mxu1 %v18098_v38  ;;  %v18609_v38 = vpack.c.bf16 %v862_v33, %v861_v35  ;;  %v18614_v40 = vpack.c.bf16 %v864_v34, %v863_v39  ;;  %v1407_v33 = vld [vmem:[#allocation2 + $0x31] sm:$0xff] }
 0x11f   : > { %839 = vst [vmem:[#allocation2 + $0x110] sm:$0xff] %v751_v47  ;;  %v18557_v49 = vpack.c.bf16 %v751_v47, %v748_v42  ;;  %15334 = vmatprep.subr.bf16.mxu1 %v18099_v44  ;;  %v866_v42 = vld [vmem:[#allocation2 + $0x8f] sm:$0xff]  ;;  %v18104_v47 = vld [vmem:[%s21785_s3 + $0x98] sm:$0xff]  }
 0x121   : > { %v15260_v51 = vpop.f32.mrb[16].mxu0  ;;  %15303 = vmatmul.mubr.bf16.gmra.mrb[12].mxu1 %v18557_v49 }
 0x122   : > { %v772_v52 = vadd.f32 %v15260_v51, %v18513_v3  ;;  %v763_v53 = vpop.f32.mrb[17].mxu0  ;;  %15306 = vmatprep.mubr.bf16.mxu1 %v18555_v48  ;;  %15335 = vmatpush3.bf16.msra.mxu1 %v18099_v44  ;;  %v865_v44 = vld [vmem:[#allocation2 + $0x87] sm:$0xff] }
 0x123   : > { %v764_v54 = vadd.f32 %v18513_v3, %v763_v53  ;;  %v15261_v55 = vpop.f32.mrb[18].mxu0  ;;  %15336 = vmatprep.subr.bf16.mxu1 %v18100_v50  ;;  %v18622_v45 = vpack.c.bf16 %v866_v42, %v865_v44  ;;  %v18105_v51 = vld [vmem:[%s21785_s3 + $0xa0] sm:$0xff]   ;;  %v872_v53 = vld [vmem:[#allocation2 + $0xef] sm:$0xff] }
 0x124   : > { %844 = vst [vmem:[#allocation2 + $0x168] sm:$0xff] %v772_v52  ;;  %v775_v57 = vadd.f32 %v15261_v55, %v18513_v3  ;;  %v766_v58 = vpop.f32.mrb[19].mxu0  ;;  %v1409_v42 = vld [vmem:[#allocation2 + $0x51] sm:$0xff] }
 0x125   : > { %842 = vst [vmem:[#allocation2 + $0x148] sm:$0xff] %v764_v54  ;;  %v767_v59 = vadd.f32 %v18513_v3, %v766_v58  ;;  %v1411_v44 = vld [vmem:[#allocation2 + $0x71] sm:$0xff] }
 0x126   : > { %845 = vst [vmem:[#allocation2 + $0x170] sm:$0xff] %v775_v57  ;;  %v18573_v60 = vpack.c.bf16 %v775_v57, %v772_v52  ;;  %15337 = vmatpush3.bf16.msra.mxu1 %v18100_v50  ;;  %v18627_v50 = vpack.c.bf16 %v868_v43, %v867_v46  ;;  %v870_v52 = vld [vmem:[#allocation2 + $0xcf] sm:$0xff] }
 0x127   : > { %843 = vst [vmem:[#allocation2 + $0x150] sm:$0xff] %v767_v59  ;;  %v18575_v61 = vpack.c.bf16 %v767_v59, %v764_v54  ;;  %15370 = vmatprep.subr.bf16.mxu1 %v18569_v56  ;;  %v869_v54 = vld [vmem:[#allocation2 + $0xc7] sm:$0xff]  ;;  %v18107_v59 = vld [vmem:[%s21785_s3 + $0xb0] sm:$0xff]  }
 0x128   : > { %v18634_v55 = vpack.c.bf16 %v870_v52, %v869_v54  ;;  %v18106_v57 = vld [vmem:[%s21785_s3 + $0xa8] sm:$0xff]   ;;  %v18111_v52 = vld [vmem:[%s21785_s3 + $0xd0] sm:$0xff]  }
 0x129   : > { %v15264_v62 = vpop.f32.mrb[20].mxu0  ;;  %15307 = vmatmul.mubr.bf16.gmra.mrb[16].mxu1 %v18575_v61  ;;  %v1410_v43 = vld [vmem:[#allocation2 + $0x69] sm:$0xff]  ;;  %v1413_v54 = vld [vmem:[#allocation2 + $0x91] sm:$0xff] }
 0x12a   : > { %v788_v63 = vadd.f32 %v15264_v62, %v18513_v3  ;;  %v779_v0 = vpop.f32.mrb[21].mxu0  ;;  %15310 = vmatprep.mubr.bf16.mxu1 %v18573_v60  ;;  %v874_v62 = vld [vmem:[#allocation2 + $0x10f] sm:$0xff] }
 0x12b   : > { %v780_v2 = vadd.f32 %v18513_v3, %v779_v0  ;;  %v15265_v4 = vpop.f32.mrb[22].mxu0  ;;  %v873_v0 = vld [vmem:[#allocation2 + $0x107] sm:$0xff] }
 0x12c   : > { %848 = vst [vmem:[#allocation2 + $0x1a8] sm:$0xff] %v788_v63  ;;  %v791_v5 = vadd.f32 %v15265_v4, %v18513_v3  ;;  %v782_v6 = vpop.f32.mrb[23].mxu0  ;;  %v875_v4 = vld [vmem:[#allocation2 + $0x127] sm:$0xff] }
 0x12d   : > { %846 = vst [vmem:[#allocation2 + $0x188] sm:$0xff] %v780_v2  ;;  %v783_v7 = vadd.f32 %v18513_v3, %v782_v6 }
 0x12e   : > { %849 = vst [vmem:[#allocation2 + $0x1b0] sm:$0xff] %v791_v5  ;;  %v18584_v8 = vpack.c.bf16 %v791_v5, %v788_v63  ;;  %v876_v63 = vld [vmem:[#allocation2 + $0x12f] sm:$0xff]  ;;  %v18108_v5 = vld [vmem:[%s21785_s3 + $0xb8] sm:$0xff]  }
 0x12f   : > { %847 = vst [vmem:[#allocation2 + $0x190] sm:$0xff] %v783_v7  ;;  %v18586_v9 = vpack.c.bf16 %v783_v7, %v780_v2  ;;  %v18646_v2 = vpack.c.bf16 %v874_v62, %v873_v0  ;;  %v18651_v6 = vpack.c.bf16 %v876_v63, %v875_v4  ;;  %v18109_v7 = vld [vmem:[%s21785_s3 + $0xc0] sm:$0xff]   ;;  %v18112_v62 = vld [vmem:[%s21785_s3 + $0xd8] sm:$0xff]   ;;  %v1416_v4 = vld [vmem:[#allocation2 + $0xc9] sm:$0xff] }
 0x130   : > { %v18113_v0 = vld [vmem:[%s21785_s3 + $0xe0] sm:$0xff]  }
 0x131   : > { %v15268_v10 = vpop.f32.mrb[24].mxu0  ;;  %15311 = vmatmul.mubr.bf16.gmra.mrb[20].mxu1 %v18586_v9 }
 0x132   : > { %v804_v11 = vadd.f32 %v15268_v10, %v18513_v3  ;;  %v795_v12 = vpop.f32.mrb[25].mxu0  ;;  %15314 = vmatprep.mubr.bf16.mxu1 %v18584_v8  ;;  %v878_v10 = vld [vmem:[#allocation2 + $0x14f] sm:$0xff] }
 0x133   : > { %v796_v13 = vadd.f32 %v18513_v3, %v795_v12  ;;  %v15269_v14 = vpop.f32.mrb[26].mxu0  ;;  %v877_v12 = vld [vmem:[#allocation2 + $0x147] sm:$0xff] }
 0x134   : > { %852 = vst [vmem:[#allocation2 + $0x1e8] sm:$0xff] %v804_v11  ;;  %v807_v15 = vadd.f32 %v15269_v14, %v18513_v3  ;;  %v798_v16 = vpop.f32.mrb[27].mxu0  ;;  %v879_v14 = vld [vmem:[#allocation2 + $0x167] sm:$0xff] }
 0x135   : > { %850 = vst [vmem:[#allocation2 + $0x1c8] sm:$0xff] %v796_v13  ;;  %v799_v17 = vadd.f32 %v18513_v3, %v798_v16 }
 0x136   : > { %853 = vst [vmem:[#allocation2 + $0x1f0] sm:$0xff] %v807_v15  ;;  %v18594_v18 = vpack.c.bf16 %v807_v15, %v804_v11  ;;  %v880_v11 = vld [vmem:[#allocation2 + $0x16f] sm:$0xff] }
 0x137   : > { %851 = vst [vmem:[#allocation2 + $0x1d0] sm:$0xff] %v799_v17  ;;  %v18596_v19 = vpack.c.bf16 %v799_v17, %v796_v13  ;;  %v18658_v13 = vpack.c.bf16 %v878_v10, %v877_v12  ;;  %v18660_v15 = vpack.c.bf16 %v880_v11, %v879_v14  ;;  %v882_v16 = vld [vmem:[#allocation2 + $0x18f] sm:$0xff] }
 0x138   : > { %v884_v17 = vld [vmem:[#allocation2 + $0x1af] sm:$0xff] }
 0x139   : > { %v15272_v20 = vpop.f32.mrb[28].mxu0  ;;  %15315 = vmatmul.mubr.bf16.gmra.mrb[24].mxu1 %v18596_v19  ;;  %v1419_v10 = vld [vmem:[#allocation2 + $0xf1] sm:$0xff]  ;;  %v18114_v12 = vld [vmem:[%s21785_s3 + $0xe8] sm:$0xff]  }
 0x13a   : > { %v820_v21 = vadd.f32 %v15272_v20, %v18513_v3  ;;  %v811_v22 = vpop.f32.mrb[29].mxu0  ;;  %15318 = vmatprep.mubr.bf16.mxu1 %v18594_v18  ;;  %v881_v20 = vld [vmem:[#allocation2 + $0x187] sm:$0xff] }
 0x13b   : > { %v812_v23 = vadd.f32 %v18513_v3, %v811_v22  ;;  %v15273_v24 = vpop.f32.mrb[30].mxu0  ;;  %v883_v22 = vld [vmem:[#allocation2 + $0x1a7] sm:$0xff] }
 0x13c   : > { %856 = vst [vmem:[#allocation2 + $0x228] sm:$0xff] %v820_v21  ;;  %v823_v27 = vadd.f32 %v15273_v24, %v18513_v3  ;;  %v814_v28 = vpop.f32.mrb[31].mxu0  ;;  %v885_v26 = vld [vmem:[#allocation2 + $0x1c7] sm:$0xff] }
 0x13d   : > { %854 = vst [vmem:[#allocation2 + $0x208] sm:$0xff] %v812_v23  ;;  %v815_v29 = vadd.f32 %v18513_v3, %v814_v28  ;;  %v18102_v3 = vld [vmem:[%s21785_s3 + $0x88] sm:$0xff]  }
 0x13e   : > { %857 = vst [vmem:[#allocation2 + $0x230] sm:$0xff] %v823_v27  ;;  %v18604_v31 = vpack.c.bf16 %v823_v27, %v820_v21  ;;  %v18664_v21 = vpack.c.bf16 %v882_v16, %v881_v20  ;;  %v886_v24 = vld [vmem:[#allocation2 + $0x1cf] sm:$0xff]  ;;  %v887_v28 = vld [vmem:[#allocation2 + $0x1e7] sm:$0xff] }
 0x13f   : > { %855 = vst [vmem:[#allocation2 + $0x210] sm:$0xff] %v815_v29  ;;  %v18606_v32 = vpack.c.bf16 %v815_v29, %v812_v23  ;;  %v18666_v23 = vpack.c.bf16 %v884_v17, %v883_v22  ;;  %v888_v25 = vld [vmem:[#allocation2 + $0x1ef] sm:$0xff]  ;;  %v18670_v27 = vpack.c.bf16 %v886_v24, %v885_v26  ;;  %v18116_v26 = vld [vmem:[%s21785_s3 + $0xf8] sm:$0xff]  }
 0x140   : > { %v18672_v29 = vpack.c.bf16 %v888_v25, %v887_v28  ;;  %v18115_v16 = vld [vmem:[%s21785_s3 + $0xf0] sm:$0xff]  }
 0x141   : > { %15319 = vmatmul.mubr.bf16.gmra.mrb[28].mxu1 %v18606_v32  ;;  %v1420_v17 = vld [vmem:[#allocation2 + $0x109] sm:$0xff]  ;;  %v1421_v20 = vld [vmem:[#allocation2 + $0x111] sm:$0xff] }
 0x142   : > { %15338 = vmatprep.mubr.bf16.mxu1 %v891_v30  ;;  %v1406_v30 = vld [vmem:[#allocation2 + $0x29] sm:$0xff]  ;;  %v1423_v24 = vld [vmem:[#allocation2 + $0x131] sm:$0xff]  ;;  %v18715_v25 = vpack.c.bf16 %v1421_v20, %v1420_v17  ;;  %v18121_v20 = vld [vmem:[%s21785_s3 + $0x120] sm:$0xff]  }
 0x143   : > { %v1438_v39 = vpack.c.bf16 %v1407_v33, %v1406_v30  ;;  %v1422_v22 = vld [vmem:[#allocation2 + $0x129] sm:$0xff]  ;;  %v18117_v30 = vld [vmem:[%s21785_s3 + $0x100] sm:$0xff]  }
 0x144   : > { %v889_v35 = vld [vmem:[#allocation2 + $0x207] sm:$0xff]  ;;  %v18720_v28 = vpack.c.bf16 %v1423_v24, %v1422_v22  ;;  %v18119_v17 = vld [vmem:[%s21785_s3 + $0x110] sm:$0xff]  }
 0x145   : > { %v1424_v33 = vld [vmem:[#allocation2 + $0x149] sm:$0xff] }
 0x146   : > { %v890_v34 = vld [vmem:[#allocation2 + $0x20f] sm:$0xff] }
 0x147   : > { %v18122_v22 = vld [vmem:[%s21785_s3 + $0x128] sm:$0xff]   ;;  %v18123_v24 = vld [vmem:[%s21785_s3 + $0x130] sm:$0xff]  }
 0x149   : > { %15339 = vmatmul.mubr.bf16.vlgmr.msra.gmra.mrb[0].mxu1 %v18609_v38 }
 0x14a   : > { %15371 = vmatpush3.bf16.msra.mxu1 %v18569_v56  ;;  %15342 = vmatprep.mubr.bf16.mxu1 %v18614_v40  ;;  %v871_v56 = vld [vmem:[#allocation2 + $0xe7] sm:$0xff] }
 0x14b   : > { %15372 = vmatprep.subr.bf16.mxu1 %v18102_v3  ;;  %v18639_v58 = vpack.c.bf16 %v872_v53, %v871_v56  ;;  %v1412_v53 = vld [vmem:[#allocation2 + $0x89] sm:$0xff] }
 0x14c   : > { %v1414_v56 = vld [vmem:[#allocation2 + $0xa9] sm:$0xff] }
 0x14e   : > { %15373 = vmatpush3.bf16.msra.mxu1 %v18102_v3  ;;  %v18676_v3 = vpack.c.bf16 %v890_v34, %v889_v35  ;;  %v1425_v34 = vld [vmem:[#allocation2 + $0x151] sm:$0xff]  ;;  %v1426_v35 = vld [vmem:[#allocation2 + $0x169] sm:$0xff] }
 0x14f   : > { %15374 = vmatprep.subr.bf16.mxu1 %v18103_v41 }
 0x151   : > { %15343 = vmatmul.mubr.bf16.gmra.mrb[4].mxu1 %v18622_v45 }
 0x152   : > { %15346 = vmatprep.mubr.bf16.mxu1 %v18627_v50  ;;  %15375 = vmatpush3.bf16.msra.mxu1 %v18103_v41  ;;  %v1408_v41 = vld [vmem:[#allocation2 + $0x49] sm:$0xff] }
 0x153   : > { %15376 = vmatprep.subr.bf16.mxu1 %v18104_v47  ;;  %v18679_v46 = vpack.c.bf16 %v1409_v42, %v1408_v41  ;;  %v18727_v41 = vpack.c.bf16 %v1425_v34, %v1424_v33  ;;  %v1743_v33 = vld [vmem:[#allocation2 + $0x22f] sm:$0xff] }
 0x154   : > { %v2019_v34 = vld [vmem:[#allocation2 + $0x50] sm:$0xff] }
 0x156   : > { %15377 = vmatpush3.bf16.msra.mxu1 %v18104_v47  ;;  %v18110_v47 = vld [vmem:[%s21785_s3 + $0xc8] sm:$0xff]  }
 0x157   : > { %15378 = vmatprep.subr.bf16.mxu1 %v18105_v51 }
 0x159   : > { %15347 = vmatmul.mubr.bf16.gmra.mrb[8].mxu1 %v18634_v55 }
 0x15a   : > { %15350 = vmatprep.mubr.bf16.mxu1 %v18639_v58  ;;  %15379 = vmatpush3.bf16.msra.mxu1 %v18105_v51  ;;  %v18684_v51 = vpack.c.bf16 %v1411_v44, %v1410_v43  ;;  %v1428_v43 = vld [vmem:[#allocation2 + $0x189] sm:$0xff]  ;;  %v1429_v44 = vld [vmem:[#allocation2 + $0x191] sm:$0xff] }
 0x15b   : > { %15380 = vmatprep.subr.bf16.mxu1 %v18106_v57 }
 0x15e   : > { %15381 = vmatpush3.bf16.msra.mxu1 %v18106_v57  ;;  %v1415_v57 = vld [vmem:[#allocation2 + $0xb1] sm:$0xff] }
 0x15f   : > { %15382 = vmatprep.subr.bf16.mxu1 %v18107_v59  ;;  %v18696_v63 = vpack.c.bf16 %v1415_v57, %v1414_v56  ;;  %v1432_v56 = vld [vmem:[#allocation2 + $0x1c9] sm:$0xff]  ;;  %v1433_v57 = vld [vmem:[#allocation2 + $0x1d1] sm:$0xff] }
 0x161   : > { %15351 = vmatmul.mubr.bf16.gmra.mrb[12].mxu1 %v18646_v2 }
 0x162   : > { %15354 = vmatprep.mubr.bf16.mxu1 %v18651_v6  ;;  %15383 = vmatpush3.bf16.msra.mxu1 %v18107_v59  ;;  %v18691_v59 = vpack.c.bf16 %v1413_v54, %v1412_v53  ;;  %v18733_v53 = vpack.c.bf16 %v1429_v44, %v1428_v43  ;;  %v2018_v43 = vld [vmem:[#allocation2 + $0x48] sm:$0xff] }
 0x163   : > { %15384 = vmatprep.subr.bf16.mxu1 %v18108_v5  ;;  %v18789_v44 = vpack.c.bf16 %v2019_v34, %v2018_v43  ;;  %v18134_v34 = vld [vmem:[%s21785_s3 + $0x188] sm:$0xff]   ;;  %v2948_v43 = vld [vmem:[#allocation2 + $0x110] sm:$0xff] }
 0x166   : > { %15385 = vmatpush3.bf16.msra.mxu1 %v18108_v5  ;;  %v1417_v5 = vld [vmem:[#allocation2 + $0xd1] sm:$0xff] }
 0x167   : > { %15418 = vmatprep.subr.bf16.mxu1 %v18109_v7  ;;  %v18703_v11 = vpack.c.bf16 %v1417_v5, %v1416_v4  ;;  %v18739_v4 = vpack.c.bf16 %v1433_v57, %v1432_v56  ;;  %v2020_v56 = vld [vmem:[#allocation2 + $0x68] sm:$0xff] }
 0x169   : > { %15355 = vmatmul.mubr.bf16.gmra.mrb[16].mxu1 %v18658_v13 }
 0x16a   : > { %15358 = vmatprep.mubr.bf16.mxu1 %v18660_v15 }
 0x171   : > { %15359 = vmatmul.mubr.bf16.gmra.mrb[20].mxu1 %v18664_v21 }
 0x172   : > { %15362 = vmatprep.mubr.bf16.mxu1 %v18666_v23 }
 0x179   : > { %15363 = vmatmul.mubr.bf16.gmra.mrb[24].mxu1 %v18670_v27 }
 0x17a   : > { %15366 = vmatprep.mubr.bf16.mxu1 %v18672_v29 }
 0x181   : > { %15367 = vmatmul.mubr.bf16.gmra.mrb[28].mxu1 %v18676_v3 }
 0x182   : > { %15386 = vmatprep.mubr.bf16.mxu1 %v1438_v39  ;;  %v1427_v39 = vld [vmem:[#allocation2 + $0x171] sm:$0xff] }
 0x183   : > { %v18729_v42 = vpack.c.bf16 %v1427_v39, %v1426_v35  ;;  %v1742_v35 = vld [vmem:[#allocation2 + $0x227] sm:$0xff] }
 0x184   : > { %v18787_v39 = vpack.c.bf16 %v1743_v33, %v1742_v35  ;;  %v18133_v33 = vld [vmem:[%s21785_s3 + $0x180] sm:$0xff]   ;;  %v18135_v35 = vld [vmem:[%s21785_s3 + $0x190] sm:$0xff]  }
 0x189   : > { %15387 = vmatmul.mubr.bf16.vlgmr.msra.gmra.mrb[0].mxu1 %v18679_v46 }
 0x18a   : > { %15419 = vmatpush3.bf16.msra.mxu1 %v18109_v7  ;;  %15390 = vmatprep.mubr.bf16.mxu1 %v18684_v51  ;;  %v1418_v7 = vld [vmem:[#allocation2 + $0xe9] sm:$0xff] }
 0x18b   : > { %15420 = vmatprep.subr.bf16.mxu1 %v18110_v47  ;;  %v18708_v14 = vpack.c.bf16 %v1419_v10, %v1418_v7  ;;  %v1436_v7 = vld [vmem:[#allocation2 + $0x209] sm:$0xff]  ;;  %v1437_v10 = vld [vmem:[#allocation2 + $0x211] sm:$0xff] }
 0x18e   : > { %15421 = vmatpush3.bf16.msra.mxu1 %v18110_v47  ;;  %v1430_v47 = vld [vmem:[#allocation2 + $0x1a9] sm:$0xff] }
 0x18f   : > { %15422 = vmatprep.subr.bf16.mxu1 %v18111_v52 }
 0x191   : > { %15391 = vmatmul.mubr.bf16.gmra.mrb[4].mxu1 %v18691_v59 }
 0x192   : > { %15394 = vmatprep.mubr.bf16.mxu1 %v18696_v63  ;;  %15423 = vmatpush3.bf16.msra.mxu1 %v18111_v52  ;;  %v1431_v52 = vld [vmem:[#allocation2 + $0x1b1] sm:$0xff] }
 0x193   : > { %15424 = vmatprep.subr.bf16.mxu1 %v18112_v62  ;;  %v18735_v54 = vpack.c.bf16 %v1431_v52, %v1430_v47  ;;  %v2021_v47 = vld [vmem:[#allocation2 + $0x70] sm:$0xff] }
 0x194   : > { %v2023_v52 = vld [vmem:[#allocation2 + $0x90] sm:$0xff]  ;;  %v18793_v57 = vpack.c.bf16 %v2021_v47, %v2020_v56 }
 0x195   : > { %v2950_v47 = vld [vmem:[#allocation2 + $0x130] sm:$0xff] }
 0x196   : > { %15425 = vmatpush3.bf16.msra.mxu1 %v18112_v62  ;;  %v1434_v62 = vld [vmem:[#allocation2 + $0x1e9] sm:$0xff] }
 0x197   : > { %15426 = vmatprep.subr.bf16.mxu1 %v18113_v0 }
 0x199   : > { %15395 = vmatmul.mubr.bf16.gmra.mrb[8].mxu1 %v18703_v11 }
 0x19a   : > { %15398 = vmatprep.mubr.bf16.mxu1 %v18708_v14  ;;  %15427 = vmatpush3.bf16.msra.mxu1 %v18113_v0  ;;  %v1435_v0 = vld [vmem:[#allocation2 + $0x1f1] sm:$0xff] }
 0x19b   : > { %15428 = vmatprep.subr.bf16.mxu1 %v18114_v12  ;;  %v18741_v5 = vpack.c.bf16 %v1435_v0, %v1434_v62  ;;  %v2022_v62 = vld [vmem:[#allocation2 + $0x88] sm:$0xff] }
 0x19c   : > { %v18126_v0 = vld [vmem:[%s21785_s3 + $0x148] sm:$0xff]  }
 0x19e   : > { %15429 = vmatpush3.bf16.msra.mxu1 %v18114_v12  ;;  %v18745_v12 = vpack.c.bf16 %v1437_v10, %v1436_v7  ;;  %v18798_v7 = vpack.c.bf16 %v2023_v52, %v2022_v62  ;;  %v18127_v10 = vld [vmem:[%s21785_s3 + $0x150] sm:$0xff]   ;;  %v2947_v52 = vld [vmem:[#allocation2 + $0x108] sm:$0xff] }
 0x19f   : > { %15430 = vmatprep.subr.bf16.mxu1 %v18115_v16  ;;  %v18940_v56 = vpack.c.bf16 %v2948_v43, %v2947_v52  ;;  %v2949_v62 = vld [vmem:[#allocation2 + $0x128] sm:$0xff]  ;;  %v18159_v52 = vld [vmem:[%s21785_s3 + $0x250] sm:$0xff]  }
 0x1a0   : > { %v18158_v43 = vld [vmem:[%s21785_s3 + $0x248] sm:$0xff]  }
 0x1a1   : > { %15399 = vmatmul.mubr.bf16.gmra.mrb[12].mxu1 %v18715_v25 }
 0x1a2   : > { %15402 = vmatprep.mubr.bf16.mxu1 %v18720_v28  ;;  %15431 = vmatpush3.bf16.msra.mxu1 %v18115_v16  ;;  %v18118_v16 = vld [vmem:[%s21785_s3 + $0x108] sm:$0xff]  }
 0x1a3   : > { %15432 = vmatprep.subr.bf16.mxu1 %v18116_v26 }
 0x1a6   : > { %15433 = vmatpush3.bf16.msra.mxu1 %v18116_v26  ;;  %v18124_v26 = vld [vmem:[%s21785_s3 + $0x138] sm:$0xff]  }
 0x1a7   : > { %15466 = vmatprep.subr.bf16.mxu1 %v18117_v30 }
 0x1a9   : > { %15403 = vmatmul.mubr.bf16.gmra.mrb[16].mxu1 %v18727_v41 }
 0x1aa   : > { %15406 = vmatprep.mubr.bf16.mxu1 %v18729_v42 }
 0x1b1   : > { %15407 = vmatmul.mubr.bf16.gmra.mrb[20].mxu1 %v18733_v53 }
 0x1b2   : > { %15410 = vmatprep.mubr.bf16.mxu1 %v18735_v54 }
 0x1b9   : > { %15411 = vmatmul.mubr.bf16.gmra.mrb[24].mxu1 %v18739_v4 }
 0x1ba   : > { %15414 = vmatprep.mubr.bf16.mxu1 %v18741_v5 }
 0x1c1   : > { %15415 = vmatmul.mubr.bf16.gmra.mrb[28].mxu1 %v18745_v12 }
 0x1c2   : > { %15434 = vmatprep.mubr.bf16.mxu1 %v18609_v38  ;;  %v18120_v38 = vld [vmem:[%s21785_s3 + $0x118] sm:$0xff]  }
 0x1c9   : > { %15435 = vmatmul.mubr.bf16.vlgmr.msra.gmra.mrb[0].mxu1 %v18614_v40 }
 0x1ca   : > { %15467 = vmatpush3.bf16.msra.mxu1 %v18117_v30  ;;  %15438 = vmatprep.mubr.bf16.mxu1 %v18622_v45  ;;  %v18125_v30 = vld [vmem:[%s21785_s3 + $0x140] sm:$0xff]  }
 0x1cb   : > { %15468 = vmatprep.subr.bf16.mxu1 %v18118_v16 }
 0x1ce   : > { %15469 = vmatpush3.bf16.msra.mxu1 %v18118_v16  ;;  %v2025_v16 = vld [vmem:[#allocation2 + $0xb0] sm:$0xff] }
 0x1cf   : > { %15470 = vmatprep.subr.bf16.mxu1 %v18119_v17 }
 0x1d1   : > { %15439 = vmatmul.mubr.bf16.gmra.mrb[4].mxu1 %v18627_v50 }
 0x1d2   : > { %15442 = vmatprep.mubr.bf16.mxu1 %v18634_v55  ;;  %15471 = vmatpush3.bf16.msra.mxu1 %v18119_v17  ;;  %v2024_v17 = vld [vmem:[#allocation2 + $0xa8] sm:$0xff] }
 0x1d3   : > { %15472 = vmatprep.subr.bf16.mxu1 %v18120_v38 }
 0x1d6   : > { %15473 = vmatpush3.bf16.msra.mxu1 %v18120_v38  ;;  %v18805_v38 = vpack.c.bf16 %v2025_v16, %v2024_v17  ;;  %v18155_v16 = vld [vmem:[%s21785_s3 + $0x230] sm:$0xff]  }
 0x1d7   : > { %15474 = vmatprep.subr.bf16.mxu1 %v18121_v20  ;;  %v2952_v17 = vld [vmem:[#allocation2 + $0x150] sm:$0xff] }
 0x1d9   : > { %15443 = vmatmul.mubr.bf16.gmra.mrb[8].mxu1 %v18639_v58 }
 0x1da   : > { %15446 = vmatprep.mubr.bf16.mxu1 %v18646_v2  ;;  %15475 = vmatpush3.bf16.msra.mxu1 %v18121_v20  ;;  %v18128_v20 = vld [vmem:[%s21785_s3 + $0x158] sm:$0xff]  }
 0x1db   : > { %15476 = vmatprep.subr.bf16.mxu1 %v18122_v22 }
 0x1de   : > { %15477 = vmatpush3.bf16.msra.mxu1 %v18122_v22  ;;  %v18129_v22 = vld [vmem:[%s21785_s3 + $0x160] sm:$0xff]  }
 0x1df   : > { %15478 = vmatprep.subr.bf16.mxu1 %v18123_v24 }
 0x1e1   : > { %15447 = vmatmul.mubr.bf16.gmra.mrb[12].mxu1 %v18651_v6 }
 0x1e2   : > { %15450 = vmatprep.mubr.bf16.mxu1 %v18658_v13  ;;  %15479 = vmatpush3.bf16.msra.mxu1 %v18123_v24  ;;  %v18130_v24 = vld [vmem:[%s21785_s3 + $0x168] sm:$0xff]  }
 0x1e3   : > { %15480 = vmatprep.subr.bf16.mxu1 %v18124_v26 }
 0x1e6   : > { %15481 = vmatpush3.bf16.msra.mxu1 %v18124_v26  ;;  %v18131_v26 = vld [vmem:[%s21785_s3 + $0x170] sm:$0xff]  }
 0x1e7   : > { %15514 = vmatprep.subr.bf16.mxu1 %v18125_v30 }
 0x1e9   : > { %15451 = vmatmul.mubr.bf16.gmra.mrb[16].mxu1 %v18660_v15 }
 0x1ea   : > { %15454 = vmatprep.mubr.bf16.mxu1 %v18664_v21 }
 0x1f1   : > { %15455 = vmatmul.mubr.bf16.gmra.mrb[20].mxu1 %v18666_v23 }
 0x1f2   : > { %15458 = vmatprep.mubr.bf16.mxu1 %v18670_v27 }
 0x1f9   : > { %15459 = vmatmul.mubr.bf16.gmra.mrb[24].mxu1 %v18672_v29 }
 0x1fa   : > { %15462 = vmatprep.mubr.bf16.mxu1 %v18676_v3 }
 0x201   : > { %15463 = vmatmul.mubr.bf16.gmra.mrb[28].mxu1 %v18787_v39 }
 0x202   : > { %15482 = vmatprep.mubr.bf16.mxu1 %v18789_v44 }
 0x209   : > { %15483 = vmatmul.mubr.bf16.vlgmr.msra.gmra.mrb[0].mxu1 %v18793_v57 }
 0x20a   : > { %15515 = vmatpush3.bf16.msra.mxu1 %v18125_v30  ;;  %15486 = vmatprep.mubr.bf16.mxu1 %v18798_v7  ;;  %v18132_v30 = vld [vmem:[%s21785_s3 + $0x178] sm:$0xff]  }
 0x20b   : > { %15516 = vmatprep.subr.bf16.mxu1 %v18126_v0 }
 0x20e   : > { %15517 = vmatpush3.bf16.msra.mxu1 %v18126_v0  ;;  %v18154_v0 = vld [vmem:[%s21785_s3 + $0x228] sm:$0xff]  }
 0x20f   : > { %15518 = vmatprep.subr.bf16.mxu1 %v18127_v10 }
 0x211   : > { %15487 = vmatmul.mubr.bf16.gmra.mrb[4].mxu1 %v18805_v38 }
 0x212   : > { %15490 = vmatprep.mubr.bf16.mxu1 %v18541_v37  ;;  %15519 = vmatpush3.bf16.msra.mxu1 %v18127_v10  ;;  %v18945_v10 = vpack.c.bf16 %v2950_v47, %v2949_v62  ;;  %v3249_v62 = vld [vmem:[#allocation2 + $0xc9] sm:$0xff] }
 0x213   : > { %15520 = vmatprep.subr.bf16.mxu1 %v18128_v20 }
 0x216   : > { %15521 = vmatpush3.bf16.msra.mxu1 %v18128_v20  ;;  %v2954_v20 = vld [vmem:[#allocation2 + $0x170] sm:$0xff] }
 0x217   : > { %15522 = vmatprep.subr.bf16.mxu1 %v18129_v22 }
 0x219   : > { %15491 = vmatmul.mubr.bf16.gmra.mrb[8].mxu1 %v18539_v36 }
 0x21a   : > { %15494 = vmatprep.mubr.bf16.mxu1 %v18557_v49  ;;  %15523 = vmatpush3.bf16.msra.mxu1 %v18129_v22  ;;  %v2951_v22 = vld [vmem:[#allocation2 + $0x148] sm:$0xff] }
 0x21b   : > { %15524 = vmatprep.subr.bf16.mxu1 %v18130_v24 }
 0x21e   : > { %15525 = vmatpush3.bf16.msra.mxu1 %v18130_v24  ;;  %v18952_v24 = vpack.c.bf16 %v2952_v17, %v2951_v22  ;;  %v3252_v17 = vld [vmem:[#allocation2 + $0xf1] sm:$0xff] }
 0x21f   : > { %15526 = vmatprep.subr.bf16.mxu1 %v18131_v26  ;;  %v18160_v22 = vld [vmem:[%s21785_s3 + $0x258] sm:$0xff]  }
 0x221   : > { %15495 = vmatmul.mubr.bf16.gmra.mrb[12].mxu1 %v18555_v48 }
 0x222   : > { %15498 = vmatprep.mubr.bf16.mxu1 %v18575_v61  ;;  %15527 = vmatpush3.bf16.msra.mxu1 %v18131_v26  ;;  %v2953_v26 = vld [vmem:[#allocation2 + $0x168] sm:$0xff] }
 0x223   : > { %15528 = vmatprep.subr.bf16.mxu1 %v18132_v30 }
 0x226   : > { %15529 = vmatpush3.bf16.msra.mxu1 %v18132_v30  ;;  %v18156_v30 = vld [vmem:[%s21785_s3 + $0x238] sm:$0xff]  }
 0x227   : > { %15562 = vmatprep.subr.bf16.mxu1 %v18133_v33 }
 0x229   : > { %15499 = vmatmul.mubr.bf16.gmra.mrb[16].mxu1 %v18573_v60 }
 0x22a   : > { %15502 = vmatprep.mubr.bf16.mxu1 %v18586_v9 }
 0x231   : > { %15503 = vmatmul.mubr.bf16.gmra.mrb[20].mxu1 %v18584_v8 }
 0x232   : > { %15506 = vmatprep.mubr.bf16.mxu1 %v18596_v19 }
 0x239   : > { %15507 = vmatmul.mubr.bf16.gmra.mrb[24].mxu1 %v18594_v18 }
 0x23a   : > { %15510 = vmatprep.mubr.bf16.mxu1 %v18606_v32 }
 0x241   : > { %15511 = vmatmul.mubr.bf16.gmra.mrb[28].mxu1 %v18604_v31 }
 0x242   : > { %15530 = vmatprep.mubr.bf16.mxu1 %v18679_v46  ;;  %v18136_v46 = vld [vmem:[%s21785_s3 + $0x198] sm:$0xff]  }
 0x249   : > { %15531 = vmatmul.mubr.bf16.vlgmr.msra.gmra.mrb[0].mxu1 %v18684_v51  ;;  %v18137_v51 = vld [vmem:[%s21785_s3 + $0x1a0] sm:$0xff]  }
 0x24a   : > { %15563 = vmatpush3.bf16.msra.mxu1 %v18133_v33  ;;  %15534 = vmatprep.mubr.bf16.mxu1 %v18691_v59  ;;  %v18138_v59 = vld [vmem:[%s21785_s3 + $0x1a8] sm:$0xff]   ;;  %v18957_v33 = vpack.c.bf16 %v2954_v20, %v2953_v26 }
 0x24b   : > { %15564 = vmatprep.subr.bf16.mxu1 %v18134_v34 }
 0x24e   : > { %15565 = vmatpush3.bf16.msra.mxu1 %v18134_v34  ;;  %v18157_v34 = vld [vmem:[%s21785_s3 + $0x240] sm:$0xff]  }
 0x24f   : > { %15566 = vmatprep.subr.bf16.mxu1 %v18135_v35 }
 0x251   : > { %15535 = vmatmul.mubr.bf16.gmra.mrb[4].mxu1 %v18696_v63  ;;  %v18139_v63 = vld [vmem:[%s21785_s3 + $0x1b0] sm:$0xff]  }
 0x252   : > { %15538 = vmatprep.mubr.bf16.mxu1 %v18703_v11  ;;  %15567 = vmatpush3.bf16.msra.mxu1 %v18135_v35  ;;  %v18140_v11 = vld [vmem:[%s21785_s3 + $0x1b8] sm:$0xff]   ;;  %v2956_v35 = vld [vmem:[#allocation2 + $0x190] sm:$0xff] }
 0x253   : > { %15568 = vmatprep.subr.bf16.mxu1 %v18136_v46 }
 0x256   : > { %15569 = vmatpush3.bf16.msra.mxu1 %v18136_v46  ;;  %v2958_v46 = vld [vmem:[#allocation2 + $0x1b0] sm:$0xff] }
 0x257   : > { %15570 = vmatprep.subr.bf16.mxu1 %v18137_v51 }
 0x259   : > { %15539 = vmatmul.mubr.bf16.gmra.mrb[8].mxu1 %v18708_v14  ;;  %v18141_v14 = vld [vmem:[%s21785_s3 + $0x1c0] sm:$0xff]  }
 0x25a   : > { %15542 = vmatprep.mubr.bf16.mxu1 %v18715_v25  ;;  %15571 = vmatpush3.bf16.msra.mxu1 %v18137_v51  ;;  %v2354_v25 = vld [vmem:[#allocation2 + $0x229] sm:$0xff] }
 0x25b   : > { %15572 = vmatprep.subr.bf16.mxu1 %v18138_v59  ;;  %v2955_v51 = vld [vmem:[#allocation2 + $0x188] sm:$0xff] }
 0x25e   : > { %15573 = vmatpush3.bf16.msra.mxu1 %v18138_v59  ;;  %v18964_v59 = vpack.c.bf16 %v2956_v35, %v2955_v51  ;;  %v3254_v35 = vld [vmem:[#allocation2 + $0x111] sm:$0xff] }
 0x25f   : > { %15574 = vmatprep.subr.bf16.mxu1 %v18139_v63  ;;  %v3256_v51 = vld [vmem:[#allocation2 + $0x131] sm:$0xff] }
 0x261   : > { %15543 = vmatmul.mubr.bf16.gmra.mrb[12].mxu1 %v18720_v28  ;;  %v2355_v28 = vld [vmem:[#allocation2 + $0x231] sm:$0xff] }
 0x262   : > { %15546 = vmatprep.mubr.bf16.mxu1 %v18727_v41  ;;  %15575 = vmatpush3.bf16.msra.mxu1 %v18139_v63  ;;  %v18877_v41 = vpack.c.bf16 %v2355_v28, %v2354_v25  ;;  %v2957_v63 = vld [vmem:[#allocation2 + $0x1a8] sm:$0xff]  ;;  %v2962_v25 = vld [vmem:[#allocation2 + $0x1f0] sm:$0xff] }
 0x263   : > { %15576 = vmatprep.subr.bf16.mxu1 %v18140_v11  ;;  %v2959_v28 = vld [vmem:[#allocation2 + $0x1c8] sm:$0xff] }
 0x266   : > { %15577 = vmatpush3.bf16.msra.mxu1 %v18140_v11  ;;  %v18966_v11 = vpack.c.bf16 %v2958_v46, %v2957_v63  ;;  %v3255_v46 = vld [vmem:[#allocation2 + $0x129] sm:$0xff] }
 0x267   : > { %15610 = vmatprep.subr.bf16.mxu1 %v18141_v14 }
 0x269   : > { %15547 = vmatmul.mubr.bf16.gmra.mrb[16].mxu1 %v18729_v42  ;;  %v18142_v42 = vld [vmem:[%s21785_s3 + $0x1c8] sm:$0xff]  }
 0x26a   : > { %15550 = vmatprep.mubr.bf16.mxu1 %v18733_v53  ;;  %v18143_v53 = vld [vmem:[%s21785_s3 + $0x1d0] sm:$0xff]  }
 0x271   : > { %15551 = vmatmul.mubr.bf16.gmra.mrb[20].mxu1 %v18735_v54 }
 0x272   : > { %15554 = vmatprep.mubr.bf16.mxu1 %v18739_v4  ;;  %v2945_v4 = vld [vmem:[#allocation2 + $0xe8] sm:$0xff] }
 0x279   : > { %15555 = vmatmul.mubr.bf16.gmra.mrb[24].mxu1 %v18741_v5  ;;  %v18152_v5 = vld [vmem:[%s21785_s3 + $0x218] sm:$0xff]  }
 0x27a   : > { %15558 = vmatprep.mubr.bf16.mxu1 %v18745_v12 }
 0x281   : > { %15559 = vmatmul.mubr.bf16.gmra.mrb[28].mxu1 %v18877_v41 }
 0x282   : > { %15578 = vmatprep.mubr.bf16.mxu1 %v18614_v40  ;;  %v18144_v40 = vld [vmem:[%s21785_s3 + $0x1d8] sm:$0xff]  }
 0x289   : > { %15579 = vmatmul.mubr.bf16.vlgmr.msra.gmra.mrb[0].mxu1 %v18622_v45  ;;  %v18145_v45 = vld [vmem:[%s21785_s3 + $0x1e0] sm:$0xff]  }
 0x28a   : > { %15611 = vmatpush3.bf16.msra.mxu1 %v18141_v14  ;;  %15582 = vmatprep.mubr.bf16.mxu1 %v18627_v50  ;;  %v18146_v50 = vld [vmem:[%s21785_s3 + $0x1e8] sm:$0xff]   ;;  %v2960_v14 = vld [vmem:[#allocation2 + $0x1d0] sm:$0xff] }
 0x28b   : > { %15612 = vmatprep.subr.bf16.mxu1 %v18142_v42 }
 0x28e   : > { %15613 = vmatpush3.bf16.msra.mxu1 %v18142_v42  ;;  %v18970_v42 = vpack.c.bf16 %v2960_v14, %v2959_v28  ;;  %v18162_v14 = vld [vmem:[%s21785_s3 + $0x268] sm:$0xff]   ;;  %v18163_v28 = vld [vmem:[%s21785_s3 + $0x270] sm:$0xff]  }
 0x28f   : > { %15614 = vmatprep.subr.bf16.mxu1 %v18143_v53 }
 0x291   : > { %15583 = vmatmul.mubr.bf16.gmra.mrb[4].mxu1 %v18634_v55  ;;  %v18147_v55 = vld [vmem:[%s21785_s3 + $0x1f0] sm:$0xff]  }
 0x292   : > { %15586 = vmatprep.mubr.bf16.mxu1 %v18639_v58  ;;  %15615 = vmatpush3.bf16.msra.mxu1 %v18143_v53  ;;  %v18148_v58 = vld [vmem:[%s21785_s3 + $0x1f8] sm:$0xff]   ;;  %v2961_v53 = vld [vmem:[#allocation2 + $0x1e8] sm:$0xff] }
 0x293   : > { %15616 = vmatprep.subr.bf16.mxu1 %v18144_v40 }
 0x296   : > { %15617 = vmatpush3.bf16.msra.mxu1 %v18144_v40  ;;  %v18972_v40 = vpack.c.bf16 %v2962_v25, %v2961_v53  ;;  %v3281_v25 = vpack.c.bf16 %v3256_v51, %v3255_v46  ;;  %v3257_v53 = vld [vmem:[#allocation2 + $0x149] sm:$0xff] }
 0x297   : > { %15618 = vmatprep.subr.bf16.mxu1 %v18145_v45  ;;  %v3551_v46 = vld [vmem:[#allocation2 + $0x26] sm:$0xff]  ;;  %v3552_v51 = vld [vmem:[#allocation2 + $0x2e] sm:$0xff] }
 0x299   : > { %15587 = vmatmul.mubr.bf16.gmra.mrb[8].mxu1 %v18646_v2  ;;  %v18149_v2 = vld [vmem:[%s21785_s3 + $0x200] sm:$0xff]  }
 0x29a   : > { %15590 = vmatprep.mubr.bf16.mxu1 %v18651_v6  ;;  %15619 = vmatpush3.bf16.msra.mxu1 %v18145_v45  ;;  %v2661_v6 = vld [vmem:[#allocation2 + $0x247] sm:$0xff]  ;;  %v2964_v45 = vld [vmem:[#allocation2 + $0x210] sm:$0xff] }
 0x29b   : > { %15620 = vmatprep.subr.bf16.mxu1 %v18146_v50 }
 0x29e   : > { %15621 = vmatpush3.bf16.msra.mxu1 %v18146_v50  ;;  %v2966_v50 = vld [vmem:[#allocation2 + $0x230] sm:$0xff] }
 0x29f   : > { %15622 = vmatprep.subr.bf16.mxu1 %v18147_v55 }
 0x2a1   : > { %15591 = vmatmul.mubr.bf16.gmra.mrb[12].mxu1 %v18658_v13  ;;  %v2662_v13 = vld [vmem:[#allocation2 + $0x24f] sm:$0xff] }
 0x2a2   : > { %15594 = vmatprep.mubr.bf16.mxu1 %v18660_v15  ;;  %15623 = vmatpush3.bf16.msra.mxu1 %v18147_v55  ;;  %v2678_v15 = vpack.c.bf16 %v2662_v13, %v2661_v6  ;;  %v2963_v55 = vld [vmem:[#allocation2 + $0x208] sm:$0xff] }
 0x2a3   : > { %15624 = vmatprep.subr.bf16.mxu1 %v18148_v58  ;;  %v18323_v13 = vld [vmem:[#allocation2 + $0x28] sm:$0xff] }
 0x2a6   : > { %15625 = vmatpush3.bf16.msra.mxu1 %v18148_v58  ;;  %v2982_v58 = vpack.c.bf16 %v2964_v45, %v2963_v55  ;;  %v3258_v45 = vld [vmem:[#allocation2 + $0x151] sm:$0xff] }
 0x2a7   : > { %15658 = vmatprep.subr.bf16.mxu1 %v18149_v2  ;;  %v3260_v55 = vld [vmem:[#allocation2 + $0x171] sm:$0xff] }
 0x2a9   : > { %15595 = vmatmul.mubr.bf16.gmra.mrb[16].mxu1 %v18664_v21  ;;  %v18150_v21 = vld [vmem:[%s21785_s3 + $0x208] sm:$0xff]  }
 0x2aa   : > { %15598 = vmatprep.mubr.bf16.mxu1 %v18666_v23  ;;  %v18151_v23 = vld [vmem:[%s21785_s3 + $0x210] sm:$0xff]  }
 0x2b1   : > { %15599 = vmatmul.mubr.bf16.gmra.mrb[20].mxu1 %v18670_v27  ;;  %v2944_v27 = vld [vmem:[#allocation2 + $0xd0] sm:$0xff] }
 0x2b2   : > { %15602 = vmatprep.mubr.bf16.mxu1 %v18672_v29  ;;  %v2946_v29 = vld [vmem:[#allocation2 + $0xf0] sm:$0xff] }
 0x2b3   : > { %v18933_v12 = vpack.c.bf16 %v2946_v29, %v2945_v4  ;;  %v3245_v29 = vld [vmem:[#allocation2 + $0x89] sm:$0xff] }
 0x2b4   : > { %v3247_v4 = vld [vmem:[#allocation2 + $0xa9] sm:$0xff] }
 0x2b9   : > { %15603 = vmatmul.mubr.bf16.gmra.mrb[24].mxu1 %v18676_v3  ;;  %v2943_v3 = vld [vmem:[#allocation2 + $0xc8] sm:$0xff] }
 0x2ba   : > { %15606 = vmatprep.mubr.bf16.mxu1 %v18787_v39  ;;  %v18928_v54 = vpack.c.bf16 %v2944_v27, %v2943_v3  ;;  %v18153_v39 = vld [vmem:[%s21785_s3 + $0x220] sm:$0xff]   ;;  %v3246_v3 = vld [vmem:[#allocation2 + $0x91] sm:$0xff] }
 0x2c1   : > { %15607 = vmatmul.mubr.bf16.gmra.mrb[28].mxu1 %v2678_v15  ;;  %v18976_v15 = vpack.c.bf16 %v18323_v13, %v18323_v13  ;;  %v18165_v13 = vld [vmem:[%s21785_s3 + $0x280] sm:$0xff]  }
 0x2c2   : > { %15626 = vmatprep.mubr.bf16.mxu1 %v18793_v57 }
 0x2c9   : > { %15627 = vmatmul.mubr.bf16.vlgmr.msra.gmra.mrb[0].mxu1 %v18798_v7 }
 0x2ca   : > { %15659 = vmatpush3.bf16.msra.mxu1 %v18149_v2  ;;  %15630 = vmatprep.mubr.bf16.mxu1 %v18805_v38  ;;  %v2965_v2 = vld [vmem:[#allocation2 + $0x228] sm:$0xff] }
 0x2cb   : > { %15660 = vmatprep.subr.bf16.mxu1 %v18150_v21  ;;  %v2983_v6 = vpack.c.bf16 %v2966_v50, %v2965_v2  ;;  %v3259_v50 = vld [vmem:[#allocation2 + $0x169] sm:$0xff]  ;;  %v18164_v2 = vld [vmem:[%s21785_s3 + $0x278] sm:$0xff]  }
 0x2ce   : > { %15661 = vmatpush3.bf16.msra.mxu1 %v18150_v21  ;;  %v3243_v21 = vld [vmem:[#allocation2 + $0x69] sm:$0xff] }
 0x2cf   : > { %15662 = vmatprep.subr.bf16.mxu1 %v18151_v23 }
 0x2d1   : > { %15631 = vmatmul.mubr.bf16.gmra.mrb[4].mxu1 %v18928_v54 }
 0x2d2   : > { %15634 = vmatprep.mubr.bf16.mxu1 %v18933_v12  ;;  %15663 = vmatpush3.bf16.msra.mxu1 %v18151_v23  ;;  %v3244_v23 = vld [vmem:[#allocation2 + $0x71] sm:$0xff] }
 0x2d3   : > { %15664 = vmatprep.subr.bf16.mxu1 %v18152_v5  ;;  %v3275_v27 = vpack.c.bf16 %v3244_v23, %v3243_v21  ;;  %v3261_v21 = vld [vmem:[#allocation2 + $0x189] sm:$0xff]  ;;  %v3262_v23 = vld [vmem:[#allocation2 + $0x191] sm:$0xff] }
 0x2d6   : > { %15665 = vmatpush3.bf16.msra.mxu1 %v18152_v5  ;;  %v3248_v5 = vld [vmem:[#allocation2 + $0xb1] sm:$0xff] }
 0x2d7   : > { %15666 = vmatprep.subr.bf16.mxu1 %v18153_v39  ;;  %v3277_v47 = vpack.c.bf16 %v3248_v5, %v3247_v4  ;;  %v3265_v5 = vld [vmem:[#allocation2 + $0x1c9] sm:$0xff] }
 0x2d9   : > { %15635 = vmatmul.mubr.bf16.gmra.mrb[8].mxu1 %v18940_v56 }
 0x2da   : > { %15638 = vmatprep.mubr.bf16.mxu1 %v18945_v10  ;;  %15667 = vmatpush3.bf16.msra.mxu1 %v18153_v39  ;;  %v3276_v39 = vpack.c.bf16 %v3246_v3, %v3245_v29  ;;  %v3264_v29 = vld [vmem:[#allocation2 + $0x1b1] sm:$0xff]  ;;  %v3284_v3 = vpack.c.bf16 %v3262_v23, %v3261_v21  ;;  %v18169_v21 = vld [vmem:[%s21785_s3 + $0x2a0] sm:$0xff]  }
 0x2db   : > { %15668 = vmatprep.subr.bf16.mxu1 %v18154_v0  ;;  %v3560_v23 = vld [vmem:[#allocation2 + $0xae] sm:$0xff] }
 0x2de   : > { %15669 = vmatpush3.bf16.msra.mxu1 %v18154_v0  ;;  %v3250_v0 = vld [vmem:[#allocation2 + $0xd1] sm:$0xff] }
 0x2df   : > { %15670 = vmatprep.subr.bf16.mxu1 %v18155_v16  ;;  %v3278_v20 = vpack.c.bf16 %v3250_v0, %v3249_v62  ;;  %v3269_v0 = vld [vmem:[#allocation2 + $0x209] sm:$0xff] }
 0x2e1   : > { %15639 = vmatmul.mubr.bf16.gmra.mrb[12].mxu1 %v18952_v24 }
 0x2e2   : > { %15642 = vmatprep.mubr.bf16.mxu1 %v18957_v33  ;;  %15671 = vmatpush3.bf16.msra.mxu1 %v18155_v16  ;;  %v3251_v16 = vld [vmem:[#allocation2 + $0xe9] sm:$0xff] }
 0x2e3   : > { %15672 = vmatprep.subr.bf16.mxu1 %v18156_v30  ;;  %v3279_v26 = vpack.c.bf16 %v3252_v17, %v3251_v16  ;;  %v3270_v16 = vld [vmem:[#allocation2 + $0x211] sm:$0xff] }
 0x2e4   : > { %v3288_v17 = vpack.c.bf16 %v3270_v16, %v3269_v0  ;;  %v3565_v16 = vld [vmem:[#allocation2 + $0x106] sm:$0xff] }
 0x2e6   : > { %15673 = vmatpush3.bf16.msra.mxu1 %v18156_v30  ;;  %v18161_v30 = vld [vmem:[%s21785_s3 + $0x260] sm:$0xff]  }
 0x2e7   : > { %15706 = vmatprep.subr.bf16.mxu1 %v18157_v34 }
 0x2e9   : > { %15643 = vmatmul.mubr.bf16.gmra.mrb[16].mxu1 %v18964_v59 }
 0x2ea   : > { %15646 = vmatprep.mubr.bf16.mxu1 %v18966_v11 }
 0x2f1   : > { %15647 = vmatmul.mubr.bf16.gmra.mrb[20].mxu1 %v18970_v42 }
 0x2f2   : > { %15650 = vmatprep.mubr.bf16.mxu1 %v18972_v40 }
 0x2f9   : > { %15651 = vmatmul.mubr.bf16.gmra.mrb[24].mxu1 %v2982_v58  ;;  %v3282_v58 = vpack.c.bf16 %v3258_v45, %v3257_v53  ;;  %v3556_v45 = vld [vmem:[#allocation2 + $0x6e] sm:$0xff] }
 0x2fa   : > { %15654 = vmatprep.mubr.bf16.mxu1 %v2983_v6  ;;  %v3283_v6 = vpack.c.bf16 %v3260_v55, %v3259_v50  ;;  %v3558_v50 = vld [vmem:[#allocation2 + $0x8e] sm:$0xff]  ;;  %v3555_v55 = vld [vmem:[#allocation2 + $0x66] sm:$0xff] }
 0x301   : > { %15655 = vmatmul.mubr.bf16.gmra.mrb[28].mxu1 %v18976_v15 }
 0x302   : > { %15674 = vmatprep.mubr.bf16.mxu1 %v3275_v27  ;;  %v3263_v27 = vld [vmem:[#allocation2 + $0x1a9] sm:$0xff] }
 0x303   : > { %v3285_v4 = vpack.c.bf16 %v3264_v29, %v3263_v27  ;;  %v3562_v27 = vld [vmem:[#allocation2 + $0xce] sm:$0xff]  ;;  %v3559_v29 = vld [vmem:[#allocation2 + $0xa6] sm:$0xff] }
 0x309   : > { %15675 = vmatmul.mubr.bf16.vlgmr.msra.gmra.mrb[0].mxu1 %v3276_v39  ;;  %v3266_v39 = vld [vmem:[#allocation2 + $0x1d1] sm:$0xff] }
 0x30a   : > { %15707 = vmatpush3.bf16.msra.mxu1 %v18157_v34  ;;  %15678 = vmatprep.mubr.bf16.mxu1 %v3277_v47  ;;  %v3253_v34 = vld [vmem:[#allocation2 + $0x109] sm:$0xff]  ;;  %v3268_v47 = vld [vmem:[#allocation2 + $0x1f1] sm:$0xff] }
 0x30b   : > { %15708 = vmatprep.subr.bf16.mxu1 %v18158_v43  ;;  %v3280_v63 = vpack.c.bf16 %v3254_v35, %v3253_v34 }
 0x30e   : > { %15709 = vmatpush3.bf16.msra.mxu1 %v18158_v43  ;;  %v3267_v43 = vld [vmem:[#allocation2 + $0x1e9] sm:$0xff] }
 0x30f   : > { %15710 = vmatprep.subr.bf16.mxu1 %v18159_v52  ;;  %v3287_v62 = vpack.c.bf16 %v3268_v47, %v3267_v43  ;;  %v18171_v43 = vld [vmem:[%s21785_s3 + $0x2b0] sm:$0xff]  }
 0x310   : > { %v3564_v47 = vld [vmem:[#allocation2 + $0xee] sm:$0xff] }
 0x311   : > { %15679 = vmatmul.mubr.bf16.gmra.mrb[4].mxu1 %v3278_v20  ;;  %v3273_v20 = vld [vmem:[#allocation2 + $0x249] sm:$0xff] }
 0x312   : > { %15682 = vmatprep.mubr.bf16.mxu1 %v3279_v26  ;;  %15711 = vmatpush3.bf16.msra.mxu1 %v18159_v52  ;;  %v3286_v52 = vpack.c.bf16 %v3266_v39, %v3265_v5  ;;  %v3549_v26 = vld [vmem:[#allocation2 + $0x6] sm:$0xff] }
 0x313   : > { %15712 = vmatprep.subr.bf16.mxu1 %v18160_v22  ;;  %v18170_v5 = vld [vmem:[%s21785_s3 + $0x2a8] sm:$0xff]  }
 0x316   : > { %15713 = vmatpush3.bf16.msra.mxu1 %v18160_v22  ;;  %v3274_v22 = vld [vmem:[#allocation2 + $0x251] sm:$0xff] }
 0x317   : > { %15714 = vmatprep.subr.bf16.mxu1 %v18161_v30  ;;  %v3290_v34 = vpack.c.bf16 %v3274_v22, %v3273_v20  ;;  %v18173_v22 = vld [vmem:[%s21785_s3 + $0x2c0] sm:$0xff]  }
 0x319   : > { %15683 = vmatmul.mubr.bf16.gmra.mrb[8].mxu1 %v3280_v63  ;;  %v3582_v63 = vpack.c.bf16 %v3552_v51, %v3551_v46  ;;  %v3569_v46 = vld [vmem:[#allocation2 + $0x146] sm:$0xff] }
 0x31a   : > { %15686 = vmatprep.mubr.bf16.mxu1 %v3281_v25  ;;  %15715 = vmatpush3.bf16.msra.mxu1 %v18161_v30  ;;  %v3550_v30 = vld [vmem:[#allocation2 + $0xe] sm:$0xff]  ;;  %v3553_v25 = vld [vmem:[#allocation2 + $0x46] sm:$0xff] }
 0x31b   : > { %15716 = vmatprep.subr.bf16.mxu1 %v18162_v14  ;;  %v3581_v35 = vpack.c.bf16 %v3550_v30, %v3549_v26  ;;  %v3568_v26 = vld [vmem:[#allocation2 + $0x12e] sm:$0xff] }
 0x31c   : > { %v3570_v30 = vld [vmem:[#allocation2 + $0x14e] sm:$0xff] }
 0x31d   : > { %v19051_v51 = vpack.c.bf16 %v3570_v30, %v3569_v46  ;;  %v18176_v46 = vld [vmem:[%s21785_s3 + $0x2d8] sm:$0xff]  }
 0x31e   : > { %15717 = vmatpush3.bf16.msra.mxu1 %v18162_v14  ;;  %v3554_v14 = vld [vmem:[#allocation2 + $0x4e] sm:$0xff] }
 0x31f   : > { %15718 = vmatprep.subr.bf16.mxu1 %v18163_v28  ;;  %v19007_v53 = vpack.c.bf16 %v3554_v14, %v3553_v25  ;;  %v3574_v14 = vld [vmem:[#allocation2 + $0x18e] sm:$0xff]  ;;  %v3571_v25 = vld [vmem:[#allocation2 + $0x166] sm:$0xff] }
 0x321   : > { %15687 = vmatmul.mubr.bf16.gmra.mrb[12].mxu1 %v3282_v58  ;;  %v19013_v58 = vpack.c.bf16 %v3556_v45, %v3555_v55  ;;  %v3578_v55 = vld [vmem:[#allocation2 + $0x1ce] sm:$0xff] }
 0x322   : > { %15690 = vmatprep.mubr.bf16.mxu1 %v3283_v6  ;;  %15719 = vmatpush3.bf16.msra.mxu1 %v18163_v28  ;;  %v18166_v28 = vld [vmem:[%s21785_s3 + $0x288] sm:$0xff]   ;;  %v18168_v6 = vld [vmem:[%s21785_s3 + $0x298] sm:$0xff]  }
 0x323   : > { %15720 = vmatprep.subr.bf16.mxu1 %v18164_v2 }
 0x326   : > { %15721 = vmatpush3.bf16.msra.mxu1 %v18164_v2  ;;  %v3557_v2 = vld [vmem:[#allocation2 + $0x86] sm:$0xff] }
 0x327   : > { %15754 = vmatprep.subr.bf16.mxu1 %v18165_v13 }
 0x329   : > { %15691 = vmatmul.mubr.bf16.gmra.mrb[16].mxu1 %v3284_v3  ;;  %v19025_v3 = vpack.c.bf16 %v3560_v23, %v3559_v29  ;;  %v3579_v29 = vld [vmem:[#allocation2 + $0x1e6] sm:$0xff] }
 0x32a   : > { %15694 = vmatprep.mubr.bf16.mxu1 %v3285_v4  ;;  %v3561_v4 = vld [vmem:[#allocation2 + $0xc6] sm:$0xff] }
 0x32b   : > { %v19030_v39 = vpack.c.bf16 %v3562_v27, %v3561_v4  ;;  %v3580_v27 = vld [vmem:[#allocation2 + $0x1ee] sm:$0xff] }
 0x32c   : > { %v19067_v4 = vpack.c.bf16 %v3580_v27, %v3579_v29  ;;  %v4164_v27 = vld [vmem:[#allocation2 + $0x32] sm:$0xff] }
 0x331   : > { %15695 = vmatmul.mubr.bf16.gmra.mrb[20].mxu1 %v3286_v52  ;;  %v3566_v52 = vld [vmem:[#allocation2 + $0x10e] sm:$0xff] }
 0x332   : > { %15698 = vmatprep.mubr.bf16.mxu1 %v3287_v62  ;;  %v3563_v62 = vld [vmem:[#allocation2 + $0xe6] sm:$0xff]  ;;  %v19042_v20 = vpack.c.bf16 %v3566_v52, %v3565_v16  ;;  %v3862_v16 = vld [vmem:[#allocation2 + $0x70] sm:$0xff] }
 0x333   : > { %v19037_v0 = vpack.c.bf16 %v3564_v47, %v3563_v62  ;;  %v18174_v47 = vld [vmem:[%s21785_s3 + $0x2c8] sm:$0xff]   ;;  %v18175_v62 = vld [vmem:[%s21785_s3 + $0x2d0] sm:$0xff]  }
 0x339   : > { %15699 = vmatmul.mubr.bf16.gmra.mrb[24].mxu1 %v3288_v17  ;;  %v18172_v17 = vld [vmem:[%s21785_s3 + $0x2b8] sm:$0xff]  }
 0x33a   : > { %15702 = vmatprep.mubr.bf16.mxu1 %v18877_v41  ;;  %v18167_v41 = vld [vmem:[%s21785_s3 + $0x290] sm:$0xff]  }
 0x341   : > { %15703 = vmatmul.mubr.bf16.gmra.mrb[28].mxu1 %v3290_v34  ;;  %v3567_v34 = vld [vmem:[#allocation2 + $0x126] sm:$0xff] }
 0x342   : > { %15722 = vmatprep.mubr.bf16.mxu1 %v3581_v35  ;;  %v19049_v35 = vpack.c.bf16 %v3568_v26, %v3567_v34  ;;  %v3861_v26 = vld [vmem:[#allocation2 + $0x68] sm:$0xff] }
 0x343   : > { %v3890_v30 = vpack.c.bf16 %v3862_v16, %v3861_v26  ;;  %v3863_v34 = vld [vmem:[#allocation2 + $0x88] sm:$0xff]  ;;  %v18185_v16 = vld [vmem:[%s21785_s3 + $0x320] sm:$0xff]   ;;  %v4172_v26 = vld [vmem:[#allocation2 + $0xb2] sm:$0xff] }
 0x349   : > { %15723 = vmatmul.mubr.bf16.vlgmr.msra.gmra.mrb[0].mxu1 %v3582_v63  ;;  %v3572_v63 = vld [vmem:[#allocation2 + $0x16e] sm:$0xff] }
 0x34a   : > { %15755 = vmatpush3.bf16.msra.mxu1 %v18165_v13  ;;  %15726 = vmatprep.mubr.bf16.mxu1 %v19007_v53  ;;  %v19018_v13 = vpack.c.bf16 %v3558_v50, %v3557_v2  ;;  %v3576_v50 = vld [vmem:[#allocation2 + $0x1ae] sm:$0xff]  ;;  %v3575_v2 = vld [vmem:[#allocation2 + $0x1a6] sm:$0xff] }
 0x34b   : > { %15756 = vmatprep.subr.bf16.mxu1 %v18166_v28 }
 0x34e   : > { %15757 = vmatpush3.bf16.msra.mxu1 %v18166_v28  ;;  %v19055_v28 = vpack.c.bf16 %v3572_v63, %v3571_v25 }
 0x34f   : > { %15758 = vmatprep.subr.bf16.mxu1 %v18167_v41 }
 0x351   : > { %15727 = vmatmul.mubr.bf16.gmra.mrb[4].mxu1 %v19013_v58 }
 0x352   : > { %15730 = vmatprep.mubr.bf16.mxu1 %v19018_v13  ;;  %15759 = vmatpush3.bf16.msra.mxu1 %v18167_v41  ;;  %v3573_v41 = vld [vmem:[#allocation2 + $0x186] sm:$0xff] }
 0x353   : > { %15760 = vmatprep.subr.bf16.mxu1 %v18168_v6  ;;  %v19057_v45 = vpack.c.bf16 %v3574_v14, %v3573_v41  ;;  %v3865_v14 = vld [vmem:[#allocation2 + $0xa8] sm:$0xff] }
 0x354   : > { %v18178_v41 = vld [vmem:[%s21785_s3 + $0x2e8] sm:$0xff]  }
 0x356   : > { %15761 = vmatpush3.bf16.msra.mxu1 %v18168_v6  ;;  %v19061_v6 = vpack.c.bf16 %v3576_v50, %v3575_v2  ;;  %v18179_v50 = vld [vmem:[%s21785_s3 + $0x2f0] sm:$0xff]  }
 0x357   : > { %15762 = vmatprep.subr.bf16.mxu1 %v18169_v21 }
 0x359   : > { %15731 = vmatmul.mubr.bf16.gmra.mrb[8].mxu1 %v19025_v3 }
 0x35a   : > { %15734 = vmatprep.mubr.bf16.mxu1 %v19030_v39  ;;  %15763 = vmatpush3.bf16.msra.mxu1 %v18169_v21  ;;  %v3577_v21 = vld [vmem:[#allocation2 + $0x1c6] sm:$0xff] }
 0x35b   : > { %15764 = vmatprep.subr.bf16.mxu1 %v18170_v5  ;;  %v19063_v23 = vpack.c.bf16 %v3578_v55, %v3577_v21  ;;  %v18180_v55 = vld [vmem:[%s21785_s3 + $0x2f8] sm:$0xff]   ;;  %v4163_v21 = vld [vmem:[#allocation2 + $0x2a] sm:$0xff] }
 0x35c   : > { %v4194_v29 = vpack.c.bf16 %v4164_v27, %v4163_v21  ;;  %v4180_v21 = vld [vmem:[#allocation2 + $0x132] sm:$0xff]  ;;  %v4181_v27 = vld [vmem:[#allocation2 + $0x14a] sm:$0xff] }
 0x35e   : > { %15765 = vmatpush3.bf16.msra.mxu1 %v18170_v5  ;;  %v3860_v5 = vld [vmem:[#allocation2 + $0x50] sm:$0xff] }
 0x35f   : > { %15766 = vmatprep.subr.bf16.mxu1 %v18171_v43 }
 0x361   : > { %15735 = vmatmul.mubr.bf16.gmra.mrb[12].mxu1 %v19037_v0 }
 0x362   : > { %15738 = vmatprep.mubr.bf16.mxu1 %v19042_v20  ;;  %15767 = vmatpush3.bf16.msra.mxu1 %v18171_v43  ;;  %v3859_v43 = vld [vmem:[#allocation2 + $0x48] sm:$0xff] }
 0x363   : > { %15768 = vmatprep.subr.bf16.mxu1 %v18172_v17  ;;  %v3889_v52 = vpack.c.bf16 %v3860_v5, %v3859_v43  ;;  %v4166_v5 = vld [vmem:[#allocation2 + $0x52] sm:$0xff] }
 0x364   : > { %v4170_v43 = vld [vmem:[#allocation2 + $0x92] sm:$0xff] }
 0x366   : > { %15769 = vmatpush3.bf16.msra.mxu1 %v18172_v17  ;;  %v3864_v17 = vld [vmem:[#allocation2 + $0x90] sm:$0xff] }
 0x367   : > { %15802 = vmatprep.subr.bf16.mxu1 %v18173_v22  ;;  %v3891_v63 = vpack.c.bf16 %v3864_v17, %v3863_v34  ;;  %v4171_v17 = vld [vmem:[#allocation2 + $0xaa] sm:$0xff]  ;;  %v4174_v34 = vld [vmem:[#allocation2 + $0xd2] sm:$0xff] }
 0x369   : > { %15739 = vmatmul.mubr.bf16.gmra.mrb[16].mxu1 %v19049_v35 }
 0x36a   : > { %15742 = vmatprep.mubr.bf16.mxu1 %v19051_v51 }
 0x371   : > { %15743 = vmatmul.mubr.bf16.gmra.mrb[20].mxu1 %v19055_v28 }
 0x372   : > { %15746 = vmatprep.mubr.bf16.mxu1 %v19057_v45 }
 0x379   : > { %15747 = vmatmul.mubr.bf16.gmra.mrb[24].mxu1 %v19061_v6 }
 0x37a   : > { %15750 = vmatprep.mubr.bf16.mxu1 %v19063_v23 }
 0x381   : > { %15751 = vmatmul.mubr.bf16.gmra.mrb[28].mxu1 %v19067_v4 }
 0x382   : > { %15770 = vmatprep.mubr.bf16.mxu1 %v18976_v15 }
 0x389   : > { %15771 = vmatmul.mubr.bf16.vlgmr.msra.gmra.mrb[0].mxu1 %v18976_v15  ;;  %v18177_v15 = vld [vmem:[%s21785_s3 + $0x2e0] sm:$0xff]  }
 0x38a   : > { %15803 = vmatpush3.bf16.msra.mxu1 %v18173_v22  ;;  %15774 = vmatprep.mubr.bf16.mxu1 %v3889_v52  ;;  %v3866_v22 = vld [vmem:[#allocation2 + $0xb0] sm:$0xff]  ;;  %v18184_v52 = vld [vmem:[%s21785_s3 + $0x318] sm:$0xff]  }
 0x38b   : > { %15804 = vmatprep.subr.bf16.mxu1 %v18174_v47  ;;  %v3892_v25 = vpack.c.bf16 %v3866_v22, %v3865_v14  ;;  %v18187_v22 = vld [vmem:[%s21785_s3 + $0x330] sm:$0xff]  }
 0x38c   : > { %v4175_v14 = vld [vmem:[#allocation2 + $0xea] sm:$0xff] }
 0x38e   : > { %15805 = vmatpush3.bf16.msra.mxu1 %v18174_v47 }
 0x38f   : > { %15806 = vmatprep.subr.bf16.mxu1 %v18175_v62 }
 0x391   : > { %15775 = vmatmul.mubr.bf16.gmra.mrb[4].mxu1 %v3890_v30  ;;  %v4173_v30 = vld [vmem:[#allocation2 + $0xca] sm:$0xff] }
 0x392   : > { %15778 = vmatprep.mubr.bf16.mxu1 %v3891_v63  ;;  %15807 = vmatpush3.bf16.msra.mxu1 %v18175_v62  ;;  %v18186_v63 = vld [vmem:[%s21785_s3 + $0x328] sm:$0xff]  }
 0x393   : > { %15808 = vmatprep.subr.bf16.mxu1 %v18176_v46 }
 0x396   : > { %15809 = vmatpush3.bf16.msra.mxu1 %v18176_v46  ;;  %v19127_v46 = vpack.c.bf16 %v4172_v26, %v4171_v17  ;;  %v4189_v17 = vld [vmem:[#allocation2 + $0x1ca] sm:$0xff]  ;;  %v4190_v26 = vld [vmem:[#allocation2 + $0x1d2] sm:$0xff] }
 0x397   : > { %15810 = vmatprep.subr.bf16.mxu1 %v18177_v15 }
 0x399   : > { %15779 = vmatmul.mubr.bf16.gmra.mrb[8].mxu1 %v3892_v25  ;;  %v4176_v25 = vld [vmem:[#allocation2 + $0xf2] sm:$0xff] }
 0x39a   : > { %15782 = vmatprep.mubr.bf16.mxu1 %v18928_v54  ;;  %15811 = vmatpush3.bf16.msra.mxu1 %v18177_v15  ;;  %v18181_v54 = vld [vmem:[%s21785_s3 + $0x300] sm:$0xff]   ;;  %v19132_v15 = vpack.c.bf16 %v4174_v34, %v4173_v30  ;;  %v19165_v34 = vpack.c.bf16 %v4190_v26, %v4189_v17  ;;  %v5351_v17 = vld [vmem:[#allocation2 + $0x14e] sm:$0xff] }
 0x39b   : > { %15812 = vmatprep.subr.bf16.mxu1 %v18178_v41  ;;  %v5348_v26 = vld [vmem:[#allocation2 + $0x126] sm:$0xff] }
 0x39e   : > { %15813 = vmatpush3.bf16.msra.mxu1 %v18178_v41  ;;  %v4177_v41 = vld [vmem:[#allocation2 + $0x10a] sm:$0xff] }
 0x39f   : > { %15814 = vmatprep.subr.bf16.mxu1 %v18179_v50 }
 0x3a1   : > { %15783 = vmatmul.mubr.bf16.gmra.mrb[12].mxu1 %v18933_v12  ;;  %v4161_v12 = vld [vmem:[#allocation2 + $0xa] sm:$0xff] }
 0x3a2   : > { %15786 = vmatprep.mubr.bf16.mxu1 %v18940_v56  ;;  %15815 = vmatpush3.bf16.msra.mxu1 %v18179_v50  ;;  %v4162_v56 = vld [vmem:[#allocation2 + $0x12] sm:$0xff] }
 0x3a3   : > { %15816 = vmatprep.subr.bf16.mxu1 %v18180_v55  ;;  %v4193_v2 = vpack.c.bf16 %v4162_v56, %v4161_v12  ;;  %v4178_v50 = vld [vmem:[#allocation2 + $0x112] sm:$0xff]  ;;  %v18189_v56 = vld [vmem:[%s21785_s3 + $0x340] sm:$0xff]  }
 0x3a4   : > { %v19144_v12 = vpack.c.bf16 %v4178_v50, %v4177_v41  ;;  %v18191_v41 = vld [vmem:[%s21785_s3 + $0x350] sm:$0xff]  }
 0x3a6   : > { %15817 = vmatpush3.bf16.msra.mxu1 %v18180_v55  ;;  %v19139_v55 = vpack.c.bf16 %v4176_v25, %v4175_v14  ;;  %v18190_v25 = vld [vmem:[%s21785_s3 + $0x348] sm:$0xff]  }
 0x3a7   : > { %15850 = vmatprep.subr.bf16.mxu1 %v18181_v54 }
 0x3a9   : > { %15787 = vmatmul.mubr.bf16.gmra.mrb[16].mxu1 %v18945_v10  ;;  %v4165_v10 = vld [vmem:[#allocation2 + $0x4a] sm:$0xff] }
 0x3aa   : > { %15790 = vmatprep.mubr.bf16.mxu1 %v18952_v24  ;;  %v18182_v24 = vld [vmem:[%s21785_s3 + $0x308] sm:$0xff]  }
 0x3b1   : > { %15791 = vmatmul.mubr.bf16.gmra.mrb[20].mxu1 %v18957_v33  ;;  %v19109_v33 = vpack.c.bf16 %v4166_v5, %v4165_v10 }
 0x3b2   : > { %15794 = vmatprep.mubr.bf16.mxu1 %v18964_v59  ;;  %v18183_v59 = vld [vmem:[%s21785_s3 + $0x310] sm:$0xff]  }
 0x3b9   : > { %15795 = vmatmul.mubr.bf16.gmra.mrb[24].mxu1 %v18966_v11  ;;  %v4167_v11 = vld [vmem:[#allocation2 + $0x6a] sm:$0xff] }
 0x3ba   : > { %15798 = vmatprep.mubr.bf16.mxu1 %v18970_v42  ;;  %v4168_v42 = vld [vmem:[#allocation2 + $0x72] sm:$0xff] }
 0x3bb   : > { %v19115_v47 = vpack.c.bf16 %v4168_v42, %v4167_v11  ;;  %v4185_v11 = vld [vmem:[#allocation2 + $0x18a] sm:$0xff]  ;;  %v4186_v42 = vld [vmem:[#allocation2 + $0x192] sm:$0xff] }
 0x3c1   : > { %15799 = vmatmul.mubr.bf16.gmra.mrb[28].mxu1 %v18972_v40  ;;  %v4169_v40 = vld [vmem:[#allocation2 + $0x8a] sm:$0xff] }
 0x3c2   : > { %15818 = vmatprep.mubr.bf16.mxu1 %v4193_v2  ;;  %v19120_v62 = vpack.c.bf16 %v4170_v43, %v4169_v40  ;;  %v4179_v2 = vld [vmem:[#allocation2 + $0x12a] sm:$0xff]  ;;  %v19159_v43 = vpack.c.bf16 %v4186_v42, %v4185_v11 }
 0x3c3   : > { %v19151_v10 = vpack.c.bf16 %v4180_v21, %v4179_v2  ;;  %v5342_v21 = vld [vmem:[#allocation2 + $0xc6] sm:$0xff] }
 0x3c4   : > { %v5346_v42 = vld [vmem:[#allocation2 + $0x106] sm:$0xff] }
 0x3c9   : > { %15819 = vmatmul.mubr.bf16.vlgmr.msra.gmra.mrb[0].mxu1 %v4194_v29  ;;  %v4182_v29 = vld [vmem:[#allocation2 + $0x152] sm:$0xff] }
 0x3ca   : > { %15851 = vmatpush3.bf16.msra.mxu1 %v18181_v54  ;;  %15822 = vmatprep.mubr.bf16.mxu1 %v19109_v33  ;;  %v18188_v54 = vld [vmem:[%s21785_s3 + $0x338] sm:$0xff]   ;;  %v19153_v5 = vpack.c.bf16 %v4182_v29, %v4181_v27  ;;  %v18214_v27 = vld [vmem:[%s21785_s3 + $0x408] sm:$0xff]  }
 0x3cb   : > { %15852 = vmatprep.subr.bf16.mxu1 %v18182_v24 }
 0x3ce   : > { %15853 = vmatpush3.bf16.msra.mxu1 %v18182_v24  ;;  %v4183_v24 = vld [vmem:[#allocation2 + $0x16a] sm:$0xff] }
 0x3cf   : > { %15854 = vmatprep.subr.bf16.mxu1 %v18183_v59 }
 0x3d1   : > { %15823 = vmatmul.mubr.bf16.gmra.mrb[4].mxu1 %v19115_v47 }
 0x3d2   : > { %15826 = vmatprep.mubr.bf16.mxu1 %v19120_v62  ;;  %15855 = vmatpush3.bf16.msra.mxu1 %v18183_v59  ;;  %v4184_v59 = vld [vmem:[#allocation2 + $0x172] sm:$0xff] }
 0x3d3   : > { %15856 = vmatprep.subr.bf16.mxu1 %v18184_v52  ;;  %v19157_v40 = vpack.c.bf16 %v4184_v59, %v4183_v24  ;;  %v5347_v24 = vld [vmem:[#allocation2 + $0x10e] sm:$0xff]  ;;  %v5344_v59 = vld [vmem:[#allocation2 + $0xe6] sm:$0xff] }
 0x3d6   : > { %15857 = vmatpush3.bf16.msra.mxu1 %v18184_v52  ;;  %v4187_v52 = vld [vmem:[#allocation2 + $0x1aa] sm:$0xff] }
 0x3d7   : > { %15858 = vmatprep.subr.bf16.mxu1 %v18185_v16 }
 0x3d9   : > { %15827 = vmatmul.mubr.bf16.gmra.mrb[8].mxu1 %v19127_v46 }
 0x3da   : > { %15830 = vmatprep.mubr.bf16.mxu1 %v19132_v15  ;;  %15859 = vmatpush3.bf16.msra.mxu1 %v18185_v16  ;;  %v4188_v16 = vld [vmem:[#allocation2 + $0x1b2] sm:$0xff] }
 0x3db   : > { %15860 = vmatprep.subr.bf16.mxu1 %v18186_v63  ;;  %v19163_v30 = vpack.c.bf16 %v4188_v16, %v4187_v52  ;;  %v18217_v52 = vld [vmem:[%s21785_s3 + $0x420] sm:$0xff]   ;;  %v5349_v16 = vld [vmem:[#allocation2 + $0x12e] sm:$0xff] }
 0x3de   : > { %15861 = vmatpush3.bf16.msra.mxu1 %v18186_v63  ;;  %v4191_v63 = vld [vmem:[#allocation2 + $0x1ea] sm:$0xff] }
 0x3df   : > { %15862 = vmatprep.subr.bf16.mxu1 %v18187_v22 }
 0x3e1   : > { %15831 = vmatmul.mubr.bf16.gmra.mrb[12].mxu1 %v19139_v55 }
 0x3e2   : > { %15834 = vmatprep.mubr.bf16.mxu1 %v19144_v12  ;;  %15863 = vmatpush3.bf16.msra.mxu1 %v18187_v22  ;;  %v4192_v22 = vld [vmem:[#allocation2 + $0x1f2] sm:$0xff] }
 0x3e3   : > { %15864 = vmatprep.subr.bf16.mxu1 %v18188_v54  ;;  %v19169_v14 = vpack.c.bf16 %v4192_v22, %v4191_v63  ;;  %v18218_v63 = vld [vmem:[%s21785_s3 + $0x428] sm:$0xff]  }
 0x3e6   : > { %15865 = vmatpush3.bf16.msra.mxu1 %v18188_v54  ;;  %v4497_v54 = vld [vmem:[#allocation2 + $0x226] sm:$0xff] }
 0x3e7   : > { %15898 = vmatprep.subr.bf16.mxu1 %v18189_v56 }
 0x3e9   : > { %15835 = vmatmul.mubr.bf16.gmra.mrb[16].mxu1 %v19151_v10 }
 0x3ea   : > { %15838 = vmatprep.mubr.bf16.mxu1 %v19153_v5 }
 0x3f1   : > { %15839 = vmatmul.mubr.bf16.gmra.mrb[20].mxu1 %v19157_v40 }
 0x3f2   : > { %15842 = vmatprep.mubr.bf16.mxu1 %v19159_v43 }
 0x3f9   : > { %15843 = vmatmul.mubr.bf16.gmra.mrb[24].mxu1 %v19163_v30 }
 0x3fa   : > { %15846 = vmatprep.mubr.bf16.mxu1 %v19165_v34 }
 0x401   : > { %15847 = vmatmul.mubr.bf16.gmra.mrb[28].mxu1 %v19169_v14 }
 0x402   : > { %15866 = vmatprep.mubr.bf16.mxu1 %v19007_v53  ;;  %v18192_v53 = vld [vmem:[%s21785_s3 + $0x358] sm:$0xff]  }
 0x409   : > { %15867 = vmatmul.mubr.bf16.vlgmr.msra.gmra.mrb[0].mxu1 %v19013_v58  ;;  %v18193_v58 = vld [vmem:[%s21785_s3 + $0x360] sm:$0xff]  }
 0x40a   : > { %15899 = vmatpush3.bf16.msra.mxu1 %v18189_v56  ;;  %15870 = vmatprep.mubr.bf16.mxu1 %v19018_v13  ;;  %v18194_v13 = vld [vmem:[%s21785_s3 + $0x368] sm:$0xff]  }
 0x40b   : > { %15900 = vmatprep.subr.bf16.mxu1 %v18190_v25 }
 0x40e   : > { %15901 = vmatpush3.bf16.msra.mxu1 %v18190_v25  ;;  %v5353_v25 = vld [vmem:[#allocation2 + $0x16e] sm:$0xff] }
 0x40f   : > { %15902 = vmatprep.subr.bf16.mxu1 %v18191_v41 }
 0x411   : > { %15871 = vmatmul.mubr.bf16.gmra.mrb[4].mxu1 %v19025_v3  ;;  %v18195_v3 = vld [vmem:[%s21785_s3 + $0x370] sm:$0xff]  }
 0x412   : > { %15874 = vmatprep.mubr.bf16.mxu1 %v19030_v39  ;;  %15903 = vmatpush3.bf16.msra.mxu1 %v18191_v41  ;;  %v18196_v39 = vld [vmem:[%s21785_s3 + $0x378] sm:$0xff]   ;;  %v5355_v41 = vld [vmem:[#allocation2 + $0x18e] sm:$0xff] }
 0x413   : > { %15904 = vmatprep.subr.bf16.mxu1 %v18192_v53 }
 0x416   : > { %15905 = vmatpush3.bf16.msra.mxu1 %v18192_v53  ;;  %v5352_v53 = vld [vmem:[#allocation2 + $0x166] sm:$0xff] }
 0x417   : > { %15906 = vmatprep.subr.bf16.mxu1 %v18193_v58 }
 0x419   : > { %15875 = vmatmul.mubr.bf16.gmra.mrb[8].mxu1 %v19037_v0  ;;  %v18197_v0 = vld [vmem:[%s21785_s3 + $0x380] sm:$0xff]  }
 0x41a   : > { %15878 = vmatprep.mubr.bf16.mxu1 %v19042_v20  ;;  %15907 = vmatpush3.bf16.msra.mxu1 %v18193_v58  ;;  %v4496_v20 = vld [vmem:[#allocation2 + $0x20e] sm:$0xff]  ;;  %v5377_v58 = vpack.c.bf16 %v5353_v25, %v5352_v53 }
 0x41b   : > { %15908 = vmatprep.subr.bf16.mxu1 %v18194_v13  ;;  %v5664_v25 = vld [vmem:[#allocation2 + $0x1c8] sm:$0xff]  ;;  %v5667_v53 = vld [vmem:[#allocation2 + $0x1f0] sm:$0xff] }
 0x41e   : > { %15909 = vmatpush3.bf16.msra.mxu1 %v18194_v13  ;;  %v5354_v13 = vld [vmem:[#allocation2 + $0x186] sm:$0xff] }
 0x41f   : > { %15910 = vmatprep.subr.bf16.mxu1 %v18195_v3 }
 0x421   : > { %15879 = vmatmul.mubr.bf16.gmra.mrb[12].mxu1 %v19049_v35  ;;  %v4495_v35 = vld [vmem:[#allocation2 + $0x206] sm:$0xff] }
 0x422   : > { %15882 = vmatprep.mubr.bf16.mxu1 %v19051_v51  ;;  %15911 = vmatpush3.bf16.msra.mxu1 %v18195_v3  ;;  %v19209_v50 = vpack.c.bf16 %v4496_v20, %v4495_v35  ;;  %v4498_v51 = vld [vmem:[#allocation2 + $0x22e] sm:$0xff]  ;;  %v18220_v3 = vld [vmem:[%s21785_s3 + $0x438] sm:$0xff]  }
 0x423   : > { %15912 = vmatprep.subr.bf16.mxu1 %v18196_v39  ;;  %v19213_v56 = vpack.c.bf16 %v4498_v51, %v4497_v54  ;;  %v5357_v20 = vld [vmem:[#allocation2 + $0x1ae] sm:$0xff]  ;;  %v5356_v51 = vld [vmem:[#allocation2 + $0x1a6] sm:$0xff] }
 0x424   : > { %v5359_v35 = vld [vmem:[#allocation2 + $0x1ce] sm:$0xff]  ;;  %v5379_v54 = vpack.c.bf16 %v5357_v20, %v5356_v51 }
 0x425   : > { %v5671_v20 = vld [vmem:[#allocation2 + $0x230] sm:$0xff]  ;;  %v19347_v51 = vld [vmem:[#allocation2 + $0x28] sm:$0xff] }
 0x426   : > { %15913 = vmatpush3.bf16.msra.mxu1 %v18196_v39  ;;  %v5378_v39 = vpack.c.bf16 %v5355_v41, %v5354_v13  ;;  %v5666_v13 = vld [vmem:[#allocation2 + $0x1e8] sm:$0xff]  ;;  %496 = vst.msk [vmem:[#allocation3] sm:$0xff] %vm495_vm0, %v19347_v51  ;;  %497 = vst.msk [vmem:[#allocation3 + $0x8] sm:$0xff] %vm495_vm0, %v19347_v51 }
 0x427   : > { %15946 = vmatprep.subr.bf16.mxu1 %v18197_v0  ;;  %498 = vst.msk [vmem:[#allocation3 + $0x10] sm:$0xff] %vm495_vm0, %v19347_v51  ;;  %499 = vst.msk [vmem:[#allocation3 + $0x18] sm:$0xff] %vm495_vm0, %v19347_v51 }
 0x428   : > { %500 = vst.msk [vmem:[#allocation3 + $0x20] sm:$0xff] %vm495_vm0, %v19347_v51  ;;  %501 = vst.msk [vmem:[#allocation3 + $0x28] sm:$0xff] %vm495_vm0, %v19347_v51 }
 0x429   : > { %15883 = vmatmul.mubr.bf16.gmra.mrb[16].mxu1 %v19055_v28  ;;  %v18198_v28 = vld [vmem:[%s21785_s3 + $0x388] sm:$0xff]   ;;  %502 = vst.msk [vmem:[#allocation3 + $0x30] sm:$0xff] %vm495_vm0, %v19347_v51  ;;  %503 = vst.msk [vmem:[#allocation3 + $0x38] sm:$0xff] %vm495_vm0, %v19347_v51 }
 0x42a   : > { %15886 = vmatprep.mubr.bf16.mxu1 %v19057_v45  ;;  %v18199_v45 = vld [vmem:[%s21785_s3 + $0x390] sm:$0xff]   ;;  %505 = vst.msk [vmem:[#allocation3 + $0x240] sm:$0xff] %vm495_vm0, %v19347_v51  ;;  %506 = vst.msk [vmem:[#allocation3 + $0x248] sm:$0xff] %vm495_vm0, %v19347_v51 }
 0x42b   : > { %507 = vst.msk [vmem:[#allocation3 + $0x250] sm:$0xff] %vm495_vm0, %v19347_v51  ;;  %508 = vst.msk [vmem:[#allocation3 + $0x258] sm:$0xff] %vm495_vm0, %v19347_v51 }
 0x42c   : > { %509 = vst.msk [vmem:[#allocation3 + $0x260] sm:$0xff] %vm495_vm0, %v19347_v51  ;;  %510 = vst.msk [vmem:[#allocation3 + $0x268] sm:$0xff] %vm495_vm0, %v19347_v51 }
 0x42d   : > { %511 = vst.msk [vmem:[#allocation3 + $0x270] sm:$0xff] %vm495_vm0, %v19347_v51  ;;  %512 = vst.msk [vmem:[#allocation3 + $0x278] sm:$0xff] %vm495_vm0, %v19347_v51 }
 0x42e   : > { %514 = vst.msk [vmem:[#allocation3 + $0x40] sm:$0xff] %vm495_vm0, %v19347_v51  ;;  %515 = vst.msk [vmem:[#allocation3 + $0x60] sm:$0xff] %vm495_vm0, %v19347_v51 }
 0x42f   : > { %516 = vst.msk [vmem:[#allocation3 + $0x80] sm:$0xff] %vm495_vm0, %v19347_v51  ;;  %517 = vst.msk [vmem:[#allocation3 + $0xa0] sm:$0xff] %vm495_vm0, %v19347_v51 }
 0x430   : > { %518 = vst.msk [vmem:[#allocation3 + $0xc0] sm:$0xff] %vm495_vm0, %v19347_v51  ;;  %519 = vst.msk [vmem:[#allocation3 + $0xe0] sm:$0xff] %vm495_vm0, %v19347_v51 }
 0x431   : > { %15887 = vmatmul.mubr.bf16.gmra.mrb[20].mxu1 %v19061_v6  ;;  %520 = vst.msk [vmem:[#allocation3 + $0x100] sm:$0xff] %vm495_vm0, %v19347_v51  ;;  %521 = vst.msk [vmem:[#allocation3 + $0x120] sm:$0xff] %vm495_vm0, %v19347_v51 }
 0x432   : > { %15890 = vmatprep.mubr.bf16.mxu1 %v19063_v23  ;;  %v5061_v23 = vld [vmem:[#allocation2 + $0x22a] sm:$0xff]  ;;  %522 = vst.msk [vmem:[#allocation3 + $0x140] sm:$0xff] %vm495_vm0, %v19347_v51  ;;  %523 = vst.msk [vmem:[#allocation3 + $0x160] sm:$0xff] %vm495_vm0, %v19347_v51 }
 0x433   : > { %524 = vst.msk [vmem:[#allocation3 + $0x180] sm:$0xff] %vm495_vm0, %v19347_v51  ;;  %525 = vst.msk [vmem:[#allocation3 + $0x1a0] sm:$0xff] %vm495_vm0, %v19347_v51 }
 0x434   : > { %526 = vst.msk [vmem:[#allocation3 + $0x1c0] sm:$0xff] %vm495_vm0, %v19347_v51  ;;  %527 = vst.msk [vmem:[#allocation3 + $0x1e0] sm:$0xff] %vm495_vm0, %v19347_v51 }
 0x435   : > { %528 = vst.msk [vmem:[#allocation3 + $0x200] sm:$0xff] %vm495_vm0, %v19347_v51  ;;  %529 = vst.msk [vmem:[#allocation3 + $0x220] sm:$0xff] %vm495_vm0, %v19347_v51 }
 0x436   : > { %530 = vst.msk [vmem:[#allocation3 + $0x58] sm:$0xff] %vm495_vm0, %v19347_v51  ;;  %531 = vst.msk [vmem:[#allocation3 + $0x78] sm:$0xff] %vm495_vm0, %v19347_v51 }
 0x437   : > { %532 = vst.msk [vmem:[#allocation3 + $0x98] sm:$0xff] %vm495_vm0, %v19347_v51  ;;  %533 = vst.msk [vmem:[#allocation3 + $0xb8] sm:$0xff] %vm495_vm0, %v19347_v51 }
 0x438   : > { %534 = vst.msk [vmem:[#allocation3 + $0xd8] sm:$0xff] %vm495_vm0, %v19347_v51  ;;  %535 = vst.msk [vmem:[#allocation3 + $0xf8] sm:$0xff] %vm495_vm0, %v19347_v51 }
 0x439   : > { %15891 = vmatmul.mubr.bf16.gmra.mrb[24].mxu1 %v19067_v4  ;;  %v5062_v4 = vld [vmem:[#allocation2 + $0x232] sm:$0xff]  ;;  %536 = vst.msk [vmem:[#allocation3 + $0x118] sm:$0xff] %vm495_vm0, %v19347_v51  ;;  %537 = vst.msk [vmem:[#allocation3 + $0x138] sm:$0xff] %vm495_vm0, %v19347_v51 }
 0x43a   : > { %15894 = vmatprep.mubr.bf16.mxu1 %v19209_v50  ;;  %538 = vst.msk [vmem:[#allocation3 + $0x158] sm:$0xff] %vm495_vm0, %v19347_v51  ;;  %539 = vst.msk [vmem:[#allocation3 + $0x178] sm:$0xff] %vm495_vm0, %v19347_v51 }
 0x43b   : > { %540 = vst.msk [vmem:[#allocation3 + $0x198] sm:$0xff] %vm495_vm0, %v19347_v51  ;;  %541 = vst.msk [vmem:[#allocation3 + $0x1b8] sm:$0xff] %vm495_vm0, %v19347_v51 }
 0x43c   : > { %542 = vst.msk [vmem:[#allocation3 + $0x1d8] sm:$0xff] %vm495_vm0, %v19347_v51  ;;  %543 = vst.msk [vmem:[#allocation3 + $0x1f8] sm:$0xff] %vm495_vm0, %v19347_v51 }
 0x43d   : > { %544 = vst.msk [vmem:[#allocation3 + $0x218] sm:$0xff] %vm495_vm0, %v19347_v51  ;;  %545 = vst.msk [vmem:[#allocation3 + $0x238] sm:$0xff] %vm495_vm0, %v19347_v51 }
 0x441   : > { %15895 = vmatmul.mubr.bf16.gmra.mrb[28].mxu1 %v19213_v56 }
 0x442   : > { %15914 = vmatprep.mubr.bf16.mxu1 %v18789_v44  ;;  %v18200_v44 = vld [vmem:[%s21785_s3 + $0x398] sm:$0xff]  }
 0x449   : > { %15915 = vmatmul.mubr.bf16.vlgmr.msra.gmra.mrb[0].mxu1 %v18793_v57  ;;  %v18201_v57 = vld [vmem:[%s21785_s3 + $0x3a0] sm:$0xff]  }
 0x44a   : > { %15947 = vmatpush3.bf16.msra.mxu1 %v18197_v0  ;;  %15918 = vmatprep.mubr.bf16.mxu1 %v18798_v7  ;;  %v18202_v7 = vld [vmem:[%s21785_s3 + $0x3a8] sm:$0xff]   ;;  %v18221_v0 = vld [vmem:[%s21785_s3 + $0x440] sm:$0xff]  }
 0x44b   : > { %15948 = vmatprep.subr.bf16.mxu1 %v18198_v28 }
 0x44e   : > { %15949 = vmatpush3.bf16.msra.mxu1 %v18198_v28  ;;  %v5358_v28 = vld [vmem:[#allocation2 + $0x1c6] sm:$0xff] }
 0x44f   : > { %15950 = vmatprep.subr.bf16.mxu1 %v18199_v45 }
 0x451   : > { %15919 = vmatmul.mubr.bf16.gmra.mrb[4].mxu1 %v18805_v38  ;;  %v18204_v38 = vld [vmem:[%s21785_s3 + $0x3b8] sm:$0xff]  }
 0x452   : > { %15922 = vmatprep.mubr.bf16.mxu1 %v18541_v37  ;;  %15951 = vmatpush3.bf16.msra.mxu1 %v18199_v45  ;;  %v18203_v37 = vld [vmem:[%s21785_s3 + $0x3b0] sm:$0xff]   ;;  %v5380_v45 = vpack.c.bf16 %v5359_v35, %v5358_v28  ;;  %v5670_v35 = vld [vmem:[#allocation2 + $0x228] sm:$0xff] }
 0x453   : > { %15952 = vmatprep.subr.bf16.mxu1 %v18200_v44  ;;  %v5689_v28 = vpack.c.bf16 %v5671_v20, %v5670_v35 }
 0x456   : > { %15953 = vmatpush3.bf16.msra.mxu1 %v18200_v44  ;;  %v5361_v44 = vld [vmem:[#allocation2 + $0x1ee] sm:$0xff] }
 0x457   : > { %15954 = vmatprep.subr.bf16.mxu1 %v18201_v57 }
 0x459   : > { %15923 = vmatmul.mubr.bf16.gmra.mrb[8].mxu1 %v18539_v36  ;;  %v18205_v36 = vld [vmem:[%s21785_s3 + $0x3c0] sm:$0xff]  }
 0x45a   : > { %15926 = vmatprep.mubr.bf16.mxu1 %v18557_v49  ;;  %15955 = vmatpush3.bf16.msra.mxu1 %v18201_v57  ;;  %v18207_v49 = vld [vmem:[%s21785_s3 + $0x3d0] sm:$0xff]   ;;  %v5360_v57 = vld [vmem:[#allocation2 + $0x1e6] sm:$0xff] }
 0x45b   : > { %15956 = vmatprep.subr.bf16.mxu1 %v18202_v7 }
 0x45e   : > { %15957 = vmatpush3.bf16.msra.mxu1 %v18202_v7  ;;  %v5381_v7 = vpack.c.bf16 %v5361_v44, %v5360_v57  ;;  %v5951_v44 = vld [vmem:[#allocation2 + $0x92] sm:$0xff] }
 0x45f   : > { %15958 = vmatprep.subr.bf16.mxu1 %v18203_v37 }
 0x461   : > { %15927 = vmatmul.mubr.bf16.gmra.mrb[12].mxu1 %v18555_v48  ;;  %v18206_v48 = vld [vmem:[%s21785_s3 + $0x3c8] sm:$0xff]  }
 0x462   : > { %15930 = vmatprep.mubr.bf16.mxu1 %v18575_v61  ;;  %15959 = vmatpush3.bf16.msra.mxu1 %v18203_v37  ;;  %v18209_v61 = vld [vmem:[%s21785_s3 + $0x3e0] sm:$0xff]  }
 0x463   : > { %15960 = vmatprep.subr.bf16.mxu1 %v18204_v38  ;;  %v5366_v37 = vld [vmem:[#allocation2 + $0x246] sm:$0xff] }
 0x466   : > { %15961 = vmatpush3.bf16.msra.mxu1 %v18204_v38  ;;  %v5367_v38 = vld [vmem:[#allocation2 + $0x24e] sm:$0xff] }
 0x467   : > { %15994 = vmatprep.subr.bf16.mxu1 %v18205_v36 }
 0x469   : > { %15931 = vmatmul.mubr.bf16.gmra.mrb[16].mxu1 %v18573_v60  ;;  %v18208_v60 = vld [vmem:[%s21785_s3 + $0x3d8] sm:$0xff]  }
 0x46a   : > { %15934 = vmatprep.mubr.bf16.mxu1 %v18586_v9  ;;  %v18211_v9 = vld [vmem:[%s21785_s3 + $0x3f0] sm:$0xff]  }
 0x471   : > { %15935 = vmatmul.mubr.bf16.gmra.mrb[20].mxu1 %v18584_v8  ;;  %v18210_v8 = vld [vmem:[%s21785_s3 + $0x3e8] sm:$0xff]  }
 0x472   : > { %15938 = vmatprep.mubr.bf16.mxu1 %v18596_v19  ;;  %v18213_v19 = vld [vmem:[%s21785_s3 + $0x400] sm:$0xff]  }
 0x479   : > { %15939 = vmatmul.mubr.bf16.gmra.mrb[24].mxu1 %v18594_v18  ;;  %v18212_v18 = vld [vmem:[%s21785_s3 + $0x3f8] sm:$0xff]  }
 0x47a   : > { %15942 = vmatprep.mubr.bf16.mxu1 %v18606_v32  ;;  %v5060_v32 = vld [vmem:[#allocation2 + $0x212] sm:$0xff] }
 0x481   : > { %15943 = vmatmul.mubr.bf16.gmra.mrb[28].mxu1 %v18604_v31  ;;  %v5059_v31 = vld [vmem:[#allocation2 + $0x20a] sm:$0xff] }
 0x482   : > { %15962 = vmatprep.mubr.bf16.mxu1 %v19109_v33  ;;  %v19293_v6 = vpack.c.bf16 %v5060_v32, %v5059_v31  ;;  %v5339_v33 = vld [vmem:[#allocation2 + $0x8e] sm:$0xff] }
 0x483   : > { %v5646_v31 = vld [vmem:[#allocation2 + $0xa8] sm:$0xff] }
 0x489   : > { %15963 = vmatmul.mubr.bf16.vlgmr.msra.gmra.mrb[0].mxu1 %v19115_v47  ;;  %v19297_v47 = vpack.c.bf16 %v5062_v4, %v5061_v23  ;;  %v5648_v23 = vld [vmem:[#allocation2 + $0xc8] sm:$0xff] }
 0x48a   : > { %15995 = vmatpush3.bf16.msra.mxu1 %v18205_v36  ;;  %15966 = vmatprep.mubr.bf16.mxu1 %v19120_v62  ;;  %v5338_v62 = vld [vmem:[#allocation2 + $0x86] sm:$0xff]  ;;  %v5384_v36 = vpack.c.bf16 %v5367_v38, %v5366_v37  ;;  %v5953_v37 = vld [vmem:[#allocation2 + $0xb2] sm:$0xff] }
 0x48b   : > { %15996 = vmatprep.subr.bf16.mxu1 %v18206_v48  ;;  %v5954_v38 = vld [vmem:[#allocation2 + $0xca] sm:$0xff] }
 0x48e   : > { %15997 = vmatpush3.bf16.msra.mxu1 %v18206_v48  ;;  %v5368_v48 = vld [vmem:[#allocation2 + $0x266] sm:$0xff] }
 0x48f   : > { %15998 = vmatprep.subr.bf16.mxu1 %v18207_v49 }
 0x491   : > { %15967 = vmatmul.mubr.bf16.gmra.mrb[4].mxu1 %v19127_v46  ;;  %v5370_v46 = vpack.c.bf16 %v5339_v33, %v5338_v62  ;;  %v5651_v33 = vld [vmem:[#allocation2 + $0xf0] sm:$0xff] }
 0x492   : > { %15970 = vmatprep.mubr.bf16.mxu1 %v19132_v15  ;;  %15999 = vmatpush3.bf16.msra.mxu1 %v18207_v49  ;;  %v5341_v15 = vld [vmem:[#allocation2 + $0xae] sm:$0xff] }
 0x493   : > { %16000 = vmatprep.subr.bf16.mxu1 %v18208_v60  ;;  %v5369_v49 = vld [vmem:[#allocation2 + $0x26e] sm:$0xff] }
 0x494   : > { %v5653_v62 = vld [vmem:[#allocation2 + $0x110] sm:$0xff] }
 0x496   : > { %16001 = vmatpush3.bf16.msra.mxu1 %v18208_v60  ;;  %v5385_v60 = vpack.c.bf16 %v5369_v49, %v5368_v48 }
 0x497   : > { %16002 = vmatprep.subr.bf16.mxu1 %v18209_v61 }
 0x499   : > { %15971 = vmatmul.mubr.bf16.gmra.mrb[8].mxu1 %v19139_v55  ;;  %v5343_v55 = vld [vmem:[#allocation2 + $0xce] sm:$0xff] }
 0x49a   : > { %15974 = vmatprep.mubr.bf16.mxu1 %v19144_v12  ;;  %16003 = vmatpush3.bf16.msra.mxu1 %v18209_v61  ;;  %v5340_v12 = vld [vmem:[#allocation2 + $0xa6] sm:$0xff]  ;;  %v5372_v29 = vpack.c.bf16 %v5343_v55, %v5342_v21  ;;  %v5645_v61 = vld [vmem:[#allocation2 + $0x90] sm:$0xff] }
 0x49b   : > { %16004 = vmatprep.subr.bf16.mxu1 %v18210_v8  ;;  %v5371_v2 = vpack.c.bf16 %v5341_v15, %v5340_v12  ;;  %v5652_v55 = vld [vmem:[#allocation2 + $0x108] sm:$0xff]  ;;  %v18224_v12 = vld [vmem:[%s21785_s3 + $0x458] sm:$0xff]   ;;  %v18225_v21 = vld [vmem:[%s21785_s3 + $0x460] sm:$0xff]  }
 0x49e   : > { %16005 = vmatpush3.bf16.msra.mxu1 %v18210_v8  ;;  %v5644_v8 = vld [vmem:[#allocation2 + $0x88] sm:$0xff] }
 0x49f   : > { %16006 = vmatprep.subr.bf16.mxu1 %v18211_v9 }
 0x4a1   : > { %15975 = vmatmul.mubr.bf16.gmra.mrb[12].mxu1 %v19151_v10  ;;  %v18215_v10 = vld [vmem:[%s21785_s3 + $0x410] sm:$0xff]  }
 0x4a2   : > { %15978 = vmatprep.mubr.bf16.mxu1 %v19153_v5  ;;  %16007 = vmatpush3.bf16.msra.mxu1 %v18211_v9  ;;  %v5345_v5 = vld [vmem:[#allocation2 + $0xee] sm:$0xff]  ;;  %v5676_v9 = vpack.c.bf16 %v5645_v61, %v5644_v8 }
 0x4a3   : > { %16008 = vmatprep.subr.bf16.mxu1 %v18212_v18  ;;  %v5373_v11 = vpack.c.bf16 %v5345_v5, %v5344_v59  ;;  %v18226_v59 = vld [vmem:[%s21785_s3 + $0x468] sm:$0xff]   ;;  %v5957_v61 = vld [vmem:[#allocation2 + $0xf2] sm:$0xff] }
 0x4a4   : > { %v5958_v8 = vld [vmem:[#allocation2 + $0x10a] sm:$0xff] }
 0x4a6   : > { %16009 = vmatpush3.bf16.msra.mxu1 %v18212_v18  ;;  %v5647_v18 = vld [vmem:[#allocation2 + $0xb0] sm:$0xff] }
 0x4a7   : > { %16042 = vmatprep.subr.bf16.mxu1 %v18213_v19  ;;  %v5677_v32 = vpack.c.bf16 %v5647_v18, %v5646_v31  ;;  %v5960_v31 = vld [vmem:[#allocation2 + $0x12a] sm:$0xff] }
 0x4a9   : > { %15979 = vmatmul.mubr.bf16.gmra.mrb[16].mxu1 %v19157_v40  ;;  %v18216_v40 = vld [vmem:[%s21785_s3 + $0x418] sm:$0xff]  }
 0x4aa   : > { %15982 = vmatprep.mubr.bf16.mxu1 %v19159_v43  ;;  %v5374_v43 = vpack.c.bf16 %v5347_v24, %v5346_v42  ;;  %v5656_v24 = vld [vmem:[#allocation2 + $0x148] sm:$0xff]  ;;  %v18227_v42 = vld [vmem:[%s21785_s3 + $0x470] sm:$0xff]  }
 0x4b1   : > { %15983 = vmatmul.mubr.bf16.gmra.mrb[20].mxu1 %v19163_v30  ;;  %v5375_v30 = vpack.c.bf16 %v5349_v16, %v5348_v26  ;;  %v18228_v26 = vld [vmem:[%s21785_s3 + $0x478] sm:$0xff]  }
 0x4b2   : > { %15986 = vmatprep.mubr.bf16.mxu1 %v19165_v34  ;;  %v5350_v34 = vld [vmem:[#allocation2 + $0x146] sm:$0xff] }
 0x4b3   : > { %v5376_v22 = vpack.c.bf16 %v5351_v17, %v5350_v34  ;;  %v5660_v17 = vld [vmem:[#allocation2 + $0x188] sm:$0xff]  ;;  %v5663_v34 = vld [vmem:[#allocation2 + $0x1b0] sm:$0xff] }
 0x4b9   : > { %15987 = vmatmul.mubr.bf16.gmra.mrb[24].mxu1 %v19169_v14  ;;  %v18219_v14 = vld [vmem:[%s21785_s3 + $0x430] sm:$0xff]  }
 0x4ba   : > { %15990 = vmatprep.mubr.bf16.mxu1 %v19293_v6 }
 0x4c1   : > { %15991 = vmatmul.mubr.bf16.gmra.mrb[28].mxu1 %v19297_v47 }
 0x4c2   : > { %16010 = vmatprep.mubr.bf16.mxu1 %v5370_v46  ;;  %v5650_v46 = vld [vmem:[#allocation2 + $0xe8] sm:$0xff] }
 0x4c3   : > { %v5679_v15 = vpack.c.bf16 %v5651_v33, %v5650_v46  ;;  %v5964_v33 = vld [vmem:[#allocation2 + $0x16a] sm:$0xff] }
 0x4c4   : > { %v5966_v46 = vld [vmem:[#allocation2 + $0x18a] sm:$0xff] }
 0x4c9   : > { %16011 = vmatmul.mubr.bf16.vlgmr.msra.gmra.mrb[0].mxu1 %v5371_v2  ;;  %v5680_v2 = vpack.c.bf16 %v5653_v62, %v5652_v55  ;;  %v5965_v62 = vld [vmem:[#allocation2 + $0x172] sm:$0xff] }
 0x4ca   : > { %16043 = vmatpush3.bf16.msra.mxu1 %v18213_v19  ;;  %16014 = vmatprep.mubr.bf16.mxu1 %v5372_v29  ;;  %v5649_v19 = vld [vmem:[#allocation2 + $0xd0] sm:$0xff]  ;;  %v5989_v55 = vpack.c.bf16 %v5965_v62, %v5964_v33 }
 0x4cb   : > { %16044 = vmatprep.subr.bf16.mxu1 %v18214_v27  ;;  %v5678_v4 = vpack.c.bf16 %v5649_v19, %v5648_v23  ;;  %v5657_v29 = vld [vmem:[#allocation2 + $0x150] sm:$0xff] }
 0x4cc   : > { %v5962_v23 = vld [vmem:[#allocation2 + $0x14a] sm:$0xff] }
 0x4ce   : > { %16045 = vmatpush3.bf16.msra.mxu1 %v18214_v27  ;;  %v5655_v27 = vld [vmem:[#allocation2 + $0x130] sm:$0xff] }
 0x4cf   : > { %16046 = vmatprep.subr.bf16.mxu1 %v18215_v10 }
 0x4d1   : > { %16015 = vmatmul.mubr.bf16.gmra.mrb[4].mxu1 %v5373_v11  ;;  %v5682_v11 = vpack.c.bf16 %v5657_v29, %v5656_v24  ;;  %v5971_v29 = vld [vmem:[#allocation2 + $0x1d2] sm:$0xff]  ;;  %v5972_v24 = vld [vmem:[#allocation2 + $0x1ea] sm:$0xff] }
 0x4d2   : > { %16018 = vmatprep.mubr.bf16.mxu1 %v5374_v43  ;;  %16047 = vmatpush3.bf16.msra.mxu1 %v18215_v10  ;;  %v5654_v10 = vld [vmem:[#allocation2 + $0x128] sm:$0xff]  ;;  %v5661_v43 = vld [vmem:[#allocation2 + $0x190] sm:$0xff] }
 0x4d3   : > { %16048 = vmatprep.subr.bf16.mxu1 %v18216_v40  ;;  %v5681_v5 = vpack.c.bf16 %v5655_v27, %v5654_v10  ;;  %v5970_v27 = vld [vmem:[#allocation2 + $0x1ca] sm:$0xff] }
 0x4d6   : > { %16049 = vmatpush3.bf16.msra.mxu1 %v18216_v40  ;;  %v5659_v40 = vld [vmem:[#allocation2 + $0x170] sm:$0xff] }
 0x4d7   : > { %16050 = vmatprep.subr.bf16.mxu1 %v18217_v52 }
 0x4d9   : > { %16019 = vmatmul.mubr.bf16.gmra.mrb[8].mxu1 %v5375_v30  ;;  %v5684_v30 = vpack.c.bf16 %v5661_v43, %v5660_v17 }
 0x4da   : > { %16022 = vmatprep.mubr.bf16.mxu1 %v5376_v22  ;;  %16051 = vmatpush3.bf16.msra.mxu1 %v18217_v52  ;;  %v5658_v52 = vld [vmem:[#allocation2 + $0x168] sm:$0xff] }
 0x4db   : > { %16052 = vmatprep.subr.bf16.mxu1 %v18218_v63  ;;  %v5683_v16 = vpack.c.bf16 %v5659_v40, %v5658_v52  ;;  %v5662_v22 = vld [vmem:[#allocation2 + $0x1a8] sm:$0xff]  ;;  %v5979_v40 = vld [vmem:[#allocation2 + $0x252] sm:$0xff] }
 0x4dc   : > { %v5980_v52 = vld [vmem:[#allocation2 + $0x26a] sm:$0xff] }
 0x4de   : > { %16053 = vmatpush3.bf16.msra.mxu1 %v18218_v63  ;;  %v5665_v63 = vld [vmem:[#allocation2 + $0x1d0] sm:$0xff] }
 0x4df   : > { %16054 = vmatprep.subr.bf16.mxu1 %v18219_v14  ;;  %v5686_v41 = vpack.c.bf16 %v5665_v63, %v5664_v25 }
 0x4e1   : > { %16023 = vmatmul.mubr.bf16.gmra.mrb[12].mxu1 %v5377_v58  ;;  %v5669_v58 = vld [vmem:[#allocation2 + $0x210] sm:$0xff] }
 0x4e2   : > { %16026 = vmatprep.mubr.bf16.mxu1 %v5378_v39  ;;  %16055 = vmatpush3.bf16.msra.mxu1 %v18219_v14  ;;  %v5685_v14 = vpack.c.bf16 %v5663_v34, %v5662_v22  ;;  %v5668_v39 = vld [vmem:[#allocation2 + $0x208] sm:$0xff] }
 0x4e3   : > { %16056 = vmatprep.subr.bf16.mxu1 %v18220_v3 }
 0x4e6   : > { %16057 = vmatpush3.bf16.msra.mxu1 %v18220_v3  ;;  %v5687_v3 = vpack.c.bf16 %v5667_v53, %v5666_v13 }
 0x4e7   : > { %16090 = vmatprep.subr.bf16.mxu1 %v18221_v0 }
 0x4e9   : > { %16027 = vmatmul.mubr.bf16.gmra.mrb[16].mxu1 %v5379_v54  ;;  %v5690_v54 = vpack.c.bf16 %v19347_v51, %v19347_v51 }
 0x4ea   : > { %16030 = vmatprep.mubr.bf16.mxu1 %v5380_v45  ;;  %v5950_v45 = vld [vmem:[#allocation2 + $0x8a] sm:$0xff] }
 0x4eb   : > { %v5982_v57 = vpack.c.bf16 %v5951_v44, %v5950_v45 }
 0x4f1   : > { %16031 = vmatmul.mubr.bf16.gmra.mrb[20].mxu1 %v5381_v7  ;;  %v5952_v7 = vld [vmem:[#allocation2 + $0xaa] sm:$0xff] }
 0x4f2   : > { %16034 = vmatprep.mubr.bf16.mxu1 %v19209_v50  ;;  %v18222_v50 = vld [vmem:[%s21785_s3 + $0x448] sm:$0xff]   ;;  %v5983_v48 = vpack.c.bf16 %v5953_v37, %v5952_v7 }
 0x4f9   : > { %16035 = vmatmul.mubr.bf16.gmra.mrb[24].mxu1 %v19213_v56  ;;  %v18223_v56 = vld [vmem:[%s21785_s3 + $0x450] sm:$0xff]  }
 0x4fa   : > { %16038 = vmatprep.mubr.bf16.mxu1 %v5384_v36  ;;  %v5955_v36 = vld [vmem:[#allocation2 + $0xd2] sm:$0xff] }
 0x4fb   : > { %v5984_v49 = vpack.c.bf16 %v5955_v36, %v5954_v38 }
 0x501   : > { %16039 = vmatmul.mubr.bf16.gmra.mrb[28].mxu1 %v5385_v60  ;;  %v5956_v60 = vld [vmem:[#allocation2 + $0xea] sm:$0xff] }
 0x502   : > { %16058 = vmatprep.mubr.bf16.mxu1 %v5676_v9  ;;  %v5959_v9 = vld [vmem:[#allocation2 + $0x112] sm:$0xff]  ;;  %v5985_v18 = vpack.c.bf16 %v5957_v61, %v5956_v60 }
 0x503   : > { %v5986_v19 = vpack.c.bf16 %v5959_v9, %v5958_v8 }
 0x509   : > { %16059 = vmatmul.mubr.bf16.vlgmr.msra.gmra.mrb[0].mxu1 %v5677_v32  ;;  %v5961_v32 = vld [vmem:[#allocation2 + $0x132] sm:$0xff] }
 0x50a   : > { %16091 = vmatpush3.bf16.msra.mxu1 %v18221_v0  ;;  %16062 = vmatprep.mubr.bf16.mxu1 %v5678_v4  ;;  %v5688_v0 = vpack.c.bf16 %v5669_v58, %v5668_v39  ;;  %v5987_v4 = vpack.c.bf16 %v5961_v32, %v5960_v31 }
 0x50b   : > { %16092 = vmatprep.subr.bf16.mxu1 %v18222_v50 }
 0x50e   : > { %16093 = vmatpush3.bf16.msra.mxu1 %v18222_v50  ;;  %v5963_v50 = vld [vmem:[#allocation2 + $0x152] sm:$0xff] }
 0x50f   : > { %16094 = vmatprep.subr.bf16.mxu1 %v18223_v56 }
 0x511   : > { %16063 = vmatmul.mubr.bf16.gmra.mrb[4].mxu1 %v5679_v15  ;;  %v5967_v15 = vld [vmem:[#allocation2 + $0x192] sm:$0xff] }
 0x512   : > { %16066 = vmatprep.mubr.bf16.mxu1 %v5680_v2  ;;  %16095 = vmatpush3.bf16.msra.mxu1 %v18223_v56  ;;  %v5988_v56 = vpack.c.bf16 %v5963_v50, %v5962_v23  ;;  %v5968_v2 = vld [vmem:[#allocation2 + $0x1aa] sm:$0xff] }
 0x513   : > { %16096 = vmatprep.subr.bf16.mxu1 %v18224_v12 }
 0x516   : > { %16097 = vmatpush3.bf16.msra.mxu1 %v18224_v12  ;;  %v5990_v12 = vpack.c.bf16 %v5967_v15, %v5966_v46 }
 0x517   : > { %16098 = vmatprep.subr.bf16.mxu1 %v18225_v21 }
 0x519   : > { %16067 = vmatmul.mubr.bf16.gmra.mrb[8].mxu1 %v5681_v5  ;;  %v5992_v5 = vpack.c.bf16 %v5971_v29, %v5970_v27 }
 0x51a   : > { %16070 = vmatprep.mubr.bf16.mxu1 %v5682_v11  ;;  %16099 = vmatpush3.bf16.msra.mxu1 %v18225_v21  ;;  %v5969_v21 = vld [vmem:[#allocation2 + $0x1b2] sm:$0xff] }
 0x51b   : > { %16100 = vmatprep.subr.bf16.mxu1 %v18226_v59  ;;  %v5991_v10 = vpack.c.bf16 %v5969_v21, %v5968_v2 }
 0x51e   : > { %16101 = vmatpush3.bf16.msra.mxu1 %v18226_v59  ;;  %v5973_v59 = vld [vmem:[#allocation2 + $0x1f2] sm:$0xff] }
 0x51f   : > { %16102 = vmatprep.subr.bf16.mxu1 %v18227_v42  ;;  %v5993_v11 = vpack.c.bf16 %v5973_v59, %v5972_v24 }
 0x521   : > { %16071 = vmatmul.mubr.bf16.gmra.mrb[12].mxu1 %v5683_v16  ;;  %v5981_v16 = vld [vmem:[#allocation2 + $0x272] sm:$0xff] }
 0x522   : > { %16074 = vmatprep.mubr.bf16.mxu1 %v5684_v30  ;;  %16103 = vmatpush3.bf16.msra.mxu1 %v18227_v42  ;;  %v5978_v42 = vld [vmem:[#allocation2 + $0x24a] sm:$0xff]  ;;  %v5997_v17 = vpack.c.bf16 %v5981_v16, %v5980_v52 }
 0x523   : > { %16104 = vmatprep.subr.bf16.mxu1 %v18228_v26  ;;  %v5996_v43 = vpack.c.bf16 %v5979_v40, %v5978_v42 }
 0x526   : > { %16105 = vmatpush3.bf16.msra.mxu1 %v18228_v26 }
 0x529   : > { %16075 = vmatmul.mubr.bf16.gmra.mrb[16].mxu1 %v5685_v14 }
 0x52a   : > { %16078 = vmatprep.mubr.bf16.mxu1 %v5686_v41 }
 0x531   : > { %16079 = vmatmul.mubr.bf16.gmra.mrb[20].mxu1 %v5687_v3 }
 0x532   : > { %16082 = vmatprep.mubr.bf16.mxu1 %v5688_v0 }
 0x539   : > { %16083 = vmatmul.mubr.bf16.gmra.mrb[24].mxu1 %v5689_v28 }
 0x53a   : > { %16086 = vmatprep.mubr.bf16.mxu1 %v5690_v54 }
 0x541   : > { %16087 = vmatmul.mubr.bf16.gmra.mrb[28].mxu1 %v5690_v54 }
 0x542   : > { %16106 = vmatprep.mubr.bf16.mxu1 %v5982_v57 }
 0x549   : > { %16107 = vmatmul.mubr.bf16.vlgmr.msra.gmra.mrb[0].mxu1 %v5983_v48 }
 0x54a   : > { %16110 = vmatprep.mubr.bf16.mxu1 %v5984_v49 }
 0x551   : > { %16111 = vmatmul.mubr.bf16.gmra.mrb[4].mxu1 %v5985_v18 }
 0x552   : > { %16114 = vmatprep.mubr.bf16.mxu1 %v5986_v19 }
 0x559   : > { %16115 = vmatmul.mubr.bf16.gmra.mrb[8].mxu1 %v5987_v4 }
 0x55a   : > { %16118 = vmatprep.mubr.bf16.mxu1 %v5988_v56 }
 0x561   : > { %16119 = vmatmul.mubr.bf16.gmra.mrb[12].mxu1 %v5989_v55 }
 0x562   : > { %16122 = vmatprep.mubr.bf16.mxu1 %v5990_v12 }
 0x569   : > { %16123 = vmatmul.mubr.bf16.gmra.mrb[16].mxu1 %v5991_v10 }
 0x56a   : > { %16126 = vmatprep.mubr.bf16.mxu1 %v5992_v5 }
 0x571   : > { %16127 = vmatmul.mubr.bf16.gmra.mrb[20].mxu1 %v5993_v11 }
 0x572   : > { %16130 = vmatprep.mubr.bf16.mxu1 %v19293_v6  ;;  %v19452_v6 = vld [vmem:[%s21786_s4] ss:$0 sm:$0xff] }
 0x579   : > { %16131 = vmatmul.mubr.bf16.gmra.mrb[24].mxu1 %v19297_v47 }
 0x57a   : > { %16134 = vmatprep.mubr.bf16.mxu1 %v5996_v43 }
 0x581   : > { %16135 = vmatmul.mubr.bf16.gmra.mrb[28].mxu1 %v5997_v17 }
 0x61c   : > { %v16108_v47 = vpop.f32.mrb[0].mxu1 }
 0x61d   : > { %v6097_v26 = vpop.f32.mrb[1].mxu1  ;;  %v19458_v22 = vadd.f32 %v16108_v47, %v19452_v6 }
 0x61e   : > { %v19455_v30 = vadd.f32 %v19452_v6, %v6097_v26  ;;  %v16109_v34 = vpop.f32.mrb[2].mxu1 }
 0x61f   : > { %v6100_v63 = vpop.f32.mrb[3].mxu1  ;;  %v19466_v41 = vadd.f32 %v16109_v34, %v19452_v6  ;;  %v6297_v58 = vmul.f32 %v19458_v22, %v19458_v22 }
 0x620   : > { %v19461_v14 = vadd.f32 %v19452_v6, %v6100_v63  ;;  %v6295_v25 = vmul.f32 %v19455_v30, %v19455_v30 }
 0x621   : > { %v6298_v0 = vmul.f32 %v19466_v41, %v19466_v41 }
 0x622   : > { %v6296_v53 = vmul.f32 %v19461_v14, %v19461_v14 }
 0x624   : > { %v6327_v13 = vadd.f32 %v6296_v53, %v6295_v25  ;;  %v16112_v3 = vpop.f32.mrb[4].mxu1 }
 0x625   : > { %v6113_v39 = vpop.f32.mrb[5].mxu1  ;;  %v19478_v28 = vadd.f32 %v16112_v3, %v19452_v6 }
 0x626   : > { %v6328_v20 = vadd.f32 %v6327_v13, %v6297_v58  ;;  %v19475_v35 = vadd.f32 %v19452_v6, %v6113_v39  ;;  %v16113_v51 = vpop.f32.mrb[6].mxu1 }
 0x627   : > { %v6116_v54 = vpop.f32.mrb[7].mxu1  ;;  %v19486_v37 = vadd.f32 %v16113_v51, %v19452_v6  ;;  %v6301_v36 = vmul.f32 %v19478_v28, %v19478_v28 }
 0x628   : > { %v6299_v45 = vmul.f32 %v19475_v35, %v19475_v35  ;;  %v6329_v44 = vadd.f32 %v6328_v20, %v6298_v0  ;;  %v19483_v57 = vadd.f32 %v19452_v6, %v6116_v54 }
 0x629   : > { %v6302_v61 = vmul.f32 %v19486_v37, %v19486_v37 }
 0x62a   : > { %v6330_v7 = vadd.f32 %v6329_v44, %v6299_v45  ;;  %v6300_v38 = vmul.f32 %v19483_v57, %v19483_v57 }
 0x62c   : > { %v6331_v48 = vadd.f32 %v6330_v7, %v6300_v38  ;;  %v16116_v49 = vpop.f32.mrb[8].mxu1 }
 0x62d   : > { %v6129_v60 = vpop.f32.mrb[9].mxu1  ;;  %v19498_v31 = vadd.f32 %v16116_v49, %v19452_v6 }
 0x62e   : > { %v6332_v8 = vadd.f32 %v6331_v48, %v6301_v36  ;;  %v19495_v9 = vadd.f32 %v19452_v6, %v6129_v60  ;;  %v16117_v18 = vpop.f32.mrb[10].mxu1 }
 0x62f   : > { %v6132_v19 = vpop.f32.mrb[11].mxu1  ;;  %v19506_v56 = vadd.f32 %v16117_v18, %v19452_v6  ;;  %v6305_v62 = vmul.f32 %v19498_v31, %v19498_v31 }
 0x630   : > { %v6303_v32 = vmul.f32 %v19495_v9, %v19495_v9  ;;  %v6333_v23 = vadd.f32 %v6332_v8, %v6302_v61  ;;  %v19503_v50 = vadd.f32 %v19452_v6, %v6132_v19 }
 0x631   : > { %v6306_v12 = vmul.f32 %v19506_v56, %v19506_v56 }
 0x632   : > { %v6334_v4 = vadd.f32 %v6333_v23, %v6303_v32  ;;  %v6304_v33 = vmul.f32 %v19503_v50, %v19503_v50 }
 0x634   : > { %v6335_v46 = vadd.f32 %v6334_v4, %v6304_v33  ;;  %v16120_v15 = vpop.f32.mrb[12].mxu1 }
 0x635   : > { %v6145_v55 = vpop.f32.mrb[13].mxu1  ;;  %v19518_v10 = vadd.f32 %v16120_v15, %v19452_v6 }
 0x636   : > { %v6336_v2 = vadd.f32 %v6335_v46, %v6305_v62  ;;  %v19515_v21 = vadd.f32 %v19452_v6, %v6145_v55  ;;  %v16121_v27 = vpop.f32.mrb[14].mxu1 }
 0x637   : > { %v6148_v29 = vpop.f32.mrb[15].mxu1  ;;  %21852 = vst [vmem:[#allocation5_spill] sm:$0xff] %v19518_v10  ;;  %v19526_v42 = vadd.f32 %v16121_v27, %v19452_v6  ;;  %v6309_v43 = vmul.f32 %v19518_v10, %v19518_v10 }
 0x638   : > { %21851 = vst [vmem:[#allocation4_spill] sm:$0xff] %v19515_v21  ;;  %v6307_v5 = vmul.f32 %v19515_v21, %v19515_v21  ;;  %v6337_v24 = vadd.f32 %v6336_v2, %v6306_v12  ;;  %v19523_v59 = vadd.f32 %v19452_v6, %v6148_v29 }
 0x639   : > { %21854 = vst [vmem:[#allocation7_spill] sm:$0xff] %v19526_v42  ;;  %v6310_v47 = vmul.f32 %v19526_v42, %v19526_v42 }
 0x63a   : > { %21853 = vst [vmem:[#allocation6_spill] sm:$0xff] %v19523_v59  ;;  %v6338_v11 = vadd.f32 %v6337_v24, %v6307_v5  ;;  %v6308_v40 = vmul.f32 %v19523_v59, %v19523_v59 }
 0x63c   : > { %v6339_v52 = vadd.f32 %v6338_v11, %v6308_v40  ;;  %v16124_v16 = vpop.f32.mrb[16].mxu1 }
 0x63d   : > { %v6161_v17 = vpop.f32.mrb[17].mxu1  ;;  %v19538_v53 = vadd.f32 %v16124_v16, %v19452_v6 }
 0x63e   : > { %v6340_v26 = vadd.f32 %v6339_v52, %v6309_v43  ;;  %v19535_v34 = vadd.f32 %v19452_v6, %v6161_v17  ;;  %v16125_v63 = vpop.f32.mrb[18].mxu1 }
 0x63f   : > { %v6164_v25 = vpop.f32.mrb[19].mxu1  ;;  %21856 = vst [vmem:[#allocation9_spill] sm:$0xff] %v19538_v53  ;;  %v19546_v0 = vadd.f32 %v16125_v63, %v19452_v6  ;;  %v6313_v51 = vmul.f32 %v19538_v53, %v19538_v53 }
 0x640   : > { %21855 = vst [vmem:[#allocation8_spill] sm:$0xff] %v19535_v34  ;;  %v6311_v58 = vmul.f32 %v19535_v34, %v19535_v34  ;;  %v6341_v13 = vadd.f32 %v6340_v26, %v6310_v47  ;;  %v19543_v3 = vadd.f32 %v19452_v6, %v6164_v25 }
 0x641   : > { %21858 = vst [vmem:[#allocation11_spill] sm:$0xff] %v19546_v0  ;;  %v6314_v7 = vmul.f32 %v19546_v0, %v19546_v0 }
 0x642   : > { %21857 = vst [vmem:[#allocation10_spill] sm:$0xff] %v19543_v3  ;;  %v6342_v39 = vadd.f32 %v6341_v13, %v6311_v58  ;;  %v6312_v20 = vmul.f32 %v19543_v3, %v19543_v3 }
 0x644   : > { %v6343_v54 = vadd.f32 %v6342_v39, %v6312_v20  ;;  %v16128_v45 = vpop.f32.mrb[20].mxu1 }
 0x645   : > { %v6177_v44 = vpop.f32.mrb[21].mxu1  ;;  %v19558_v60 = vadd.f32 %v16128_v45, %v19452_v6 }
 0x646   : > { %v6344_v38 = vadd.f32 %v6343_v54, %v6313_v51  ;;  %v19555_v36 = vadd.f32 %v19452_v6, %v6177_v44  ;;  %v16129_v48 = vpop.f32.mrb[22].mxu1 }
 0x647   : > { %v6180_v49 = vpop.f32.mrb[23].mxu1  ;;  %21860 = vst [vmem:[#allocation13_spill] sm:$0xff] %v19558_v60  ;;  %v19566_v32 = vadd.f32 %v16129_v48, %v19452_v6  ;;  %v6317_v4 = vmul.f32 %v19558_v60, %v19558_v60 }
 0x648   : > { %21859 = vst [vmem:[#allocation12_spill] sm:$0xff] %v19555_v36  ;;  %v6315_v61 = vmul.f32 %v19555_v36, %v19555_v36  ;;  %v6345_v8 = vadd.f32 %v6344_v38, %v6314_v7  ;;  %v19563_v18 = vadd.f32 %v19452_v6, %v6180_v49 }
 0x649   : > { %21862 = vst [vmem:[#allocation15_spill] sm:$0xff] %v19566_v32  ;;  %v6318_v15 = vmul.f32 %v19566_v32, %v19566_v32 }
 0x64a   : > { %21861 = vst [vmem:[#allocation14_spill] sm:$0xff] %v19563_v18  ;;  %v6346_v19 = vadd.f32 %v6345_v8, %v6315_v61  ;;  %v6316_v23 = vmul.f32 %v19563_v18, %v19563_v18 }
 0x64c   : > { %v6347_v33 = vadd.f32 %v6346_v19, %v6316_v23  ;;  %v16132_v62 = vpop.f32.mrb[24].mxu1 }
 0x64d   : > { %v6193_v46 = vpop.f32.mrb[25].mxu1  ;;  %v19578_v29 = vadd.f32 %v16132_v62, %v19452_v6 }
 0x64e   : > { %v6348_v55 = vadd.f32 %v6347_v33, %v6317_v4  ;;  %v19575_v12 = vadd.f32 %v19452_v6, %v6193_v46  ;;  %v16133_v2 = vpop.f32.mrb[26].mxu1 }
 0x64f   : > { %v6196_v27 = vpop.f32.mrb[27].mxu1  ;;  %21864 = vst [vmem:[#allocation17_spill] sm:$0xff] %v19578_v29  ;;  %v19586_v43 = vadd.f32 %v16133_v2, %v19452_v6  ;;  %v6321_v16 = vmul.f32 %v19578_v29, %v19578_v29 }
 0x650   : > { %21863 = vst [vmem:[#allocation16_spill] sm:$0xff] %v19575_v12  ;;  %v6319_v5 = vmul.f32 %v19575_v12, %v19575_v12  ;;  %v6349_v24 = vadd.f32 %v6348_v55, %v6318_v15  ;;  %v19583_v11 = vadd.f32 %v19452_v6, %v6196_v27 }
 0x651   : > { %21866 = vst [vmem:[#allocation19_spill] sm:$0xff] %v19586_v43  ;;  %v6322_v63 = vmul.f32 %v19586_v43, %v19586_v43 }
 0x652   : > { %21865 = vst [vmem:[#allocation18_spill] sm:$0xff] %v19583_v11  ;;  %v6350_v40 = vadd.f32 %v6349_v24, %v6319_v5  ;;  %v6320_v52 = vmul.f32 %v19583_v11, %v19583_v11 }
 0x654   : > { %v6351_v17 = vadd.f32 %v6350_v40, %v6320_v52  ;;  %v16136_v47 = vpop.f32.mrb[28].mxu1 }
 0x655   : > { %v6209_v26 = vpop.f32.mrb[29].mxu1  ;;  %v19598_v20 = vadd.f32 %v16136_v47, %v19452_v6 }
 0x656   : > { %v6352_v25 = vadd.f32 %v6351_v17, %v6321_v16  ;;  %v19595_v58 = vadd.f32 %v19452_v6, %v6209_v26  ;;  %v16137_v13 = vpop.f32.mrb[30].mxu1 }
 0x657   : > { %v6212_v39 = vpop.f32.mrb[31].mxu1  ;;  %21868 = vst [vmem:[#allocation21_spill] sm:$0xff] %v19598_v20  ;;  %v19606_v7 = vadd.f32 %v16137_v13, %v19452_v6  ;;  %v6325_v48 = vmul.f32 %v19598_v20, %v19598_v20 }
 0x658   : > { %21867 = vst [vmem:[#allocation20_spill] sm:$0xff] %v19595_v58  ;;  %v6323_v51 = vmul.f32 %v19595_v58, %v19595_v58  ;;  %v6353_v54 = vadd.f32 %v6352_v25, %v6322_v63  ;;  %v19603_v45 = vadd.f32 %v19452_v6, %v6212_v39 }
 0x659   : > { %21870 = vst [vmem:[#allocation23_spill] sm:$0xff] %v19606_v7  ;;  %v6326_v61 = vmul.f32 %v19606_v7, %v19606_v7 }
 0x65a   : > { %21869 = vst [vmem:[#allocation22_spill] sm:$0xff] %v19603_v45  ;;  %v6354_v44 = vadd.f32 %v6353_v54, %v6323_v51  ;;  %v6324_v38 = vmul.f32 %v19603_v45, %v19603_v45  ;;  %v21796_v54 = vlaneseq }
 0x65c   : > { %v6355_v49 = vadd.f32 %v6354_v44, %v6324_v38  ;;  %v19618_v44 = vand.u32 127, %v21796_v54 }
 0x65e   : > { %v6356_v8 = vadd.f32 %v6355_v49, %v6325_v48  ;;  %vm444_vm5 = vcmp.lt.s32.totalorder %v19618_v44, 64 }
 0x660   : > { %v6357_v19 = vadd.f32 %v6356_v8, %v6326_v61 }
 0x662   : > { %v6358_v23 = vrot.slane %v6357_v19, 4 }
 0x664   : > { %v6359_v4 = vadd.f32 %v6358_v23, %v6357_v19 }
 0x666   : > { %v6360_v33 = vrot.slane %v6359_v4, 2 }
 0x668   : > { %v6361_v62 = vadd.f32 %v6360_v33, %v6359_v4 }
 0x66a   : > { %v6362_v46 = vrot.slane %v6361_v62, 1 }
 0x66c   : > { %v6363_v15 = vadd.f32 %v6362_v46, %v6361_v62 }
 0x66e   : > { %6376 = vrot.lane.b32.xlu0 %v6363_v15, %s18336_s14  ;;  %v6364_v6 = vsel %vm495_vm0, %v6363_v15, 0.0 }
 0x68d   : > { %6365 = vadd.xlane.f32.xlu0 %v6364_v6 }
 0x6e0   : > { %v6377_v55 = vpop.permute.xlu0 %6376 }
 0x6e1   : > { %v6379_v2 = vsel %vm495_vm0, %v6377_v55, 0.0 }
 0x6e2   : > { %6380 = vadd.xlane.f32.xlu1 %v6379_v2 }
 0x71a   : > { %v6366_v27 = vpop.xlane.xlu0 %6365 }
 0x71b   : > { %18309 = vrsqrt.f32 %v6366_v27  ;;  %vm6369_vm1 = vcmp.eq.f32.partialorder %v6366_v27, inf  ;;  %v6372_v17 = vand.u32 2147483648, %v6366_v27  ;;  %vm6371_vm2 = vcmp.eq.f32.partialorder %v6366_v27, 0.0 }
 0x725   : > { %v18310_v24 = vpop.eup %18309 }
 0x726   : > { %v6368_v40 = vmul.f32 %v18310_v24, %v6366_v27 }
 0x728   : > { %v6370_v52 = vsel %vm6369_vm1, %v6366_v27, %v6368_v40 }
 0x729   : > { %v6373_v26 = vsel %vm6371_vm2, %v6372_v17, %v6370_v52 }
 0x72a   : > { %v6374_v39 = vmax.f32 %v6373_v26, 1e-12 }
 0x76f   : > { %v6381_v5 = vpop.xlane.xlu1 %6380 }
 0x770   : > { %18311 = vrsqrt.f32 %v6381_v5  ;;  %vm6384_vm3 = vcmp.eq.f32.partialorder %v6381_v5, inf  ;;  %v6387_v63 = vand.u32 2147483648, %v6381_v5  ;;  %vm6386_vm4 = vcmp.eq.f32.partialorder %v6381_v5, 0.0 }
 0x77a   : > { %v18312_v16 = vpop.eup %18311 }
 0x77b   : > { %v6383_v47 = vmul.f32 %v18312_v16, %v6381_v5 }
 0x77d   : > { %v6385_v25 = vsel %vm6384_vm3, %v6381_v5, %v6383_v47 }
 0x77e   : > { %v6388_v13 = vsel %vm6386_vm4, %v6387_v63, %v6385_v25 }
 0x77f   : > { %v6389_v51 = vmax.f32 %v6388_v13, 1e-12 }
 0x781   : > { %18313 = vrcp.f32 %v6389_v51 }
 0x782   : > { %18315 = vrcp.f32 %v6374_v39 }
 0x78b   : > { %v18314_v38 = vpop.eup %18313 }
 0x78c   : > { %v18316_v48 = vpop.eup %18315 }
 0x78d   : > { %v6394_v49 = vsel %vm444_vm5, %v18316_v48, %v18314_v38 }
 0x78e   : > { %v19624_v61 = vmul.f32 %v6394_v49, %v19455_v30  ;;  %v19627_v8 = vmul.f32 %v6394_v49, %v19461_v14  ;;  %v19630_v19 = vmul.f32 %v6394_v49, %v19458_v22  ;;  %v19635_v4 = vmul.f32 %v6394_v49, %v19466_v41 }
 0x78f   : > { %v19639_v62 = vmul.f32 %v6394_v49, %v19475_v35  ;;  %v19643_v15 = vmul.f32 %v6394_v49, %v19483_v57  ;;  %v19647_v55 = vmul.f32 %v6394_v49, %v19478_v28  ;;  %v19651_v27 = vmul.f32 %v6394_v49, %v19486_v37 }
 0x790   : > { %v6427_v23 = vadd.f32 %v19627_v8, %v19624_v61  ;;  %v19655_v24 = vmul.f32 %v6394_v49, %v19495_v9  ;;  %v19659_v52 = vmul.f32 %v6394_v49, %v19503_v50  ;;  %v19663_v17 = vmul.f32 %v6394_v49, %v19498_v31 }
 0x791   : > { %v19667_v26 = vmul.f32 %v6394_v49, %v19506_v56  ;;  %v19671_v25 = vmul.f32 %v6394_v49, %v19515_v21  ;;  %v19675_v39 = vmul.f32 %v6394_v49, %v19523_v59  ;;  %v19679_v38 = vmul.f32 %v6394_v49, %v19518_v10 }
 0x792   : > { %v6428_v33 = vadd.f32 %v6427_v23, %v19630_v19  ;;  %v19683_v23 = vmul.f32 %v6394_v49, %v19526_v42  ;;  %v19715_v54 = vmul.f32 %v6394_v49, %v19566_v32  ;;  %v19719_v1 = vmul.f32 %v6394_v49, %v19575_v12 }
 0x793   : > { %v19731_v32 = vmul.f32 %v6394_v49, %v19586_v43  ;;  %v19735_v12 = vmul.f32 %v6394_v49, %v19595_v58  ;;  %v19747_v43 = vmul.f32 %v6394_v49, %v19606_v7 }
 0x794   : > { %v6429_v46 = vadd.f32 %v6428_v33, %v19635_v4 }
 0x796   : > { %v6430_v6 = vadd.f32 %v6429_v46, %v19639_v62  ;;  %v19687_v46 = vmul.f32 %v6394_v49, %v19535_v34 }
 0x798   : > { %v6431_v2 = vadd.f32 %v6430_v6, %v19643_v15 }
 0x79a   : > { %v6432_v5 = vadd.f32 %v6431_v2, %v19647_v55  ;;  %v19691_v2 = vmul.f32 %v6394_v49, %v19543_v3 }
 0x79c   : > { %v6433_v40 = vadd.f32 %v6432_v5, %v19651_v27 }
 0x79e   : > { %v6434_v16 = vadd.f32 %v6433_v40, %v19655_v24  ;;  %v19695_v40 = vmul.f32 %v6394_v49, %v19538_v53 }
 0x7a0   : > { %v6435_v47 = vadd.f32 %v6434_v16, %v19659_v52 }
 0x7a2   : > { %v6436_v63 = vadd.f32 %v6435_v47, %v19663_v17  ;;  %v19699_v47 = vmul.f32 %v6394_v49, %v19546_v0 }
 0x7a4   : > { %v6437_v13 = vadd.f32 %v6436_v63, %v19667_v26 }
 0x7a6   : > { %v6438_v51 = vadd.f32 %v6437_v13, %v19671_v25  ;;  %v19703_v13 = vmul.f32 %v6394_v49, %v19555_v36 }
 0x7a8   : > { %v6439_v48 = vadd.f32 %v6438_v51, %v19675_v39 }
 0x7aa   : > { %v6440_v33 = vadd.f32 %v6439_v48, %v19679_v38  ;;  %v19707_v48 = vmul.f32 %v6394_v49, %v19563_v18  ;;  %v19723_v18 = vmul.f32 %v6394_v49, %v19583_v11  ;;  %v19739_v11 = vmul.f32 %v6394_v49, %v19603_v45 }
 0x7ac   : > { %v6441_v6 = vadd.f32 %v6440_v33, %v19683_v23 }
 0x7ae   : > { %v6442_v5 = vadd.f32 %v6441_v6, %v19687_v46  ;;  %v19711_v6 = vmul.f32 %v6394_v49, %v19558_v60  ;;  %v19727_v60 = vmul.f32 %v6394_v49, %v19578_v29  ;;  %v19743_v29 = vmul.f32 %v6394_v49, %v19598_v20 }
 0x7b0   : > { %v6443_v16 = vadd.f32 %v6442_v5, %v19691_v2 }
 0x7b2   : > { %v6444_v63 = vadd.f32 %v6443_v16, %v19695_v40 }
 0x7b4   : > { %v6445_v51 = vadd.f32 %v6444_v63, %v19699_v47 }
 0x7b6   : > { %v6446_v33 = vadd.f32 %v6445_v51, %v19703_v13 }
 0x7b8   : > { %v6447_v5 = vadd.f32 %v6446_v33, %v19707_v48 }
 0x7ba   : > { %v6448_v16 = vadd.f32 %v6447_v5, %v19711_v6 }
 0x7bc   : > { %v6449_v63 = vadd.f32 %v6448_v16, %v19715_v54 }
 0x7be   : > { %v6450_v51 = vadd.f32 %v6449_v63, %v19719_v1 }
 0x7c0   : > { %v6451_v33 = vadd.f32 %v6450_v51, %v19723_v18 }
 0x7c2   : > { %v6452_v5 = vadd.f32 %v6451_v33, %v19727_v60 }
 0x7c4   : > { %v6453_v16 = vadd.f32 %v6452_v5, %v19731_v32 }
 0x7c6   : > { %v6454_v63 = vadd.f32 %v6453_v16, %v19735_v12 }
 0x7c8   : > { %v6455_v51 = vadd.f32 %v6454_v63, %v19739_v11 }
 0x7ca   : > { %v6456_v33 = vadd.f32 %v6455_v51, %v19743_v29 }
 0x7cc   : > { %v6457_v58 = vadd.f32 %v6456_v33, %v19747_v43 }
 0x7ce   : > { %v6458_v36 = vrot.slane %v6457_v58, 4 }
 0x7d0   : > { %v6459_v0 = vadd.f32 %v6458_v36, %v6457_v58 }
 0x7d2   : > { %v6460_v5 = vrot.slane %v6459_v0, 2 }
 0x7d4   : > { %v6461_v53 = vadd.f32 %v6460_v5, %v6459_v0 }
 0x7d6   : > { %v6462_v45 = vrot.slane %v6461_v53, 1 }
 0x7d8   : > { %v6463_v3 = vadd.f32 %v6462_v45, %v6461_v53 }
 0x7da   : > { %6469 = vrot.lane.b32.xlu1 %v6463_v3, %s18336_s14  ;;  %v6464_v16 = vsel %vm495_vm0, %v6463_v3, 0.0 }
 0x7fe   : > { %6465 = vadd.xlane.f32.xlu1 %v6464_v16 }
 0x84c   : > { %v6470_v20 = vpop.permute.xlu1 %6469 }
 0x84d   : > { %v6472_v63 = vsel %vm495_vm0, %v6470_v20, 0.0 }
 0x84e   : > { %6473 = vadd.xlane.f32.xlu0 %v6472_v63 }
 0x88b   : > { %v6466_v49 = vpop.xlane.xlu1 %6465 }
 0x88c   : > { %v6467_v51 = vmul.f32 6.1035156e-05, %v6466_v49 }
 0x8db   : > { %v6474_v7 = vpop.xlane.xlu0 %6473 }
 0x8dc   : > { %v6475_v34 = vmul.f32 6.1035156e-05, %v6474_v7 }
 0x8de   : > { %v19756_v36 = vsel %vm444_vm5, %v6467_v51, %v6475_v34 }
 0x8df   : > { %v19760_v53 = vsub.f32 %v19627_v8, %v19756_v36  ;;  %v19764_v3 = vsub.f32 %v19624_v61, %v19756_v36  ;;  %v19768_v0 = vsub.f32 %v19630_v19, %v19756_v36  ;;  %v19780_v20 = vsub.f32 %v19647_v55, %v19756_v36 }
 0x8e0   : > { %v19784_v45 = vsub.f32 %v19635_v4, %v19756_v36  ;;  %v19790_v8 = vsub.f32 %v19639_v62, %v19756_v36  ;;  %v19800_v4 = vsub.f32 %v19643_v15, %v19756_v36  ;;  %v19804_v33 = vsub.f32 %v19655_v24, %v19756_v36 }
 0x8e1   : > { %6604 = vrot.lane.b32.xlu1 %v19760_v53, %s18336_s14  ;;  %v6510_v58 = vmul.f32 %v19760_v53, %v19760_v53  ;;  %6602 = vrot.lane.b32.xlu0 %v19764_v3, %s18336_s14  ;;  %v6509_v34 = vmul.f32 %v19764_v3, %v19764_v3  ;;  %v6511_v61 = vmul.f32 %v19768_v0, %v19768_v0 }
 0x8e2   : > { %v6512_v55 = vmul.f32 %v19784_v45, %v19784_v45  ;;  %v6513_v5 = vmul.f32 %v19790_v8, %v19790_v8  ;;  %v6514_v63 = vmul.f32 %v19800_v4, %v19800_v4  ;;  %v19816_v15 = vsub.f32 %v19651_v27, %v19756_v36 }
 0x8e3   : > { %v6541_v7 = vadd.f32 %v6510_v58, %v6509_v34  ;;  %v19820_v24 = vsub.f32 %v19663_v17, %v19756_v36  ;;  %v6515_v49 = vmul.f32 %v19780_v20, %v19780_v20  ;;  %v19832_v27 = vsub.f32 %v19659_v52, %v19756_v36 }
 0x8e4   : > { %v6516_v58 = vmul.f32 %v19816_v15, %v19816_v15  ;;  %v19836_v17 = vsub.f32 %v19671_v25, %v19756_v36  ;;  %v19848_v52 = vsub.f32 %v19667_v26, %v19756_v36  ;;  %v19852_v25 = vsub.f32 %v19679_v38, %v19756_v36 }
 0x8e5   : > { %6614 = vrot.lane.b32.xlu1 %v19780_v20, %s18336_s14  ;;  %6606 = vrot.lane.b32.xlu0 %v19768_v0, %s18336_s14  ;;  %v6542_v19 = vadd.f32 %v6541_v7, %v6511_v61  ;;  %v6517_v7 = vmul.f32 %v19804_v33, %v19804_v33  ;;  %v19864_v26 = vsub.f32 %v19675_v39, %v19756_v36 }
 0x8e6   : > { %v19868_v38 = vsub.f32 %v19687_v46, %v19756_v36  ;;  %v19880_v39 = vsub.f32 %v19683_v23, %v19756_v36  ;;  %v19884_v46 = vsub.f32 %v19695_v40, %v19756_v36  ;;  %v19896_v23 = vsub.f32 %v19691_v2, %v19756_v36 }
 0x8e7   : > { %v6543_v62 = vadd.f32 %v6542_v19, %v6512_v55  ;;  %v6518_v19 = vmul.f32 %v19832_v27, %v19832_v27  ;;  %v19900_v40 = vsub.f32 %v19703_v13, %v19756_v36  ;;  %v19912_v2 = vsub.f32 %v19699_v47, %v19756_v36 }
 0x8e8   : > { %v19916_v13 = vsub.f32 %v19711_v6, %v19756_v36  ;;  %v19928_v47 = vsub.f32 %v19707_v48, %v19756_v36  ;;  %v19932_v6 = vsub.f32 %v19719_v1, %v19756_v36  ;;  %v19944_v48 = vsub.f32 %v19715_v54, %v19756_v36 }
 0x8e9   : > { %6618 = vrot.lane.b32.xlu1 %v19804_v33, %s18336_s14  ;;  %6608 = vrot.lane.b32.xlu0 %v19784_v45, %s18336_s14  ;;  %v6544_v16 = vadd.f32 %v6543_v62, %v6513_v5  ;;  %v6519_v62 = vmul.f32 %v19820_v24, %v19820_v24  ;;  %v19948_v1 = vsub.f32 %v19723_v18, %v19756_v36 }
 0x8ea   : > { %v19960_v54 = vsub.f32 %v19731_v32, %v19756_v36  ;;  %v19964_v18 = vsub.f32 %v19727_v60, %v19756_v36  ;;  %v19976_v32 = vsub.f32 %v19739_v11, %v19756_v36  ;;  %v19980_v60 = vsub.f32 %v19735_v12, %v19756_v36 }
 0x8eb   : > { %v6545_v51 = vadd.f32 %v6544_v16, %v6514_v63  ;;  %v6520_v16 = vmul.f32 %v19848_v52, %v19848_v52  ;;  %v19992_v11 = vsub.f32 %v19747_v43, %v19756_v36  ;;  %v19996_v12 = vsub.f32 %v19743_v29, %v19756_v36 }
 0x8ed   : > { %6622 = vrot.lane.b32.xlu1 %v19820_v24, %s18336_s14  ;;  %6610 = vrot.lane.b32.xlu0 %v19790_v8, %s18336_s14  ;;  %v6546_v34 = vadd.f32 %v6545_v51, %v6515_v49  ;;  %v6521_v49 = vmul.f32 %v19836_v17, %v19836_v17 }
 0x8ef   : > { %v6547_v61 = vadd.f32 %v6546_v34, %v6516_v58  ;;  %v6522_v58 = vmul.f32 %v19864_v26, %v19864_v26 }
 0x8f1   : > { %6626 = vrot.lane.b32.xlu1 %v19836_v17, %s18336_s14  ;;  %6612 = vrot.lane.b32.xlu0 %v19800_v4, %s18336_s14  ;;  %v6548_v55 = vadd.f32 %v6547_v61, %v6517_v7  ;;  %v6523_v7 = vmul.f32 %v19852_v25, %v19852_v25 }
 0x8f3   : > { %v6549_v5 = vadd.f32 %v6548_v55, %v6518_v19  ;;  %v6524_v19 = vmul.f32 %v19880_v39, %v19880_v39 }
 0x8f5   : > { %6630 = vrot.lane.b32.xlu1 %v19852_v25, %s18336_s14  ;;  %6616 = vrot.lane.b32.xlu0 %v19816_v15, %s18336_s14  ;;  %v6550_v63 = vadd.f32 %v6549_v5, %v6519_v62  ;;  %v6525_v62 = vmul.f32 %v19868_v38, %v19868_v38 }
 0x8f7   : > { %v6551_v51 = vadd.f32 %v6550_v63, %v6520_v16  ;;  %v6526_v16 = vmul.f32 %v19896_v23, %v19896_v23 }
 0x8f9   : > { %6634 = vrot.lane.b32.xlu1 %v19868_v38, %s18336_s14  ;;  %6620 = vrot.lane.b32.xlu0 %v19832_v27, %s18336_s14  ;;  %v6552_v34 = vadd.f32 %v6551_v51, %v6521_v49  ;;  %v6527_v49 = vmul.f32 %v19884_v46, %v19884_v46 }
 0x8fb   : > { %v6553_v61 = vadd.f32 %v6552_v34, %v6522_v58  ;;  %v6528_v58 = vmul.f32 %v19912_v2, %v19912_v2 }
 0x8fd   : > { %6638 = vrot.lane.b32.xlu1 %v19884_v46, %s18336_s14  ;;  %6624 = vrot.lane.b32.xlu0 %v19848_v52, %s18336_s14  ;;  %v6554_v55 = vadd.f32 %v6553_v61, %v6523_v7  ;;  %v6529_v7 = vmul.f32 %v19900_v40, %v19900_v40 }
 0x8ff   : > { %v6555_v5 = vadd.f32 %v6554_v55, %v6524_v19  ;;  %v6530_v19 = vmul.f32 %v19928_v47, %v19928_v47 }
 0x901   : > { %6642 = vrot.lane.b32.xlu1 %v19900_v40, %s18336_s14  ;;  %6628 = vrot.lane.b32.xlu0 %v19864_v26, %s18336_s14  ;;  %v6556_v63 = vadd.f32 %v6555_v5, %v6525_v62  ;;  %v6531_v62 = vmul.f32 %v19916_v13, %v19916_v13 }
 0x903   : > { %v6557_v51 = vadd.f32 %v6556_v63, %v6526_v16  ;;  %v6532_v16 = vmul.f32 %v19944_v48, %v19944_v48 }
 0x905   : > { %6646 = vrot.lane.b32.xlu1 %v19916_v13, %s18336_s14  ;;  %6632 = vrot.lane.b32.xlu0 %v19880_v39, %s18336_s14  ;;  %v6558_v34 = vadd.f32 %v6557_v51, %v6527_v49  ;;  %v6533_v49 = vmul.f32 %v19932_v6, %v19932_v6 }
 0x907   : > { %v6559_v61 = vadd.f32 %v6558_v34, %v6528_v58  ;;  %v6534_v58 = vmul.f32 %v19948_v1, %v19948_v1 }
 0x909   : > { %6650 = vrot.lane.b32.xlu1 %v19932_v6, %s18336_s14  ;;  %6636 = vrot.lane.b32.xlu0 %v19896_v23, %s18336_s14  ;;  %v6560_v55 = vadd.f32 %v6559_v61, %v6529_v7  ;;  %v6535_v7 = vmul.f32 %v19964_v18, %v19964_v18 }
 0x90b   : > { %v6561_v5 = vadd.f32 %v6560_v55, %v6530_v19  ;;  %v6536_v19 = vmul.f32 %v19960_v54, %v19960_v54 }
 0x90d   : > { %6652 = vrot.lane.b32.xlu1 %v19948_v1, %s18336_s14  ;;  %6640 = vrot.lane.b32.xlu0 %v19912_v2, %s18336_s14  ;;  %v6562_v63 = vadd.f32 %v6561_v5, %v6531_v62  ;;  %v6537_v62 = vmul.f32 %v19980_v60, %v19980_v60 }
 0x90f   : > { %v6563_v51 = vadd.f32 %v6562_v63, %v6532_v16  ;;  %v6538_v16 = vmul.f32 %v19976_v32, %v19976_v32 }
 0x911   : > { %6656 = vrot.lane.b32.xlu1 %v19960_v54, %s18336_s14  ;;  %6644 = vrot.lane.b32.xlu0 %v19928_v47, %s18336_s14  ;;  %v6564_v34 = vadd.f32 %v6563_v51, %v6533_v49  ;;  %v6539_v49 = vmul.f32 %v19996_v12, %v19996_v12  ;;  %v6540_v51 = vmul.f32 %v19992_v11, %v19992_v11 }
 0x913   : > { %v6565_v61 = vadd.f32 %v6564_v34, %v6534_v58 }
 0x915   : > { %6660 = vrot.lane.b32.xlu1 %v19976_v32, %s18336_s14  ;;  %6648 = vrot.lane.b32.xlu0 %v19944_v48, %s18336_s14  ;;  %v6566_v55 = vadd.f32 %v6565_v61, %v6535_v7 }
 0x917   : > { %v6567_v5 = vadd.f32 %v6566_v55, %v6536_v19 }
 0x919   : > { %6664 = vrot.lane.b32.xlu1 %v19992_v11, %s18336_s14  ;;  %v6568_v63 = vadd.f32 %v6567_v5, %v6537_v62 }
 0x91b   : > { %v6569_v43 = vadd.f32 %v6568_v63, %v6538_v16 }
 0x91d   : > { %v6570_v29 = vadd.f32 %v6569_v43, %v6539_v49 }
 0x91f   : > { %v6571_v36 = vadd.f32 %v6570_v29, %v6540_v51 }
 0x921   : > { %v6572_v58 = vrot.slane %v6571_v36, 4 }
 0x923   : > { %v6573_v34 = vadd.f32 %v6572_v58, %v6571_v36 }
 0x925   : > { %v6574_v7 = vrot.slane %v6573_v34, 2 }
 0x927   : > { %v6575_v61 = vadd.f32 %v6574_v7, %v6573_v34 }
 0x929   : > { %v6576_v19 = vrot.slane %v6575_v61, 1 }
 0x92b   : > { %v6577_v55 = vadd.f32 %v6576_v19, %v6575_v61 }
 0x92d   : > { %6589 = vrot.lane.b32.xlu0 %v6577_v55, %s18336_s14  ;;  %v6578_v63 = vsel %vm495_vm0, %v6577_v55, 0.0 }
 0x931   : > { %6654 = vrot.lane.b32.xlu0 %v19964_v18, %s18336_s14 }
 0x935   : > { %6658 = vrot.lane.b32.xlu0 %v19980_v60, %s18336_s14 }
 0x939   : > { %6662 = vrot.lane.b32.xlu0 %v19996_v12, %s18336_s14 }
 0x953   : > { %v6603_v62 = vpop.permute.xlu0 %6602  ;;  %v6605_v5 = vpop.permute.xlu1 %6604 }
 0x954   : > { %v6667_v49 = vmul.f32 %v6605_v5, %v19760_v53  ;;  %v6666_v43 = vmul.f32 %v6603_v62, %v19764_v3 }
 0x956   : > { %v6698_v58 = vadd.f32 %v6667_v49, %v6666_v43 }
 0x957   : > { %v6607_v16 = vpop.permute.xlu0 %6606  ;;  %v6615_v51 = vpop.permute.xlu1 %6614 }
 0x958   : > { %6579 = vadd.xlane.f32.xlu0 %v6578_v63  ;;  %v6668_v36 = vmul.f32 %v6607_v16, %v19768_v0  ;;  %v6672_v53 = vmul.f32 %v6615_v51, %v19780_v20 }
 0x95a   : > { %v6699_v61 = vadd.f32 %v6698_v58, %v6668_v36 }
 0x95b   : > { %v6609_v29 = vpop.permute.xlu0 %6608  ;;  %v6619_v42 = vpop.permute.xlu1 %6618 }
 0x95c   : > { %v6669_v34 = vmul.f32 %v6609_v29, %v19784_v45  ;;  %v6674_v45 = vmul.f32 %v6619_v42, %v19804_v33 }
 0x95e   : > { %v6700_v10 = vadd.f32 %v6699_v61, %v6669_v34 }
 0x95f   : > { %v6611_v7 = vpop.permute.xlu0 %6610  ;;  %v6623_v62 = vpop.permute.xlu1 %6622 }
 0x960   : > { %v6670_v19 = vmul.f32 %v6611_v7, %v19790_v8 }
 0x962   : > { %v6701_v55 = vadd.f32 %v6700_v10, %v6670_v19  ;;  %v6676_v10 = vmul.f32 %v6623_v62, %v19820_v24 }
 0x963   : > { %v6613_v59 = vpop.permute.xlu0 %6612  ;;  %v6627_v29 = vpop.permute.xlu1 %6626 }
 0x964   : > { %v6671_v63 = vmul.f32 %v6613_v59, %v19800_v4  ;;  %v6678_v51 = vmul.f32 %v6627_v29, %v19836_v17 }
 0x966   : > { %v6702_v3 = vadd.f32 %v6701_v55, %v6671_v63 }
 0x967   : > { %v6617_v5 = vpop.permute.xlu0 %6616  ;;  %v6631_v34 = vpop.permute.xlu1 %6630 }
 0x968   : > { %v6703_v21 = vadd.f32 %v6702_v3, %v6672_v53  ;;  %v6673_v0 = vmul.f32 %v6617_v5, %v19816_v15  ;;  %v6680_v42 = vmul.f32 %v6631_v34, %v19852_v25 }
 0x96a   : > { %v6704_v16 = vadd.f32 %v6703_v21, %v6673_v0 }
 0x96b   : > { %v6621_v49 = vpop.permute.xlu0 %6620  ;;  %v6635_v19 = vpop.permute.xlu1 %6634 }
 0x96c   : > { %v6705_v43 = vadd.f32 %v6704_v16, %v6674_v45  ;;  %v6675_v8 = vmul.f32 %v6621_v49, %v19832_v27 }
 0x96e   : > { %v6706_v36 = vadd.f32 %v6705_v43, %v6675_v8 }
 0x96f   : > { %v6625_v59 = vpop.permute.xlu0 %6624  ;;  %v6639_v3 = vpop.permute.xlu1 %6638 }
 0x970   : > { %v6707_v4 = vadd.f32 %v6706_v36, %v6676_v10  ;;  %v6677_v20 = vmul.f32 %v6625_v59, %v19848_v52  ;;  %v6682_v52 = vmul.f32 %v6635_v19, %v19868_v38 }
 0x972   : > { %v6708_v58 = vadd.f32 %v6707_v4, %v6677_v20 }
 0x973   : > { %v6629_v15 = vpop.permute.xlu0 %6628  ;;  %v6643_v0 = vpop.permute.xlu1 %6642 }
 0x974   : > { %v6709_v7 = vadd.f32 %v6708_v58, %v6678_v51  ;;  %v6679_v21 = vmul.f32 %v6629_v15, %v19864_v26  ;;  %v6684_v26 = vmul.f32 %v6639_v3, %v19884_v46  ;;  %v6686_v43 = vmul.f32 %v6643_v0, %v19900_v40  ;;  %v6861_v0 = vld [vmem:[%s21787_s5 + $0x8] sm:$0xff] }
 0x976   : > { %v6710_v33 = vadd.f32 %v6709_v7, %v6679_v21 }
 0x977   : > { %v6633_v27 = vpop.permute.xlu0 %6632  ;;  %v6647_v49 = vpop.permute.xlu1 %6646 }
 0x978   : > { %v6711_v61 = vadd.f32 %v6710_v33, %v6680_v42  ;;  %v6681_v24 = vmul.f32 %v6633_v27, %v19880_v39  ;;  %v6688_v36 = vmul.f32 %v6647_v49, %v19916_v13 }
 0x97a   : > { %v6712_v55 = vadd.f32 %v6711_v61, %v6681_v24 }
 0x97b   : > { %v6637_v63 = vpop.permute.xlu0 %6636  ;;  %v6651_v29 = vpop.permute.xlu1 %6650 }
 0x97c   : > { %v6713_v53 = vadd.f32 %v6712_v55, %v6682_v52  ;;  %v6683_v17 = vmul.f32 %v6637_v63, %v19896_v23 }
 0x97e   : > { %v6714_v62 = vadd.f32 %v6713_v53, %v6683_v17 }
 0x97f   : > { %v6641_v5 = vpop.permute.xlu0 %6640  ;;  %v6653_v4 = vpop.permute.xlu1 %6652 }
 0x980   : > { %v6715_v25 = vadd.f32 %v6714_v62, %v6684_v26  ;;  %v6685_v45 = vmul.f32 %v6641_v5, %v19912_v2  ;;  %v6690_v2 = vmul.f32 %v6651_v29, %v19932_v6 }
 0x982   : > { %v6716_v16 = vadd.f32 %v6715_v25, %v6685_v45  ;;  %v6878_v25 = vld [vmem:[%s21787_s5 + $0x90] sm:$0xff]  ;;  %v6879_v45 = vld [vmem:[%s21787_s5 + $0x98] sm:$0xff] }
 0x983   : > { %v6645_v39 = vpop.permute.xlu0 %6644  ;;  %v6657_v51 = vpop.permute.xlu1 %6656  ;;  %v16929_v49 = vpack.c.bf16 %v6879_v45, %v6878_v25 }
 0x984   : > { %v6717_v8 = vadd.f32 %v6716_v16, %v6686_v43  ;;  %v6687_v38 = vmul.f32 %v6645_v39, %v19928_v47  ;;  %v6691_v47 = vmul.f32 %v6653_v4, %v19948_v1  ;;  %v6693_v42 = vmul.f32 %v6657_v51, %v19960_v54  ;;  %v6862_v39 = vld [vmem:[%s21787_s5 + $0x10] sm:$0xff]  ;;  %v6863_v43 = vld [vmem:[%s21787_s5 + $0x18] sm:$0xff] }
 0x985   : > { %v16931_v29 = vpack.c.bf16 %v6863_v43, %v6862_v39  ;;  %v6867_v51 = vld [vmem:[%s21787_s5 + $0x38] sm:$0xff] }
 0x986   : > { %v6718_v10 = vadd.f32 %v6717_v8, %v6687_v38  ;;  %v6880_v8 = vld [vmem:[%s21787_s5 + $0xa0] sm:$0xff]  ;;  %v6881_v38 = vld [vmem:[%s21787_s5 + $0xa8] sm:$0xff] }
 0x987   : > { %v6649_v23 = vpop.permute.xlu0 %6648  ;;  %v6661_v13 = vpop.permute.xlu1 %6660 }
 0x988   : > { %v6719_v59 = vadd.f32 %v6718_v10, %v6688_v36  ;;  %v6689_v46 = vmul.f32 %v6649_v23, %v19944_v48  ;;  %v6695_v61 = vmul.f32 %v6661_v13, %v19976_v32  ;;  %v6876_v32 = vld [vmem:[%s21787_s5 + $0x80] sm:$0xff]  ;;  %v16933_v10 = vpack.c.bf16 %v6881_v38, %v6880_v8  ;;  %v6865_v36 = vld [vmem:[%s21787_s5 + $0x28] sm:$0xff]  ;;  %v6886_v13 = vld [vmem:[%s21787_s5 + $0xd0] sm:$0xff] }
 0x989   : > { %v6864_v23 = vld [vmem:[%s21787_s5 + $0x20] sm:$0xff] }
 0x98a   : > { %v6720_v20 = vadd.f32 %v6719_v59, %v6689_v46  ;;  %v6882_v59 = vld [vmem:[%s21787_s5 + $0xb0] sm:$0xff]  ;;  %v6883_v46 = vld [vmem:[%s21787_s5 + $0xb8] sm:$0xff]  ;;  %v16935_v4 = vpack.c.bf16 %v6865_v36, %v6864_v23 }
 0x98b   : > { %v6665_v19 = vpop.permute.xlu1 %6664 }
 0x98c   : > { %v6721_v34 = vadd.f32 %v6720_v20, %v6690_v2  ;;  %v6697_v52 = vmul.f32 %v6665_v19, %v19992_v11  ;;  %v6860_v11 = vld [vmem:[%s21787_s5] sm:$0xff]  ;;  %v16937_v20 = vpack.c.bf16 %v6883_v46, %v6882_v59  ;;  %v6866_v2 = vld [vmem:[%s21787_s5 + $0x30] sm:$0xff] }
 0x98d   : > { %v16927_v16 = vpack.c.bf16 %v6861_v0, %v6860_v11 }
 0x98e   : > { %v6722_v7 = vadd.f32 %v6721_v34, %v6691_v47  ;;  %v6885_v34 = vld [vmem:[%s21787_s5 + $0xc8] sm:$0xff]  ;;  %v16939_v47 = vpack.c.bf16 %v6867_v51, %v6866_v2 }
 0x99f   : > { %v6590_v58 = vpop.permute.xlu0 %6589 }
 0x9a0   : > { %v6592_v40 = vsel %vm495_vm0, %v6590_v58, 0.0  ;;  %v6884_v58 = vld [vmem:[%s21787_s5 + $0xc0] sm:$0xff] }
 0x9a1   : > { %6593 = vadd.xlane.f32.xlu1 %v6592_v40 }
 0x9a3   : > { %v6655_v15 = vpop.permute.xlu0 %6654 }
 0x9a4   : > { %v6692_v21 = vmul.f32 %v6655_v15, %v19964_v18  ;;  %v16941_v15 = vpack.c.bf16 %v6885_v34, %v6884_v58 }
 0x9a6   : > { %v6723_v48 = vadd.f32 %v6722_v7, %v6692_v21  ;;  %v6868_v7 = vld [vmem:[%s21787_s5 + $0x40] sm:$0xff]  ;;  %v6869_v21 = vld [vmem:[%s21787_s5 + $0x48] sm:$0xff] }
 0x9a7   : > { %v6659_v33 = vpop.permute.xlu0 %6658 }
 0x9a8   : > { %v6724_v27 = vadd.f32 %v6723_v48, %v6693_v42  ;;  %v6694_v6 = vmul.f32 %v6659_v33, %v19980_v60  ;;  %v6877_v60 = vld [vmem:[%s21787_s5 + $0x88] sm:$0xff]  ;;  %v6887_v42 = vld [vmem:[%s21787_s5 + $0xd8] sm:$0xff]  ;;  %v16943_v48 = vpack.c.bf16 %v6869_v21, %v6868_v7 }
 0x9a9   : > { %v16945_v33 = vpack.c.bf16 %v6887_v42, %v6886_v13  ;;  %v21892_v13 = vld [vmem:[#allocation8_spill] sm:$0xff] }
 0x9aa   : > { %v6725_v24 = vadd.f32 %v6724_v27, %v6694_v6  ;;  %v6870_v27 = vld [vmem:[%s21787_s5 + $0x50] sm:$0xff]  ;;  %v6871_v6 = vld [vmem:[%s21787_s5 + $0x58] sm:$0xff] }
 0x9ab   : > { %v6663_v55 = vpop.permute.xlu0 %6662 }
 0x9ac   : > { %v6726_v63 = vadd.f32 %v6725_v24, %v6695_v61  ;;  %v6696_v1 = vmul.f32 %v6663_v55, %v19996_v12  ;;  %v16925_v12 = vpack.c.bf16 %v6877_v60, %v6876_v32  ;;  %v6888_v61 = vld [vmem:[%s21787_s5 + $0xe0] sm:$0xff]  ;;  %v6889_v24 = vld [vmem:[%s21787_s5 + $0xe8] sm:$0xff]  ;;  %v16947_v55 = vpack.c.bf16 %v6871_v6, %v6870_v27 }
 0x9ad   : > { %v21896_v27 = vld [vmem:[#allocation9_spill] sm:$0xff] }
 0x9ae   : > { %v6727_v53 = vadd.f32 %v6726_v63, %v6696_v1  ;;  %16926 = vmatprep.subr.bf16.mxu0 %v16925_v12  ;;  %v16949_v63 = vpack.c.bf16 %v6889_v24, %v6888_v61  ;;  %v6872_v1 = vld [vmem:[%s21787_s5 + $0x60] sm:$0xff] }
 0x9af   : > { %16928 = vmatpush3.bf16.msra.mxu0 %v16927_v16  ;;  %v21871_v16 = vmov 0.0|0.0  }
 0x9b0   : > { %v6728_v18 = vadd.f32 %v6727_v53, %v6697_v52  ;;  %16930 = vmatprep.subr.bf16.mxu0 %v16929_v49  ;;  %v6873_v52 = vld [vmem:[%s21787_s5 + $0x68] sm:$0xff]  ;;  %v6890_v53 = vld [vmem:[%s21787_s5 + $0xf0] sm:$0xff] }
 0x9b2   : > { %v6729_v17 = vrot.slane %v6728_v18, 4 }
 0x9b3   : > { %16932 = vmatpush3.bf16.msra.mxu0 %v16931_v29 }
 0x9b4   : > { %v6730_v3 = vadd.f32 %v6729_v17, %v6728_v18  ;;  %16934 = vmatprep.subr.bf16.mxu0 %v16933_v10  ;;  %v6891_v18 = vld [vmem:[%s21787_s5 + $0xf8] sm:$0xff] }
 0x9b6   : > { %v6731_v54 = vrot.slane %v6730_v3, 2 }
 0x9b7   : > { %16936 = vmatpush3.bf16.msra.mxu0 %v16935_v4 }
 0x9b8   : > { %v6732_v62 = vadd.f32 %v6731_v54, %v6730_v3  ;;  %16938 = vmatprep.subr.bf16.mxu0 %v16937_v20  ;;  %v16951_v3 = vpack.c.bf16 %v6873_v52, %v6872_v1  ;;  %v16953_v54 = vpack.c.bf16 %v6891_v18, %v6890_v53  ;;  %v21898_v1 = vld [vmem:[#allocation11_spill] sm:$0xff]  ;;  %v21900_v53 = vld [vmem:[#allocation12_spill] sm:$0xff] }
 0x9ba   : > { %v6733_v5 = vrot.slane %v6732_v62, 1 }
 0x9bb   : > { %16940 = vmatpush3.bf16.msra.mxu0 %v16939_v47 }
 0x9bc   : > { %v6734_v26 = vadd.f32 %v6733_v5, %v6732_v62  ;;  %16942 = vmatprep.subr.bf16.mxu0 %v16941_v15  ;;  %v6874_v62 = vld [vmem:[%s21787_s5 + $0x70] sm:$0xff]  ;;  %v6875_v5 = vld [vmem:[%s21787_s5 + $0x78] sm:$0xff] }
 0x9bd   : > { %v16955_v32 = vpack.c.bf16 %v6875_v5, %v6874_v62 }
 0x9be   : > { %6735 = vadd.xlane.f32.xlu0 %v6734_v26 }
 0x9bf   : > { %16944 = vmatpush3.bf16.msra.mxu0 %v16943_v48  ;;  %v21894_v48 = vld [vmem:[#allocation10_spill] sm:$0xff] }
 0x9c0   : > { %16946 = vmatprep.subr.bf16.mxu0 %v16945_v33 }
 0x9c3   : > { %16948 = vmatpush3.bf16.msra.mxu0 %v16947_v55 }
 0x9c4   : > { %16950 = vmatprep.subr.bf16.mxu0 %v16949_v63 }
 0x9c7   : > { %16952 = vmatpush3.bf16.msra.mxu0 %v16951_v3 }
 0x9c8   : > { %16954 = vmatprep.subr.bf16.mxu0 %v16953_v54 }
 0x9cb   : > { %16956 = vmatpush3.bf16.msra.mxu0 %v16955_v32 }
 0x9cc   : > { %16957 = vmatprep.subr.bf16.mxu0 %v21871_v16 }
 0x9e5   : > { %v6580_v40 = vpop.xlane.xlu0 %6579 }
 0x9e6   : > { %18317 = vrsqrt.f32 %v6580_v40  ;;  %vm6583_vm6 = vcmp.eq.f32.partialorder %v6580_v40, inf  ;;  %v6586_v0 = vand.u32 2147483648, %v6580_v40  ;;  %vm6585_vm8 = vcmp.eq.f32.partialorder %v6580_v40, 0.0 }
 0x9f0   : > { %v18318_v17 = vpop.eup %18317 }
 0x9f1   : > { %v6582_v26 = vmul.f32 %v18318_v17, %v6580_v40  ;;  %v21902_v17 = vld [vmem:[#allocation14_spill] sm:$0xff] }
 0x9f3   : > { %v6584_v11 = vsel %vm6583_vm6, %v6580_v40, %v6582_v26 }
 0x9f4   : > { %v6587_v49 = vsel %vm6585_vm8, %v6586_v0, %v6584_v11 }
 0xa2e   : > { %v6594_v19 = vpop.xlane.xlu1 %6593 }
 0xa2f   : > { %18319 = vrsqrt.f32 %v6594_v19  ;;  %vm6597_vm7 = vcmp.eq.f32.partialorder %v6594_v19, inf  ;;  %v6600_v25 = vand.u32 2147483648, %v6594_v19  ;;  %vm6599_vm9 = vcmp.eq.f32.partialorder %v6594_v19, 0.0 }
 0xa39   : > { %v18320_v60 = vpop.eup %18319 }
 0xa3a   : > { %v6596_v12 = vmul.f32 %v18320_v60, %v6594_v19  ;;  %v21904_v60 = vld [vmem:[#allocation13_spill] sm:$0xff] }
 0xa3c   : > { %v6598_v45 = vsel %vm6597_vm7, %v6594_v19, %v6596_v12  ;;  %v21906_v12 = vld [vmem:[#allocation15_spill] sm:$0xff] }
 0xa3d   : > { %v6601_v39 = vsel %vm6599_vm9, %v6600_v25, %v6598_v45  ;;  %v21908_v25 = vld [vmem:[#allocation16_spill] sm:$0xff] }
 0xa3e   : > { %v6738_v43 = vmul.f32 %v6601_v39, %v6587_v49 }
 0xa40   : > { %v6739_v8 = vadd.f32 1e-06, %v6738_v43 }
 0xa42   : > { %18321 = vrcp.f32 %v6739_v8 }
 0xa4b   : > { %v6736_v38 = vpop.xlane.xlu0 %6735 }
 0xa4c   : > { %v18322_v29 = vpop.eup %18321  ;;  %v6737_v10 = vmul.f32 0.5, %v6736_v38 }
 0xa4e   : > { %v6741_v23 = vmul.f32 %v18322_v29, %v6737_v10  ;;  %v21910_v29 = vld [vmem:[#allocation18_spill] sm:$0xff] }
 0xa50   : > { %v6742_v36 = vsub.f32 1.0, %v6741_v23  ;;  %v21912_v23 = vld [vmem:[#allocation17_spill] sm:$0xff] }
 0xa52   : > { %v6743_v59 = vadd.f32 1.0, %v6742_v36 }
 0xa54   : > { %v6744_v46 = vsel %vm444_vm5, 1.0, %v6743_v59  ;;  %v21914_v59 = vld [vmem:[#allocation19_spill] sm:$0xff] }
 0xa55   : > { %v20149_v4 = vmul.f32 %v6744_v46, %v19455_v30  ;;  %v20152_v20 = vmul.f32 %v6744_v46, %v19461_v14  ;;  %v20155_v2 = vmul.f32 %v6744_v46, %v19458_v22  ;;  %v20158_v51 = vmul.f32 %v6744_v46, %v19475_v35 }
 0xa56   : > { %v20161_v58 = vmul.f32 %v6744_v46, %v19483_v57  ;;  %v20164_v34 = vmul.f32 %v6744_v46, %v19478_v28  ;;  %v20167_v44 = vmul.f32 %v6744_v46, %v19466_v41  ;;  %v20170_v30 = vmul.f32 %v6744_v46, %v19486_v37  ;;  %v21884_v28 = vld [vmem:[#allocation4_spill] sm:$0xff]  ;;  %v21886_v41 = vld [vmem:[#allocation6_spill] sm:$0xff]  ;;  %v21888_v37 = vld [vmem:[#allocation5_spill] sm:$0xff] }
 0xa57   : > { %21872 = vst [vmem:[#allocation24_spill] sm:$0xff] %v20149_v4  ;;  %21873 = vst [vmem:[#allocation25_spill] sm:$0xff] %v20152_v20  ;;  %v20173_v14 = vmul.f32 %v6744_v46, %v19495_v9  ;;  %v20176_v22 = vmul.f32 %v6744_v46, %v19503_v50  ;;  %v20179_v35 = vmul.f32 %v6744_v46, %v19498_v31  ;;  %v21890_v9 = vld [vmem:[#allocation7_spill] sm:$0xff] }
 0xa58   : > { %21874 = vst [vmem:[#allocation26_spill] sm:$0xff] %v20155_v2  ;;  %21875 = vst [vmem:[#allocation27_spill] sm:$0xff] %v20158_v51  ;;  %v20182_v57 = vmul.f32 %v6744_v46, %v19506_v56  ;;  %v20185_v40 = vmul.f32 %v6744_v46, %v21884_v28  ;;  %v20188_v47 = vmul.f32 %v6744_v46, %v21886_v41 }
 0xa59   : > { %21876 = vst [vmem:[#allocation28_spill] sm:$0xff] %v20161_v58  ;;  %21877 = vst [vmem:[#allocation29_spill] sm:$0xff] %v20164_v34  ;;  %v20191_v15 = vmul.f32 %v6744_v46, %v21888_v37  ;;  %v20194_v7 = vmul.f32 %v6744_v46, %v21890_v9  ;;  %v6777_v50 = vadd.f32 %v20152_v20, %v20149_v4 }
 0xa5a   : > { %21878 = vst [vmem:[#allocation30_spill] sm:$0xff] %v20167_v44  ;;  %21879 = vst [vmem:[#allocation31_spill] sm:$0xff] %v20170_v30  ;;  %v6815_v31 = vmax.f32 %v20149_v4, %v20158_v51  ;;  %v6816_v56 = vmax.f32 %v20152_v20, %v20161_v58  ;;  %v6817_v21 = vmax.f32 %v20155_v2, %v20164_v34 }
 0xa5b   : > { %21880 = vst [vmem:[#allocation32_spill] sm:$0xff] %v20173_v14  ;;  %21881 = vst [vmem:[#allocation33_spill] sm:$0xff] %v20176_v22  ;;  %v20205_v42 = vmul.f32 %v6744_v46, %v21892_v13  ;;  %v20208_v33 = vmul.f32 %v6744_v46, %v21894_v48  ;;  %v20211_v6 = vmul.f32 %v6744_v46, %v21896_v27  ;;  %v21918_v13 = vld [vmem:[#allocation22_spill] sm:$0xff]  ;;  %v21920_v27 = vld [vmem:[#allocation21_spill] sm:$0xff] }
 0xa5c   : > { %21882 = vst [vmem:[#allocation34_spill] sm:$0xff] %v20179_v35  ;;  %21883 = vst [vmem:[#allocation35_spill] sm:$0xff] %v20182_v57  ;;  %v6818_v61 = vmax.f32 %v20167_v44, %v20170_v30  ;;  %v6778_v24 = vadd.f32 %v6777_v50, %v20155_v2  ;;  %v6819_v19 = vmax.f32 %v6815_v31, %v20173_v14 }
 0xa5d   : > { %21885 = vst [vmem:[#allocation4_spill] sm:$0xff] %v20185_v40  ;;  %21887 = vst [vmem:[#allocation6_spill] sm:$0xff] %v20188_v47  ;;  %v6820_v55 = vmax.f32 %v6816_v56, %v20176_v22  ;;  %v6821_v63 = vmax.f32 %v6817_v21, %v20179_v35  ;;  %v20220_v52 = vmul.f32 %v6744_v46, %v21898_v1  ;;  %v21916_v56 = vld [vmem:[#allocation20_spill] sm:$0xff] }
 0xa5e   : > { %21889 = vst [vmem:[#allocation5_spill] sm:$0xff] %v20191_v15  ;;  %21891 = vst [vmem:[#allocation7_spill] sm:$0xff] %v20194_v7  ;;  %v20223_v18 = vmul.f32 %v6744_v46, %v21900_v53  ;;  %v20226_v3 = vmul.f32 %v6744_v46, %v21902_v17  ;;  %v6822_v54 = vmax.f32 %v6818_v61, %v20182_v57  ;;  %v21922_v53 = vld [vmem:[#allocation23_spill] sm:$0xff] }
 0xa5f   : > { %21893 = vst [vmem:[#allocation8_spill] sm:$0xff] %v20205_v42  ;;  %21895 = vst [vmem:[#allocation10_spill] sm:$0xff] %v20208_v33  ;;  %v6779_v62 = vadd.f32 %v6778_v24, %v20167_v44  ;;  %v6823_v5 = vmax.f32 %v6819_v19, %v20185_v40  ;;  %v6824_v26 = vmax.f32 %v6820_v55, %v20188_v47 }
 0xa60   : > { %21897 = vst [vmem:[#allocation9_spill] sm:$0xff] %v20211_v6  ;;  %21899 = vst [vmem:[#allocation11_spill] sm:$0xff] %v20220_v52  ;;  %v6825_v32 = vmax.f32 %v6821_v63, %v20191_v15  ;;  %v20234_v11 = vmul.f32 %v6744_v46, %v21904_v60  ;;  %v20237_v0 = vmul.f32 %v6744_v46, %v21906_v12 }
 0xa61   : > { %21901 = vst [vmem:[#allocation12_spill] sm:$0xff] %v20223_v18  ;;  %21903 = vst [vmem:[#allocation14_spill] sm:$0xff] %v20226_v3  ;;  %v20240_v45 = vmul.f32 %v6744_v46, %v21908_v25  ;;  %v6826_v49 = vmax.f32 %v6822_v54, %v20194_v7  ;;  %v6780_v39 = vadd.f32 %v6779_v62, %v20158_v51 }
 0xa62   : > { %21905 = vst [vmem:[#allocation13_spill] sm:$0xff] %v20234_v11  ;;  %21907 = vst [vmem:[#allocation15_spill] sm:$0xff] %v20237_v0  ;;  %v6827_v43 = vmax.f32 %v6823_v5, %v20205_v42  ;;  %v6828_v8 = vmax.f32 %v6824_v26, %v20208_v33  ;;  %v6829_v38 = vmax.f32 %v6825_v32, %v20211_v6 }
 0xa63   : > { %21909 = vst [vmem:[#allocation16_spill] sm:$0xff] %v20240_v45  ;;  %v20248_v10 = vmul.f32 %v6744_v46, %v21910_v29  ;;  %v20251_v36 = vmul.f32 %v6744_v46, %v21912_v23  ;;  %v20254_v28 = vmul.f32 %v6744_v46, %v21914_v59  ;;  %v6830_v41 = vmax.f32 %v6826_v49, %v20220_v52 }
 0xa64   : > { %v6781_v37 = vadd.f32 %v6780_v39, %v20161_v58  ;;  %v6831_v9 = vmax.f32 %v6827_v43, %v20223_v18  ;;  %v6832_v50 = vmax.f32 %v6828_v8, %v20226_v3  ;;  %v6833_v31 = vmax.f32 %v6829_v38, %v20234_v11 }
 0xa65   : > { %21911 = vst [vmem:[#allocation18_spill] sm:$0xff] %v20248_v10  ;;  %21913 = vst [vmem:[#allocation17_spill] sm:$0xff] %v20251_v36  ;;  %v20262_v21 = vmul.f32 %v6744_v46, %v21916_v56  ;;  %v20265_v48 = vmul.f32 %v6744_v46, %v21918_v13  ;;  %v20268_v61 = vmul.f32 %v6744_v46, %v21920_v27 }
 0xa66   : > { %21915 = vst [vmem:[#allocation19_spill] sm:$0xff] %v20254_v28  ;;  %v6834_v24 = vmax.f32 %v6830_v41, %v20237_v0  ;;  %v6782_v19 = vadd.f32 %v6781_v37, %v20164_v34  ;;  %v6835_v55 = vmax.f32 %v6831_v9, %v20240_v45  ;;  %v6836_v63 = vmax.f32 %v6832_v50, %v20248_v10 }
 0xa67   : > { %21917 = vst [vmem:[#allocation20_spill] sm:$0xff] %v20262_v21  ;;  %21919 = vst [vmem:[#allocation22_spill] sm:$0xff] %v20265_v48  ;;  %v6837_v1 = vmax.f32 %v6833_v31, %v20251_v36  ;;  %v20276_v17 = vmul.f32 %v6744_v46, %v21922_v53  ;;  %v21924_v41 = vlaneseq }
 0xa68   : > { %21921 = vst [vmem:[#allocation21_spill] sm:$0xff] %v20268_v61  ;;  %v6838_v54 = vmax.f32 %v6834_v24, %v20254_v28  ;;  %v6783_v62 = vadd.f32 %v6782_v19, %v20170_v30  ;;  %v6839_v5 = vmax.f32 %v6835_v55, %v20262_v21  ;;  %v6840_v26 = vmax.f32 %v6836_v63, %v20265_v48 }
 0xa69   : > { %21923 = vst [vmem:[#allocation23_spill] sm:$0xff] %v20276_v17  ;;  %v6841_v32 = vmax.f32 %v6837_v1, %v20268_v61  ;;  %v6853_v37 = vshrl.u32 %v21924_v41, 7 }
 0xa6a   : > { %v6842_v60 = vmax.f32 %v6838_v54, %v20276_v17  ;;  %v6784_v12 = vadd.f32 %v6783_v62, %v20173_v14  ;;  %v6843_v25 = vmax.f32 %v6839_v5, %v6840_v26 }
 0xa6b   : > { %v20292_v13 = vsub.s32 0, %v6853_v37  ;;  %v6970_v37 = vld [vmem:[%s21789_s7] sm:$0xff] }
 0xa6c   : > { %v6844_v49 = vmax.f32 %v6841_v32, %v6842_v60  ;;  %v6785_v39 = vadd.f32 %v6784_v12, %v20176_v22 }
 0xa6e   : > { %v6845_v46 = vmax.f32 %v6843_v25, %v6844_v49  ;;  %v6786_v43 = vadd.f32 %v6785_v39, %v20179_v35 }
 0xa70   : > { %v6846_v8 = vrot.slane %v6845_v46, 4  ;;  %v6787_v38 = vadd.f32 %v6786_v43, %v20182_v57 }
 0xa72   : > { %v6847_v29 = vmax.f32 %v6845_v46, %v6846_v8  ;;  %v6788_v23 = vadd.f32 %v6787_v38, %v20185_v40 }
 0xa74   : > { %v6848_v59 = vrot.slane %v6847_v29, 2  ;;  %v6789_v9 = vadd.f32 %v6788_v23, %v20188_v47 }
 0xa76   : > { %v6849_v50 = vmax.f32 %v6847_v29, %v6848_v59  ;;  %v6790_v31 = vadd.f32 %v6789_v9, %v20191_v15  ;;  %v6971_v9 = vld [vmem:[%s21789_s7 + $0x8] sm:$0xff] }
 0xa78   : > { %v6850_v56 = vrot.slane %v6849_v50, 1  ;;  %v6791_v27 = vadd.f32 %v6790_v31, %v20194_v7  ;;  %v16958_v31 = vpack.c.bf16 %v6971_v9, %v6970_v37 }
 0xa7a   : > { %v6851_v24 = vmax.f32 %v6849_v50, %v6850_v56  ;;  %v6792_v19 = vadd.f32 %v6791_v27, %v20205_v42  ;;  %v6972_v27 = vld [vmem:[%s21789_s7 + $0x10] sm:$0xff] }
 0xa7c   : > { %v6859_v55 = vrot.slane %v6851_v24, %v20292_v13  ;;  %v6793_v63 = vadd.f32 %v6792_v19, %v20208_v33  ;;  %v6973_v24 = vld [vmem:[%s21789_s7 + $0x18] sm:$0xff] }
 0xa7d   : > { %v16961_v19 = vpack.c.bf16 %v6973_v24, %v6972_v27  ;;  %v7059_v27 = vmul.f32 %v20152_v20, %v20152_v20  ;;  %v7058_v24 = vmul.f32 %v20149_v4, %v20149_v4 }
 0xa7e   : > { %6963 = vmatprep.mubr.f32.mxu0 %v6859_v55  ;;  %v6794_v1 = vadd.f32 %v6793_v63, %v20211_v6  ;;  %v6974_v55 = vld [vmem:[%s21789_s7 + $0x20] sm:$0xff]  ;;  %v6975_v63 = vld [vmem:[%s21789_s7 + $0x28] sm:$0xff] }
 0xa80   : > { %v6795_v53 = vadd.f32 %v6794_v1, %v20220_v52  ;;  %v6976_v1 = vld [vmem:[%s21789_s7 + $0x30] sm:$0xff] }
 0xa82   : > { %v6796_v54 = vadd.f32 %v6795_v53, %v20223_v18  ;;  %v16964_v53 = vpack.c.bf16 %v6975_v63, %v6974_v55  ;;  %v7063_v55 = vmul.f32 %v20161_v58, %v20161_v58 }
 0xa84   : > { %v6797_v62 = vadd.f32 %v6796_v54, %v20226_v3  ;;  %v6977_v54 = vld [vmem:[%s21789_s7 + $0x38] sm:$0xff] }
 0xa86   : > { %v6798_v5 = vadd.f32 %v6797_v62, %v20234_v11  ;;  %v18325_v62 = vld [vmem:[#allocation2 + $0x28] sm:$0xff] }
 0xa88   : > { %v6799_v26 = vadd.f32 %v6798_v5, %v20237_v0  ;;  %v18229_v5 = vld [vmem:[%s21791_s9] sm:$0xff]  }
 0xa89   : > { %16157 = vmatprep.subr.bf16.mxu1 %v18229_v5 }
 0xa8a   : > { %v6800_v32 = vadd.f32 %v6799_v26, %v20240_v45  ;;  %v18230_v26 = vld [vmem:[%s21791_s9 + $0x8] sm:$0xff]   ;;  %16158 = vmatpush3.bf16.msra.mxu1 %v18229_v5 }
 0xa8b   : > { %16159 = vmatprep.subr.bf16.mxu1 %v18230_v26 }
 0xa8c   : > { %v6801_v60 = vadd.f32 %v6800_v32, %v20248_v10  ;;  %v16967_v32 = vpack.c.bf16 %v6977_v54, %v6976_v1 }
 0xa8e   : > { %v6802_v12 = vadd.f32 %v6801_v60, %v20251_v36  ;;  %v18231_v60 = vld [vmem:[%s21791_s9 + $0x10] sm:$0xff]   ;;  %16160 = vmatpush3.bf16.msra.mxu1 %v18230_v26 }
 0xa8f   : > { %16161 = vmatprep.subr.bf16.mxu1 %v18231_v60 }
 0xa90   : > { %v6803_v25 = vadd.f32 %v6802_v12, %v20254_v28  ;;  %v18232_v12 = vld [vmem:[%s21791_s9 + $0x18] sm:$0xff]  }
 0xa92   : > { %v6804_v49 = vadd.f32 %v6803_v25, %v20262_v21  ;;  %16162 = vmatpush3.bf16.msra.mxu1 %v18231_v60  ;;  %v18234_v25 = vld [vmem:[%s21791_s9 + $0x28] sm:$0xff]   ;;  %v7064_v60 = vmul.f32 %v20164_v34, %v20164_v34 }
 0xa93   : > { %16163 = vmatprep.subr.bf16.mxu1 %v18232_v12 }
 0xa94   : > { %v6805_v39 = vadd.f32 %v6804_v49, %v20265_v48  ;;  %v18235_v49 = vld [vmem:[%s21791_s9 + $0x30] sm:$0xff]  }
 0xa96   : > { %v6806_v46 = vadd.f32 %v6805_v39, %v20268_v61  ;;  %16164 = vmatpush3.bf16.msra.mxu1 %v18232_v12  ;;  %v7065_v12 = vmul.f32 %v20170_v30, %v20170_v30 }
 0xa98   : > { %v6807_v43 = vadd.f32 %v6806_v46, %v20276_v17  ;;  %v13829_v46 = vld [vmem:[%s21788_s6] ss:$0 sm:$0xff] }
 0xa9a   : > { %v6808_v8 = vrot.slane %v6807_v43, 4 }
 0xa9c   : > { %v6809_v38 = vadd.f32 %v6808_v8, %v6807_v43 }
 0xa9e   : > { %v6810_v29 = vrot.slane %v6809_v38, 2 }
 0xaa0   : > { %v6811_v23 = vadd.f32 %v6810_v29, %v6809_v38 }
 0xaa2   : > { %v6812_v59 = vrot.slane %v6811_v23, 1 }
 0xaa4   : > { %v6813_v41 = vadd.f32 %v6812_v59, %v6811_v23  ;;  %v18236_v23 = vld [vmem:[%s21791_s9 + $0x38] sm:$0xff]   ;;  %v13830_v59 = vld [vmem:[%s21790_s8] ss:$0 sm:$0xff] }
 0xaa6   : > { %v6814_v50 = vmul.f32 0.00390625, %v6813_v41 }
 0xaa8   : > { %v6855_v56 = vrot.slane %v6814_v50, %v20292_v13  ;;  %v7060_v50 = vmul.f32 %v20155_v2, %v20155_v2 }
 0xaaa   : > { %6964 = vmatmul.mubr.f32.vlgmr.msra.gmra.mrb[32].mxu0 %v6855_v56 }
 0xaab   : > { %16959 = vmatpush3.bf16.msra.mxu0 %v16958_v31  ;;  %16154 = vmatprep.mubr.msk.f32.mxu0 %vm18337_vm10, %v18325_v62  ;;  %v7061_v31 = vmul.f32 %v20167_v44, %v20167_v44  ;;  %v18282_v44 = vld [vmem:[%s21793_s11 + $0x168] sm:$0xff]  }
 0xaac   : > { %16960 = vmatprep.subr.bf16.mxu0 %v21871_v16 }
 0xaaf   : > { %16962 = vmatpush3.bf16.msra.mxu0 %v16961_v19  ;;  %v7062_v19 = vmul.f32 %v20158_v51, %v20158_v51  ;;  %v18262_v51 = vld [vmem:[%s21793_s11 + $0xc8] sm:$0xff]  }
 0xab0   : > { %16963 = vmatprep.subr.bf16.mxu0 %v21871_v16 }
 0xab3   : > { %16965 = vmatpush3.bf16.msra.mxu0 %v16964_v53 }
 0xab4   : > { %16966 = vmatprep.subr.bf16.mxu0 %v21871_v16  ;;  %v18233_v16 = vld [vmem:[%s21791_s9 + $0x20] sm:$0xff]  }
 0xab5   : > { %16165 = vmatprep.subr.bf16.mxu1 %v18233_v16 }
 0xab6   : > { %16166 = vmatpush3.bf16.msra.mxu1 %v18233_v16 }
 0xab7   : > { %16968 = vmatpush3.bf16.msra.mxu0 %v16967_v32  ;;  %16167 = vmatprep.subr.bf16.mxu1 %v18234_v25 }
 0xaba   : > { %16168 = vmatpush3.bf16.msra.mxu1 %v18234_v25 }
 0xabb   : > { %16169 = vmatprep.subr.bf16.mxu1 %v18235_v49 }
 0xabe   : > { %16170 = vmatpush3.bf16.msra.mxu1 %v18235_v49  ;;  %v7066_v49 = vmul.f32 %v20173_v14, %v20173_v14 }
 0xabf   : > { %16171 = vmatprep.subr.bf16.mxu1 %v18236_v23 }
 0xac2   : > { %16172 = vmatpush3.bf16.msra.mxu1 %v18236_v23  ;;  %v7069_v23 = vmul.f32 %v20182_v57, %v20182_v57 }
 0xb7d   : > { %v14830_v39 = vpop.f32.mrb[32].mxu0 }
 0xb7e   : > { %v14831_v43 = vpop.f32.mrb[33].mxu0 }
 0xb7f   : > { %v14832_v8 = vadd.f32 %v14831_v43, %v14830_v39  ;;  %v7067_v39 = vmul.f32 %v20176_v22, %v20176_v22 }
 0xb81   : > { %v6966_v38 = vadd.f32 %v14832_v8, %v13829_v46 }
 0xb83   : > { %v6969_v29 = vmax.f32 %v6966_v38, 0.0 }
 0xb85   : > { %16155 = vmatmul.mubr.msk.f32.vlgmr.msra.gmra.mrb[34].mxu0 %vm495_vm0, %v6969_v29  ;;  %v7068_v29 = vmul.f32 %v20179_v35, %v20179_v35 }
 0xc58   : > { %v7054_v41 = vpop.f32.mrb[34].mxu0 }
 0xc59   : > { %v7055_v37 = vadd.f32 %v13830_v59, %v7054_v41  ;;  %v16156_v9 = vpop.f32.mrb[35].mxu0 }
 0xc5a   : > { %v7071_v9 = vmul.f32 %v20188_v47, %v20188_v47 }
 0xc5b   : > { %v20376_v56 = vrot.slane %v7055_v37, %v20292_v13  ;;  %v7070_v37 = vmul.f32 %v20185_v40, %v20185_v40 }
 0xc5d   : > { %v7095_v63 = vmul.f32 %v20376_v56, %v7059_v27  ;;  %v7094_v1 = vmul.f32 %v20376_v56, %v7058_v24  ;;  %v7096_v53 = vmul.f32 %v20376_v56, %v7060_v50  ;;  %v7097_v13 = vmul.f32 %v20376_v56, %v7061_v31 }
 0xc5e   : > { %v7098_v54 = vmul.f32 %v20376_v56, %v7062_v19  ;;  %v7099_v62 = vmul.f32 %v20376_v56, %v7063_v55  ;;  %v7100_v16 = vmul.f32 %v20376_v56, %v7064_v60  ;;  %v7101_v25 = vmul.f32 %v20376_v56, %v7065_v12 }
 0xc5f   : > { %13085 = vrot.lane.b32.xlu1 %v7095_v63, %s18336_s14  ;;  %13083 = vrot.lane.b32.xlu0 %v7094_v1, %s18336_s14  ;;  %v7126_v5 = vpack.c.bf16 %v7095_v63, %v7094_v1  ;;  %v7127_v26 = vpack.c.bf16 %v7097_v13, %v7096_v53  ;;  %v7102_v46 = vmul.f32 %v20376_v56, %v7066_v49 }
 0xc60   : > { %v7128_v32 = vpack.c.bf16 %v7099_v62, %v7098_v54  ;;  %v7103_v43 = vmul.f32 %v20376_v56, %v7067_v39  ;;  %v7129_v8 = vpack.c.bf16 %v7101_v25, %v7100_v16  ;;  %v7104_v59 = vmul.f32 %v20376_v56, %v7068_v29 }
 0xc61   : > { %16173 = vmatprep.mubr.bf16.mxu1 %v7126_v5  ;;  %v7105_v41 = vmul.f32 %v20376_v56, %v7069_v23  ;;  %v7106_v50 = vmul.f32 %v20376_v56, %v7070_v37  ;;  %v7107_v31 = vmul.f32 %v20376_v56, %v7071_v9  ;;  %v7072_v19 = vmul.f32 %v20191_v15, %v20191_v15 }
 0xc62   : > { %16174 = vmatmul.mubr.bf16.vlgmr.msra.gmra.mrb[32].mxu1 %v7127_v26  ;;  %v7130_v38 = vpack.c.bf16 %v7103_v43, %v7102_v46  ;;  %v7073_v55 = vmul.f32 %v20194_v7, %v20194_v7  ;;  %v7077_v60 = vmul.f32 %v20220_v52, %v20220_v52  ;;  %v7079_v49 = vmul.f32 %v20226_v3, %v20226_v3 }
 0xc63   : > { %13087 = vrot.lane.b32.xlu1 %v7096_v53, %s18336_s14  ;;  %13089 = vrot.lane.b32.xlu0 %v7097_v13, %s18336_s14  ;;  %v7131_v27 = vpack.c.bf16 %v7105_v41, %v7104_v59  ;;  %v7132_v24 = vpack.c.bf16 %v7107_v31, %v7106_v50  ;;  %v7108_v63 = vmul.f32 %v20376_v56, %v7072_v19 }
 0xc64   : > { %16177 = vmatprep.mubr.bf16.mxu1 %v7128_v32  ;;  %v7109_v1 = vmul.f32 %v20376_v56, %v7073_v55  ;;  %v7074_v53 = vmul.f32 %v20205_v42, %v20205_v42  ;;  %v7075_v13 = vmul.f32 %v20208_v33, %v20208_v33  ;;  %v7076_v32 = vmul.f32 %v20211_v6, %v20211_v6 }
 0xc65   : > { %v7081_v29 = vmul.f32 %v20237_v0, %v20237_v0  ;;  %v7083_v37 = vmul.f32 %v20248_v10, %v20248_v10  ;;  %v7085_v19 = vmul.f32 %v20254_v28, %v20254_v28 }
 0xc66   : > { %v7133_v5 = vpack.c.bf16 %v7109_v1, %v7108_v63  ;;  %v7112_v12 = vmul.f32 %v20376_v56, %v7076_v32  ;;  %v7088_v32 = vmul.f32 %v20268_v61, %v20268_v61 }
 0xc67   : > { %13091 = vrot.lane.b32.xlu1 %v7098_v54, %s18336_s14  ;;  %13093 = vrot.lane.b32.xlu0 %v7099_v62, %s18336_s14  ;;  %v7110_v54 = vmul.f32 %v20376_v56, %v7074_v53  ;;  %v7111_v62 = vmul.f32 %v20376_v56, %v7075_v13  ;;  %v7087_v53 = vmul.f32 %v20265_v48, %v20265_v48  ;;  %v18237_v13 = vld [vmem:[%s21793_s11 + $0x20] sm:$0xff]  }
 0xc68   : > { %16205 = vmatprep.subr.bf16.mxu0 %v18237_v13  ;;  %16969 = vmatprep.subr.bf16.mxu1 %v18237_v13 }
 0xc69   : > { %v7134_v26 = vpack.c.bf16 %v7111_v62, %v7110_v54  ;;  %16206 = vmatpush3.bf16.msra.mxu0 %v18237_v13  ;;  %16973 = vmatpush3.bf16.msra.mxu1 %v18237_v13 }
 0xc6a   : > { %16178 = vmatmul.mubr.bf16.gmra.mrb[36].mxu1 %v7129_v8 }
 0xc6b   : > { %13095 = vrot.lane.b32.xlu1 %v7100_v16, %s18336_s14  ;;  %13097 = vrot.lane.b32.xlu0 %v7101_v25, %s18336_s14  ;;  %v7113_v16 = vmul.f32 %v20376_v56, %v7077_v60  ;;  %v7078_v25 = vmul.f32 %v20223_v18, %v20223_v18  ;;  %v7089_v60 = vmul.f32 %v20276_v17, %v20276_v17  ;;  %v18250_v18 = vld [vmem:[%s21793_s11 + $0x68] sm:$0xff]  }
 0xc6c   : > { %16181 = vmatprep.mubr.bf16.mxu1 %v7130_v38  ;;  %v7080_v38 = vmul.f32 %v20234_v11, %v20234_v11 }
 0xc6d   : > { %v7114_v39 = vmul.f32 %v20376_v56, %v7078_v25 }
 0xc6e   : > { %v7116_v23 = vmul.f32 %v20376_v56, %v7080_v38  ;;  %v18241_v38 = vld [vmem:[%s21793_s11] sm:$0xff]  }
 0xc6f   : > { %13099 = vrot.lane.b32.xlu1 %v7102_v46, %s18336_s14  ;;  %13101 = vrot.lane.b32.xlu0 %v7103_v43, %s18336_s14  ;;  %v7115_v46 = vmul.f32 %v20376_v56, %v7079_v49  ;;  %v7135_v43 = vpack.c.bf16 %v7113_v16, %v7112_v12  ;;  %v18238_v49 = vld [vmem:[%s21793_s11 + $0x28] sm:$0xff]  }
 0xc70   : > { %16207 = vmatprep.subr.bf16.mxu0 %v18238_v49  ;;  %16970 = vmatprep.subr.bf16.mxu1 %v18238_v49 }
 0xc71   : > { %v7136_v8 = vpack.c.bf16 %v7115_v46, %v7114_v39  ;;  %16208 = vmatpush3.bf16.msra.mxu0 %v18238_v49  ;;  %16974 = vmatpush3.bf16.msra.mxu1 %v18238_v49 }
 0xc72   : > { %16182 = vmatmul.mubr.bf16.gmra.mrb[40].mxu1 %v7131_v27 }
 0xc73   : > { %13103 = vrot.lane.b32.xlu1 %v7104_v59, %s18336_s14  ;;  %13105 = vrot.lane.b32.xlu0 %v7105_v41, %s18336_s14  ;;  %v7117_v59 = vmul.f32 %v20376_v56, %v7081_v29  ;;  %v7082_v41 = vmul.f32 %v20240_v45, %v20240_v45  ;;  %v20521_v29 = vld [vmem:[%s21792_s10] ss:$0 sm:$0xff] }
 0xc74   : > { %16185 = vmatprep.mubr.bf16.mxu1 %v7132_v24  ;;  %v7084_v24 = vmul.f32 %v20251_v36, %v20251_v36 }
 0xc75   : > { %v7118_v9 = vmul.f32 %v20376_v56, %v7082_v41 }
 0xc76   : > { %v7120_v55 = vmul.f32 %v20376_v56, %v7084_v24 }
 0xc77   : > { %13107 = vrot.lane.b32.xlu1 %v7106_v50, %s18336_s14  ;;  %13109 = vrot.lane.b32.xlu0 %v7107_v31, %s18336_s14  ;;  %v7119_v50 = vmul.f32 %v20376_v56, %v7083_v37  ;;  %v7137_v31 = vpack.c.bf16 %v7117_v59, %v7116_v23 }
 0xc79   : > { %v7138_v27 = vpack.c.bf16 %v7119_v50, %v7118_v9 }
 0xc7a   : > { %16186 = vmatmul.mubr.bf16.gmra.mrb[44].mxu1 %v7133_v5 }
 0xc7b   : > { %13111 = vrot.lane.b32.xlu1 %v7108_v63, %s18336_s14  ;;  %13113 = vrot.lane.b32.xlu0 %v7109_v1, %s18336_s14  ;;  %v7121_v63 = vmul.f32 %v20376_v56, %v7085_v19  ;;  %v7086_v1 = vmul.f32 %v20262_v21, %v20262_v21 }
 0xc7c   : > { %16189 = vmatprep.mubr.bf16.mxu1 %v7134_v26 }
 0xc7d   : > { %v7139_v5 = vpack.c.bf16 %v7121_v63, %v7120_v55 }
 0xc7f   : > { %13115 = vrot.lane.b32.xlu1 %v7110_v54, %s18336_s14  ;;  %13117 = vrot.lane.b32.xlu0 %v7111_v62, %s18336_s14  ;;  %v7122_v54 = vmul.f32 %v20376_v56, %v7086_v1  ;;  %v7123_v62 = vmul.f32 %v20376_v56, %v7087_v53 }
 0xc81   : > { %v7140_v26 = vpack.c.bf16 %v7123_v62, %v7122_v54 }
 0xc82   : > { %16190 = vmatmul.mubr.bf16.gmra.mrb[48].mxu1 %v7135_v43  ;;  %v7464_v43 = vld [vmem:[#allocation3 + $0x30] sm:$0xff] }
 0xc83   : > { %13119 = vrot.lane.b32.xlu1 %v7112_v12, %s18336_s14  ;;  %13121 = vrot.lane.b32.xlu0 %v7113_v16, %s18336_s14  ;;  %v7124_v12 = vmul.f32 %v20376_v56, %v7088_v32  ;;  %v7125_v16 = vmul.f32 %v20376_v56, %v7089_v60  ;;  %v18240_v56 = vld [vmem:[%s21793_s11 + $0x38] sm:$0xff]  }
 0xc84   : > { %16193 = vmatprep.mubr.bf16.mxu1 %v7136_v8 }
 0xc85   : > { %v7141_v25 = vpack.c.bf16 %v7125_v16, %v7124_v12 }
 0xc87   : > { %13123 = vrot.lane.b32.xlu1 %v7114_v39, %s18336_s14  ;;  %13125 = vrot.lane.b32.xlu0 %v7115_v46, %s18336_s14  ;;  %v18239_v39 = vld [vmem:[%s21793_s11 + $0x30] sm:$0xff]   ;;  %v7463_v46 = vld [vmem:[#allocation3 + $0x28] sm:$0xff] }
 0xc88   : > { %16209 = vmatprep.subr.bf16.mxu0 %v18239_v39  ;;  %16971 = vmatprep.subr.bf16.mxu1 %v18239_v39  ;;  %v7495_v8 = vpack.c.bf16 %v7464_v43, %v7463_v46  ;;  %v18243_v43 = vld [vmem:[%s21793_s11 + $0x10] sm:$0xff]  }
 0xc89   : > { %16210 = vmatpush3.bf16.msra.mxu0 %v18239_v39  ;;  %16975 = vmatpush3.bf16.msra.mxu1 %v18239_v39 }
 0xc8a   : > { %16194 = vmatmul.mubr.bf16.gmra.mrb[52].mxu1 %v7137_v31  ;;  %16211 = vmatprep.subr.bf16.mxu0 %v18240_v56 }
 0xc8b   : > { %13127 = vrot.lane.b32.xlu1 %v7116_v23, %s18336_s14  ;;  %13129 = vrot.lane.b32.xlu0 %v7117_v59, %s18336_s14 }
 0xc8c   : > { %16197 = vmatprep.mubr.bf16.mxu1 %v7138_v27  ;;  %16972 = vmatprep.subr.bf16.mxu1 %v18240_v56 }
 0xc8d   : > { %16212 = vmatpush3.bf16.msra.mxu0 %v18240_v56  ;;  %16213 = vmatprep.mubr.msk.bf16.mxu0 %vm495_vm0, %v7495_v8 }
 0xc8e   : > { %16245 = vmatprep.subr.bf16.mxu0 %v18241_v38  ;;  %16976 = vmatpush3.bf16.msra.mxu1 %v18240_v56 }
 0xc8f   : > { %13131 = vrot.lane.b32.xlu1 %v7118_v9, %s18336_s14  ;;  %13133 = vrot.lane.b32.xlu0 %v7119_v50, %s18336_s14 }
 0xc92   : > { %16198 = vmatmul.mubr.bf16.gmra.mrb[56].mxu1 %v7139_v5 }
 0xc93   : > { %13135 = vrot.lane.b32.xlu1 %v7120_v55, %s18336_s14  ;;  %13137 = vrot.lane.b32.xlu0 %v7121_v63, %s18336_s14 }
 0xc94   : > { %16201 = vmatprep.mubr.bf16.mxu1 %v7140_v26 }
 0xc97   : > { %13139 = vrot.lane.b32.xlu1 %v7122_v54, %s18336_s14  ;;  %13141 = vrot.lane.b32.xlu0 %v7123_v62, %s18336_s14 }
 0xc9a   : > { %16202 = vmatmul.mubr.bf16.gmra.mrb[60].mxu1 %v7141_v25 }
 0xc9b   : > { %13143 = vrot.lane.b32.xlu1 %v7124_v12, %s18336_s14  ;;  %13145 = vrot.lane.b32.xlu0 %v7125_v16, %s18336_s14  ;;  %v18242_v12 = vld [vmem:[%s21793_s11 + $0x8] sm:$0xff]  }
 0xd35   : > { %v16175_v23 = vpop.f32.mrb[32].mxu1 }
 0xd36   : > { %v7256_v59 = vadd.f32 %v16175_v23, %v20521_v29  ;;  %v7247_v41 = vpop.f32.mrb[33].mxu1 }
 0xd37   : > { %v7248_v37 = vadd.f32 %v20521_v29, %v7247_v41  ;;  %v16176_v9 = vpop.f32.mrb[34].mxu1 }
 0xd38   : > { %7376 = vst.msk [vmem:[#allocation3 + $0x68] sm:$0xff] %vm495_vm0, %v7256_v59  ;;  %v7259_v50 = vadd.f32 %v16176_v9, %v20521_v29  ;;  %v7250_v31 = vpop.f32.mrb[35].mxu1 }
 0xd39   : > { %7374 = vst.msk [vmem:[#allocation3 + $0x48] sm:$0xff] %vm495_vm0, %v7248_v37  ;;  %v7251_v27 = vadd.f32 %v20521_v29, %v7250_v31  ;;  %v18244_v31 = vld [vmem:[%s21793_s11 + $0x18] sm:$0xff]  }
 0xd3a   : > { %7377 = vst.msk [vmem:[#allocation3 + $0x70] sm:$0xff] %vm495_vm0, %v7259_v50 }
 0xd3b   : > { %7375 = vst.msk [vmem:[#allocation3 + $0x50] sm:$0xff] %vm495_vm0, %v7251_v27 }
 0xd3d   : > { %v16179_v24 = vpop.f32.mrb[36].mxu1 }
 0xd3e   : > { %v7272_v19 = vadd.f32 %v16179_v24, %v20521_v29  ;;  %v7263_v55 = vpop.f32.mrb[37].mxu1 }
 0xd3f   : > { %v7264_v63 = vadd.f32 %v20521_v29, %v7263_v55  ;;  %v16180_v1 = vpop.f32.mrb[38].mxu1  ;;  %v7467_v60 = vld [vmem:[#allocation3 + $0x68] sm:$0xff] }
 0xd40   : > { %7380 = vst.msk [vmem:[#allocation3 + $0xa8] sm:$0xff] %vm495_vm0, %v7272_v19  ;;  %v7275_v53 = vadd.f32 %v16180_v1, %v20521_v29  ;;  %v7266_v13 = vpop.f32.mrb[39].mxu1  ;;  %v7465_v5 = vld [vmem:[#allocation3 + $0x48] sm:$0xff] }
 0xd41   : > { %7378 = vst.msk [vmem:[#allocation3 + $0x88] sm:$0xff] %vm495_vm0, %v7264_v63  ;;  %v7267_v54 = vadd.f32 %v20521_v29, %v7266_v13  ;;  %v7468_v62 = vld [vmem:[#allocation3 + $0x70] sm:$0xff]  ;;  %v10567_v4 = vld [vmem:[#allocation3 + $0x48] sm:$0xff] }
 0xd42   : > { %7381 = vst.msk [vmem:[#allocation3 + $0xb0] sm:$0xff] %vm495_vm0, %v7275_v53  ;;  %v7466_v26 = vld [vmem:[#allocation3 + $0x50] sm:$0xff]  ;;  %v20544_v16 = vpack.c.bf16 %v7468_v62, %v7467_v60  ;;  %v20577_v53 = vld [vmem:[%s21793_s11 + $0x40] sm:$0xff]  }
 0xd43   : > { %7379 = vst.msk [vmem:[#allocation3 + $0x90] sm:$0xff] %vm495_vm0, %v7267_v54  ;;  %v20539_v32 = vpack.c.bf16 %v7466_v26, %v7465_v5 }
 0xd45   : > { %v16183_v25 = vpop.f32.mrb[40].mxu1  ;;  %16214 = vmatmul.mubr.msk.bf16.vlgmr.msra.gmra.mrb[36].mxu0 %vm495_vm0, %v20539_v32 }
 0xd46   : > { %v7288_v49 = vadd.f32 %v16183_v25, %v20521_v29  ;;  %16246 = vmatpush3.bf16.msra.mxu0 %v18241_v38  ;;  %v7279_v39 = vpop.f32.mrb[41].mxu1  ;;  %16217 = vmatprep.mubr.msk.bf16.mxu0 %vm495_vm0, %v20544_v16 }
 0xd47   : > { %v7280_v56 = vadd.f32 %v20521_v29, %v7279_v39  ;;  %v16184_v46 = vpop.f32.mrb[42].mxu1  ;;  %16247 = vmatprep.subr.bf16.mxu0 %v18242_v12  ;;  %v7471_v50 = vld [vmem:[#allocation3 + $0xa8] sm:$0xff] }
 0xd48   : > { %7384 = vst.msk [vmem:[#allocation3 + $0xe8] sm:$0xff] %vm495_vm0, %v7288_v49  ;;  %v7291_v8 = vadd.f32 %v16184_v46, %v20521_v29  ;;  %v7282_v23 = vpop.f32.mrb[43].mxu1  ;;  %v7469_v41 = vld [vmem:[#allocation3 + $0x88] sm:$0xff] }
 0xd49   : > { %7382 = vst.msk [vmem:[#allocation3 + $0xc8] sm:$0xff] %vm495_vm0, %v7280_v56  ;;  %v7283_v38 = vadd.f32 %v20521_v29, %v7282_v23  ;;  %v7472_v59 = vld [vmem:[#allocation3 + $0xb0] sm:$0xff] }
 0xd4a   : > { %7385 = vst.msk [vmem:[#allocation3 + $0xf0] sm:$0xff] %vm495_vm0, %v7291_v8  ;;  %v7470_v37 = vld [vmem:[#allocation3 + $0x90] sm:$0xff]  ;;  %16248 = vmatpush3.bf16.msra.mxu0 %v18242_v12  ;;  %v20566_v27 = vpack.c.bf16 %v7472_v59, %v7471_v50 }
 0xd4b   : > { %7383 = vst.msk [vmem:[#allocation3 + $0xd0] sm:$0xff] %vm495_vm0, %v7283_v38  ;;  %v20561_v9 = vpack.c.bf16 %v7470_v37, %v7469_v41  ;;  %16249 = vmatprep.subr.bf16.mxu0 %v18243_v43 }
 0xd4d   : > { %v16187_v24 = vpop.f32.mrb[44].mxu1  ;;  %16218 = vmatmul.mubr.msk.bf16.gmra.mrb[40].mxu0 %vm495_vm0, %v20561_v9 }
 0xd4e   : > { %v7304_v19 = vadd.f32 %v16187_v24, %v20521_v29  ;;  %v7295_v55 = vpop.f32.mrb[45].mxu1  ;;  %16221 = vmatprep.mubr.msk.bf16.mxu0 %vm495_vm0, %v20566_v27  ;;  %16250 = vmatpush3.bf16.msra.mxu0 %v18243_v43 }
 0xd4f   : > { %v7296_v63 = vadd.f32 %v20521_v29, %v7295_v55  ;;  %v16188_v1 = vpop.f32.mrb[46].mxu1  ;;  %16251 = vmatprep.subr.bf16.mxu0 %v18244_v31  ;;  %v7475_v25 = vld [vmem:[#allocation3 + $0xe8] sm:$0xff] }
 0xd50   : > { %7388 = vst.msk [vmem:[#allocation3 + $0x128] sm:$0xff] %vm495_vm0, %v7304_v19  ;;  %v7307_v13 = vadd.f32 %v16188_v1, %v20521_v29  ;;  %v7298_v54 = vpop.f32.mrb[47].mxu1  ;;  %v7473_v26 = vld [vmem:[#allocation3 + $0xc8] sm:$0xff] }
 0xd51   : > { %7386 = vst.msk [vmem:[#allocation3 + $0x108] sm:$0xff] %vm495_vm0, %v7296_v63  ;;  %v7299_v62 = vadd.f32 %v20521_v29, %v7298_v54  ;;  %v7476_v5 = vld [vmem:[#allocation3 + $0xf0] sm:$0xff] }
 0xd52   : > { %7389 = vst.msk [vmem:[#allocation3 + $0x130] sm:$0xff] %vm495_vm0, %v7307_v13  ;;  %v7474_v60 = vld [vmem:[#allocation3 + $0xd0] sm:$0xff]  ;;  %16252 = vmatpush3.bf16.msra.mxu0 %v18244_v31  ;;  %v20588_v49 = vpack.c.bf16 %v7476_v5, %v7475_v25 }
 0xd53   : > { %7387 = vst.msk [vmem:[#allocation3 + $0x110] sm:$0xff] %vm495_vm0, %v7299_v62  ;;  %v20585_v12 = vpack.c.bf16 %v7474_v60, %v7473_v26  ;;  %16285 = vmatprep.subr.bf16.mxu0 %v20577_v53 }
 0xd55   : > { %v16191_v39 = vpop.f32.mrb[48].mxu1  ;;  %16222 = vmatmul.mubr.msk.bf16.gmra.mrb[44].mxu0 %vm495_vm0, %v20585_v12 }
 0xd56   : > { %v7320_v56 = vadd.f32 %v16191_v39, %v20521_v29  ;;  %v7311_v46 = vpop.f32.mrb[49].mxu1  ;;  %16225 = vmatprep.mubr.msk.bf16.mxu0 %vm495_vm0, %v20588_v49 }
 0xd57   : > { %v7312_v43 = vadd.f32 %v20521_v29, %v7311_v46  ;;  %v16192_v8 = vpop.f32.mrb[50].mxu1  ;;  %v7479_v24 = vld [vmem:[#allocation3 + $0x128] sm:$0xff] }
 0xd58   : > { %7392 = vst.msk [vmem:[#allocation3 + $0x168] sm:$0xff] %vm495_vm0, %v7320_v56  ;;  %v7323_v23 = vadd.f32 %v16192_v8, %v20521_v29  ;;  %v7314_v38 = vpop.f32.mrb[51].mxu1  ;;  %v7477_v37 = vld [vmem:[#allocation3 + $0x108] sm:$0xff] }
 0xd59   : > { %7390 = vst.msk [vmem:[#allocation3 + $0x148] sm:$0xff] %vm495_vm0, %v7312_v43  ;;  %v7315_v59 = vadd.f32 %v20521_v29, %v7314_v38  ;;  %v7480_v41 = vld [vmem:[#allocation3 + $0x130] sm:$0xff] }
 0xd5a   : > { %7393 = vst.msk [vmem:[#allocation3 + $0x170] sm:$0xff] %vm495_vm0, %v7323_v23  ;;  %v7478_v50 = vld [vmem:[#allocation3 + $0x110] sm:$0xff]  ;;  %v20604_v19 = vpack.c.bf16 %v7480_v41, %v7479_v24 }
 0xd5b   : > { %7391 = vst.msk [vmem:[#allocation3 + $0x150] sm:$0xff] %vm495_vm0, %v7315_v59  ;;  %v20602_v31 = vpack.c.bf16 %v7478_v50, %v7477_v37  ;;  %v7407_v37 = vld [vmem:[#allocation3 + $0x27] sm:$0xff]  ;;  %v7408_v50 = vld [vmem:[#allocation3 + $0x2f] sm:$0xff] }
 0xd5c   : > { %v8002_v33 = vld [vmem:[#allocation3 + $0x129] sm:$0xff]  ;;  %v8003_v42 = vld [vmem:[#allocation3 + $0x131] sm:$0xff] }
 0xd5d   : > { %v16195_v55 = vpop.f32.mrb[52].mxu1  ;;  %16226 = vmatmul.mubr.msk.bf16.gmra.mrb[48].mxu0 %vm495_vm0, %v20602_v31  ;;  %v20775_v6 = vpack.c.bf16 %v8003_v42, %v8002_v33 }
 0xd5e   : > { %v7336_v63 = vadd.f32 %v16195_v55, %v20521_v29  ;;  %v7327_v1 = vpop.f32.mrb[53].mxu1  ;;  %16229 = vmatprep.mubr.msk.bf16.mxu0 %vm495_vm0, %v20604_v19 }
 0xd5f   : > { %v7328_v13 = vadd.f32 %v20521_v29, %v7327_v1  ;;  %v16196_v54 = vpop.f32.mrb[54].mxu1  ;;  %v7483_v46 = vld [vmem:[#allocation3 + $0x168] sm:$0xff] }
 0xd60   : > { %7396 = vst.msk [vmem:[#allocation3 + $0x1a8] sm:$0xff] %vm495_vm0, %v7336_v63  ;;  %v7339_v62 = vadd.f32 %v16196_v54, %v20521_v29  ;;  %v7330_v5 = vpop.f32.mrb[55].mxu1  ;;  %v7481_v25 = vld [vmem:[#allocation3 + $0x148] sm:$0xff] }
 0xd61   : > { %7394 = vst.msk [vmem:[#allocation3 + $0x188] sm:$0xff] %vm495_vm0, %v7328_v13  ;;  %v7331_v26 = vadd.f32 %v20521_v29, %v7330_v5  ;;  %v7484_v60 = vld [vmem:[#allocation3 + $0x170] sm:$0xff] }
 0xd62   : > { %7397 = vst.msk [vmem:[#allocation3 + $0x1b0] sm:$0xff] %vm495_vm0, %v7339_v62  ;;  %v7482_v39 = vld [vmem:[#allocation3 + $0x150] sm:$0xff]  ;;  %v20620_v43 = vpack.c.bf16 %v7484_v60, %v7483_v46 }
 0xd63   : > { %7395 = vst.msk [vmem:[#allocation3 + $0x190] sm:$0xff] %vm495_vm0, %v7331_v26  ;;  %v20618_v56 = vpack.c.bf16 %v7482_v39, %v7481_v25  ;;  %v7439_v26 = vpack.c.bf16 %v7408_v50, %v7407_v37  ;;  %v7409_v50 = vld [vmem:[#allocation3 + $0x47] sm:$0xff] }
 0xd65   : > { %v16199_v8 = vpop.f32.mrb[56].mxu1  ;;  %16230 = vmatmul.mubr.msk.bf16.gmra.mrb[52].mxu0 %vm495_vm0, %v20618_v56 }
 0xd66   : > { %v7352_v23 = vadd.f32 %v16199_v8, %v20521_v29  ;;  %v7343_v38 = vpop.f32.mrb[57].mxu1  ;;  %16233 = vmatprep.mubr.msk.bf16.mxu0 %vm495_vm0, %v20620_v43 }
 0xd67   : > { %v7344_v59 = vadd.f32 %v20521_v29, %v7343_v38  ;;  %v16200_v41 = vpop.f32.mrb[58].mxu1  ;;  %v7487_v1 = vld [vmem:[#allocation3 + $0x1a8] sm:$0xff] }
 0xd68   : > { %7400 = vst.msk [vmem:[#allocation3 + $0x1e8] sm:$0xff] %vm495_vm0, %v7352_v23  ;;  %v7355_v24 = vadd.f32 %v16200_v41, %v20521_v29  ;;  %v7346_v55 = vpop.f32.mrb[59].mxu1  ;;  %v7485_v62 = vld [vmem:[#allocation3 + $0x188] sm:$0xff] }
 0xd69   : > { %7398 = vst.msk [vmem:[#allocation3 + $0x1c8] sm:$0xff] %vm495_vm0, %v7344_v59  ;;  %v7347_v63 = vadd.f32 %v20521_v29, %v7346_v55  ;;  %v7488_v13 = vld [vmem:[#allocation3 + $0x1b0] sm:$0xff]  ;;  %v7431_v48 = vld [vmem:[#allocation3 + $0x1a7] sm:$0xff] }
 0xd6a   : > { %7401 = vst.msk [vmem:[#allocation3 + $0x1f0] sm:$0xff] %vm495_vm0, %v7355_v24  ;;  %v20633_v54 = vpack.c.bf16 %v7488_v13, %v7487_v1  ;;  %v7486_v5 = vld [vmem:[#allocation3 + $0x190] sm:$0xff] }
 0xd6b   : > { %7399 = vst.msk [vmem:[#allocation3 + $0x1d0] sm:$0xff] %vm495_vm0, %v7347_v63  ;;  %v20636_v60 = vpack.c.bf16 %v7486_v5, %v7485_v62  ;;  %v7410_v41 = vld [vmem:[#allocation3 + $0x4f] sm:$0xff] }
 0xd6c   : > { %16237 = vmatprep.mubr.msk.bf16.mxu1 %vm495_vm0, %v20633_v54  ;;  %v7412_v1 = vld [vmem:[#allocation3 + $0x6f] sm:$0xff]  ;;  %v20653_v62 = vpack.c.bf16 %v7410_v41, %v7409_v50  ;;  %v7413_v41 = vld [vmem:[#allocation3 + $0x87] sm:$0xff] }
 0xd6d   : > { %v16203_v25 = vpop.f32.mrb[60].mxu1  ;;  %16234 = vmatmul.mubr.msk.bf16.gmra.mrb[56].mxu0 %vm495_vm0, %v20636_v60  ;;  %v7415_v50 = vld [vmem:[#allocation3 + $0xa7] sm:$0xff]  ;;  %v8009_v33 = vld [vmem:[#allocation3 + $0x191] sm:$0xff] }
 0xd6e   : > { %v7368_v39 = vadd.f32 %v16203_v25, %v20521_v29  ;;  %v7359_v46 = vpop.f32.mrb[61].mxu1  ;;  %16253 = vmatprep.mubr.msk.bf16.mxu0 %vm495_vm0, %v7439_v26  ;;  %v18246_v26 = vld [vmem:[%s21793_s11 + $0x48] sm:$0xff]  }
 0xd6f   : > { %v7360_v8 = vadd.f32 %v20521_v29, %v7359_v46  ;;  %v16204_v23 = vpop.f32.mrb[62].mxu1  ;;  %v7491_v5 = vld [vmem:[#allocation3 + $0x1e8] sm:$0xff]  ;;  %v18247_v46 = vld [vmem:[%s21793_s11 + $0x50] sm:$0xff]  }
 0xd70   : > { %7404 = vst.msk [vmem:[#allocation3 + $0x228] sm:$0xff] %vm495_vm0, %v7368_v39  ;;  %v7371_v38 = vadd.f32 %v16204_v23, %v20521_v29  ;;  %v7362_v59 = vpop.f32.mrb[63].mxu1  ;;  %v7489_v55 = vld [vmem:[#allocation3 + $0x1c8] sm:$0xff] }
 0xd71   : > { %7402 = vst.msk [vmem:[#allocation3 + $0x208] sm:$0xff] %vm495_vm0, %v7360_v8  ;;  %v7363_v37 = vadd.f32 %v20521_v29, %v7362_v59  ;;  %v7492_v24 = vld [vmem:[#allocation3 + $0x1f0] sm:$0xff]  ;;  %v7411_v29 = vld [vmem:[#allocation3 + $0x67] sm:$0xff] }
 0xd72   : > { %7405 = vst.msk [vmem:[#allocation3 + $0x230] sm:$0xff] %vm495_vm0, %v7371_v38  ;;  %v7490_v63 = vld [vmem:[#allocation3 + $0x1d0] sm:$0xff]  ;;  %v20658_v25 = vpack.c.bf16 %v7492_v24, %v7491_v5  ;;  %v20664_v39 = vpack.c.bf16 %v7412_v1, %v7411_v29  ;;  %v18248_v24 = vld [vmem:[%s21793_s11 + $0x58] sm:$0xff]   ;;  %v7435_v10 = vld [vmem:[#allocation3 + $0x1e7] sm:$0xff] }
 0xd73   : > { %7403 = vst.msk [vmem:[#allocation3 + $0x210] sm:$0xff] %vm495_vm0, %v7363_v37  ;;  %v20651_v13 = vpack.c.bf16 %v7490_v63, %v7489_v55  ;;  %v7414_v8 = vld [vmem:[#allocation3 + $0x8f] sm:$0xff]  ;;  %v18249_v63 = vld [vmem:[%s21793_s11 + $0x60] sm:$0xff]  }
 0xd74   : > { %v7416_v23 = vld [vmem:[#allocation3 + $0xaf] sm:$0xff] }
 0xd75   : > { %16238 = vmatmul.mubr.msk.bf16.vlgmr.msra.gmra.mrb[64].mxu1 %vm495_vm0, %v20651_v13  ;;  %16254 = vmatmul.mubr.msk.bf16.vlgmr.msra.gmra.mrb[36].mxu0 %vm495_vm0, %v20653_v62  ;;  %v20681_v55 = vpack.c.bf16 %v7416_v23, %v7415_v50  ;;  %v7418_v1 = vld [vmem:[#allocation3 + $0xcf] sm:$0xff]  ;;  %v7423_v50 = vld [vmem:[#allocation3 + $0x127] sm:$0xff] }
 0xd76   : > { %16286 = vmatpush3.bf16.msra.mxu0 %v20577_v53  ;;  %16241 = vmatprep.mubr.msk.bf16.mxu1 %vm495_vm0, %v20658_v25  ;;  %v20676_v53 = vpack.c.bf16 %v7414_v8, %v7413_v41  ;;  %v7420_v5 = vld [vmem:[#allocation3 + $0xef] sm:$0xff]  ;;  %v7419_v8 = vld [vmem:[#allocation3 + $0xe7] sm:$0xff] }
 0xd77   : > { %16257 = vmatprep.mubr.msk.bf16.mxu0 %vm495_vm0, %v20664_v39  ;;  %16287 = vmatprep.subr.bf16.mxu0 %v18246_v26  ;;  %v20694_v23 = vpack.c.bf16 %v7420_v5, %v7419_v8  ;;  %v7425_v5 = vld [vmem:[#allocation3 + $0x147] sm:$0xff] }
 0xd78   : > { %v7493_v38 = vld [vmem:[#allocation3 + $0x208] sm:$0xff] }
 0xd79   : > { %v7427_v8 = vld [vmem:[#allocation3 + $0x167] sm:$0xff]  ;;  %v8661_v57 = vld [vmem:[#allocation3 + $0x230] sm:$0xff] }
 0xd7a   : > { %v7494_v59 = vld [vmem:[#allocation3 + $0x210] sm:$0xff]  ;;  %16288 = vmatpush3.bf16.msra.mxu0 %v18246_v26  ;;  %v7417_v26 = vld [vmem:[#allocation3 + $0xc7] sm:$0xff] }
 0xd7b   : > { %v20674_v37 = vpack.c.bf16 %v7494_v59, %v7493_v38  ;;  %16289 = vmatprep.subr.bf16.mxu0 %v18247_v46  ;;  %v20692_v29 = vpack.c.bf16 %v7418_v1, %v7417_v26  ;;  %v7424_v38 = vld [vmem:[#allocation3 + $0x12f] sm:$0xff]  ;;  %v7421_v59 = vld [vmem:[#allocation3 + $0x107] sm:$0xff] }
 0xd7c   : > { %v20702_v17 = vpack.c.bf16 %v7424_v38, %v7423_v50  ;;  %v7428_v1 = vld [vmem:[#allocation3 + $0x16f] sm:$0xff] }
 0xd7d   : > { %16242 = vmatmul.mubr.msk.bf16.gmra.mrb[68].mxu1 %vm495_vm0, %v20674_v37  ;;  %16258 = vmatmul.mubr.msk.bf16.gmra.mrb[40].mxu0 %vm495_vm0, %v20676_v53  ;;  %v20710_v61 = vpack.c.bf16 %v7428_v1, %v7427_v8  ;;  %v7432_v38 = vld [vmem:[#allocation3 + $0x1af] sm:$0xff] }
 0xd7e   : > { %16261 = vmatprep.mubr.msk.bf16.mxu0 %vm495_vm0, %v20681_v55  ;;  %16290 = vmatpush3.bf16.msra.mxu0 %v18247_v46  ;;  %v7422_v46 = vld [vmem:[#allocation3 + $0x10f] sm:$0xff]  ;;  %v20718_v21 = vpack.c.bf16 %v7432_v38, %v7431_v48 }
 0xd7f   : > { %16291 = vmatprep.subr.bf16.mxu0 %v18248_v24  ;;  %v20700_v41 = vpack.c.bf16 %v7422_v46, %v7421_v59  ;;  %v7430_v46 = vld [vmem:[#allocation3 + $0x18f] sm:$0xff]  ;;  %v7429_v59 = vld [vmem:[#allocation3 + $0x187] sm:$0xff] }
 0xd80   : > { %v20716_v50 = vpack.c.bf16 %v7430_v46, %v7429_v59  ;;  %v7436_v1 = vld [vmem:[#allocation3 + $0x1ef] sm:$0xff]  ;;  %v7437_v59 = vld [vmem:[#allocation3 + $0x207] sm:$0xff] }
 0xd81   : > { %v20726_v45 = vpack.c.bf16 %v7436_v1, %v7435_v10  ;;  %v7986_v48 = vld [vmem:[#allocation3 + $0x29] sm:$0xff]  ;;  %v7987_v46 = vld [vmem:[#allocation3 + $0x31] sm:$0xff] }
 0xd82   : > { %16292 = vmatpush3.bf16.msra.mxu0 %v18248_v24  ;;  %v7426_v24 = vld [vmem:[#allocation3 + $0x14f] sm:$0xff]  ;;  %v8018_v28 = vpack.c.bf16 %v7987_v46, %v7986_v48 }
 0xd83   : > { %16325 = vmatprep.subr.bf16.mxu0 %v18249_v63  ;;  %v20708_v26 = vpack.c.bf16 %v7426_v24, %v7425_v5  ;;  %v7434_v24 = vld [vmem:[#allocation3 + $0x1cf] sm:$0xff]  ;;  %v7433_v5 = vld [vmem:[#allocation3 + $0x1c7] sm:$0xff] }
 0xd84   : > { %v20724_v8 = vpack.c.bf16 %v7434_v24, %v7433_v5  ;;  %v7438_v38 = vld [vmem:[#allocation3 + $0x20f] sm:$0xff] }
 0xd85   : > { %16262 = vmatmul.mubr.msk.bf16.gmra.mrb[44].mxu0 %vm495_vm0, %v20692_v29  ;;  %v20732_v36 = vpack.c.bf16 %v7438_v38, %v7437_v59  ;;  %v7988_v10 = vld [vmem:[#allocation3 + $0x49] sm:$0xff]  ;;  %v7989_v24 = vld [vmem:[#allocation3 + $0x51] sm:$0xff] }
 0xd86   : > { %16265 = vmatprep.mubr.msk.bf16.mxu0 %vm495_vm0, %v20694_v23  ;;  %v7990_v1 = vld [vmem:[#allocation3 + $0x69] sm:$0xff]  ;;  %v7991_v5 = vld [vmem:[#allocation3 + $0x71] sm:$0xff]  ;;  %v20737_v3 = vpack.c.bf16 %v7989_v24, %v7988_v10 }
 0xd87   : > { %v20742_v0 = vpack.c.bf16 %v7991_v5, %v7990_v1  ;;  %v7992_v48 = vld [vmem:[#allocation3 + $0x89] sm:$0xff]  ;;  %v7993_v46 = vld [vmem:[#allocation3 + $0x91] sm:$0xff] }
 0xd88   : > { %v7994_v38 = vld [vmem:[#allocation3 + $0xa9] sm:$0xff]  ;;  %v7995_v59 = vld [vmem:[#allocation3 + $0xb1] sm:$0xff]  ;;  %v20751_v10 = vpack.c.bf16 %v7993_v46, %v7992_v48 }
 0xd89   : > { %v20756_v24 = vpack.c.bf16 %v7995_v59, %v7994_v38  ;;  %v7996_v1 = vld [vmem:[#allocation3 + $0xc9] sm:$0xff]  ;;  %v7997_v5 = vld [vmem:[#allocation3 + $0xd1] sm:$0xff] }
 0xd8a   : > { %v7998_v48 = vld [vmem:[#allocation3 + $0xe9] sm:$0xff]  ;;  %v7999_v46 = vld [vmem:[#allocation3 + $0xf1] sm:$0xff]  ;;  %v20765_v11 = vpack.c.bf16 %v7997_v5, %v7996_v1 }
 0xd8b   : > { %v20767_v38 = vpack.c.bf16 %v7999_v46, %v7998_v48  ;;  %v8001_v59 = vld [vmem:[#allocation3 + $0x111] sm:$0xff]  ;;  %v8006_v5 = vld [vmem:[#allocation3 + $0x169] sm:$0xff] }
 0xd8c   : > { %v8005_v1 = vld [vmem:[#allocation3 + $0x151] sm:$0xff]  ;;  %v8008_v42 = vld [vmem:[#allocation3 + $0x189] sm:$0xff] }
 0xd8d   : > { %16266 = vmatmul.mubr.msk.bf16.gmra.mrb[48].mxu0 %vm495_vm0, %v20700_v41  ;;  %v8007_v48 = vld [vmem:[#allocation3 + $0x171] sm:$0xff]  ;;  %v20789_v40 = vpack.c.bf16 %v8009_v33, %v8008_v42  ;;  %v8016_v42 = vld [vmem:[#allocation3 + $0x209] sm:$0xff] }
 0xd8e   : > { %16269 = vmatprep.mubr.msk.bf16.mxu0 %vm495_vm0, %v20702_v17  ;;  %v20783_v47 = vpack.c.bf16 %v8007_v48, %v8006_v5  ;;  %v8014_v5 = vld [vmem:[#allocation3 + $0x1e9] sm:$0xff]  ;;  %v8015_v48 = vld [vmem:[#allocation3 + $0x1f1] sm:$0xff] }
 0xd8f   : > { %v20799_v22 = vpack.c.bf16 %v8015_v48, %v8014_v5  ;;  %v8017_v33 = vld [vmem:[#allocation3 + $0x211] sm:$0xff]  ;;  %v8338_v5 = vld [vmem:[#allocation3 + $0x227] sm:$0xff] }
 0xd90   : > { %v8660_v35 = vld [vmem:[#allocation3 + $0x228] sm:$0xff] }
 0xd91   : > { %v20913_v58 = vpack.c.bf16 %v8661_v57, %v8660_v35  ;;  %v18263_v35 = vld [vmem:[%s21793_s11 + $0xd0] sm:$0xff]   ;;  %v18264_v57 = vld [vmem:[%s21793_s11 + $0xd8] sm:$0xff]   ;;  %v9621_v34 = vld [vmem:[#allocation3 + $0x1e8] sm:$0xff] }
 0xd95   : > { %16270 = vmatmul.mubr.msk.bf16.gmra.mrb[52].mxu0 %vm495_vm0, %v20708_v26 }
 0xd96   : > { %16273 = vmatprep.mubr.msk.bf16.mxu0 %vm495_vm0, %v20710_v61 }
 0xd9d   : > { %16274 = vmatmul.mubr.msk.bf16.gmra.mrb[56].mxu0 %vm495_vm0, %v20716_v50 }
 0xd9e   : > { %16277 = vmatprep.mubr.msk.bf16.mxu0 %vm495_vm0, %v20718_v21 }
 0xda5   : > { %16278 = vmatmul.mubr.msk.bf16.gmra.mrb[60].mxu0 %vm495_vm0, %v20724_v8 }
 0xda6   : > { %16281 = vmatprep.mubr.msk.bf16.mxu0 %vm495_vm0, %v20726_v45 }
 0xdad   : > { %16282 = vmatmul.mubr.msk.bf16.gmra.mrb[64].mxu0 %vm495_vm0, %v20732_v36 }
 0xdae   : > { %16293 = vmatprep.mubr.msk.bf16.mxu0 %vm495_vm0, %v8018_v28  ;;  %v18251_v28 = vld [vmem:[%s21793_s11 + $0x70] sm:$0xff]  }
 0xdb5   : > { %16294 = vmatmul.mubr.msk.bf16.vlgmr.msra.gmra.mrb[36].mxu0 %vm495_vm0, %v20737_v3 }
 0xdb6   : > { %16326 = vmatpush3.bf16.msra.mxu0 %v18249_v63  ;;  %16297 = vmatprep.mubr.msk.bf16.mxu0 %vm495_vm0, %v20742_v0  ;;  %v18252_v63 = vld [vmem:[%s21793_s11 + $0x78] sm:$0xff]  }
 0xdb7   : > { %16327 = vmatprep.subr.bf16.mxu0 %v18250_v18 }
 0xdba   : > { %16328 = vmatpush3.bf16.msra.mxu0 %v18250_v18  ;;  %v18253_v18 = vld [vmem:[%s21793_s11 + $0x80] sm:$0xff]  }
 0xdbb   : > { %16329 = vmatprep.subr.bf16.mxu0 %v18251_v28 }
 0xdbd   : > { %16298 = vmatmul.mubr.msk.bf16.gmra.mrb[40].mxu0 %vm495_vm0, %v20751_v10 }
 0xdbe   : > { %16301 = vmatprep.mubr.msk.bf16.mxu0 %vm495_vm0, %v20756_v24  ;;  %16330 = vmatpush3.bf16.msra.mxu0 %v18251_v28  ;;  %v8000_v28 = vld [vmem:[#allocation3 + $0x109] sm:$0xff] }
 0xdbf   : > { %16331 = vmatprep.subr.bf16.mxu0 %v18252_v63  ;;  %v20773_v52 = vpack.c.bf16 %v8001_v59, %v8000_v28  ;;  %v8010_v28 = vld [vmem:[#allocation3 + $0x1a9] sm:$0xff]  ;;  %v8011_v59 = vld [vmem:[#allocation3 + $0x1b1] sm:$0xff] }
 0xdc0   : > { %v20791_v7 = vpack.c.bf16 %v8011_v59, %v8010_v28  ;;  %v20805_v28 = vpack.c.bf16 %v8017_v33, %v8016_v42  ;;  %v18254_v59 = vld [vmem:[%s21793_s11 + $0x88] sm:$0xff]   ;;  %v18259_v33 = vld [vmem:[%s21793_s11 + $0xb0] sm:$0xff]  }
 0xdc1   : > { %v18258_v42 = vld [vmem:[%s21793_s11 + $0xa8] sm:$0xff]  }
 0xdc2   : > { %16332 = vmatpush3.bf16.msra.mxu0 %v18252_v63  ;;  %v8004_v63 = vld [vmem:[#allocation3 + $0x149] sm:$0xff] }
 0xdc3   : > { %16365 = vmatprep.subr.bf16.mxu0 %v18253_v18  ;;  %v20781_v46 = vpack.c.bf16 %v8005_v1, %v8004_v63  ;;  %v8012_v63 = vld [vmem:[#allocation3 + $0x1c9] sm:$0xff]  ;;  %v8013_v1 = vld [vmem:[#allocation3 + $0x1d1] sm:$0xff] }
 0xdc4   : > { %v20797_v15 = vpack.c.bf16 %v8013_v1, %v8012_v63  ;;  %v18255_v63 = vld [vmem:[%s21793_s11 + $0x90] sm:$0xff]  }
 0xdc5   : > { %16302 = vmatmul.mubr.msk.bf16.gmra.mrb[44].mxu0 %vm495_vm0, %v20765_v11  ;;  %v8339_v1 = vld [vmem:[#allocation3 + $0x22f] sm:$0xff] }
 0xdc6   : > { %16305 = vmatprep.mubr.msk.bf16.mxu0 %vm495_vm0, %v20767_v38  ;;  %v20851_v48 = vpack.c.bf16 %v8339_v1, %v8338_v5 }
 0xdcd   : > { %16306 = vmatmul.mubr.msk.bf16.gmra.mrb[48].mxu0 %vm495_vm0, %v20773_v52 }
 0xdce   : > { %16309 = vmatprep.mubr.msk.bf16.mxu0 %vm495_vm0, %v20775_v6 }
 0xdd5   : > { %16310 = vmatmul.mubr.msk.bf16.gmra.mrb[52].mxu0 %vm495_vm0, %v20781_v46 }
 0xdd6   : > { %16313 = vmatprep.mubr.msk.bf16.mxu0 %vm495_vm0, %v20783_v47 }
 0xddd   : > { %16314 = vmatmul.mubr.msk.bf16.gmra.mrb[56].mxu0 %vm495_vm0, %v20789_v40 }
 0xdde   : > { %16317 = vmatprep.mubr.msk.bf16.mxu0 %vm495_vm0, %v20791_v7 }
 0xde5   : > { %16318 = vmatmul.mubr.msk.bf16.gmra.mrb[60].mxu0 %vm495_vm0, %v20797_v15 }
 0xde6   : > { %16321 = vmatprep.mubr.msk.bf16.mxu0 %vm495_vm0, %v20799_v22 }
 0xded   : > { %16322 = vmatmul.mubr.msk.bf16.gmra.mrb[64].mxu0 %vm495_vm0, %v20805_v28 }
 0xdee   : > { %16333 = vmatprep.mubr.msk.bf16.mxu0 %vm495_vm0, %v20653_v62  ;;  %v18256_v62 = vld [vmem:[%s21793_s11 + $0x98] sm:$0xff]  }
 0xdf5   : > { %16334 = vmatmul.mubr.msk.bf16.vlgmr.msra.gmra.mrb[36].mxu0 %vm495_vm0, %v20664_v39 }
 0xdf6   : > { %16366 = vmatpush3.bf16.msra.mxu0 %v18253_v18  ;;  %16337 = vmatprep.mubr.msk.bf16.mxu0 %vm495_vm0, %v20676_v53  ;;  %v18257_v18 = vld [vmem:[%s21793_s11 + $0xa0] sm:$0xff]  }
 0xdf7   : > { %16367 = vmatprep.subr.bf16.mxu0 %v18254_v59 }
 0xdfa   : > { %16368 = vmatpush3.bf16.msra.mxu0 %v18254_v59  ;;  %v18260_v59 = vld [vmem:[%s21793_s11 + $0xb8] sm:$0xff]  }
 0xdfb   : > { %16369 = vmatprep.subr.bf16.mxu0 %v18255_v63 }
 0xdfd   : > { %16338 = vmatmul.mubr.msk.bf16.gmra.mrb[40].mxu0 %vm495_vm0, %v20681_v55 }
 0xdfe   : > { %16341 = vmatprep.mubr.msk.bf16.mxu0 %vm495_vm0, %v20692_v29  ;;  %16370 = vmatpush3.bf16.msra.mxu0 %v18255_v63  ;;  %v18261_v63 = vld [vmem:[%s21793_s11 + $0xc0] sm:$0xff]  }
 0xdff   : > { %16371 = vmatprep.subr.bf16.mxu0 %v18256_v62 }
 0xe02   : > { %16372 = vmatpush3.bf16.msra.mxu0 %v18256_v62 }
 0xe03   : > { %16405 = vmatprep.subr.bf16.mxu0 %v18257_v18 }
 0xe05   : > { %16342 = vmatmul.mubr.msk.bf16.gmra.mrb[44].mxu0 %vm495_vm0, %v20694_v23 }
 0xe06   : > { %16345 = vmatprep.mubr.msk.bf16.mxu0 %vm495_vm0, %v20700_v41 }
 0xe0d   : > { %16346 = vmatmul.mubr.msk.bf16.gmra.mrb[48].mxu0 %vm495_vm0, %v20702_v17 }
 0xe0e   : > { %16349 = vmatprep.mubr.msk.bf16.mxu0 %vm495_vm0, %v20708_v26 }
 0xe15   : > { %16350 = vmatmul.mubr.msk.bf16.gmra.mrb[52].mxu0 %vm495_vm0, %v20710_v61 }
 0xe16   : > { %16353 = vmatprep.mubr.msk.bf16.mxu0 %vm495_vm0, %v20716_v50 }
 0xe1d   : > { %16354 = vmatmul.mubr.msk.bf16.gmra.mrb[56].mxu0 %vm495_vm0, %v20718_v21 }
 0xe1e   : > { %16357 = vmatprep.mubr.msk.bf16.mxu0 %vm495_vm0, %v20724_v8 }
 0xe25   : > { %16358 = vmatmul.mubr.msk.bf16.gmra.mrb[60].mxu0 %vm495_vm0, %v20726_v45 }
 0xe26   : > { %16361 = vmatprep.mubr.msk.bf16.mxu0 %vm495_vm0, %v20732_v36 }
 0xe2d   : > { %16362 = vmatmul.mubr.msk.bf16.gmra.mrb[64].mxu0 %vm495_vm0, %v20851_v48 }
 0xe2e   : > { %16373 = vmatprep.mubr.msk.bf16.mxu0 %vm495_vm0, %v20539_v32 }
 0xe35   : > { %16374 = vmatmul.mubr.msk.bf16.vlgmr.msra.gmra.mrb[36].mxu0 %vm495_vm0, %v20544_v16 }
 0xe36   : > { %16406 = vmatpush3.bf16.msra.mxu0 %v18257_v18  ;;  %16377 = vmatprep.mubr.msk.bf16.mxu0 %vm495_vm0, %v20561_v9 }
 0xe37   : > { %16407 = vmatprep.subr.bf16.mxu0 %v18258_v42 }
 0xe3a   : > { %16408 = vmatpush3.bf16.msra.mxu0 %v18258_v42 }
 0xe3b   : > { %16409 = vmatprep.subr.bf16.mxu0 %v18259_v33 }
 0xe3d   : > { %16378 = vmatmul.mubr.msk.bf16.gmra.mrb[40].mxu0 %vm495_vm0, %v20566_v27 }
 0xe3e   : > { %16381 = vmatprep.mubr.msk.bf16.mxu0 %vm495_vm0, %v20585_v12  ;;  %16410 = vmatpush3.bf16.msra.mxu0 %v18259_v33 }
 0xe3f   : > { %16411 = vmatprep.subr.bf16.mxu0 %v18260_v59 }
 0xe42   : > { %16412 = vmatpush3.bf16.msra.mxu0 %v18260_v59 }
 0xe43   : > { %16445 = vmatprep.subr.bf16.mxu0 %v18261_v63 }
 0xe45   : > { %16382 = vmatmul.mubr.msk.bf16.gmra.mrb[44].mxu0 %vm495_vm0, %v20588_v49 }
 0xe46   : > { %16385 = vmatprep.mubr.msk.bf16.mxu0 %vm495_vm0, %v20602_v31 }
 0xe48   : > { %v20881_v62 = vpop.f32.mrb[64].mxu1 }
 0xe49   : > { %v20883_v18 = vpop.f32.mrb[65].mxu1 }
 0xe4a   : > { %v20885_v1 = vpop.f32.mrb[66].mxu1 }
 0xe4b   : > { %v20887_v5 = vpop.f32.mrb[67].mxu1 }
 0xe4d   : > { %16386 = vmatmul.mubr.msk.bf16.gmra.mrb[48].mxu0 %vm495_vm0, %v20604_v19 }
 0xe4e   : > { %16389 = vmatprep.mubr.msk.bf16.mxu0 %vm495_vm0, %v20618_v56 }
 0xe50   : > { %v20893_v42 = vpop.f32.mrb[68].mxu1 }
 0xe51   : > { %v20895_v33 = vpop.f32.mrb[69].mxu1 }
 0xe52   : > { %v20897_v59 = vpop.f32.mrb[70].mxu1 }
 0xe53   : > { %v20899_v14 = vpop.f32.mrb[71].mxu1 }
 0xe55   : > { %16390 = vmatmul.mubr.msk.bf16.gmra.mrb[52].mxu0 %vm495_vm0, %v20620_v43 }
 0xe56   : > { %16393 = vmatprep.mubr.msk.bf16.mxu0 %vm495_vm0, %v20636_v60 }
 0xe5d   : > { %16394 = vmatmul.mubr.msk.bf16.gmra.mrb[56].mxu0 %vm495_vm0, %v20633_v54 }
 0xe5e   : > { %16397 = vmatprep.mubr.msk.bf16.mxu0 %vm495_vm0, %v20651_v13 }
 0xe65   : > { %16398 = vmatmul.mubr.msk.bf16.gmra.mrb[60].mxu0 %vm495_vm0, %v20658_v25 }
 0xe66   : > { %16401 = vmatprep.mubr.msk.bf16.mxu0 %vm495_vm0, %v20674_v37 }
 0xe6d   : > { %16402 = vmatmul.mubr.msk.bf16.gmra.mrb[64].mxu0 %vm495_vm0, %v20913_v58 }
 0xe6e   : > { %16413 = vmatprep.mubr.msk.bf16.mxu0 %vm495_vm0, %v20737_v3  ;;  %v18265_v3 = vld [vmem:[%s21793_s11 + $0xe0] sm:$0xff]  }
 0xe75   : > { %16414 = vmatmul.mubr.msk.bf16.vlgmr.msra.gmra.mrb[36].mxu0 %vm495_vm0, %v20742_v0 }
 0xe76   : > { %16446 = vmatpush3.bf16.msra.mxu0 %v18261_v63  ;;  %16417 = vmatprep.mubr.msk.bf16.mxu0 %vm495_vm0, %v20751_v10  ;;  %v8983_v63 = vld [vmem:[#allocation3 + $0x231] sm:$0xff] }
 0xe77   : > { %16447 = vmatprep.subr.bf16.mxu0 %v18262_v51 }
 0xe7a   : > { %16448 = vmatpush3.bf16.msra.mxu0 %v18262_v51  ;;  %v8982_v51 = vld [vmem:[#allocation3 + $0x229] sm:$0xff] }
 0xe7b   : > { %16449 = vmatprep.subr.bf16.mxu0 %v18263_v35 }
 0xe7d   : > { %16418 = vmatmul.mubr.msk.bf16.gmra.mrb[40].mxu0 %vm495_vm0, %v20756_v24 }
 0xe7e   : > { %16421 = vmatprep.mubr.msk.bf16.mxu0 %vm495_vm0, %v20765_v11  ;;  %16450 = vmatpush3.bf16.msra.mxu0 %v18263_v35  ;;  %v20959_v35 = vpack.c.bf16 %v8983_v63, %v8982_v51  ;;  %v18267_v51 = vld [vmem:[%s21793_s11 + $0xf0] sm:$0xff]  }
 0xe7f   : > { %16451 = vmatprep.subr.bf16.mxu0 %v18264_v57  ;;  %v9604_v63 = vld [vmem:[#allocation3 + $0xd0] sm:$0xff] }
 0xe82   : > { %16452 = vmatpush3.bf16.msra.mxu0 %v18264_v57  ;;  %v18266_v57 = vld [vmem:[%s21793_s11 + $0xe8] sm:$0xff]  }
 0xe83   : > { %16485 = vmatprep.subr.bf16.mxu0 %v18265_v3 }
 0xe85   : > { %16422 = vmatmul.mubr.msk.bf16.gmra.mrb[44].mxu0 %vm495_vm0, %v20767_v38 }
 0xe86   : > { %16425 = vmatprep.mubr.msk.bf16.mxu0 %vm495_vm0, %v20773_v52 }
 0xe8d   : > { %16426 = vmatmul.mubr.msk.bf16.gmra.mrb[48].mxu0 %vm495_vm0, %v20775_v6 }
 0xe8e   : > { %16429 = vmatprep.mubr.msk.bf16.mxu0 %vm495_vm0, %v20781_v46 }
 0xe95   : > { %16430 = vmatmul.mubr.msk.bf16.gmra.mrb[52].mxu0 %vm495_vm0, %v20783_v47 }
 0xe96   : > { %16433 = vmatprep.mubr.msk.bf16.mxu0 %vm495_vm0, %v20789_v40 }
 0xe9d   : > { %16434 = vmatmul.mubr.msk.bf16.gmra.mrb[56].mxu0 %vm495_vm0, %v20791_v7 }
 0xe9e   : > { %16437 = vmatprep.mubr.msk.bf16.mxu0 %vm495_vm0, %v20797_v15 }
 0xea5   : > { %16438 = vmatmul.mubr.msk.bf16.gmra.mrb[60].mxu0 %vm495_vm0, %v20799_v22 }
 0xea6   : > { %16441 = vmatprep.mubr.msk.bf16.mxu0 %vm495_vm0, %v20805_v28 }
 0xead   : > { %16442 = vmatmul.mubr.msk.bf16.gmra.mrb[64].mxu0 %vm495_vm0, %v20959_v35 }
 0xeae   : > { %16453 = vmatprep.mubr.msk.bf16.mxu0 %vm495_vm0, %v20664_v39  ;;  %v18268_v39 = vld [vmem:[%s21793_s11 + $0xf8] sm:$0xff]  }
 0xeb5   : > { %16454 = vmatmul.mubr.msk.bf16.vlgmr.msra.gmra.mrb[36].mxu0 %vm495_vm0, %v20676_v53  ;;  %v18269_v53 = vld [vmem:[%s21793_s11 + $0x100] sm:$0xff]  }
 0xeb6   : > { %16486 = vmatpush3.bf16.msra.mxu0 %v18265_v3  ;;  %16457 = vmatprep.mubr.msk.bf16.mxu0 %vm495_vm0, %v20681_v55  ;;  %v18271_v3 = vld [vmem:[%s21793_s11 + $0x110] sm:$0xff]  }
 0xeb7   : > { %16487 = vmatprep.subr.bf16.mxu0 %v18266_v57 }
 0xeba   : > { %16488 = vmatpush3.bf16.msra.mxu0 %v18266_v57  ;;  %v9606_v57 = vld [vmem:[#allocation3 + $0xf0] sm:$0xff] }
 0xebb   : > { %16489 = vmatprep.subr.bf16.mxu0 %v18267_v51 }
 0xebd   : > { %16458 = vmatmul.mubr.msk.bf16.gmra.mrb[40].mxu0 %vm495_vm0, %v20692_v29  ;;  %v9598_v29 = vld [vmem:[#allocation3 + $0x70] sm:$0xff] }
 0xebe   : > { %16461 = vmatprep.mubr.msk.bf16.mxu0 %vm495_vm0, %v20694_v23  ;;  %16490 = vmatpush3.bf16.msra.mxu0 %v18267_v51  ;;  %v9597_v23 = vld [vmem:[#allocation3 + $0x68] sm:$0xff] }
 0xebf   : > { %16491 = vmatprep.subr.bf16.mxu0 %v18268_v39  ;;  %v9603_v51 = vld [vmem:[#allocation3 + $0xc8] sm:$0xff] }
 0xec2   : > { %16492 = vmatpush3.bf16.msra.mxu0 %v18268_v39  ;;  %v21024_v39 = vpack.c.bf16 %v9604_v63, %v9603_v51  ;;  %v9611_v63 = vld [vmem:[#allocation3 + $0x148] sm:$0xff] }
 0xec3   : > { %16525 = vmatprep.subr.bf16.mxu0 %v18269_v53  ;;  %v9613_v51 = vld [vmem:[#allocation3 + $0x168] sm:$0xff] }
 0xec5   : > { %16462 = vmatmul.mubr.msk.bf16.gmra.mrb[44].mxu0 %vm495_vm0, %v20700_v41  ;;  %v21005_v41 = vpack.c.bf16 %v9598_v29, %v9597_v23  ;;  %v9608_v29 = vld [vmem:[#allocation3 + $0x110] sm:$0xff] }
 0xec6   : > { %16465 = vmatprep.mubr.msk.bf16.mxu0 %vm495_vm0, %v20702_v17  ;;  %v9305_v17 = vld [vmem:[#allocation3 + $0x247] sm:$0xff]  ;;  %v9610_v23 = vld [vmem:[#allocation3 + $0x130] sm:$0xff] }
 0xecd   : > { %16466 = vmatmul.mubr.msk.bf16.gmra.mrb[48].mxu0 %vm495_vm0, %v20708_v26  ;;  %v9599_v26 = vld [vmem:[#allocation3 + $0x88] sm:$0xff] }
 0xece   : > { %16469 = vmatprep.mubr.msk.bf16.mxu0 %vm495_vm0, %v20710_v61  ;;  %v9306_v61 = vld [vmem:[#allocation3 + $0x24f] sm:$0xff] }
 0xecf   : > { %v9322_v55 = vpack.c.bf16 %v9306_v61, %v9305_v17  ;;  %v9605_v17 = vld [vmem:[#allocation3 + $0xe8] sm:$0xff] }
 0xed0   : > { %v21029_v61 = vpack.c.bf16 %v9606_v57, %v9605_v17 }
 0xed5   : > { %16470 = vmatmul.mubr.msk.bf16.gmra.mrb[52].mxu0 %vm495_vm0, %v20716_v50 }
 0xed6   : > { %16473 = vmatprep.mubr.msk.bf16.mxu0 %vm495_vm0, %v20718_v21  ;;  %v9600_v21 = vld [vmem:[#allocation3 + $0x90] sm:$0xff] }
 0xed7   : > { %v21010_v50 = vpack.c.bf16 %v9600_v21, %v9599_v26  ;;  %v9607_v21 = vld [vmem:[#allocation3 + $0x108] sm:$0xff] }
 0xed8   : > { %v9609_v26 = vld [vmem:[#allocation3 + $0x128] sm:$0xff] }
 0xedd   : > { %16474 = vmatmul.mubr.msk.bf16.gmra.mrb[56].mxu0 %vm495_vm0, %v20724_v8  ;;  %v18270_v8 = vld [vmem:[%s21793_s11 + $0x108] sm:$0xff]  }
 0xede   : > { %16477 = vmatprep.mubr.msk.bf16.mxu0 %vm495_vm0, %v20726_v45  ;;  %v9602_v45 = vld [vmem:[#allocation3 + $0xb0] sm:$0xff] }
 0xee5   : > { %16478 = vmatmul.mubr.msk.bf16.gmra.mrb[60].mxu0 %vm495_vm0, %v20732_v36  ;;  %v9601_v36 = vld [vmem:[#allocation3 + $0xa8] sm:$0xff] }
 0xee6   : > { %16481 = vmatprep.mubr.msk.bf16.mxu0 %vm495_vm0, %v20851_v48  ;;  %v21015_v48 = vpack.c.bf16 %v9602_v45, %v9601_v36  ;;  %v21038_v45 = vpack.c.bf16 %v9608_v29, %v9607_v21  ;;  %v21040_v36 = vpack.c.bf16 %v9610_v23, %v9609_v26  ;;  %v9618_v29 = vld [vmem:[#allocation3 + $0x1b0] sm:$0xff]  ;;  %v9615_v23 = vld [vmem:[#allocation3 + $0x188] sm:$0xff] }
 0xee7   : > { %v9617_v26 = vld [vmem:[#allocation3 + $0x1a8] sm:$0xff] }
 0xee8   : > { %v21056_v30 = vpack.c.bf16 %v9618_v29, %v9617_v26  ;;  %v9623_v29 = vld [vmem:[#allocation3 + $0x208] sm:$0xff] }
 0xee9   : > { %v9627_v26 = vld [vmem:[#allocation3 + $0x248] sm:$0xff] }
 0xeed   : > { %16482 = vmatmul.mubr.msk.bf16.gmra.mrb[64].mxu0 %vm495_vm0, %v9322_v55  ;;  %v18273_v55 = vld [vmem:[%s21793_s11 + $0x120] sm:$0xff]  }
 0xeee   : > { %16493 = vmatprep.mubr.msk.bf16.mxu0 %vm495_vm0, %v21005_v41 }
 0xef5   : > { %16494 = vmatmul.mubr.msk.bf16.vlgmr.msra.gmra.mrb[36].mxu0 %vm495_vm0, %v21010_v50 }
 0xef6   : > { %16526 = vmatpush3.bf16.msra.mxu0 %v18269_v53  ;;  %16497 = vmatprep.mubr.msk.bf16.mxu0 %vm495_vm0, %v21015_v48  ;;  %v18272_v53 = vld [vmem:[%s21793_s11 + $0x118] sm:$0xff]  }
 0xef7   : > { %16527 = vmatprep.subr.bf16.mxu0 %v18270_v8 }
 0xefa   : > { %16528 = vmatpush3.bf16.msra.mxu0 %v18270_v8  ;;  %v9612_v8 = vld [vmem:[#allocation3 + $0x150] sm:$0xff] }
 0xefb   : > { %16529 = vmatprep.subr.bf16.mxu0 %v18271_v3  ;;  %v21046_v57 = vpack.c.bf16 %v9612_v8, %v9611_v63  ;;  %v9620_v8 = vld [vmem:[#allocation3 + $0x1d0] sm:$0xff]  ;;  %v9619_v63 = vld [vmem:[#allocation3 + $0x1c8] sm:$0xff] }
 0xefd   : > { %16498 = vmatmul.mubr.msk.bf16.gmra.mrb[40].mxu0 %vm495_vm0, %v21024_v39 }
 0xefe   : > { %16501 = vmatprep.mubr.msk.bf16.mxu0 %vm495_vm0, %v21029_v61  ;;  %16530 = vmatpush3.bf16.msra.mxu0 %v18271_v3  ;;  %v9614_v3 = vld [vmem:[#allocation3 + $0x170] sm:$0xff] }
 0xeff   : > { %16531 = vmatprep.subr.bf16.mxu0 %v18272_v53  ;;  %v21048_v17 = vpack.c.bf16 %v9614_v3, %v9613_v51  ;;  %v9622_v3 = vld [vmem:[#allocation3 + $0x1f0] sm:$0xff]  ;;  %v21062_v51 = vpack.c.bf16 %v9620_v8, %v9619_v63 }
 0xf00   : > { %v21064_v20 = vpack.c.bf16 %v9622_v3, %v9621_v34  ;;  %v9628_v8 = vld [vmem:[#allocation3 + $0x250] sm:$0xff]  ;;  %v18274_v34 = vld [vmem:[%s21793_s11 + $0x128] sm:$0xff]  }
 0xf01   : > { %v9644_v63 = vpack.c.bf16 %v9628_v8, %v9627_v26  ;;  %v18275_v3 = vld [vmem:[%s21793_s11 + $0x130] sm:$0xff]   ;;  %v10249_v8 = vld [vmem:[#allocation3 + $0x86] sm:$0xff] }
 0xf02   : > { %16532 = vmatpush3.bf16.msra.mxu0 %v18272_v53  ;;  %v9616_v53 = vld [vmem:[#allocation3 + $0x190] sm:$0xff] }
 0xf03   : > { %16565 = vmatprep.subr.bf16.mxu0 %v18273_v55  ;;  %v21054_v21 = vpack.c.bf16 %v9616_v53, %v9615_v23  ;;  %v9624_v53 = vld [vmem:[#allocation3 + $0x210] sm:$0xff] }
 0xf04   : > { %v9642_v23 = vpack.c.bf16 %v9624_v53, %v9623_v29  ;;  %v10248_v53 = vld [vmem:[#allocation3 + $0x6e] sm:$0xff] }
 0xf05   : > { %16502 = vmatmul.mubr.msk.bf16.gmra.mrb[44].mxu0 %vm495_vm0, %v21038_v45  ;;  %v10250_v29 = vld [vmem:[#allocation3 + $0x8e] sm:$0xff] }
 0xf06   : > { %16505 = vmatprep.mubr.msk.bf16.mxu0 %vm495_vm0, %v21040_v36 }
 0xf0d   : > { %16506 = vmatmul.mubr.msk.bf16.gmra.mrb[48].mxu0 %vm495_vm0, %v21046_v57 }
 0xf0e   : > { %16509 = vmatprep.mubr.msk.bf16.mxu0 %vm495_vm0, %v21048_v17 }
 0xf15   : > { %16510 = vmatmul.mubr.msk.bf16.gmra.mrb[52].mxu0 %vm495_vm0, %v21054_v21 }
 0xf16   : > { %16513 = vmatprep.mubr.msk.bf16.mxu0 %vm495_vm0, %v21056_v30 }
 0xf1d   : > { %16514 = vmatmul.mubr.msk.bf16.gmra.mrb[56].mxu0 %vm495_vm0, %v21062_v51 }
 0xf1e   : > { %16517 = vmatprep.mubr.msk.bf16.mxu0 %vm495_vm0, %v21064_v20 }
 0xf25   : > { %16518 = vmatmul.mubr.msk.bf16.gmra.mrb[60].mxu0 %vm495_vm0, %v9642_v23  ;;  %v10247_v23 = vld [vmem:[#allocation3 + $0x66] sm:$0xff] }
 0xf26   : > { %16521 = vmatprep.mubr.msk.bf16.mxu0 %vm495_vm0, %v20913_v58  ;;  %v21129_v26 = vpack.c.bf16 %v10248_v53, %v10247_v23 }
 0xf2d   : > { %16522 = vmatmul.mubr.msk.bf16.gmra.mrb[64].mxu0 %vm495_vm0, %v9644_v63  ;;  %v18280_v63 = vld [vmem:[%s21793_s11 + $0x158] sm:$0xff]  }
 0xf2e   : > { %16533 = vmatprep.mubr.msk.bf16.mxu0 %vm495_vm0, %v20742_v0  ;;  %v18276_v0 = vld [vmem:[%s21793_s11 + $0x138] sm:$0xff]  }
 0xf35   : > { %16534 = vmatmul.mubr.msk.bf16.vlgmr.msra.gmra.mrb[36].mxu0 %vm495_vm0, %v20751_v10  ;;  %v18277_v10 = vld [vmem:[%s21793_s11 + $0x140] sm:$0xff]  }
 0xf36   : > { %16566 = vmatpush3.bf16.msra.mxu0 %v18273_v55  ;;  %16537 = vmatprep.mubr.msk.bf16.mxu0 %vm495_vm0, %v20756_v24  ;;  %v18279_v55 = vld [vmem:[%s21793_s11 + $0x150] sm:$0xff]  }
 0xf37   : > { %16567 = vmatprep.subr.bf16.mxu0 %v18274_v34 }
 0xf3a   : > { %16568 = vmatpush3.bf16.msra.mxu0 %v18274_v34  ;;  %v21134_v34 = vpack.c.bf16 %v10250_v29, %v10249_v8  ;;  %v10261_v29 = vld [vmem:[#allocation3 + $0x146] sm:$0xff]  ;;  %v10264_v8 = vld [vmem:[#allocation3 + $0x16e] sm:$0xff] }
 0xf3b   : > { %16569 = vmatprep.subr.bf16.mxu0 %v18275_v3 }
 0xf3d   : > { %16538 = vmatmul.mubr.msk.bf16.gmra.mrb[40].mxu0 %vm495_vm0, %v20765_v11  ;;  %v10242_v11 = vld [vmem:[#allocation3 + $0xe] sm:$0xff] }
 0xf3e   : > { %16541 = vmatprep.mubr.msk.bf16.mxu0 %vm495_vm0, %v20767_v38  ;;  %16570 = vmatpush3.bf16.msra.mxu0 %v18275_v3  ;;  %v18281_v3 = vld [vmem:[%s21793_s11 + $0x160] sm:$0xff]  }
 0xf3f   : > { %16571 = vmatprep.subr.bf16.mxu0 %v18276_v0 }
 0xf42   : > { %16572 = vmatpush3.bf16.msra.mxu0 %v18276_v0  ;;  %v10252_v0 = vld [vmem:[#allocation3 + $0xae] sm:$0xff] }
 0xf43   : > { %16605 = vmatprep.subr.bf16.mxu0 %v18277_v10 }
 0xf45   : > { %16542 = vmatmul.mubr.msk.bf16.gmra.mrb[44].mxu0 %vm495_vm0, %v20773_v52  ;;  %v10241_v52 = vld [vmem:[#allocation3 + $0x6] sm:$0xff] }
 0xf46   : > { %16545 = vmatprep.mubr.msk.bf16.mxu0 %vm495_vm0, %v20775_v6  ;;  %v9949_v6 = vld [vmem:[#allocation3 + $0x249] sm:$0xff]  ;;  %v10273_v24 = vpack.c.bf16 %v10242_v11, %v10241_v52 }
 0xf47   : > { %v10253_v52 = vld [vmem:[#allocation3 + $0xc6] sm:$0xff] }
 0xf4d   : > { %16546 = vmatmul.mubr.msk.bf16.gmra.mrb[48].mxu0 %vm495_vm0, %v20781_v46  ;;  %v10245_v46 = vld [vmem:[#allocation3 + $0x46] sm:$0xff] }
 0xf4e   : > { %16549 = vmatprep.mubr.msk.bf16.mxu0 %vm495_vm0, %v20783_v47  ;;  %v9950_v47 = vld [vmem:[#allocation3 + $0x251] sm:$0xff] }
 0xf55   : > { %16550 = vmatmul.mubr.msk.bf16.gmra.mrb[52].mxu0 %vm495_vm0, %v20789_v40  ;;  %v9966_v40 = vpack.c.bf16 %v9950_v47, %v9949_v6  ;;  %v10251_v6 = vld [vmem:[#allocation3 + $0xa6] sm:$0xff] }
 0xf56   : > { %16553 = vmatprep.mubr.msk.bf16.mxu0 %vm495_vm0, %v20791_v7  ;;  %v10244_v7 = vld [vmem:[#allocation3 + $0x2e] sm:$0xff]  ;;  %v21143_v47 = vpack.c.bf16 %v10252_v0, %v10251_v6  ;;  %v10263_v0 = vld [vmem:[#allocation3 + $0x166] sm:$0xff] }
 0xf57   : > { %v10265_v6 = vld [vmem:[#allocation3 + $0x186] sm:$0xff] }
 0xf5d   : > { %16554 = vmatmul.mubr.msk.bf16.gmra.mrb[56].mxu0 %vm495_vm0, %v20797_v15  ;;  %v10243_v15 = vld [vmem:[#allocation3 + $0x26] sm:$0xff] }
 0xf5e   : > { %16557 = vmatprep.mubr.msk.bf16.mxu0 %vm495_vm0, %v20799_v22  ;;  %v10274_v38 = vpack.c.bf16 %v10244_v7, %v10243_v15  ;;  %v10246_v22 = vld [vmem:[#allocation3 + $0x4e] sm:$0xff]  ;;  %v10255_v15 = vld [vmem:[#allocation3 + $0xe6] sm:$0xff] }
 0xf65   : > { %16558 = vmatmul.mubr.msk.bf16.gmra.mrb[60].mxu0 %vm495_vm0, %v20805_v28  ;;  %v18278_v28 = vld [vmem:[%s21793_s11 + $0x148] sm:$0xff]  }
 0xf66   : > { %16561 = vmatprep.mubr.msk.bf16.mxu0 %vm495_vm0, %v20959_v35  ;;  %v21121_v35 = vpack.c.bf16 %v10246_v22, %v10245_v46  ;;  %v10260_v46 = vld [vmem:[#allocation3 + $0x12e] sm:$0xff] }
 0xf6d   : > { %16562 = vmatmul.mubr.msk.bf16.gmra.mrb[64].mxu0 %vm495_vm0, %v9966_v40  ;;  %v10256_v40 = vld [vmem:[#allocation3 + $0xee] sm:$0xff] }
 0xf6e   : > { %16573 = vmatprep.mubr.msk.bf16.mxu0 %vm495_vm0, %v10273_v24  ;;  %v10258_v24 = vld [vmem:[#allocation3 + $0x10e] sm:$0xff]  ;;  %v21151_v7 = vpack.c.bf16 %v10256_v40, %v10255_v15  ;;  %v10267_v15 = vld [vmem:[#allocation3 + $0x1a6] sm:$0xff] }
 0xf6f   : > { %v10268_v40 = vld [vmem:[#allocation3 + $0x1ae] sm:$0xff] }
 0xf75   : > { %16574 = vmatmul.mubr.msk.bf16.vlgmr.msra.gmra.mrb[36].mxu0 %vm495_vm0, %v10274_v38  ;;  %v10257_v38 = vld [vmem:[#allocation3 + $0x106] sm:$0xff] }
 0xf76   : > { %16606 = vmatpush3.bf16.msra.mxu0 %v18277_v10  ;;  %16577 = vmatprep.mubr.msk.bf16.mxu0 %vm495_vm0, %v21121_v35  ;;  %v10254_v10 = vld [vmem:[#allocation3 + $0xce] sm:$0xff]  ;;  %v21153_v22 = vpack.c.bf16 %v10258_v24, %v10257_v38  ;;  %v21175_v38 = vpack.c.bf16 %v10268_v40, %v10267_v15 }
 0xf77   : > { %16607 = vmatprep.subr.bf16.mxu0 %v18278_v28  ;;  %v21145_v11 = vpack.c.bf16 %v10254_v10, %v10253_v52  ;;  %v21167_v10 = vpack.c.bf16 %v10264_v8, %v10263_v0  ;;  %v10270_v24 = vld [vmem:[#allocation3 + $0x1ce] sm:$0xff] }
 0xf78   : > { %v10272_v8 = vld [vmem:[#allocation3 + $0x1ee] sm:$0xff] }
 0xf79   : > { %v10565_v40 = vld [vmem:[#allocation3 + $0x28] sm:$0xff] }
 0xf7a   : > { %16608 = vmatpush3.bf16.msra.mxu0 %v18278_v28  ;;  %v10262_v28 = vld [vmem:[#allocation3 + $0x14e] sm:$0xff] }
 0xf7b   : > { %16609 = vmatprep.subr.bf16.mxu0 %v18279_v55  ;;  %v21161_v23 = vpack.c.bf16 %v10262_v28, %v10261_v29  ;;  %v10564_v29 = vld [vmem:[#allocation3 + $0x10] sm:$0xff] }
 0xf7d   : > { %16578 = vmatmul.mubr.msk.bf16.gmra.mrb[40].mxu0 %vm495_vm0, %v21129_v26 }
 0xf7e   : > { %16581 = vmatprep.mubr.msk.bf16.mxu0 %vm495_vm0, %v21134_v34  ;;  %16610 = vmatpush3.bf16.msra.mxu0 %v18279_v55  ;;  %v10259_v55 = vld [vmem:[#allocation3 + $0x126] sm:$0xff] }
 0xf7f   : > { %16611 = vmatprep.subr.bf16.mxu0 %v18280_v63  ;;  %v21159_v53 = vpack.c.bf16 %v10260_v46, %v10259_v55  ;;  %v10269_v46 = vld [vmem:[#allocation3 + $0x1c6] sm:$0xff] }
 0xf80   : > { %v21177_v28 = vpack.c.bf16 %v10270_v24, %v10269_v46  ;;  %v10563_v55 = vld [vmem:[#allocation3 + $0x8] sm:$0xff]  ;;  %v10566_v24 = vld [vmem:[#allocation3 + $0x30] sm:$0xff] }
 0xf81   : > { %v10595_v0 = vpack.c.bf16 %v10564_v29, %v10563_v55  ;;  %v10596_v15 = vpack.c.bf16 %v10566_v24, %v10565_v40  ;;  %v10568_v46 = vld [vmem:[#allocation3 + $0x50] sm:$0xff]  ;;  %v18284_v29 = vld [vmem:[%s21793_s11 + $0x178] sm:$0xff]  }
 0xf82   : > { %16612 = vmatpush3.bf16.msra.mxu0 %v18280_v63  ;;  %v10266_v63 = vld [vmem:[#allocation3 + $0x18e] sm:$0xff]  ;;  %v10597_v2 = vpack.c.bf16 %v10568_v46, %v10567_v4  ;;  %v18285_v4 = vld [vmem:[%s21793_s11 + $0x180] sm:$0xff]  }
 0xf83   : > { %16645 = vmatprep.subr.bf16.mxu0 %v18281_v3  ;;  %v21169_v52 = vpack.c.bf16 %v10266_v63, %v10265_v6  ;;  %v10271_v63 = vld [vmem:[#allocation3 + $0x1e6] sm:$0xff]  ;;  %v18283_v55 = vld [vmem:[%s21793_s11 + $0x170] sm:$0xff]  }
 0xf84   : > { %v21183_v6 = vpack.c.bf16 %v10272_v8, %v10271_v63  ;;  %v18288_v8 = vld [vmem:[%s21793_s11 + $0x198] sm:$0xff]   ;;  %v10895_v40 = vld [vmem:[#allocation3 + $0xaa] sm:$0xff] }
 0xf85   : > { %16582 = vmatmul.mubr.msk.bf16.gmra.mrb[44].mxu0 %vm495_vm0, %v21143_v47  ;;  %v10896_v24 = vld [vmem:[#allocation3 + $0xb2] sm:$0xff] }
 0xf86   : > { %16585 = vmatprep.mubr.msk.bf16.mxu0 %vm495_vm0, %v21145_v11  ;;  %v10898_v46 = vld [vmem:[#allocation3 + $0xd2] sm:$0xff] }
 0xf8d   : > { %16586 = vmatmul.mubr.msk.bf16.gmra.mrb[48].mxu0 %vm495_vm0, %v21151_v7 }
 0xf8e   : > { %16589 = vmatprep.mubr.msk.bf16.mxu0 %vm495_vm0, %v21153_v22 }
 0xf95   : > { %16590 = vmatmul.mubr.msk.bf16.gmra.mrb[52].mxu0 %vm495_vm0, %v21159_v53 }
 0xf96   : > { %16593 = vmatprep.mubr.msk.bf16.mxu0 %vm495_vm0, %v21161_v23 }
 0xf9d   : > { %16594 = vmatmul.mubr.msk.bf16.gmra.mrb[56].mxu0 %vm495_vm0, %v21167_v10 }
 0xf9e   : > { %16597 = vmatprep.mubr.msk.bf16.mxu0 %vm495_vm0, %v21169_v52 }
 0xfa5   : > { %16598 = vmatmul.mubr.msk.bf16.gmra.mrb[60].mxu0 %vm495_vm0, %v21175_v38 }
 0xfa6   : > { %16601 = vmatprep.mubr.msk.bf16.mxu0 %vm495_vm0, %v21177_v28 }
 0xfad   : > { %16602 = vmatmul.mubr.msk.bf16.gmra.mrb[64].mxu0 %vm495_vm0, %v21183_v6 }
 0xfae   : > { %16613 = vmatprep.mubr.msk.bf16.mxu0 %vm495_vm0, %v10595_v0  ;;  %v18289_v0 = vld [vmem:[%s21793_s11 + $0x1a0] sm:$0xff]  }
 0xfb5   : > { %16614 = vmatmul.mubr.msk.bf16.vlgmr.msra.gmra.mrb[36].mxu0 %vm495_vm0, %v10596_v15  ;;  %v10897_v15 = vld [vmem:[#allocation3 + $0xca] sm:$0xff] }
 0xfb6   : > { %16646 = vmatpush3.bf16.msra.mxu0 %v18281_v3  ;;  %16617 = vmatprep.mubr.msk.bf16.mxu0 %vm495_vm0, %v10597_v2  ;;  %v10885_v2 = vld [vmem:[#allocation3 + $0xa] sm:$0xff] }
 0xfb7   : > { %16647 = vmatprep.subr.bf16.mxu0 %v18282_v44 }
 0xfba   : > { %16648 = vmatpush3.bf16.msra.mxu0 %v18282_v44  ;;  %v10886_v44 = vld [vmem:[#allocation3 + $0x12] sm:$0xff] }
 0xfbb   : > { %16649 = vmatprep.subr.bf16.mxu0 %v18283_v55 }
 0xfbd   : > { %16618 = vmatmul.mubr.msk.bf16.gmra.mrb[40].mxu0 %vm495_vm0, %v21005_v41  ;;  %v10917_v41 = vpack.c.bf16 %v10886_v44, %v10885_v2  ;;  %v10900_v2 = vld [vmem:[#allocation3 + $0xf2] sm:$0xff]  ;;  %v10901_v44 = vld [vmem:[#allocation3 + $0x10a] sm:$0xff] }
 0xfbe   : > { %16621 = vmatprep.mubr.msk.bf16.mxu0 %vm495_vm0, %v21010_v50  ;;  %16650 = vmatpush3.bf16.msra.mxu0 %v18283_v55  ;;  %v10887_v50 = vld [vmem:[#allocation3 + $0x2a] sm:$0xff]  ;;  %v21254_v55 = vpack.c.bf16 %v10896_v24, %v10895_v40 }
 0xfbf   : > { %16651 = vmatprep.subr.bf16.mxu0 %v18284_v29 }
 0xfc2   : > { %16652 = vmatpush3.bf16.msra.mxu0 %v18284_v29  ;;  %v21256_v29 = vpack.c.bf16 %v10898_v46, %v10897_v15  ;;  %v10911_v15 = vld [vmem:[#allocation3 + $0x1aa] sm:$0xff]  ;;  %v10912_v46 = vld [vmem:[#allocation3 + $0x1b2] sm:$0xff] }
 0xfc3   : > { %16685 = vmatprep.subr.bf16.mxu0 %v18285_v4 }
 0xfc5   : > { %16622 = vmatmul.mubr.msk.bf16.gmra.mrb[44].mxu0 %vm495_vm0, %v21015_v48  ;;  %v10888_v48 = vld [vmem:[#allocation3 + $0x32] sm:$0xff] }
 0xfc6   : > { %16625 = vmatprep.mubr.msk.bf16.mxu0 %vm495_vm0, %v21024_v39  ;;  %v10918_v39 = vpack.c.bf16 %v10888_v48, %v10887_v50 }
 0xfcd   : > { %16626 = vmatmul.mubr.msk.bf16.gmra.mrb[48].mxu0 %vm495_vm0, %v21029_v61  ;;  %v10889_v61 = vld [vmem:[#allocation3 + $0x4a] sm:$0xff] }
 0xfce   : > { %16629 = vmatprep.mubr.msk.bf16.mxu0 %vm495_vm0, %v21038_v45  ;;  %v10890_v45 = vld [vmem:[#allocation3 + $0x52] sm:$0xff] }
 0xfd5   : > { %16630 = vmatmul.mubr.msk.bf16.gmra.mrb[52].mxu0 %vm495_vm0, %v21040_v36  ;;  %v21232_v36 = vpack.c.bf16 %v10890_v45, %v10889_v61  ;;  %v10904_v61 = vld [vmem:[#allocation3 + $0x132] sm:$0xff]  ;;  %v10905_v45 = vld [vmem:[#allocation3 + $0x14a] sm:$0xff] }
 0xfd6   : > { %16633 = vmatprep.mubr.msk.bf16.mxu0 %vm495_vm0, %v21046_v57  ;;  %v10891_v57 = vld [vmem:[#allocation3 + $0x6a] sm:$0xff] }
 0xfdd   : > { %16634 = vmatmul.mubr.msk.bf16.gmra.mrb[56].mxu0 %vm495_vm0, %v21048_v17  ;;  %v10892_v17 = vld [vmem:[#allocation3 + $0x72] sm:$0xff] }
 0xfde   : > { %16637 = vmatprep.mubr.msk.bf16.mxu0 %vm495_vm0, %v21054_v21  ;;  %v10893_v21 = vld [vmem:[#allocation3 + $0x8a] sm:$0xff]  ;;  %v21240_v3 = vpack.c.bf16 %v10892_v17, %v10891_v57 }
 0xfdf   : > { %v10907_v17 = vld [vmem:[#allocation3 + $0x16a] sm:$0xff] }
 0xfe5   : > { %16638 = vmatmul.mubr.msk.bf16.gmra.mrb[60].mxu0 %vm495_vm0, %v21056_v30  ;;  %v18286_v30 = vld [vmem:[%s21793_s11 + $0x188] sm:$0xff]  }
 0xfe6   : > { %16641 = vmatprep.mubr.msk.bf16.mxu0 %vm495_vm0, %v21062_v51  ;;  %v10894_v51 = vld [vmem:[#allocation3 + $0x92] sm:$0xff] }
 0xfe7   : > { %v21245_v63 = vpack.c.bf16 %v10894_v51, %v10893_v21  ;;  %v10908_v21 = vld [vmem:[#allocation3 + $0x172] sm:$0xff]  ;;  %v10909_v51 = vld [vmem:[#allocation3 + $0x18a] sm:$0xff] }
 0xfe8   : > { %v21278_v40 = vpack.c.bf16 %v10908_v21, %v10907_v17  ;;  %v18291_v17 = vld [vmem:[%s21793_s11 + $0x1b0] sm:$0xff]   ;;  %v11235_v21 = vld [vmem:[#allocation3 + $0x206] sm:$0xff] }
 0xfed   : > { %16642 = vmatmul.mubr.msk.bf16.gmra.mrb[64].mxu0 %vm495_vm0, %v21064_v20  ;;  %v18287_v20 = vld [vmem:[%s21793_s11 + $0x190] sm:$0xff]  }
 0xfee   : > { %16653 = vmatprep.mubr.msk.bf16.mxu0 %vm495_vm0, %v10917_v41  ;;  %v10902_v41 = vld [vmem:[#allocation3 + $0x112] sm:$0xff] }
 0xfef   : > { %v21264_v48 = vpack.c.bf16 %v10902_v41, %v10901_v44  ;;  %v21286_v44 = vpack.c.bf16 %v10912_v46, %v10911_v15  ;;  %v11237_v15 = vld [vmem:[#allocation3 + $0x226] sm:$0xff] }
 0xff5   : > { %16654 = vmatmul.mubr.msk.bf16.vlgmr.msra.gmra.mrb[36].mxu0 %vm495_vm0, %v10918_v39  ;;  %v10903_v39 = vld [vmem:[#allocation3 + $0x12a] sm:$0xff] }
 0xff6   : > { %16686 = vmatpush3.bf16.msra.mxu0 %v18285_v4  ;;  %16657 = vmatprep.mubr.msk.bf16.mxu0 %vm495_vm0, %v21232_v36  ;;  %v10899_v4 = vld [vmem:[#allocation3 + $0xea] sm:$0xff] }
 0xff7   : > { %16687 = vmatprep.subr.bf16.mxu0 %v18286_v30  ;;  %v21262_v50 = vpack.c.bf16 %v10900_v2, %v10899_v4  ;;  %v10913_v4 = vld [vmem:[#allocation3 + $0x1ca] sm:$0xff]  ;;  %v10914_v2 = vld [vmem:[#allocation3 + $0x1d2] sm:$0xff] }
 0xff8   : > { %v21288_v41 = vpack.c.bf16 %v10914_v2, %v10913_v4  ;;  %v18294_v4 = vld [vmem:[%s21793_s11 + $0x1c8] sm:$0xff]   ;;  %v18295_v2 = vld [vmem:[%s21793_s11 + $0x1d0] sm:$0xff]  }
 0xffa   : > { %16688 = vmatpush3.bf16.msra.mxu0 %v18286_v30  ;;  %v10906_v30 = vld [vmem:[#allocation3 + $0x152] sm:$0xff] }
 0xffb   : > { %16689 = vmatprep.subr.bf16.mxu0 %v18287_v20  ;;  %v21272_v57 = vpack.c.bf16 %v10906_v30, %v10905_v45  ;;  %v18290_v30 = vld [vmem:[%s21793_s11 + $0x1a8] sm:$0xff]  }
 0xffd   : > { %16658 = vmatmul.mubr.msk.bf16.gmra.mrb[40].mxu0 %vm495_vm0, %v21240_v3 }
 0xffe   : > { %16661 = vmatprep.mubr.msk.bf16.mxu0 %vm495_vm0, %v21245_v63  ;;  %16690 = vmatpush3.bf16.msra.mxu0 %v18287_v20  ;;  %v21270_v20 = vpack.c.bf16 %v10904_v61, %v10903_v39  ;;  %v10915_v39 = vld [vmem:[#allocation3 + $0x1ea] sm:$0xff]  ;;  %v10916_v61 = vld [vmem:[#allocation3 + $0x1f2] sm:$0xff] }
 0xfff   : > { %16691 = vmatprep.subr.bf16.mxu0 %v18288_v8  ;;  %v21294_v45 = vpack.c.bf16 %v10916_v61, %v10915_v39  ;;  %v18306_v39 = vld [vmem:[%s21793_s11 + $0x228] sm:$0xff]  }
0x1002   : > { %16692 = vmatpush3.bf16.msra.mxu0 %v18288_v8  ;;  %v10910_v8 = vld [vmem:[#allocation3 + $0x192] sm:$0xff] }
0x1003   : > { %16725 = vmatprep.subr.bf16.mxu0 %v18289_v0  ;;  %v21280_v24 = vpack.c.bf16 %v10910_v8, %v10909_v51  ;;  %v11238_v8 = vld [vmem:[#allocation3 + $0x22e] sm:$0xff] }
0x1004   : > { %v21342_v46 = vpack.c.bf16 %v11238_v8, %v11237_v15  ;;  %v12411_v15 = vld [vmem:[#allocation3 + $0x130] sm:$0xff] }
0x1005   : > { %16662 = vmatmul.mubr.msk.bf16.gmra.mrb[44].mxu0 %vm495_vm0, %v21254_v55 }
0x1006   : > { %16665 = vmatprep.mubr.msk.bf16.mxu0 %vm495_vm0, %v21256_v29 }
0x100d   : > { %16666 = vmatmul.mubr.msk.bf16.gmra.mrb[48].mxu0 %vm495_vm0, %v21262_v50 }
0x100e   : > { %16669 = vmatprep.mubr.msk.bf16.mxu0 %vm495_vm0, %v21264_v48 }
0x1015   : > { %16670 = vmatmul.mubr.msk.bf16.gmra.mrb[52].mxu0 %vm495_vm0, %v21270_v20 }
0x1016   : > { %16673 = vmatprep.mubr.msk.bf16.mxu0 %vm495_vm0, %v21272_v57 }
0x101d   : > { %16674 = vmatmul.mubr.msk.bf16.gmra.mrb[56].mxu0 %vm495_vm0, %v21278_v40 }
0x101e   : > { %16677 = vmatprep.mubr.msk.bf16.mxu0 %vm495_vm0, %v21280_v24 }
0x1025   : > { %16678 = vmatmul.mubr.msk.bf16.gmra.mrb[60].mxu0 %vm495_vm0, %v21286_v44 }
0x1026   : > { %16681 = vmatprep.mubr.msk.bf16.mxu0 %vm495_vm0, %v21288_v41 }
0x102d   : > { %16682 = vmatmul.mubr.msk.bf16.gmra.mrb[64].mxu0 %vm495_vm0, %v21294_v45 }
0x102e   : > { %16693 = vmatprep.mubr.msk.bf16.mxu0 %vm495_vm0, %v21121_v35  ;;  %v18292_v35 = vld [vmem:[%s21793_s11 + $0x1b8] sm:$0xff]  }
0x1035   : > { %16694 = vmatmul.mubr.msk.bf16.vlgmr.msra.gmra.mrb[36].mxu0 %vm495_vm0, %v21129_v26  ;;  %v18293_v26 = vld [vmem:[%s21793_s11 + $0x1c0] sm:$0xff]  }
0x1036   : > { %16726 = vmatpush3.bf16.msra.mxu0 %v18289_v0  ;;  %16697 = vmatprep.mubr.msk.bf16.mxu0 %vm495_vm0, %v21134_v34  ;;  %v11236_v0 = vld [vmem:[#allocation3 + $0x20e] sm:$0xff] }
0x1037   : > { %16727 = vmatprep.subr.bf16.mxu0 %v18290_v30  ;;  %v21336_v51 = vpack.c.bf16 %v11236_v0, %v11235_v21  ;;  %v12408_v21 = vld [vmem:[#allocation3 + $0x108] sm:$0xff] }
0x103a   : > { %16728 = vmatpush3.bf16.msra.mxu0 %v18290_v30  ;;  %v18307_v30 = vld [vmem:[%s21793_s11 + $0x230] sm:$0xff]  }
0x103b   : > { %16729 = vmatprep.subr.bf16.mxu0 %v18291_v17 }
0x103d   : > { %16698 = vmatmul.mubr.msk.bf16.gmra.mrb[40].mxu0 %vm495_vm0, %v21143_v47 }
0x103e   : > { %16701 = vmatprep.mubr.msk.bf16.mxu0 %vm495_vm0, %v21145_v11  ;;  %16730 = vmatpush3.bf16.msra.mxu0 %v18291_v17  ;;  %v12407_v17 = vld [vmem:[#allocation3 + $0xf0] sm:$0xff] }
0x103f   : > { %16731 = vmatprep.subr.bf16.mxu0 %v18292_v35 }
0x1042   : > { %16732 = vmatpush3.bf16.msra.mxu0 %v18292_v35  ;;  %v12409_v35 = vld [vmem:[#allocation3 + $0x110] sm:$0xff] }
0x1043   : > { %16765 = vmatprep.subr.bf16.mxu0 %v18293_v26  ;;  %v12436_v8 = vpack.c.bf16 %v12409_v35, %v12408_v21 }
0x1045   : > { %16702 = vmatmul.mubr.msk.bf16.gmra.mrb[44].mxu0 %vm495_vm0, %v21151_v7 }
0x1046   : > { %16705 = vmatprep.mubr.msk.bf16.mxu0 %vm495_vm0, %v21153_v22 }
0x104d   : > { %16706 = vmatmul.mubr.msk.bf16.gmra.mrb[48].mxu0 %vm495_vm0, %v21159_v53 }
0x104e   : > { %16709 = vmatprep.mubr.msk.bf16.mxu0 %vm495_vm0, %v21161_v23 }
0x1055   : > { %16710 = vmatmul.mubr.msk.bf16.gmra.mrb[52].mxu0 %vm495_vm0, %v21167_v10 }
0x1056   : > { %16713 = vmatprep.mubr.msk.bf16.mxu0 %vm495_vm0, %v21169_v52 }
0x105d   : > { %16714 = vmatmul.mubr.msk.bf16.gmra.mrb[56].mxu0 %vm495_vm0, %v21175_v38 }
0x105e   : > { %16717 = vmatprep.mubr.msk.bf16.mxu0 %vm495_vm0, %v21177_v28 }
0x1065   : > { %16718 = vmatmul.mubr.msk.bf16.gmra.mrb[60].mxu0 %vm495_vm0, %v21183_v6 }
0x1066   : > { %16721 = vmatprep.mubr.msk.bf16.mxu0 %vm495_vm0, %v21336_v51 }
0x106d   : > { %16722 = vmatmul.mubr.msk.bf16.gmra.mrb[64].mxu0 %vm495_vm0, %v21342_v46 }
0x106e   : > { %16733 = vmatprep.mubr.msk.bf16.mxu0 %vm495_vm0, %v20539_v32  ;;  %v18296_v32 = vld [vmem:[%s21793_s11 + $0x1d8] sm:$0xff]  }
0x1075   : > { %16734 = vmatmul.mubr.msk.bf16.vlgmr.msra.gmra.mrb[36].mxu0 %vm495_vm0, %v20544_v16  ;;  %v18297_v16 = vld [vmem:[%s21793_s11 + $0x1e0] sm:$0xff]  }
0x1076   : > { %16766 = vmatpush3.bf16.msra.mxu0 %v18293_v26  ;;  %16737 = vmatprep.mubr.msk.bf16.mxu0 %vm495_vm0, %v20561_v9  ;;  %v18298_v9 = vld [vmem:[%s21793_s11 + $0x1e8] sm:$0xff]  }
0x1077   : > { %16767 = vmatprep.subr.bf16.mxu0 %v18294_v4  ;;  %v12406_v26 = vld [vmem:[#allocation3 + $0xe8] sm:$0xff] }
0x1078   : > { %v12435_v0 = vpack.c.bf16 %v12407_v17, %v12406_v26 }
0x107a   : > { %16768 = vmatpush3.bf16.msra.mxu0 %v18294_v4  ;;  %v12410_v4 = vld [vmem:[#allocation3 + $0x128] sm:$0xff] }
0x107b   : > { %16769 = vmatprep.subr.bf16.mxu0 %v18295_v2 }
0x107d   : > { %16738 = vmatmul.mubr.msk.bf16.gmra.mrb[40].mxu0 %vm495_vm0, %v20566_v27  ;;  %v18299_v27 = vld [vmem:[%s21793_s11 + $0x1f0] sm:$0xff]  }
0x107e   : > { %16741 = vmatprep.mubr.msk.bf16.mxu0 %vm495_vm0, %v20585_v12  ;;  %16770 = vmatpush3.bf16.msra.mxu0 %v18295_v2  ;;  %v18301_v12 = vld [vmem:[%s21793_s11 + $0x200] sm:$0xff]   ;;  %v12437_v2 = vpack.c.bf16 %v12411_v15, %v12410_v4 }
0x107f   : > { %16771 = vmatprep.subr.bf16.mxu0 %v18296_v32 }
0x1082   : > { %16772 = vmatpush3.bf16.msra.mxu0 %v18296_v32  ;;  %v12412_v32 = vld [vmem:[#allocation3 + $0x148] sm:$0xff] }
0x1083   : > { %16805 = vmatprep.subr.bf16.mxu0 %v18297_v16 }
0x1085   : > { %16742 = vmatmul.mubr.msk.bf16.gmra.mrb[44].mxu0 %vm495_vm0, %v20588_v49  ;;  %v11783_v49 = vld [vmem:[#allocation3 + $0x20a] sm:$0xff] }
0x1086   : > { %16745 = vmatprep.mubr.msk.bf16.mxu0 %vm495_vm0, %v20602_v31  ;;  %v11784_v31 = vld [vmem:[#allocation3 + $0x212] sm:$0xff] }
0x108d   : > { %16746 = vmatmul.mubr.msk.bf16.gmra.mrb[48].mxu0 %vm495_vm0, %v20604_v19  ;;  %v21428_v19 = vpack.c.bf16 %v11784_v31, %v11783_v49  ;;  %v12416_v49 = vld [vmem:[#allocation3 + $0x188] sm:$0xff] }
0x108e   : > { %16749 = vmatprep.mubr.msk.bf16.mxu0 %vm495_vm0, %v20618_v56  ;;  %v11785_v56 = vld [vmem:[#allocation3 + $0x22a] sm:$0xff] }
0x1095   : > { %16750 = vmatmul.mubr.msk.bf16.gmra.mrb[52].mxu0 %vm495_vm0, %v20620_v43  ;;  %v11786_v43 = vld [vmem:[#allocation3 + $0x232] sm:$0xff] }
0x1096   : > { %16753 = vmatprep.mubr.msk.bf16.mxu0 %vm495_vm0, %v20636_v60  ;;  %v18302_v60 = vld [vmem:[%s21793_s11 + $0x208] sm:$0xff]  }
0x109d   : > { %16754 = vmatmul.mubr.msk.bf16.gmra.mrb[56].mxu0 %vm495_vm0, %v20633_v54  ;;  %v21434_v54 = vpack.c.bf16 %v11786_v43, %v11785_v56  ;;  %v12419_v56 = vld [vmem:[#allocation3 + $0x1b0] sm:$0xff] }
0x109e   : > { %16757 = vmatprep.mubr.msk.bf16.mxu0 %vm495_vm0, %v20651_v13  ;;  %v18303_v13 = vld [vmem:[%s21793_s11 + $0x210] sm:$0xff]  }
0x109f   : > { %v12421_v43 = vld [vmem:[#allocation3 + $0x1d0] sm:$0xff] }
0x10a5   : > { %16758 = vmatmul.mubr.msk.bf16.gmra.mrb[60].mxu0 %vm495_vm0, %v20658_v25  ;;  %v18304_v25 = vld [vmem:[%s21793_s11 + $0x218] sm:$0xff]  }
0x10a6   : > { %16761 = vmatprep.mubr.msk.bf16.mxu0 %vm495_vm0, %v20674_v37  ;;  %v18305_v37 = vld [vmem:[%s21793_s11 + $0x220] sm:$0xff]  }
0x10ad   : > { %16762 = vmatmul.mubr.msk.bf16.gmra.mrb[64].mxu0 %vm495_vm0, %v20913_v58  ;;  %v18300_v58 = vld [vmem:[%s21793_s11 + $0x1f8] sm:$0xff]  }
0x10ae   : > { %16773 = vmatprep.mubr.msk.bf16.mxu0 %vm495_vm0, %v21232_v36 }
0x10b5   : > { %16774 = vmatmul.mubr.msk.bf16.vlgmr.msra.gmra.mrb[36].mxu0 %vm495_vm0, %v21240_v3  ;;  %v12404_v3 = vld [vmem:[#allocation3 + $0xc8] sm:$0xff] }
0x10b6   : > { %16806 = vmatpush3.bf16.msra.mxu0 %v18297_v16  ;;  %16777 = vmatprep.mubr.msk.bf16.mxu0 %vm495_vm0, %v21245_v63 }
0x10b7   : > { %16807 = vmatprep.subr.bf16.mxu0 %v18298_v9 }
0x10ba   : > { %16808 = vmatpush3.bf16.msra.mxu0 %v18298_v9  ;;  %v12415_v9 = vld [vmem:[#allocation3 + $0x170] sm:$0xff] }
0x10bb   : > { %16809 = vmatprep.subr.bf16.mxu0 %v18299_v27 }
0x10bd   : > { %16778 = vmatmul.mubr.msk.bf16.gmra.mrb[40].mxu0 %vm495_vm0, %v21254_v55 }
0x10be   : > { %16781 = vmatprep.mubr.msk.bf16.mxu0 %vm495_vm0, %v21256_v29  ;;  %16810 = vmatpush3.bf16.msra.mxu0 %v18299_v27  ;;  %v12417_v27 = vld [vmem:[#allocation3 + $0x190] sm:$0xff] }
0x10bf   : > { %16811 = vmatprep.subr.bf16.mxu0 %v18300_v58  ;;  %v12440_v31 = vpack.c.bf16 %v12417_v27, %v12416_v49  ;;  %v21561_v27 = vpop.permute.xlu1 %13085  ;;  %v21565_v49 = vpop.permute.xlu0 %13083 }
0x10c2   : > { %16812 = vmatpush3.bf16.msra.mxu0 %v18300_v58  ;;  %v12414_v58 = vld [vmem:[#allocation3 + $0x168] sm:$0xff] }
0x10c3   : > { %16845 = vmatprep.subr.bf16.mxu0 %v18301_v12 }
0x10c5   : > { %16782 = vmatmul.mubr.msk.bf16.gmra.mrb[44].mxu0 %vm495_vm0, %v21262_v50 }
0x10c6   : > { %16785 = vmatprep.mubr.msk.bf16.mxu0 %vm495_vm0, %v21264_v48 }
0x10cd   : > { %16786 = vmatmul.mubr.msk.bf16.gmra.mrb[48].mxu0 %vm495_vm0, %v21270_v20 }
0x10ce   : > { %16789 = vmatprep.mubr.msk.bf16.mxu0 %vm495_vm0, %v21272_v57 }
0x10d5   : > { %16790 = vmatmul.mubr.msk.bf16.gmra.mrb[52].mxu0 %vm495_vm0, %v21278_v40 }
0x10d6   : > { %16793 = vmatprep.mubr.msk.bf16.mxu0 %vm495_vm0, %v21280_v24 }
0x10dd   : > { %16794 = vmatmul.mubr.msk.bf16.gmra.mrb[56].mxu0 %vm495_vm0, %v21286_v44 }
0x10de   : > { %16797 = vmatprep.mubr.msk.bf16.mxu0 %vm495_vm0, %v21288_v41 }
0x10e5   : > { %16798 = vmatmul.mubr.msk.bf16.gmra.mrb[60].mxu0 %vm495_vm0, %v21294_v45 }
0x10e6   : > { %16801 = vmatprep.mubr.msk.bf16.mxu0 %vm495_vm0, %v21428_v19 }
0x10ed   : > { %16802 = vmatmul.mubr.msk.bf16.gmra.mrb[64].mxu0 %vm495_vm0, %v21434_v54 }
0x10ee   : > { %16813 = vmatprep.mubr.msk.bf16.mxu0 %vm495_vm0, %v21134_v34  ;;  %v12106_v34 = vld [vmem:[#allocation3 + $0x246] sm:$0xff] }
0x10f5   : > { %16814 = vmatmul.mubr.msk.bf16.vlgmr.msra.gmra.mrb[36].mxu0 %vm495_vm0, %v21143_v47  ;;  %v12107_v47 = vld [vmem:[#allocation3 + $0x24e] sm:$0xff] }
0x10f6   : > { %16846 = vmatpush3.bf16.msra.mxu0 %v18301_v12  ;;  %16817 = vmatprep.mubr.msk.bf16.mxu0 %vm495_vm0, %v21145_v11  ;;  %v12124_v11 = vpack.c.bf16 %v12107_v47, %v12106_v34  ;;  %v12439_v12 = vpack.c.bf16 %v12415_v9, %v12414_v58  ;;  %v12423_v34 = vld [vmem:[#allocation3 + $0x1f0] sm:$0xff] }
0x10f7   : > { %16847 = vmatprep.subr.bf16.mxu0 %v18302_v60  ;;  %v12425_v47 = vld [vmem:[#allocation3 + $0x210] sm:$0xff] }
0x10fa   : > { %16848 = vmatpush3.bf16.msra.mxu0 %v18302_v60  ;;  %v12418_v60 = vld [vmem:[#allocation3 + $0x1a8] sm:$0xff] }
0x10fb   : > { %16849 = vmatprep.subr.bf16.mxu0 %v18303_v13 }
0x10fd   : > { %16818 = vmatmul.mubr.msk.bf16.gmra.mrb[40].mxu0 %vm495_vm0, %v21151_v7  ;;  %v12108_v7 = vld [vmem:[#allocation3 + $0x266] sm:$0xff] }
0x10fe   : > { %16821 = vmatprep.mubr.msk.bf16.mxu0 %vm495_vm0, %v21153_v22  ;;  %16850 = vmatpush3.bf16.msra.mxu0 %v18303_v13  ;;  %v12109_v22 = vld [vmem:[#allocation3 + $0x26e] sm:$0xff]  ;;  %v12441_v13 = vpack.c.bf16 %v12419_v56, %v12418_v60 }
0x10ff   : > { %16851 = vmatprep.subr.bf16.mxu0 %v18304_v25 }
0x1102   : > { %16852 = vmatpush3.bf16.msra.mxu0 %v18304_v25  ;;  %v12420_v25 = vld [vmem:[#allocation3 + $0x1c8] sm:$0xff] }
0x1103   : > { %16885 = vmatprep.subr.bf16.mxu0 %v18305_v37 }
0x1105   : > { %16822 = vmatmul.mubr.msk.bf16.gmra.mrb[44].mxu0 %vm495_vm0, %v21159_v53  ;;  %v12125_v53 = vpack.c.bf16 %v12109_v22, %v12108_v7  ;;  %v12424_v22 = vld [vmem:[#allocation3 + $0x208] sm:$0xff] }
0x1106   : > { %16825 = vmatprep.mubr.msk.bf16.mxu0 %vm495_vm0, %v21161_v23  ;;  %v12401_v23 = vld [vmem:[#allocation3 + $0x90] sm:$0xff] }
0x110d   : > { %16826 = vmatmul.mubr.msk.bf16.gmra.mrb[48].mxu0 %vm495_vm0, %v21167_v10  ;;  %v12400_v10 = vld [vmem:[#allocation3 + $0x88] sm:$0xff] }
0x110e   : > { %16829 = vmatprep.mubr.msk.bf16.mxu0 %vm495_vm0, %v21169_v52  ;;  %v12432_v52 = vpack.c.bf16 %v12401_v23, %v12400_v10  ;;  %v12428_v23 = vld [vmem:[#allocation3 + $0x248] sm:$0xff]  ;;  %v12429_v10 = vld [vmem:[#allocation3 + $0x250] sm:$0xff] }
0x1115   : > { %16830 = vmatmul.mubr.msk.bf16.gmra.mrb[52].mxu0 %vm495_vm0, %v21175_v38  ;;  %v12403_v38 = vld [vmem:[#allocation3 + $0xb0] sm:$0xff] }
0x1116   : > { %16833 = vmatprep.mubr.msk.bf16.mxu0 %vm495_vm0, %v21177_v28  ;;  %v12405_v28 = vld [vmem:[#allocation3 + $0xd0] sm:$0xff] }
0x1117   : > { %v12434_v61 = vpack.c.bf16 %v12405_v28, %v12404_v3  ;;  %v12446_v28 = vpack.c.bf16 %v12429_v10, %v12428_v23  ;;  %v12431_v3 = vld [vmem:[#allocation3 + $0x270] sm:$0xff] }
0x111d   : > { %16834 = vmatmul.mubr.msk.bf16.gmra.mrb[56].mxu0 %vm495_vm0, %v21183_v6  ;;  %v12402_v6 = vld [vmem:[#allocation3 + $0xa8] sm:$0xff] }
0x111e   : > { %16837 = vmatprep.mubr.msk.bf16.mxu0 %vm495_vm0, %v21336_v51  ;;  %v12433_v36 = vpack.c.bf16 %v12403_v38, %v12402_v6  ;;  %v18308_v51 = vld [vmem:[%s21793_s11 + $0x238] sm:$0xff]   ;;  %v12426_v38 = vld [vmem:[#allocation3 + $0x228] sm:$0xff] }
0x1125   : > { %16838 = vmatmul.mubr.msk.bf16.gmra.mrb[60].mxu0 %vm495_vm0, %v21342_v46  ;;  %v12413_v46 = vld [vmem:[#allocation3 + $0x150] sm:$0xff] }
0x1126   : > { %16841 = vmatprep.mubr.msk.bf16.mxu0 %vm495_vm0, %v12124_v11  ;;  %v12438_v16 = vpack.c.bf16 %v12413_v46, %v12412_v32  ;;  %v12422_v11 = vld [vmem:[#allocation3 + $0x1e8] sm:$0xff] }
0x1127   : > { %v12443_v7 = vpack.c.bf16 %v12423_v34, %v12422_v11  ;;  %v21575_v34 = vpop.permute.xlu0 %13089 }
0x112d   : > { %16842 = vmatmul.mubr.msk.bf16.gmra.mrb[64].mxu0 %vm495_vm0, %v12125_v53  ;;  %v12444_v53 = vpack.c.bf16 %v12425_v47, %v12424_v22 }
0x112e   : > { %16853 = vmatprep.mubr.msk.bf16.mxu0 %vm495_vm0, %v12432_v52  ;;  %v12427_v52 = vld [vmem:[#allocation3 + $0x230] sm:$0xff] }
0x112f   : > { %v12445_v6 = vpack.c.bf16 %v12427_v52, %v12426_v38  ;;  %v21585_v38 = vpop.permute.xlu0 %13093 }
0x1135   : > { %16854 = vmatmul.mubr.msk.bf16.vlgmr.msra.gmra.mrb[36].mxu0 %vm495_vm0, %v12433_v36  ;;  %v12430_v36 = vld [vmem:[#allocation3 + $0x268] sm:$0xff] }
0x1136   : > { %16886 = vmatpush3.bf16.msra.mxu0 %v18305_v37  ;;  %16857 = vmatprep.mubr.msk.bf16.mxu0 %vm495_vm0, %v12434_v61  ;;  %v12442_v37 = vpack.c.bf16 %v12421_v43, %v12420_v25  ;;  %v21571_v25 = vpop.permute.xlu1 %13087 }
0x1137   : > { %16887 = vmatprep.subr.bf16.mxu0 %v18306_v39 }
0x113a   : > { %16888 = vmatpush3.bf16.msra.mxu0 %v18306_v39  ;;  %v12447_v39 = vpack.c.bf16 %v12431_v3, %v12430_v36  ;;  %v21581_v23 = vpop.permute.xlu1 %13091 }
0x113b   : > { %16889 = vmatprep.subr.bf16.mxu0 %v18307_v30 }
0x113d   : > { %16858 = vmatmul.mubr.msk.bf16.gmra.mrb[40].mxu0 %vm495_vm0, %v12435_v0 }
0x113e   : > { %16861 = vmatprep.mubr.msk.bf16.mxu0 %vm495_vm0, %v12436_v8  ;;  %16890 = vmatpush3.bf16.msra.mxu0 %v18307_v30  ;;  %v21591_v3 = vpop.permute.xlu1 %13095 }
0x113f   : > { %16891 = vmatprep.subr.bf16.mxu0 %v18308_v51 }
0x1142   : > { %16892 = vmatpush3.bf16.msra.mxu0 %v18308_v51 }
0x1145   : > { %16862 = vmatmul.mubr.msk.bf16.gmra.mrb[44].mxu0 %vm495_vm0, %v12437_v2 }
0x1146   : > { %16865 = vmatprep.mubr.msk.bf16.mxu0 %vm495_vm0, %v12438_v16 }
0x114d   : > { %16866 = vmatmul.mubr.msk.bf16.gmra.mrb[48].mxu0 %vm495_vm0, %v12439_v12 }
0x114e   : > { %16869 = vmatprep.mubr.msk.bf16.mxu0 %vm495_vm0, %v12440_v31 }
0x1155   : > { %16870 = vmatmul.mubr.msk.bf16.gmra.mrb[52].mxu0 %vm495_vm0, %v12441_v13 }
0x1156   : > { %16873 = vmatprep.mubr.msk.bf16.mxu0 %vm495_vm0, %v12442_v37 }
0x115d   : > { %16874 = vmatmul.mubr.msk.bf16.gmra.mrb[56].mxu0 %vm495_vm0, %v12443_v7 }
0x115e   : > { %16877 = vmatprep.mubr.msk.bf16.mxu0 %vm495_vm0, %v12444_v53 }
0x1165   : > { %16878 = vmatmul.mubr.msk.bf16.gmra.mrb[60].mxu0 %vm495_vm0, %v12445_v6 }
0x1166   : > { %16881 = vmatprep.mubr.msk.bf16.mxu0 %vm495_vm0, %v12446_v28 }
0x116d   : > { %16882 = vmatmul.mubr.msk.bf16.gmra.mrb[64].mxu0 %vm495_vm0, %v12447_v39 }
0x116e   : > { %16893 = vmatprep.mubr.msk.bf16.mxu0 %vm495_vm0, %v21245_v63  ;;  %v12750_v63 = vld [vmem:[#allocation3 + $0x24a] sm:$0xff] }
0x1175   : > { %16894 = vmatmul.mubr.msk.bf16.vlgmr.msra.gmra.mrb[36].mxu0 %vm495_vm0, %v21254_v55  ;;  %v12751_v55 = vld [vmem:[#allocation3 + $0x252] sm:$0xff] }
0x1176   : > { %16897 = vmatprep.mubr.msk.bf16.mxu0 %vm495_vm0, %v21256_v29  ;;  %v12768_v29 = vpack.c.bf16 %v12751_v55, %v12750_v63 }
0x117d   : > { %16898 = vmatmul.mubr.msk.bf16.gmra.mrb[40].mxu0 %vm495_vm0, %v21262_v50  ;;  %v12752_v50 = vld [vmem:[#allocation3 + $0x26a] sm:$0xff] }
0x117e   : > { %16901 = vmatprep.mubr.msk.bf16.mxu0 %vm495_vm0, %v21264_v48  ;;  %v12753_v48 = vld [vmem:[#allocation3 + $0x272] sm:$0xff] }
0x1185   : > { %16902 = vmatmul.mubr.msk.bf16.gmra.mrb[44].mxu0 %vm495_vm0, %v21270_v20  ;;  %v12769_v20 = vpack.c.bf16 %v12753_v48, %v12752_v50 }
0x1186   : > { %16905 = vmatprep.mubr.msk.bf16.mxu0 %vm495_vm0, %v21272_v57  ;;  %v21538_v57 = vld [vmem:[%s21794_s12] ss:$0 sm:$0xff] }
0x118d   : > { %16906 = vmatmul.mubr.msk.bf16.gmra.mrb[48].mxu0 %vm495_vm0, %v21278_v40 }
0x118e   : > { %16909 = vmatprep.mubr.msk.bf16.mxu0 %vm495_vm0, %v21280_v24 }
0x1195   : > { %16910 = vmatmul.mubr.msk.bf16.gmra.mrb[52].mxu0 %vm495_vm0, %v21286_v44 }
0x1196   : > { %16913 = vmatprep.mubr.msk.bf16.mxu0 %vm495_vm0, %v21288_v41 }
0x119d   : > { %16914 = vmatmul.mubr.msk.bf16.gmra.mrb[56].mxu0 %vm495_vm0, %v21294_v45 }
0x119e   : > { %16917 = vmatprep.mubr.msk.bf16.mxu0 %vm495_vm0, %v21428_v19 }
0x11a5   : > { %16918 = vmatmul.mubr.msk.bf16.gmra.mrb[60].mxu0 %vm495_vm0, %v21434_v54 }
0x11a6   : > { %16921 = vmatprep.mubr.msk.bf16.mxu0 %vm495_vm0, %v12768_v29  ;;  %v21595_v29 = vpop.permute.xlu0 %13097 }
0x11ad   : > { %16922 = vmatmul.mubr.msk.bf16.gmra.mrb[64].mxu0 %vm495_vm0, %v12769_v20 }
0x1248   : > { %v16895_v40 = vpop.f32.mrb[36].mxu0 }
0x1249   : > { %v13053_v24 = vadd.f32 %v16895_v40, %v21538_v57  ;;  %v12885_v44 = vpop.f32.mrb[37].mxu0  ;;  %v21601_v40 = vpop.permute.xlu1 %13099 }
0x124a   : > { %v16896_v41 = vpop.f32.mrb[38].mxu0  ;;  %v13051_v54 = vadd.f32 %v21538_v57, %v12885_v44 }
0x124b   : > { %v13054_v45 = vadd.f32 %v16896_v41, %v21538_v57  ;;  %13151 = vrot.lane.b32.xlu1 %v13053_v24, %s18336_s14  ;;  %v12888_v19 = vpop.f32.mrb[39].mxu0  ;;  %v21605_v41 = vpop.permute.xlu0 %13101 }
0x124c   : > { %v13052_v61 = vadd.f32 %v21538_v57, %v12888_v19 }
0x124d   : > { %13153 = vrot.lane.b32.xlu0 %v13054_v45, %s18336_s14 }
0x124f   : > { %13147 = vrot.lane.b32.xlu1 %v13051_v54, %s18336_s14 }
0x1250   : > { %v16899_v30 = vpop.f32.mrb[40].mxu0 }
0x1251   : > { %v13057_v17 = vadd.f32 %v16899_v30, %v21538_v57  ;;  %13149 = vrot.lane.b32.xlu0 %v13052_v61, %s18336_s14  ;;  %v12901_v35 = vpop.f32.mrb[41].mxu0 }
0x1252   : > { %v16900_v26 = vpop.f32.mrb[42].mxu0  ;;  %v13055_v51 = vadd.f32 %v21538_v57, %v12901_v35 }
0x1253   : > { %v13058_v0 = vadd.f32 %v16900_v26, %v21538_v57  ;;  %13159 = vrot.lane.b32.xlu1 %v13057_v17, %s18336_s14  ;;  %v12904_v21 = vpop.f32.mrb[43].mxu0 }
0x1254   : > { %v13056_v8 = vadd.f32 %v21538_v57, %v12904_v21 }
0x1255   : > { %13161 = vrot.lane.b32.xlu0 %v13058_v0, %s18336_s14  ;;  %v21613_v0 = vpop.permute.xlu1 %13103 }
0x1257   : > { %13155 = vrot.lane.b32.xlu1 %v13055_v51, %s18336_s14 }
0x1258   : > { %v16903_v15 = vpop.f32.mrb[44].mxu0 }
0x1259   : > { %v13061_v46 = vadd.f32 %v16903_v15, %v21538_v57  ;;  %13157 = vrot.lane.b32.xlu0 %v13056_v8, %s18336_s14  ;;  %v12917_v4 = vpop.f32.mrb[45].mxu0 }
0x125a   : > { %v16904_v2 = vpop.f32.mrb[46].mxu0  ;;  %v13059_v9 = vadd.f32 %v21538_v57, %v12917_v4  ;;  %v21625_v4 = vpop.permute.xlu1 %13107 }
0x125b   : > { %v13062_v32 = vadd.f32 %v16904_v2, %v21538_v57  ;;  %13167 = vrot.lane.b32.xlu1 %v13061_v46, %s18336_s14  ;;  %v12920_v16 = vpop.f32.mrb[47].mxu0 }
0x125c   : > { %v13060_v58 = vadd.f32 %v21538_v57, %v12920_v16 }
0x125d   : > { %13169 = vrot.lane.b32.xlu0 %v13062_v32, %s18336_s14 }
0x125f   : > { %13163 = vrot.lane.b32.xlu1 %v13059_v9, %s18336_s14 }
0x1260   : > { %v16907_v12 = vpop.f32.mrb[48].mxu0 }
0x1261   : > { %v13065_v31 = vadd.f32 %v16907_v12, %v21538_v57  ;;  %13165 = vrot.lane.b32.xlu0 %v13060_v58, %s18336_s14  ;;  %v12933_v56 = vpop.f32.mrb[49].mxu0 }
0x1262   : > { %v16908_v43 = vpop.f32.mrb[50].mxu0  ;;  %v13063_v37 = vadd.f32 %v21538_v57, %v12933_v56 }
0x1263   : > { %v13066_v60 = vadd.f32 %v16908_v43, %v21538_v57  ;;  %13175 = vrot.lane.b32.xlu1 %v13065_v31, %s18336_s14  ;;  %v12936_v13 = vpop.f32.mrb[51].mxu0 }
0x1264   : > { %v13064_v47 = vadd.f32 %v21538_v57, %v12936_v13 }
0x1265   : > { %13177 = vrot.lane.b32.xlu0 %v13066_v60, %s18336_s14 }
0x1267   : > { %13171 = vrot.lane.b32.xlu1 %v13063_v37, %s18336_s14 }
0x1268   : > { %v16911_v11 = vpop.f32.mrb[52].mxu0 }
0x1269   : > { %v13069_v7 = vadd.f32 %v16911_v11, %v21538_v57  ;;  %13173 = vrot.lane.b32.xlu0 %v13064_v47, %s18336_s14  ;;  %v12949_v22 = vpop.f32.mrb[53].mxu0 }
0x126a   : > { %v16912_v53 = vpop.f32.mrb[54].mxu0  ;;  %v13067_v28 = vadd.f32 %v21538_v57, %v12949_v22 }
0x126b   : > { %v13070_v10 = vadd.f32 %v16912_v53, %v21538_v57  ;;  %13183 = vrot.lane.b32.xlu1 %v13069_v7, %s18336_s14  ;;  %v12952_v52 = vpop.f32.mrb[55].mxu0 }
0x126c   : > { %v13068_v6 = vadd.f32 %v21538_v57, %v12952_v52 }
0x126d   : > { %13185 = vrot.lane.b32.xlu0 %v13070_v10, %s18336_s14 }
0x126f   : > { %13179 = vrot.lane.b32.xlu1 %v13067_v28, %s18336_s14 }
0x1270   : > { %v16915_v36 = vpop.f32.mrb[56].mxu0 }
0x1271   : > { %v13073_v39 = vadd.f32 %v16915_v36, %v21538_v57  ;;  %13181 = vrot.lane.b32.xlu0 %v13068_v6, %s18336_s14  ;;  %v12965_v63 = vpop.f32.mrb[57].mxu0 }
0x1272   : > { %v16916_v55 = vpop.f32.mrb[58].mxu0  ;;  %v13071_v20 = vadd.f32 %v21538_v57, %v12965_v63 }
0x1273   : > { %v13074_v50 = vadd.f32 %v16916_v55, %v21538_v57  ;;  %13191 = vrot.lane.b32.xlu1 %v13073_v39, %s18336_s14  ;;  %v12968_v48 = vpop.f32.mrb[59].mxu0 }
0x1274   : > { %v13072_v24 = vadd.f32 %v21538_v57, %v12968_v48 }
0x1275   : > { %13193 = vrot.lane.b32.xlu0 %v13074_v50, %s18336_s14 }
0x1277   : > { %13187 = vrot.lane.b32.xlu1 %v13071_v20, %s18336_s14  ;;  %v21925_v20 = vld [vmem:[#allocation26_spill] sm:$0xff] }
0x1278   : > { %v16919_v44 = vpop.f32.mrb[60].mxu0 }
0x1279   : > { %v16977_v45 = vadd.f32 %v16919_v44, %v20881_v62  ;;  %13189 = vrot.lane.b32.xlu0 %v13072_v24, %s18336_s14  ;;  %v12981_v19 = vpop.f32.mrb[61].mxu0  ;;  %v21617_v62 = vpop.permute.xlu0 %13105 }
0x127a   : > { %v16978_v54 = vadd.f32 %v12981_v19, %v20883_v18  ;;  %v16920_v61 = vpop.f32.mrb[62].mxu0 }
0x127b   : > { %v13077_v30 = vadd.f32 %v16977_v45, %v21538_v57  ;;  %v16979_v17 = vadd.f32 %v16920_v61, %v20885_v1  ;;  %v12984_v35 = vpop.f32.mrb[63].mxu0 }
0x127c   : > { %v16980_v26 = vadd.f32 %v12984_v35, %v20887_v5  ;;  %v13075_v51 = vadd.f32 %v16978_v54, %v21538_v57  ;;  %v21927_v35 = vld [vmem:[#allocation24_spill] sm:$0xff] }
0x127d   : > { %v13078_v21 = vadd.f32 %v16979_v17, %v21538_v57  ;;  %13199 = vrot.lane.b32.xlu1 %v13077_v30, %s18336_s14  ;;  %v21631_v58 = vpop.permute.xlu0 %13109 }
0x127e   : > { %v13076_v8 = vadd.f32 %v16980_v26, %v21538_v57 }
0x127f   : > { %13201 = vrot.lane.b32.xlu0 %v13078_v21, %s18336_s14 }
0x1280   : > { %v16923_v18 = vpop.f32.mrb[64].mxu0 }
0x1281   : > { %v16981_v1 = vadd.f32 %v16923_v18, %v20893_v42  ;;  %13195 = vrot.lane.b32.xlu1 %v13075_v51, %s18336_s14  ;;  %v12997_v5 = vpop.f32.mrb[65].mxu0  ;;  %v21641_v31 = vpop.permute.xlu0 %13113 }
0x1282   : > { %v16982_v15 = vadd.f32 %v12997_v5, %v20895_v33  ;;  %v16924_v46 = vpop.f32.mrb[66].mxu0 }
0x1283   : > { %v16983_v2 = vadd.f32 %v16924_v46, %v20897_v59  ;;  %13197 = vrot.lane.b32.xlu0 %v13076_v8, %s18336_s14  ;;  %v13000_v32 = vpop.f32.mrb[67].mxu0  ;;  %v13081_v33 = vadd.f32 %v16981_v1, %v21538_v57  ;;  %v21638_v59 = vpop.permute.xlu1 %13111 }
0x1284   : > { %v13079_v16 = vadd.f32 %v16982_v15, %v21538_v57  ;;  %v16984_v9 = vadd.f32 %v13000_v32, %v20899_v14 }
0x1285   : > { %v13082_v42 = vadd.f32 %v16983_v2, %v21538_v57  ;;  %v21646_v56 = vpop.permute.xlu0 %13117 }
0x1286   : > { %v13080_v12 = vadd.f32 %v16984_v9, %v21538_v57  ;;  %13203 = vrot.lane.b32.xlu1 %v13079_v16, %s18336_s14 }
0x1287   : > { %v21644_v14 = vpop.permute.xlu1 %13115 }
0x1288   : > { %13205 = vrot.lane.b32.xlu0 %v13080_v12, %s18336_s14 }
0x1289   : > { %v21650_v60 = vpop.permute.xlu0 %13121 }
0x128a   : > { %13207 = vrot.lane.b32.xlu1 %v13081_v33, %s18336_s14 }
0x128b   : > { %v21648_v43 = vpop.permute.xlu1 %13119 }
0x128c   : > { %13209 = vrot.lane.b32.xlu0 %v13082_v42, %s18336_s14 }
0x128d   : > { %v21654_v57 = vpop.permute.xlu0 %13125 }
0x128f   : > { %v21652_v13 = vpop.permute.xlu1 %13123 }
0x1291   : > { %v21658_v47 = vpop.permute.xlu0 %13129 }
0x1293   : > { %v21656_v37 = vpop.permute.xlu1 %13127 }
0x1295   : > { %v21662_v7 = vpop.permute.xlu0 %13133 }
0x1297   : > { %v21660_v11 = vpop.permute.xlu1 %13131 }
0x1299   : > { %v21666_v53 = vpop.permute.xlu0 %13137 }
0x129b   : > { %v21664_v22 = vpop.permute.xlu1 %13135 }
0x129d   : > { %v21670_v52 = vpop.permute.xlu0 %13141 }
0x129f   : > { %v21668_v10 = vpop.permute.xlu1 %13139 }
0x12a1   : > { %v21674_v6 = vpop.permute.xlu0 %13145 }
0x12a3   : > { %v21672_v28 = vpop.permute.xlu1 %13143 }
0x12bd   : > { %v13152_v36 = vpop.permute.xlu1 %13151 }
0x12be   : > { %v13213_v39 = vadd.f32 1.0, %v13152_v36 }
0x12bf   : > { %v13154_v63 = vpop.permute.xlu0 %13153 }
0x12c0   : > { %v13245_v55 = vmul.f32 %v13213_v39, %v21571_v25  ;;  %v13214_v50 = vadd.f32 1.0, %v13154_v63  ;;  %v21926_v25 = vld [vmem:[#allocation30_spill] sm:$0xff] }
0x12c1   : > { %v13148_v48 = vpop.permute.xlu1 %13147 }
0x12c2   : > { %v13277_v24 = vadd.f32 %v13245_v55, %v21925_v20  ;;  %v13246_v44 = vmul.f32 %v13214_v50, %v21575_v34  ;;  %v13211_v45 = vadd.f32 1.0, %v13148_v48  ;;  %v21928_v34 = vld [vmem:[#allocation25_spill] sm:$0xff] }
0x12c3   : > { %v13150_v19 = vpop.permute.xlu0 %13149 }
0x12c4   : > { %13309 = vst [vmem:[%s21682_s18 + $0x10] sm:$0xff] %v13277_v24  ;;  %v13278_v54 = vadd.f32 %v13246_v44, %v21926_v25  ;;  %v13243_v61 = vmul.f32 %v13211_v45, %v21565_v49  ;;  %v13212_v30 = vadd.f32 1.0, %v13150_v19  ;;  %v21929_v49 = vld [vmem:[#allocation29_spill] sm:$0xff] }
0x12c5   : > { %v13160_v17 = vpop.permute.xlu1 %13159 }
0x12c6   : > { %13310 = vst [vmem:[%s21682_s18 + $0x18] sm:$0xff] %v13278_v54  ;;  %v13275_v26 = vadd.f32 %v13243_v61, %v21927_v35  ;;  %v13244_v21 = vmul.f32 %v13212_v30, %v21561_v27  ;;  %v13217_v51 = vadd.f32 1.0, %v13160_v17  ;;  %v21930_v27 = vld [vmem:[#allocation31_spill] sm:$0xff] }
0x12c7   : > { %v13162_v18 = vpop.permute.xlu0 %13161 }
0x12c8   : > { %13307 = vst [vmem:[%s21682_s18] sm:$0xff] %v13275_v26  ;;  %v13276_v8 = vadd.f32 %v13244_v21, %v21928_v34  ;;  %v13249_v1 = vmul.f32 %v13217_v51, %v21591_v3  ;;  %v13218_v5 = vadd.f32 1.0, %v13162_v18  ;;  %v21931_v3 = vld [vmem:[#allocation27_spill] sm:$0xff] }
0x12c9   : > { %v13156_v15 = vpop.permute.xlu1 %13155 }
0x12ca   : > { %13308 = vst [vmem:[%s21682_s18 + $0x8] sm:$0xff] %v13276_v8  ;;  %v13281_v46 = vadd.f32 %v13249_v1, %v21929_v49  ;;  %v13250_v2 = vmul.f32 %v13218_v5, %v21595_v29  ;;  %v13215_v32 = vadd.f32 1.0, %v13156_v15  ;;  %v21932_v29 = vld [vmem:[#allocation28_spill] sm:$0xff] }
0x12cb   : > { %v13158_v16 = vpop.permute.xlu0 %13157 }
0x12cc   : > { %13313 = vst [vmem:[%s21682_s18 + $0x30] sm:$0xff] %v13281_v46  ;;  %v13282_v9 = vadd.f32 %v13250_v2, %v21930_v27  ;;  %v13247_v42 = vmul.f32 %v13215_v32, %v21581_v23  ;;  %v13216_v12 = vadd.f32 1.0, %v13158_v16  ;;  %v21933_v23 = vld [vmem:[#allocation34_spill] sm:$0xff] }
0x12cd   : > { %v13168_v33 = vpop.permute.xlu1 %13167 }
0x12ce   : > { %13314 = vst [vmem:[%s21682_s18 + $0x38] sm:$0xff] %v13282_v9  ;;  %v13279_v36 = vadd.f32 %v13247_v42, %v21931_v3  ;;  %v13248_v39 = vmul.f32 %v13216_v12, %v21585_v38  ;;  %v13221_v63 = vadd.f32 1.0, %v13168_v33  ;;  %v21934_v38 = vld [vmem:[#allocation35_spill] sm:$0xff] }
0x12cf   : > { %v13170_v55 = vpop.permute.xlu0 %13169 }
0x12d0   : > { %13311 = vst [vmem:[%s21682_s18 + $0x20] sm:$0xff] %v13279_v36  ;;  %v13280_v50 = vadd.f32 %v13248_v39, %v21932_v29  ;;  %v13253_v48 = vmul.f32 %v13221_v63, %v21613_v0  ;;  %v13222_v20 = vadd.f32 1.0, %v13170_v55  ;;  %v21935_v0 = vld [vmem:[#allocation32_spill] sm:$0xff] }
0x12d1   : > { %v13164_v24 = vpop.permute.xlu1 %13163 }
0x12d2   : > { %13312 = vst [vmem:[%s21682_s18 + $0x28] sm:$0xff] %v13280_v50  ;;  %v13285_v44 = vadd.f32 %v13253_v48, %v21933_v23  ;;  %v13254_v45 = vmul.f32 %v13222_v20, %v21617_v62  ;;  %v13219_v19 = vadd.f32 1.0, %v13164_v24  ;;  %v21936_v62 = vld [vmem:[#allocation33_spill] sm:$0xff] }
0x12d3   : > { %v13166_v25 = vpop.permute.xlu0 %13165 }
0x12d4   : > { %13317 = vst [vmem:[%s21682_s18 + $0x50] sm:$0xff] %v13285_v44  ;;  %v13286_v54 = vadd.f32 %v13254_v45, %v21934_v38  ;;  %v13251_v61 = vmul.f32 %v13219_v19, %v21601_v40  ;;  %v13220_v30 = vadd.f32 1.0, %v13166_v25  ;;  %v21937_v40 = vld [vmem:[#allocation5_spill] sm:$0xff] }
0x12d5   : > { %v13176_v17 = vpop.permute.xlu1 %13175 }
0x12d6   : > { %13318 = vst [vmem:[%s21682_s18 + $0x58] sm:$0xff] %v13286_v54  ;;  %v13283_v35 = vadd.f32 %v13251_v61, %v21935_v0  ;;  %v13252_v26 = vmul.f32 %v13220_v30, %v21605_v41  ;;  %v13225_v21 = vadd.f32 1.0, %v13176_v17  ;;  %v21938_v41 = vld [vmem:[#allocation7_spill] sm:$0xff] }
0x12d7   : > { %v13178_v51 = vpop.permute.xlu0 %13177 }
0x12d8   : > { %13315 = vst [vmem:[%s21682_s18 + $0x40] sm:$0xff] %v13283_v35  ;;  %v13284_v18 = vadd.f32 %v13252_v26, %v21936_v62  ;;  %v13257_v34 = vmul.f32 %v13225_v21, %v21638_v59  ;;  %v13226_v8 = vadd.f32 1.0, %v13178_v51  ;;  %v21939_v59 = vld [vmem:[#allocation4_spill] sm:$0xff] }
0x12d9   : > { %v13172_v1 = vpop.permute.xlu1 %13171 }
0x12da   : > { %13316 = vst [vmem:[%s21682_s18 + $0x48] sm:$0xff] %v13284_v18  ;;  %v13289_v5 = vadd.f32 %v13257_v34, %v21937_v40  ;;  %v13258_v15 = vmul.f32 %v13226_v8, %v21641_v31  ;;  %v13223_v49 = vadd.f32 1.0, %v13172_v1  ;;  %v21940_v31 = vld [vmem:[#allocation6_spill] sm:$0xff]  ;;  %v21947_v34 = vld [vmem:[#allocation12_spill] sm:$0xff] }
0x12db   : > { %v13174_v46 = vpop.permute.xlu0 %13173  ;;  %v21948_v40 = vld [vmem:[#allocation14_spill] sm:$0xff] }
0x12dc   : > { %13321 = vst [vmem:[%s21682_s18 + $0x70] sm:$0xff] %v13289_v5  ;;  %v13290_v2 = vadd.f32 %v13258_v15, %v21938_v41  ;;  %v13255_v32 = vmul.f32 %v13223_v49, %v21625_v4  ;;  %v13224_v16 = vadd.f32 1.0, %v13174_v46  ;;  %v21941_v4 = vld [vmem:[#allocation9_spill] sm:$0xff] }
0x12dd   : > { %v13184_v27 = vpop.permute.xlu1 %13183  ;;  %v21949_v41 = vld [vmem:[#allocation17_spill] sm:$0xff] }
0x12de   : > { %13322 = vst [vmem:[%s21682_s18 + $0x78] sm:$0xff] %v13290_v2  ;;  %v13287_v9 = vadd.f32 %v13255_v32, %v21939_v59  ;;  %v13256_v42 = vmul.f32 %v13224_v16, %v21631_v58  ;;  %v13229_v12 = vadd.f32 1.0, %v13184_v27  ;;  %v21942_v58 = vld [vmem:[#allocation11_spill] sm:$0xff] }
0x12df   : > { %v13186_v33 = vpop.permute.xlu0 %13185  ;;  %v21950_v27 = vld [vmem:[#allocation19_spill] sm:$0xff] }
0x12e0   : > { %13319 = vst [vmem:[%s21682_s18 + $0x60] sm:$0xff] %v13287_v9  ;;  %v13288_v3 = vadd.f32 %v13256_v42, %v21940_v31  ;;  %v13261_v36 = vmul.f32 %v13229_v12, %v21648_v43  ;;  %v13230_v39 = vadd.f32 1.0, %v13186_v33  ;;  %v21943_v43 = vld [vmem:[#allocation8_spill] sm:$0xff] }
0x12e1   : > { %v13180_v63 = vpop.permute.xlu1 %13179  ;;  %v21951_v12 = vld [vmem:[#allocation16_spill] sm:$0xff] }
0x12e2   : > { %13320 = vst [vmem:[%s21682_s18 + $0x68] sm:$0xff] %v13288_v3  ;;  %v13293_v55 = vadd.f32 %v13261_v36, %v21941_v4  ;;  %v13262_v29 = vmul.f32 %v13230_v39, %v21650_v60  ;;  %v13227_v50 = vadd.f32 1.0, %v13180_v63  ;;  %v21944_v60 = vld [vmem:[#allocation10_spill] sm:$0xff] }
0x12e3   : > { %v13182_v48 = vpop.permute.xlu0 %13181 }
0x12e4   : > { %13325 = vst [vmem:[%s21682_s18 + $0x90] sm:$0xff] %v13293_v55  ;;  %v13294_v20 = vadd.f32 %v13262_v29, %v21942_v58  ;;  %v13259_v24 = vmul.f32 %v13227_v50, %v21644_v14  ;;  %v13228_v23 = vadd.f32 1.0, %v13182_v48  ;;  %v21945_v14 = vld [vmem:[#allocation13_spill] sm:$0xff]  ;;  %v21953_v55 = vld [vmem:[#allocation20_spill] sm:$0xff]  ;;  %v21954_v58 = vld [vmem:[#allocation22_spill] sm:$0xff] }
0x12e5   : > { %v13192_v44 = vpop.permute.xlu1 %13191 }
0x12e6   : > { %13326 = vst [vmem:[%s21682_s18 + $0x98] sm:$0xff] %v13294_v20  ;;  %v13291_v45 = vadd.f32 %v13259_v24, %v21943_v43  ;;  %v13260_v19 = vmul.f32 %v13228_v23, %v21646_v56  ;;  %v13233_v25 = vadd.f32 1.0, %v13192_v44  ;;  %v21946_v56 = vld [vmem:[#allocation15_spill] sm:$0xff]  ;;  %v21955_v44 = vld [vmem:[#allocation21_spill] sm:$0xff] }
0x12e7   : > { %v13194_v38 = vpop.permute.xlu0 %13193 }
0x12e8   : > { %13323 = vst [vmem:[%s21682_s18 + $0x80] sm:$0xff] %v13291_v45  ;;  %v13292_v54 = vadd.f32 %v13260_v19, %v21944_v60  ;;  %v13265_v61 = vmul.f32 %v13233_v25, %v21656_v37  ;;  %v13234_v30 = vadd.f32 1.0, %v13194_v38  ;;  %v21956_v45 = vld [vmem:[#allocation23_spill] sm:$0xff] }
0x12e9   : > { %v13188_v17 = vpop.permute.xlu1 %13187 }
0x12ea   : > { %13324 = vst [vmem:[%s21682_s18 + $0x88] sm:$0xff] %v13292_v54  ;;  %v13297_v0 = vadd.f32 %v13265_v61, %v21945_v14  ;;  %v13266_v35 = vmul.f32 %v13234_v30, %v21658_v47  ;;  %v13231_v26 = vadd.f32 1.0, %v13188_v17 }
0x12eb   : > { %v13190_v21 = vpop.permute.xlu0 %13189 }
0x12ec   : > { %13329 = vst [vmem:[%s21682_s18 + $0xb0] sm:$0xff] %v13297_v0  ;;  %v13298_v51 = vadd.f32 %v13266_v35, %v21946_v56  ;;  %v13263_v62 = vmul.f32 %v13231_v26, %v21652_v13  ;;  %v13232_v18 = vadd.f32 1.0, %v13190_v21 }
0x12ee   : > { %13330 = vst [vmem:[%s21682_s18 + $0xb8] sm:$0xff] %v13298_v51  ;;  %v13295_v37 = vadd.f32 %v13263_v62, %v21947_v34  ;;  %v13264_v8 = vmul.f32 %v13232_v18, %v21654_v57 }
0x12ef   : > { %v13200_v1 = vpop.permute.xlu1 %13199 }
0x12f0   : > { %13327 = vst [vmem:[%s21682_s18 + $0xa0] sm:$0xff] %v13295_v37  ;;  %v13296_v5 = vadd.f32 %v13264_v8, %v21948_v40  ;;  %v13237_v47 = vadd.f32 1.0, %v13200_v1 }
0x12f1   : > { %v13202_v15 = vpop.permute.xlu0 %13201 }
0x12f2   : > { %13328 = vst [vmem:[%s21682_s18 + $0xa8] sm:$0xff] %v13296_v5  ;;  %v13269_v49 = vmul.f32 %v13237_v47, %v21664_v22  ;;  %v13238_v46 = vadd.f32 1.0, %v13202_v15 }
0x12f3   : > { %v13196_v13 = vpop.permute.xlu1 %13195 }
0x12f4   : > { %v13301_v2 = vadd.f32 %v13269_v49, %v21949_v41  ;;  %v13270_v32 = vmul.f32 %v13238_v46, %v21666_v53  ;;  %v13235_v16 = vadd.f32 1.0, %v13196_v13  ;;  %v21952_v53 = vld [vmem:[#allocation18_spill] sm:$0xff] }
0x12f5   : > { %v13198_v57 = vpop.permute.xlu0 %13197 }
0x12f6   : > { %13333 = vst [vmem:[%s21682_s18 + $0xd0] sm:$0xff] %v13301_v2  ;;  %v13302_v59 = vadd.f32 %v13270_v32, %v21950_v27  ;;  %v13267_v9 = vmul.f32 %v13235_v16, %v21660_v11  ;;  %v13236_v42 = vadd.f32 1.0, %v13198_v57 }
0x12f8   : > { %13334 = vst [vmem:[%s21682_s18 + $0xd8] sm:$0xff] %v13302_v59  ;;  %v13299_v22 = vadd.f32 %v13267_v9, %v21951_v12  ;;  %v13268_v33 = vmul.f32 %v13236_v42, %v21662_v7  ;;  %v13204_v31 = vpop.permute.xlu1 %13203 }
0x12f9   : > { %v13239_v3 = vadd.f32 1.0, %v13204_v31 }
0x12fa   : > { %13331 = vst [vmem:[%s21682_s18 + $0xc0] sm:$0xff] %v13299_v22  ;;  %v13300_v36 = vadd.f32 %v13268_v33, %v21952_v53  ;;  %v13206_v39 = vpop.permute.xlu0 %13205 }
0x12fb   : > { %v13271_v63 = vmul.f32 %v13239_v3, %v21668_v10  ;;  %v13240_v4 = vadd.f32 1.0, %v13206_v39 }
0x12fc   : > { %13332 = vst [vmem:[%s21682_s18 + $0xc8] sm:$0xff] %v13300_v36  ;;  %v13208_v11 = vpop.permute.xlu1 %13207 }
0x12fd   : > { %v13303_v29 = vadd.f32 %v13271_v63, %v21953_v55  ;;  %v13272_v50 = vmul.f32 %v13240_v4, %v21670_v52  ;;  %v13241_v48 = vadd.f32 1.0, %v13208_v11 }
0x12fe   : > { %v13210_v7 = vpop.permute.xlu0 %13209 }
0x12ff   : > { %13335 = vst [vmem:[%s21682_s18 + $0xe0] sm:$0xff] %v13303_v29  ;;  %v13304_v20 = vadd.f32 %v13272_v50, %v21954_v58  ;;  %v13273_v24 = vmul.f32 %v13241_v48, %v21672_v28  ;;  %v13242_v23 = vadd.f32 1.0, %v13210_v7 }
0x1301   : > { %13336 = vst [vmem:[%s21682_s18 + $0xe8] sm:$0xff] %v13304_v20  ;;  %v13305_v43 = vadd.f32 %v13273_v24, %v21955_v44  ;;  %v13274_v10 = vmul.f32 %v13242_v23, %v21674_v6 }
0x1303   : > { %13337 = vst [vmem:[%s21682_s18 + $0xf0] sm:$0xff] %v13305_v43  ;;  %v13306_v19 = vadd.f32 %v13274_v10, %v21956_v45 }
0x1305   : > { %13338 = vst [vmem:[%s21682_s18 + $0xf8] sm:$0xff] %v13306_v19 }
0x1306 PF: > { %s23_s25 = sadd.s32 1, %s18332_s25  }
0x1307   : > { %p20_p4 = scmp.ge.s32.totalorder %s23_s25, 4  }
0x1309   :  { %22 = sbr.rel (!%p20_p4) target bundleno = 1 (0x1), region = 146 }

</bundles_post_ra>
